<compile_context>
chip_gen: v7x
topology: tpu7x:2x2x1
jax: 0.10.0
libtpu: 0.0.40
codegen_flags: <defaults>
</compile_context>

<pallas_src>
import functools

import numpy as np
import jax
import jax.numpy as jnp
from jax.experimental import pallas as pl
from jax.experimental.pallas import tpu as pltpu


# ----------------------------- compiler params -----------------------------

@functools.lru_cache(maxsize=None)
def _vmem_limit_bytes():
    """Per-generation scoped-VMEM budget (review: don't hardcode 32 MiB)."""
    try:
        cap = int(pltpu.get_tpu_info().vmem_capacity_bytes)
    except Exception:  # interpret mode / unknown chip / older jax
        cap = 64 * 1024 * 1024
    # leave double-buffer headroom; never ask for more than ~100 MiB (v5e/v6e),
    # and stay well under the 64 MiB physical VMEM of a v7x TensorCore.
    return int(min(max(cap - (16 << 20), 16 << 20), 100 << 20))


def _compiler_params():
    return pltpu.CompilerParams(dimension_semantics=("parallel",),
                                vmem_limit_bytes=_vmem_limit_bytes())


# ----------------------------- in-kernel helpers -----------------------------

# Interior rows of the halo scratch start at an 8-aligned sublane offset so the
# big interior store is tile-aligned (the two 1-row halo zero stores are tiny).
_HALO_TOP = 8


def _halo_store(xs_ref, interior):
    """Write `interior` (H, W*C) into the halo scratch; zero ONLY the two border
    rows (never the whole buffer).  Scratch height is H + _HALO_TOP + 1."""
    H, WC = interior.shape
    z = jnp.zeros((1, WC), xs_ref.dtype)
    xs_ref[_HALO_TOP - 1:_HALO_TOP, :] = z
    xs_ref[_HALO_TOP + H:_HALO_TOP + H + 1, :] = z
    xs_ref[_HALO_TOP:_HALO_TOP + H, :] = interior.astype(xs_ref.dtype)


def _banded_conv3x3(xs_ref, w_ref, H):
    """3x3 conv as 3 lane-dense MXU matmuls (one per kernel row, K = W*Cin).

    The kx taps and the W-dim zero padding are folded into host-precomputed banded
    weight matrices w_ref[ky] of shape (W*Cin, W*Cout); the H-dim padding comes from
    the zeroed halo rows of the scratch.  Returns an (H, W*Cout) f32 accumulator.
    """
    acc = jnp.dot(xs_ref[_HALO_TOP - 1:_HALO_TOP - 1 + H, :], w_ref[0],
                  preferred_element_type=jnp.float32)
    acc = acc + jnp.dot(xs_ref[_HALO_TOP:_HALO_TOP + H, :], w_ref[1],
                        preferred_element_type=jnp.float32)
    acc = acc + jnp.dot(xs_ref[_HALO_TOP + 1:_HALO_TOP + 1 + H, :], w_ref[2],
                        preferred_element_type=jnp.float32)
    return acc


# ----------------------------- Pallas kernels -----------------------------

def _inc_kernel(x_ref, w1_ref, b1_ref, w2_ref, s2_ref, t2_ref, o_ref, xs1, xs2):
    """inconv: Conv3x3(bias) -> SingleConv(BN,ReLU), fully fused (1 launch)."""
    H = o_ref.shape[1]
    _halo_store(xs1, x_ref[0])
    h1 = _banded_conv3x3(xs1, w1_ref, H) + b1_ref[...]
    _halo_store(xs2, h1)
    h2 = _banded_conv3x3(xs2, w2_ref, H)
    out = jnp.maximum(h2 * s2_ref[...] + t2_ref[...], 0.0)
    o_ref[...] = out.reshape(o_ref.shape).astype(o_ref.dtype)


def _down_kernel(x_ref, re_ref, ro_ref, ce_ref, co_ref,
                 w1_ref, s1_ref, t1_ref, w2_ref, s2_ref, t2_ref,
                 o_ref, xs1, xs2):
    """down block: MaxPool2d(2) -> SingleConv -> SingleConv, fully fused."""
    H = o_ref.shape[1]
    x = x_ref[0]                                             # (2H, 2W*Cin) bf16
    # MaxPool2d(2) via 0/1 selection matmuls (exact): keeps the data lane-dense and
    # puts the decimation on the otherwise idle MXU instead of strided sublane
    # reads / lane relayouts.
    r0 = jnp.dot(re_ref[...], x, preferred_element_type=jnp.float32)
    r1 = jnp.dot(ro_ref[...], x, preferred_element_type=jnp.float32)
    rm = jnp.maximum(r0, r1).astype(jnp.bfloat16)            # (H, 2W*Cin) row-pair max
    c0 = jnp.dot(rm, ce_ref[...], preferred_element_type=jnp.float32)
    c1 = jnp.dot(rm, co_ref[...], preferred_element_type=jnp.float32)
    pooled = jnp.maximum(c0, c1)                             # (H, W*Cin) f32
    _halo_store(xs1, pooled)
    h1 = _banded_conv3x3(xs1, w1_ref, H)
    h1 = jnp.maximum(h1 * s1_ref[...] + t1_ref[...], 0.0)
    _halo_store(xs2, h1)
    h2 = _banded_conv3x3(xs2, w2_ref, H)
    out = jnp.maximum(h2 * s2_ref[...] + t2_ref[...], 0.0)
    o_ref[...] = out.reshape(o_ref.shape).astype(o_ref.dtype)


def _up_body(x_ref, skip_ref, r_ref, m_ref, bu_ref, wa_ref, wb_ref,
             s1_ref, t1_ref, w2_ref, s2_ref, t2_ref, sa, sb, sc):
    """Shared up-block body: bilinear x2 + 1x1 conv + cat-conv + conv (f32 out)."""
    Ho = skip_ref.shape[1]
    # Bilinear x2 (align_corners=True) as two separable matmuls; the up-block 1x1
    # conv (+bias) is folded into the column matrix m = kron(C, w1x1).  The deep
    # feature map is read once, at low resolution.
    t = jnp.dot(r_ref[...], x_ref[0], preferred_element_type=jnp.float32)
    u = jnp.dot(t.astype(jnp.bfloat16), m_ref[...],
                preferred_element_type=jnp.float32) + bu_ref[...]     # (Ho, Wo*Cout)
    # cat([skip, up], channels) -> SingleConv: concat fused away via split banded
    # weights (two accumulating matmul groups).
    _halo_store(sa, skip_ref[0])
    _halo_store(sb, u)
    h1 = _banded_conv3x3(sa, wa_ref, Ho) + _banded_conv3x3(sb, wb_ref, Ho)
    h1 = jnp.maximum(h1 * s1_ref[...] + t1_ref[...], 0.0)
    _halo_store(sc, h1)
    h2 = _banded_conv3x3(sc, w2_ref, Ho)
    return jnp.maximum(h2 * s2_ref[...] + t2_ref[...], 0.0)


def _up_kernel(x_ref, skip_ref, r_ref, m_ref, bu_ref, wa_ref, wb_ref,
               s1_ref, t1_ref, w2_ref, s2_ref, t2_ref, o_ref, sa, sb, sc):
    out = _up_body(x_ref, skip_ref, r_ref, m_ref, bu_ref, wa_ref, wb_ref,
                   s1_ref, t1_ref, w2_ref, s2_ref, t2_ref, sa, sb, sc)
    o_ref[...] = out.reshape(o_ref.shape).astype(o_ref.dtype)


def _up_proj_kernel(x_ref, skip_ref, r_ref, m_ref, bu_ref, wa_ref, wb_ref,
                    s1_ref, t1_ref, w2_ref, s2_ref, t2_ref, p_ref, bp_ref,
                    o_ref, sa, sb, sc):
    """Last up block with the final outc 1x1 conv fused into the epilogue
    (block-diagonal kron(I_W, w_outc) projection)."""
    out = _up_body(x_ref, skip_ref, r_ref, m_ref, bu_ref, wa_ref, wb_ref,
                   s1_ref, t1_ref, w2_ref, s2_ref, t2_ref, sa, sb, sc)
    proj = jnp.dot(out.astype(jnp.bfloat16), p_ref[...],
                   preferred_element_type=jnp.float32) + bp_ref[...]
    o_ref[...] = proj.reshape(o_ref.shape)


# ----------------------------- pallas_call wrappers -----------------------------

def _act_spec(shape):
    # Whole-image (1, H, W*C) block; minor dim is W*C (lane-dense).
    return pl.BlockSpec((1,) + tuple(shape[1:]), lambda n: (n, 0, 0))


def _const_spec(arr):
    zeros = (0,) * arr.ndim
    return pl.BlockSpec(arr.shape, lambda n, z=zeros: z)


def inc_block(x, p):
    N, H, WCin = x.shape
    WC1 = p['w1'].shape[2]
    return pl.pallas_call(
        _inc_kernel,
        out_shape=jax.ShapeDtypeStruct((N, H, WC1), jnp.bfloat16),
        grid=(N,),
        in_specs=[_act_spec(x.shape),
                  _const_spec(p['w1']), _const_spec(p['b1']),
                  _const_spec(p['w2']), _const_spec(p['s2']), _const_spec(p['t2'])],
        out_specs=pl.BlockSpec((1, H, WC1), lambda n: (n, 0, 0)),
        scratch_shapes=[pltpu.VMEM((H + _HALO_TOP + 1, WCin), jnp.bfloat16),
                        pltpu.VMEM((H + _HALO_TOP + 1, WC1), jnp.bfloat16)],
        compiler_params=_compiler_params(),
    )(x, p['w1'], p['b1'], p['w2'], p['s2'], p['t2'])


def down_block(x, p):
    N, H2, _ = x.shape
    H = H2 // 2
    WCin = p['w1'].shape[1]
    WCmid = p['w1'].shape[2]
    WCout = p['w2'].shape[2]
    return pl.pallas_call(
        _down_kernel,
        out_shape=jax.ShapeDtypeStruct((N, H, WCout), jnp.bfloat16),
        grid=(N,),
        in_specs=[_act_spec(x.shape),
                  _const_spec(p['re']), _const_spec(p['ro']),
                  _const_spec(p['ce']), _const_spec(p['co']),
                  _const_spec(p['w1']), _const_spec(p['s1']), _const_spec(p['t1']),
                  _const_spec(p['w2']), _const_spec(p['s2']), _const_spec(p['t2'])],
        out_specs=pl.BlockSpec((1, H, WCout), lambda n: (n, 0, 0)),
        scratch_shapes=[pltpu.VMEM((H + _HALO_TOP + 1, WCin), jnp.bfloat16),
                        pltpu.VMEM((H + _HALO_TOP + 1, WCmid), jnp.bfloat16)],
        compiler_params=_compiler_params(),
    )(x, p['re'], p['ro'], p['ce'], p['co'],
      p['w1'], p['s1'], p['t1'], p['w2'], p['s2'], p['t2'])


def up_block(x, skip, p, proj=False):
    N, Ho, WCs = skip.shape
    WCmid = p['w2'].shape[1]
    args = [x, skip, p['r'], p['m'], p['bu'], p['wa'], p['wb'],
            p['s1'], p['t1'], p['w2'], p['s2'], p['t2']]
    in_specs = [_act_spec(x.shape), _act_spec(skip.shape),
                _const_spec(p['r']), _const_spec(p['m']), _const_spec(p['bu']),
                _const_spec(p['wa']), _const_spec(p['wb']),
                _const_spec(p['s1']), _const_spec(p['t1']),
                _const_spec(p['w2']), _const_spec(p['s2']), _const_spec(p['t2'])]
    scratch = [pltpu.VMEM((Ho + _HALO_TOP + 1, WCs), jnp.bfloat16),
               pltpu.VMEM((Ho + _HALO_TOP + 1, WCs), jnp.bfloat16),
               pltpu.VMEM((Ho + _HALO_TOP + 1, WCmid), jnp.bfloat16)]
    if proj:
        kernel = _up_proj_kernel
        args += [p['p'], p['bp']]
        in_specs += [_const_spec(p['p']), _const_spec(p['bp'])]
        WCo = p['p'].shape[1]
        out_shape = jax.ShapeDtypeStruct((N, Ho, WCo), jnp.float32)
        out_spec = pl.BlockSpec((1, Ho, WCo), lambda n: (n, 0, 0))
    else:
        kernel = _up_kernel
        out_shape = jax.ShapeDtypeStruct((N, Ho, WCs), jnp.bfloat16)
        out_spec = pl.BlockSpec((1, Ho, WCs), lambda n: (n, 0, 0))
    return pl.pallas_call(
        kernel, out_shape=out_shape, grid=(N,),
        in_specs=in_specs, out_specs=out_spec,
        scratch_shapes=scratch,
        compiler_params=_compiler_params(),
    )(*args)


# ----------------------------- parameter preparation -----------------------------

def _np_normal(key, shape, scale):
    return np.asarray(jax.random.normal(key, shape, jnp.float32)) * scale


def _bn_fold_np(key, c, eps=1e-5):
    k1, k2, k3, k4 = jax.random.split(key, 4)
    gamma = np.asarray(jax.random.uniform(k1, (c,), jnp.float32, 0.5, 1.5))
    beta = 0.1 * np.asarray(jax.random.normal(k2, (c,), jnp.float32))
    mean = 0.1 * np.asarray(jax.random.normal(k3, (c,), jnp.float32))
    var = np.asarray(jax.random.uniform(k4, (c,), jnp.float32, 0.5, 1.5))
    scale = gamma / np.sqrt(var + eps)
    shift = beta - mean * scale
    return scale, shift


def _banded(w33, w_sp):
    """(3,3,Cin,Cout) conv weight -> (3, W*Cin, W*Cout) banded matrices (one per
    kernel row): all kx taps and the W-dim zero padding folded into K."""
    cin, cout = w33.shape[2], w33.shape[3]
    b = np.zeros((3, w_sp * cin, w_sp * cout), np.float32)
    for ky in range(3):
        for kx in range(3):
            for wo in range(w_sp):
                wi = wo + kx - 1
                if 0 <= wi < w_sp:
                    b[ky, wi * cin:(wi + 1) * cin,
                      wo * cout:(wo + 1) * cout] = w33[ky, kx]
    return b


def _bilinear_matrix(n_in, n_out):
    """(n_out, n_in) interpolation matrix matching bilinear align_corners=True."""
    m = np.zeros((n_out, n_in), np.float32)
    if n_in == 1:
        m[:, 0] = 1.0
        return m
    src = np.arange(n_out, dtype=np.float64) * (n_in - 1) / (n_out - 1)
    i0 = np.clip(np.floor(src).astype(np.int64), 0, n_in - 1)
    i1 = np.minimum(i0 + 1, n_in - 1)
    f = (src - i0).astype(np.float32)
    np.add.at(m, (np.arange(n_out), i0), 1.0 - f)
    np.add.at(m, (np.arange(n_out), i1), f)
    return m


def _rows(v, w_sp):
    """Per-channel vector tiled across W -> (1, W*C) f32 row (matches flattened lanes)."""
    return jnp.asarray(np.tile(np.asarray(v, np.float32), w_sp)[None, :], jnp.float32)


def _bf16(a):
    return jnp.asarray(a, jnp.bfloat16)


def _single_conv(key, cin, cout, w_sp):
    kw, kb = jax.random.split(key)
    w = _np_normal(kw, (3, 3, cin, cout), 1.0 / np.sqrt(9.0 * cin))
    scale, shift = _bn_fold_np(kb, cout)
    return {'w': _bf16(_banded(w, w_sp)), 's': _rows(scale, w_sp), 't': _rows(shift, w_sp)}


def init_unet_params(key, in_ch, num_classes, base_ch, H, W):
    assert H % 16 == 0 and W % 16 == 0, "4 pooling levels need H, W divisible by 16"
    chans = [base_ch * (1 << i) for i in range(5)]
    cin_pad = ((in_ch + 3) // 4) * 4          # input channels zero-padded for lane density
    keys = iter(jax.random.split(key, 64))
    p = {}

    # inconv: Conv3x3(bias) -> SingleConv
    w1 = np.zeros((3, 3, cin_pad, base_ch), np.float32)
    w1[:, :, :in_ch, :] = _np_normal(next(keys), (3, 3, in_ch, base_ch),
                                     1.0 / np.sqrt(9.0 * in_ch))
    b1 = 0.01 * np.asarray(jax.random.normal(next(keys), (base_ch,), jnp.float32))
    sc2 = _single_conv(next(keys), base_ch, base_ch, W)
    p['inc'] = {'w1': _bf16(_banded(w1, W)), 'b1': _rows(b1, W),
                'w2': sc2['w'], 's2': sc2['s'], 't2': sc2['t']}

    # encoder: MaxPool2d(2) -> SingleConv -> SingleConv
    for i in range(1, 5):
        hi, wi = H >> i, W >> i
        cin, cout = chans[i - 1], chans[i]
        c1 = _single_conv(next(keys), cin, cout, wi)
        c2 = _single_conv(next(keys), cout, cout, wi)
        eye_c = np.eye(cin, dtype=np.float32)
        p[f'down{i}'] = {
            're': _bf16(np.eye(2 * hi, dtype=np.float32)[0::2]),      # (hi, 2hi)
            'ro': _bf16(np.eye(2 * hi, dtype=np.float32)[1::2]),
            'ce': _bf16(np.kron(np.eye(2 * wi, dtype=np.float32)[:, 0::2], eye_c)),
            'co': _bf16(np.kron(np.eye(2 * wi, dtype=np.float32)[:, 1::2], eye_c)),
            'w1': c1['w'], 's1': c1['s'], 't1': c1['t'],
            'w2': c2['w'], 's2': c2['s'], 't2': c2['t'],
        }

    # decoder: bilinear x2 -> Conv1x1 -> cat -> SingleConv -> SingleConv
    for i in range(1, 5):
        hd, wd = H >> (5 - i), W >> (5 - i)            # deep-feature spatial dims
        ho, wo = 2 * hd, 2 * wd
        cd, cs = chans[5 - i], chans[4 - i]
        k1, k2, k3, k4, k5 = jax.random.split(next(keys), 5)
        w1x1 = _np_normal(k1, (cd, cs), 1.0 / np.sqrt(float(cd)))
        b1x1 = 0.01 * np.asarray(jax.random.normal(k2, (cs,), jnp.float32))
        wcat = _np_normal(k3, (3, 3, 2 * cs, cs), 1.0 / np.sqrt(9.0 * 2 * cs))
        s1, t1 = _bn_fold_np(k4, cs)
        c2 = _single_conv(k5, cs, cs, wo)
        rmat = _bilinear_matrix(hd, ho)                 # (ho, hd)
        cmat = _bilinear_matrix(wd, wo).T               # (wd, wo)
        p[f'up{i}'] = {
            'r': _bf16(rmat),
            'm': _bf16(np.kron(cmat, w1x1)),            # 1x1 conv folded into col interp
            'bu': _rows(b1x1, wo),
            'wa': _bf16(_banded(wcat[:, :, :cs, :], wo)),   # skip half of the cat conv
            'wb': _bf16(_banded(wcat[:, :, cs:, :], wo)),   # upsampled half
            's1': _rows(s1, wo), 't1': _rows(t1, wo),
            'w2': c2['w'], 's2': c2['s'], 't2': c2['t'],
        }

    # outc 1x1 conv, folded into the last up block's epilogue (block-diagonal).
    kw, kb = jax.random.split(next(keys))
    wout = _np_normal(kw, (base_ch, num_classes), 1.0 / np.sqrt(float(base_ch)))
    bout = 0.01 * np.asarray(jax.random.normal(kb, (num_classes,), jnp.float32))
    p['up4']['p'] = _bf16(np.kron(np.eye(W, dtype=np.float32), wout))
    p['up4']['bp'] = _rows(bout, W)
    return p


# ----------------------------- forward -----------------------------

def unet_forward(params, x_nchw):
    N, in_ch, H, W = x_nchw.shape
    cin_pad = ((in_ch + 3) // 4) * 4
    x = jnp.transpose(x_nchw, (0, 2, 3, 1))                      # NHWC
    if cin_pad != in_ch:
        x = jnp.pad(x, ((0, 0), (0, 0), (0, 0), (0, cin_pad - in_ch)))
    x = x.reshape(N, H, W * cin_pad).astype(jnp.bfloat16)        # (N, H, W*C) lane-dense

    x1 = inc_block(x, params['inc'])
    feats = [x1]
    h = x1
    for i in range(1, 5):
        h = down_block(h, params[f'down{i}'])
        feats.append(h)

    out = feats[4]
    for i in range(1, 5):
        out = up_block(out, feats[4 - i], params[f'up{i}'], proj=(i == 4))

    ncls = out.shape[2] // W
    out = out.reshape(N, H, W, ncls)
    return jnp.transpose(out, (0, 3, 1, 2))                      # NCHW f32


# ----------------------------- main -----------------------------

if __name__ == "__main__":
    key = jax.random.PRNGKey(0)
    kx, kp = jax.random.split(key)

    N, IN_CH, H, W = 2, 3, 32, 32
    NUM_CLASSES, BASE_CH = 2, 4

    x = jax.random.normal(kx, (N, IN_CH, H, W), jnp.float32)
    params = init_unet_params(kp, IN_CH, NUM_CLASSES, BASE_CH, H, W)

    fwd = jax.jit(unet_forward)
    y = fwd(params, x)
    jax.block_until_ready(y)

    assert y.shape == (N, NUM_CLASSES, H, W), y.shape
    assert bool(jnp.all(jnp.isfinite(y)))
    print("KERNEL_OK")
</pallas_src>

<mosaic_0001>
module attributes {stable_mosaic.version = 11 : i64} {
  func.func @_inc_kernel(%arg0: i32, %arg1: memref<1x32x128xbf16, #tpu.memory_space<vmem>>, %arg2: memref<3x128x128xbf16, #tpu.memory_space<vmem>>, %arg3: memref<1x128xf32, #tpu.memory_space<vmem>>, %arg4: memref<3x128x128xbf16, #tpu.memory_space<vmem>>, %arg5: memref<1x128xf32, #tpu.memory_space<vmem>>, %arg6: memref<1x128xf32, #tpu.memory_space<vmem>>, %arg7: memref<1x32x128xbf16, #tpu.memory_space<vmem>>, %arg8: memref<41x128xbf16, #tpu.memory_space<vmem>>, %arg9: memref<41x128xbf16, #tpu.memory_space<vmem>>) attributes {dimension_semantics = [#tpu.dimension_semantics<parallel>], iteration_bounds = array<i64: 2>, scalar_prefetch = 0 : i64, scratch_operands = 2 : i64, tpu.core_type = #tpu.core_type<tc>, window_params = [{transform_indices = @transform_0, window_bounds = array<i64: 1, 32, 128>}, {pipeline_mode = #tpu.pipeline_mode<synchronous>, transform_indices = @transform_1, window_bounds = array<i64: 3, 128, 128>}, {pipeline_mode = #tpu.pipeline_mode<synchronous>, transform_indices = @transform_2, window_bounds = array<i64: 1, 128>}, {pipeline_mode = #tpu.pipeline_mode<synchronous>, transform_indices = @transform_3, window_bounds = array<i64: 3, 128, 128>}, {pipeline_mode = #tpu.pipeline_mode<synchronous>, transform_indices = @transform_4, window_bounds = array<i64: 1, 128>}, {pipeline_mode = #tpu.pipeline_mode<synchronous>, transform_indices = @transform_5, window_bounds = array<i64: 1, 128>}, {transform_indices = @transform_6, window_bounds = array<i64: 1, 32, 128>}]} {
    %c0 = arith.constant 0 : index
    %c0_0 = arith.constant 0 : index
    %c0_1 = arith.constant 0 : index
    %0 = vector.load %arg1[%c0, %c0_0, %c0_1] : memref<1x32x128xbf16, #tpu.memory_space<vmem>>, vector<1x32x128xbf16>
    %1 = vector.shape_cast %0 : vector<1x32x128xbf16> to vector<32x128xbf16>
    %cst = arith.constant 0.000000e+00 : bf16
    %2 = vector.broadcast %cst : bf16 to vector<1x128xbf16>
    %c7 = arith.constant 7 : index
    %c0_2 = arith.constant 0 : index
    %3 = vector.load %arg8[%c7, %c0_2] : memref<41x128xbf16, #tpu.memory_space<vmem>>, vector<1x128xbf16>
    tpu.vector_store %arg8[%c7, %c0_2], %2 {strides = array<i32>} : memref<41x128xbf16, #tpu.memory_space<vmem>>, vector<1x128xbf16>,
    %c40 = arith.constant 40 : index
    %c0_3 = arith.constant 0 : index
    %4 = vector.load %arg8[%c40, %c0_3] : memref<41x128xbf16, #tpu.memory_space<vmem>>, vector<1x128xbf16>
    tpu.vector_store %arg8[%c40, %c0_3], %2 {strides = array<i32>} : memref<41x128xbf16, #tpu.memory_space<vmem>>, vector<1x128xbf16>,
    %c8 = arith.constant 8 : index
    %c0_4 = arith.constant 0 : index
    %5 = vector.load %arg8[%c8, %c0_4] : memref<41x128xbf16, #tpu.memory_space<vmem>>, vector<32x128xbf16>
    tpu.vector_store %arg8[%c8, %c0_4], %1 {strides = array<i32>} : memref<41x128xbf16, #tpu.memory_space<vmem>>, vector<32x128xbf16>,
    %c7_5 = arith.constant 7 : index
    %c0_6 = arith.constant 0 : index
    %6 = vector.load %arg8[%c7_5, %c0_6] : memref<41x128xbf16, #tpu.memory_space<vmem>>, vector<32x128xbf16>
    %c0_7 = arith.constant 0 : index
    %c0_8 = arith.constant 0 : index
    %c0_9 = arith.constant 0 : index
    %7 = vector.load %arg2[%c0_7, %c0_8, %c0_9] : memref<3x128x128xbf16, #tpu.memory_space<vmem>>, vector<1x128x128xbf16>
    %8 = vector.shape_cast %7 : vector<1x128x128xbf16> to vector<128x128xbf16>
    %cst_10 = arith.constant dense<0.000000e+00> : vector<32x128xf32>
    %9 = tpu.matmul %6, %8, %cst_10 {dimension_numbers = #tpu.dot_dimension_numbers<[1], [0], [0], [1], [0, 0, 1, 1], [], []>} : vector<32x128xbf16>, vector<128x128xbf16>, vector<32x128xf32> -> vector<32x128xf32>
    %c8_11 = arith.constant 8 : index
    %c0_12 = arith.constant 0 : index
    %10 = vector.load %arg8[%c8_11, %c0_12] : memref<41x128xbf16, #tpu.memory_space<vmem>>, vector<32x128xbf16>
    %c1 = arith.constant 1 : index
    %c0_13 = arith.constant 0 : index
    %c0_14 = arith.constant 0 : index
    %11 = vector.load %arg2[%c1, %c0_13, %c0_14] : memref<3x128x128xbf16, #tpu.memory_space<vmem>>, vector<1x128x128xbf16>
    %12 = vector.shape_cast %11 : vector<1x128x128xbf16> to vector<128x128xbf16>
    %cst_15 = arith.constant dense<0.000000e+00> : vector<32x128xf32>
    %13 = tpu.matmul %10, %12, %cst_15 {dimension_numbers = #tpu.dot_dimension_numbers<[1], [0], [0], [1], [0, 0, 1, 1], [], []>} : vector<32x128xbf16>, vector<128x128xbf16>, vector<32x128xf32> -> vector<32x128xf32>
    %14 = arith.addf %9, %13 : vector<32x128xf32>
    %c9 = arith.constant 9 : index
    %c0_16 = arith.constant 0 : index
    %15 = vector.load %arg8[%c9, %c0_16] : memref<41x128xbf16, #tpu.memory_space<vmem>>, vector<32x128xbf16>
    %c2 = arith.constant 2 : index
    %c0_17 = arith.constant 0 : index
    %c0_18 = arith.constant 0 : index
    %16 = vector.load %arg2[%c2, %c0_17, %c0_18] : memref<3x128x128xbf16, #tpu.memory_space<vmem>>, vector<1x128x128xbf16>
    %17 = vector.shape_cast %16 : vector<1x128x128xbf16> to vector<128x128xbf16>
    %cst_19 = arith.constant dense<0.000000e+00> : vector<32x128xf32>
    %18 = tpu.matmul %15, %17, %cst_19 {dimension_numbers = #tpu.dot_dimension_numbers<[1], [0], [0], [1], [0, 0, 1, 1], [], []>} : vector<32x128xbf16>, vector<128x128xbf16>, vector<32x128xf32> -> vector<32x128xf32>
    %19 = arith.addf %14, %18 : vector<32x128xf32>
    %c0_20 = arith.constant 0 : index
    %c0_21 = arith.constant 0 : index
    %20 = vector.load %arg3[%c0_20, %c0_21] : memref<1x128xf32, #tpu.memory_space<vmem>>, vector<1x128xf32>
    %21 = vector.broadcast %20 : vector<1x128xf32> to vector<32x128xf32>
    %22 = arith.addf %19, %21 : vector<32x128xf32>
    %cst_22 = arith.constant 0.000000e+00 : bf16
    %23 = vector.broadcast %cst_22 : bf16 to vector<1x128xbf16>
    %c7_23 = arith.constant 7 : index
    %c0_24 = arith.constant 0 : index
    %24 = vector.load %arg9[%c7_23, %c0_24] : memref<41x128xbf16, #tpu.memory_space<vmem>>, vector<1x128xbf16>
    tpu.vector_store %arg9[%c7_23, %c0_24], %23 {strides = array<i32>} : memref<41x128xbf16, #tpu.memory_space<vmem>>, vector<1x128xbf16>,
    %c40_25 = arith.constant 40 : index
    %c0_26 = arith.constant 0 : index
    %25 = vector.load %arg9[%c40_25, %c0_26] : memref<41x128xbf16, #tpu.memory_space<vmem>>, vector<1x128xbf16>
    tpu.vector_store %arg9[%c40_25, %c0_26], %23 {strides = array<i32>} : memref<41x128xbf16, #tpu.memory_space<vmem>>, vector<1x128xbf16>,
    %26 = arith.truncf %22 : vector<32x128xf32> to vector<32x128xbf16>
    %c8_27 = arith.constant 8 : index
    %c0_28 = arith.constant 0 : index
    %27 = vector.load %arg9[%c8_27, %c0_28] : memref<41x128xbf16, #tpu.memory_space<vmem>>, vector<32x128xbf16>
    tpu.vector_store %arg9[%c8_27, %c0_28], %26 {strides = array<i32>} : memref<41x128xbf16, #tpu.memory_space<vmem>>, vector<32x128xbf16>,
    %c7_29 = arith.constant 7 : index
    %c0_30 = arith.constant 0 : index
    %28 = vector.load %arg9[%c7_29, %c0_30] : memref<41x128xbf16, #tpu.memory_space<vmem>>, vector<32x128xbf16>
    %c0_31 = arith.constant 0 : index
    %c0_32 = arith.constant 0 : index
    %c0_33 = arith.constant 0 : index
    %29 = vector.load %arg4[%c0_31, %c0_32, %c0_33] : memref<3x128x128xbf16, #tpu.memory_space<vmem>>, vector<1x128x128xbf16>
    %30 = vector.shape_cast %29 : vector<1x128x128xbf16> to vector<128x128xbf16>
    %cst_34 = arith.constant dense<0.000000e+00> : vector<32x128xf32>
    %31 = tpu.matmul %28, %30, %cst_34 {dimension_numbers = #tpu.dot_dimension_numbers<[1], [0], [0], [1], [0, 0, 1, 1], [], []>} : vector<32x128xbf16>, vector<128x128xbf16>, vector<32x128xf32> -> vector<32x128xf32>
    %c8_35 = arith.constant 8 : index
    %c0_36 = arith.constant 0 : index
    %32 = vector.load %arg9[%c8_35, %c0_36] : memref<41x128xbf16, #tpu.memory_space<vmem>>, vector<32x128xbf16>
    %c1_37 = arith.constant 1 : index
    %c0_38 = arith.constant 0 : index
    %c0_39 = arith.constant 0 : index
    %33 = vector.load %arg4[%c1_37, %c0_38, %c0_39] : memref<3x128x128xbf16, #tpu.memory_space<vmem>>, vector<1x128x128xbf16>
    %34 = vector.shape_cast %33 : vector<1x128x128xbf16> to vector<128x128xbf16>
    %cst_40 = arith.constant dense<0.000000e+00> : vector<32x128xf32>
    %35 = tpu.matmul %32, %34, %cst_40 {dimension_numbers = #tpu.dot_dimension_numbers<[1], [0], [0], [1], [0, 0, 1, 1], [], []>} : vector<32x128xbf16>, vector<128x128xbf16>, vector<32x128xf32> -> vector<32x128xf32>
    %36 = arith.addf %31, %35 : vector<32x128xf32>
    %c9_41 = arith.constant 9 : index
    %c0_42 = arith.constant 0 : index
    %37 = vector.load %arg9[%c9_41, %c0_42] : memref<41x128xbf16, #tpu.memory_space<vmem>>, vector<32x128xbf16>
    %c2_43 = arith.constant 2 : index
    %c0_44 = arith.constant 0 : index
    %c0_45 = arith.constant 0 : index
    %38 = vector.load %arg4[%c2_43, %c0_44, %c0_45] : memref<3x128x128xbf16, #tpu.memory_space<vmem>>, vector<1x128x128xbf16>
    %39 = vector.shape_cast %38 : vector<1x128x128xbf16> to vector<128x128xbf16>
    %cst_46 = arith.constant dense<0.000000e+00> : vector<32x128xf32>
    %40 = tpu.matmul %37, %39, %cst_46 {dimension_numbers = #tpu.dot_dimension_numbers<[1], [0], [0], [1], [0, 0, 1, 1], [], []>} : vector<32x128xbf16>, vector<128x128xbf16>, vector<32x128xf32> -> vector<32x128xf32>
    %41 = arith.addf %36, %40 : vector<32x128xf32>
    %c0_47 = arith.constant 0 : index
    %c0_48 = arith.constant 0 : index
    %42 = vector.load %arg5[%c0_47, %c0_48] : memref<1x128xf32, #tpu.memory_space<vmem>>, vector<1x128xf32>
    %43 = vector.broadcast %42 : vector<1x128xf32> to vector<32x128xf32>
    %44 = arith.mulf %41, %43 : vector<32x128xf32>
    %c0_49 = arith.constant 0 : index
    %c0_50 = arith.constant 0 : index
    %45 = vector.load %arg6[%c0_49, %c0_50] : memref<1x128xf32, #tpu.memory_space<vmem>>, vector<1x128xf32>
    %46 = vector.broadcast %45 : vector<1x128xf32> to vector<32x128xf32>
    %47 = arith.addf %44, %46 : vector<32x128xf32>
    %cst_51 = arith.constant 0.000000e+00 : f32
    %48 = vector.broadcast %cst_51 : f32 to vector<32x128xf32>
    %49 = arith.maximumf %47, %48 : vector<32x128xf32>
    %50 = vector.shape_cast %49 : vector<32x128xf32> to vector<1x32x128xf32>
    %51 = arith.truncf %50 : vector<1x32x128xf32> to vector<1x32x128xbf16>
    %c0_52 = arith.constant 0 : index
    %c0_53 = arith.constant 0 : index
    %c0_54 = arith.constant 0 : index
    %52 = vector.load %arg7[%c0_52, %c0_53, %c0_54] : memref<1x32x128xbf16, #tpu.memory_space<vmem>>, vector<1x32x128xbf16>
    tpu.vector_store %arg7[%c0_52, %c0_53, %c0_54], %51 {strides = array<i32>} : memref<1x32x128xbf16, #tpu.memory_space<vmem>>, vector<1x32x128xbf16>,
    return
  }
  func.func @transform_0(%arg0: i32) -> (i32, i32, i32) {
    %c0_i32 = arith.constant 0 : i32
    %c0_i32_0 = arith.constant 0 : i32
    %c0_i32_1 = arith.constant 0 : i32
    return %arg0, %c0_i32, %c0_i32_0 : i32, i32, i32
  }
  func.func @transform_1(%arg0: i32) -> (i32, i32, i32) {
    %c0_i32 = arith.constant 0 : i32
    %c0_i32_0 = arith.constant 0 : i32
    %c0_i32_1 = arith.constant 0 : i32
    %c0_i32_2 = arith.constant 0 : i32
    return %c0_i32, %c0_i32_0, %c0_i32_1 : i32, i32, i32
  }
  func.func @transform_2(%arg0: i32) -> (i32, i32) {
    %c0_i32 = arith.constant 0 : i32
    %c0_i32_0 = arith.constant 0 : i32
    %c0_i32_1 = arith.constant 0 : i32
    return %c0_i32, %c0_i32_0 : i32, i32
  }
  func.func @transform_3(%arg0: i32) -> (i32, i32, i32) {
    %c0_i32 = arith.constant 0 : i32
    %c0_i32_0 = arith.constant 0 : i32
    %c0_i32_1 = arith.constant 0 : i32
    %c0_i32_2 = arith.constant 0 : i32
    return %c0_i32, %c0_i32_0, %c0_i32_1 : i32, i32, i32
  }
  func.func @transform_4(%arg0: i32) -> (i32, i32) {
    %c0_i32 = arith.constant 0 : i32
    %c0_i32_0 = arith.constant 0 : i32
    %c0_i32_1 = arith.constant 0 : i32
    return %c0_i32, %c0_i32_0 : i32, i32
  }
  func.func @transform_5(%arg0: i32) -> (i32, i32) {
    %c0_i32 = arith.constant 0 : i32
    %c0_i32_0 = arith.constant 0 : i32
    %c0_i32_1 = arith.constant 0 : i32
    return %c0_i32, %c0_i32_0 : i32, i32
  }
  func.func @transform_6(%arg0: i32) -> (i32, i32, i32) {
    %c0_i32 = arith.constant 0 : i32
    %c0_i32_0 = arith.constant 0 : i32
    %c0_i32_1 = arith.constant 0 : i32
    return %arg0, %c0_i32, %c0_i32_0 : i32, i32, i32
  }
}

module attributes {stable_mosaic.version = 11 : i64} {
  func.func @_down_kernel(%arg0: i32, %arg1: memref<1x32x128xbf16, #tpu.memory_space<vmem>>, %arg2: memref<16x32xbf16, #tpu.memory_space<vmem>>, %arg3: memref<16x32xbf16, #tpu.memory_space<vmem>>, %arg4: memref<128x64xbf16, #tpu.memory_space<vmem>>, %arg5: memref<128x64xbf16, #tpu.memory_space<vmem>>, %arg6: memref<3x64x128xbf16, #tpu.memory_space<vmem>>, %arg7: memref<1x128xf32, #tpu.memory_space<vmem>>, %arg8: memref<1x128xf32, #tpu.memory_space<vmem>>, %arg9: memref<3x128x128xbf16, #tpu.memory_space<vmem>>, %arg10: memref<1x128xf32, #tpu.memory_space<vmem>>, %arg11: memref<1x128xf32, #tpu.memory_space<vmem>>, %arg12: memref<1x16x128xbf16, #tpu.memory_space<vmem>>, %arg13: memref<25x64xbf16, #tpu.memory_space<vmem>>, %arg14: memref<25x128xbf16, #tpu.memory_space<vmem>>) attributes {dimension_semantics = [#tpu.dimension_semantics<parallel>], iteration_bounds = array<i64: 2>, scalar_prefetch = 0 : i64, scratch_operands = 2 : i64, tpu.core_type = #tpu.core_type<tc>, window_params = [{transform_indices = @transform_0, window_bounds = array<i64: 1, 32, 128>}, {pipeline_mode = #tpu.pipeline_mode<synchronous>, transform_indices = @transform_1, window_bounds = array<i64: 16, 32>}, {pipeline_mode = #tpu.pipeline_mode<synchronous>, transform_indices = @transform_2, window_bounds = array<i64: 16, 32>}, {pipeline_mode = #tpu.pipeline_mode<synchronous>, transform_indices = @transform_3, window_bounds = array<i64: 128, 64>}, {pipeline_mode = #tpu.pipeline_mode<synchronous>, transform_indices = @transform_4, window_bounds = array<i64: 128, 64>}, {pipeline_mode = #tpu.pipeline_mode<synchronous>, transform_indices = @transform_5, window_bounds = array<i64: 3, 64, 128>}, {pipeline_mode = #tpu.pipeline_mode<synchronous>, transform_indices = @transform_6, window_bounds = array<i64: 1, 128>}, {pipeline_mode = #tpu.pipeline_mode<synchronous>, transform_indices = @transform_7, window_bounds = array<i64: 1, 128>}, {pipeline_mode = #tpu.pipeline_mode<synchronous>, transform_indices = @transform_8, window_bounds = array<i64: 3, 128, 128>}, {pipeline_mode = #tpu.pipeline_mode<synchronous>, transform_indices = @transform_9, window_bounds = array<i64: 1, 128>}, {pipeline_mode = #tpu.pipeline_mode<synchronous>, transform_indices = @transform_10, window_bounds = array<i64: 1, 128>}, {transform_indices = @transform_11, window_bounds = array<i64: 1, 16, 128>}]} {
    %c0 = arith.constant 0 : index
    %c0_0 = arith.constant 0 : index
    %c0_1 = arith.constant 0 : index
    %0 = vector.load %arg1[%c0, %c0_0, %c0_1] : memref<1x32x128xbf16, #tpu.memory_space<vmem>>, vector<1x32x128xbf16>
    %1 = vector.shape_cast %0 : vector<1x32x128xbf16> to vector<32x128xbf16>
    %c0_2 = arith.constant 0 : index
    %c0_3 = arith.constant 0 : index
    %2 = vector.load %arg2[%c0_2, %c0_3] : memref<16x32xbf16, #tpu.memory_space<vmem>>, vector<16x32xbf16>
    %cst = arith.constant dense<0.000000e+00> : vector<16x128xf32>
    %3 = tpu.matmul %2, %1, %cst {dimension_numbers = #tpu.dot_dimension_numbers<[1], [0], [0], [1], [0, 0, 1, 1], [], []>} : vector<16x32xbf16>, vector<32x128xbf16>, vector<16x128xf32> -> vector<16x128xf32>
    %c0_4 = arith.constant 0 : index
    %c0_5 = arith.constant 0 : index
    %4 = vector.load %arg3[%c0_4, %c0_5] : memref<16x32xbf16, #tpu.memory_space<vmem>>, vector<16x32xbf16>
    %cst_6 = arith.constant dense<0.000000e+00> : vector<16x128xf32>
    %5 = tpu.matmul %4, %1, %cst_6 {dimension_numbers = #tpu.dot_dimension_numbers<[1], [0], [0], [1], [0, 0, 1, 1], [], []>} : vector<16x32xbf16>, vector<32x128xbf16>, vector<16x128xf32> -> vector<16x128xf32>
    %6 = arith.maximumf %3, %5 : vector<16x128xf32>
    %7 = arith.truncf %6 : vector<16x128xf32> to vector<16x128xbf16>
    %c0_7 = arith.constant 0 : index
    %c0_8 = arith.constant 0 : index
    %8 = vector.load %arg4[%c0_7, %c0_8] : memref<128x64xbf16, #tpu.memory_space<vmem>>, vector<128x64xbf16>
    %cst_9 = arith.constant dense<0.000000e+00> : vector<16x64xf32>
    %9 = tpu.matmul %7, %8, %cst_9 {dimension_numbers = #tpu.dot_dimension_numbers<[1], [0], [0], [1], [0, 0, 1, 1], [], []>} : vector<16x128xbf16>, vector<128x64xbf16>, vector<16x64xf32> -> vector<16x64xf32>
    %c0_10 = arith.constant 0 : index
    %c0_11 = arith.constant 0 : index
    %10 = vector.load %arg5[%c0_10, %c0_11] : memref<128x64xbf16, #tpu.memory_space<vmem>>, vector<128x64xbf16>
    %cst_12 = arith.constant dense<0.000000e+00> : vector<16x64xf32>
    %11 = tpu.matmul %7, %10, %cst_12 {dimension_numbers = #tpu.dot_dimension_numbers<[1], [0], [0], [1], [0, 0, 1, 1], [], []>} : vector<16x128xbf16>, vector<128x64xbf16>, vector<16x64xf32> -> vector<16x64xf32>
    %12 = arith.maximumf %9, %11 : vector<16x64xf32>
    %cst_13 = arith.constant 0.000000e+00 : bf16
    %13 = vector.broadcast %cst_13 : bf16 to vector<1x64xbf16>
    %c7 = arith.constant 7 : index
    %c0_14 = arith.constant 0 : index
    %14 = vector.load %arg13[%c7, %c0_14] : memref<25x64xbf16, #tpu.memory_space<vmem>>, vector<1x64xbf16>
    tpu.vector_store %arg13[%c7, %c0_14], %13 {strides = array<i32>} : memref<25x64xbf16, #tpu.memory_space<vmem>>, vector<1x64xbf16>,
    %c24 = arith.constant 24 : index
    %c0_15 = arith.constant 0 : index
    %15 = vector.load %arg13[%c24, %c0_15] : memref<25x64xbf16, #tpu.memory_space<vmem>>, vector<1x64xbf16>
    tpu.vector_store %arg13[%c24, %c0_15], %13 {strides = array<i32>} : memref<25x64xbf16, #tpu.memory_space<vmem>>, vector<1x64xbf16>,
    %16 = arith.truncf %12 : vector<16x64xf32> to vector<16x64xbf16>
    %c8 = arith.constant 8 : index
    %c0_16 = arith.constant 0 : index
    %17 = vector.load %arg13[%c8, %c0_16] : memref<25x64xbf16, #tpu.memory_space<vmem>>, vector<16x64xbf16>
    tpu.vector_store %arg13[%c8, %c0_16], %16 {strides = array<i32>} : memref<25x64xbf16, #tpu.memory_space<vmem>>, vector<16x64xbf16>,
    %c7_17 = arith.constant 7 : index
    %c0_18 = arith.constant 0 : index
    %18 = vector.load %arg13[%c7_17, %c0_18] : memref<25x64xbf16, #tpu.memory_space<vmem>>, vector<16x64xbf16>
    %c0_19 = arith.constant 0 : index
    %c0_20 = arith.constant 0 : index
    %c0_21 = arith.constant 0 : index
    %19 = vector.load %arg6[%c0_19, %c0_20, %c0_21] : memref<3x64x128xbf16, #tpu.memory_space<vmem>>, vector<1x64x128xbf16>
    %20 = vector.shape_cast %19 : vector<1x64x128xbf16> to vector<64x128xbf16>
    %cst_22 = arith.constant dense<0.000000e+00> : vector<16x128xf32>
    %21 = tpu.matmul %18, %20, %cst_22 {dimension_numbers = #tpu.dot_dimension_numbers<[1], [0], [0], [1], [0, 0, 1, 1], [], []>} : vector<16x64xbf16>, vector<64x128xbf16>, vector<16x128xf32> -> vector<16x128xf32>
    %c8_23 = arith.constant 8 : index
    %c0_24 = arith.constant 0 : index
    %22 = vector.load %arg13[%c8_23, %c0_24] : memref<25x64xbf16, #tpu.memory_space<vmem>>, vector<16x64xbf16>
    %c1 = arith.constant 1 : index
    %c0_25 = arith.constant 0 : index
    %c0_26 = arith.constant 0 : index
    %23 = vector.load %arg6[%c1, %c0_25, %c0_26] : memref<3x64x128xbf16, #tpu.memory_space<vmem>>, vector<1x64x128xbf16>
    %24 = vector.shape_cast %23 : vector<1x64x128xbf16> to vector<64x128xbf16>
    %cst_27 = arith.constant dense<0.000000e+00> : vector<16x128xf32>
    %25 = tpu.matmul %22, %24, %cst_27 {dimension_numbers = #tpu.dot_dimension_numbers<[1], [0], [0], [1], [0, 0, 1, 1], [], []>} : vector<16x64xbf16>, vector<64x128xbf16>, vector<16x128xf32> -> vector<16x128xf32>
    %26 = arith.addf %21, %25 : vector<16x128xf32>
    %c9 = arith.constant 9 : index
    %c0_28 = arith.constant 0 : index
    %27 = vector.load %arg13[%c9, %c0_28] : memref<25x64xbf16, #tpu.memory_space<vmem>>, vector<16x64xbf16>
    %c2 = arith.constant 2 : index
    %c0_29 = arith.constant 0 : index
    %c0_30 = arith.constant 0 : index
    %28 = vector.load %arg6[%c2, %c0_29, %c0_30] : memref<3x64x128xbf16, #tpu.memory_space<vmem>>, vector<1x64x128xbf16>
    %29 = vector.shape_cast %28 : vector<1x64x128xbf16> to vector<64x128xbf16>
    %cst_31 = arith.constant dense<0.000000e+00> : vector<16x128xf32>
    %30 = tpu.matmul %27, %29, %cst_31 {dimension_numbers = #tpu.dot_dimension_numbers<[1], [0], [0], [1], [0, 0, 1, 1], [], []>} : vector<16x64xbf16>, vector<64x128xbf16>, vector<16x128xf32> -> vector<16x128xf32>
    %31 = arith.addf %26, %30 : vector<16x128xf32>
    %c0_32 = arith.constant 0 : index
    %c0_33 = arith.constant 0 : index
    %32 = vector.load %arg7[%c0_32, %c0_33] : memref<1x128xf32, #tpu.memory_space<vmem>>, vector<1x128xf32>
    %33 = vector.broadcast %32 : vector<1x128xf32> to vector<16x128xf32>
    %34 = arith.mulf %31, %33 : vector<16x128xf32>
    %c0_34 = arith.constant 0 : index
    %c0_35 = arith.constant 0 : index
    %35 = vector.load %arg8[%c0_34, %c0_35] : memref<1x128xf32, #tpu.memory_space<vmem>>, vector<1x128xf32>
    %36 = vector.broadcast %35 : vector<1x128xf32> to vector<16x128xf32>
    %37 = arith.addf %34, %36 : vector<16x128xf32>
    %cst_36 = arith.constant 0.000000e+00 : f32
    %38 = vector.broadcast %cst_36 : f32 to vector<16x128xf32>
    %39 = arith.maximumf %37, %38 : vector<16x128xf32>
    %cst_37 = arith.constant 0.000000e+00 : bf16
    %40 = vector.broadcast %cst_37 : bf16 to vector<1x128xbf16>
    %c7_38 = arith.constant 7 : index
    %c0_39 = arith.constant 0 : index
    %41 = vector.load %arg14[%c7_38, %c0_39] : memref<25x128xbf16, #tpu.memory_space<vmem>>, vector<1x128xbf16>
    tpu.vector_store %arg14[%c7_38, %c0_39], %40 {strides = array<i32>} : memref<25x128xbf16, #tpu.memory_space<vmem>>, vector<1x128xbf16>,
    %c24_40 = arith.constant 24 : index
    %c0_41 = arith.constant 0 : index
    %42 = vector.load %arg14[%c24_40, %c0_41] : memref<25x128xbf16, #tpu.memory_space<vmem>>, vector<1x128xbf16>
    tpu.vector_store %arg14[%c24_40, %c0_41], %40 {strides = array<i32>} : memref<25x128xbf16, #tpu.memory_space<vmem>>, vector<1x128xbf16>,
    %43 = arith.truncf %39 : vector<16x128xf32> to vector<16x128xbf16>
    %c8_42 = arith.constant 8 : index
    %c0_43 = arith.constant 0 : index
    %44 = vector.load %arg14[%c8_42, %c0_43] : memref<25x128xbf16, #tpu.memory_space<vmem>>, vector<16x128xbf16>
    tpu.vector_store %arg14[%c8_42, %c0_43], %43 {strides = array<i32>} : memref<25x128xbf16, #tpu.memory_space<vmem>>, vector<16x128xbf16>,
    %c7_44 = arith.constant 7 : index
    %c0_45 = arith.constant 0 : index
    %45 = vector.load %arg14[%c7_44, %c0_45] : memref<25x128xbf16, #tpu.memory_space<vmem>>, vector<16x128xbf16>
    %c0_46 = arith.constant 0 : index
    %c0_47 = arith.constant 0 : index
    %c0_48 = arith.constant 0 : index
    %46 = vector.load %arg9[%c0_46, %c0_47, %c0_48] : memref<3x128x128xbf16, #tpu.memory_space<vmem>>, vector<1x128x128xbf16>
    %47 = vector.shape_cast %46 : vector<1x128x128xbf16> to vector<128x128xbf16>
    %cst_49 = arith.constant dense<0.000000e+00> : vector<16x128xf32>
    %48 = tpu.matmul %45, %47, %cst_49 {dimension_numbers = #tpu.dot_dimension_numbers<[1], [0], [0], [1], [0, 0, 1, 1], [], []>} : vector<16x128xbf16>, vector<128x128xbf16>, vector<16x128xf32> -> vector<16x128xf32>
    %c8_50 = arith.constant 8 : index
    %c0_51 = arith.constant 0 : index
    %49 = vector.load %arg14[%c8_50, %c0_51] : memref<25x128xbf16, #tpu.memory_space<vmem>>, vector<16x128xbf16>
    %c1_52 = arith.constant 1 : index
    %c0_53 = arith.constant 0 : index
    %c0_54 = arith.constant 0 : index
    %50 = vector.load %arg9[%c1_52, %c0_53, %c0_54] : memref<3x128x128xbf16, #tpu.memory_space<vmem>>, vector<1x128x128xbf16>
    %51 = vector.shape_cast %50 : vector<1x128x128xbf16> to vector<128x128xbf16>
    %cst_55 = arith.constant dense<0.000000e+00> : vector<16x128xf32>
    %52 = tpu.matmul %49, %51, %cst_55 {dimension_numbers = #tpu.dot_dimension_numbers<[1], [0], [0], [1], [0, 0, 1, 1], [], []>} : vector<16x128xbf16>, vector<128x128xbf16>, vector<16x128xf32> -> vector<16x128xf32>
    %53 = arith.addf %48, %52 : vector<16x128xf32>
    %c9_56 = arith.constant 9 : index
    %c0_57 = arith.constant 0 : index
    %54 = vector.load %arg14[%c9_56, %c0_57] : memref<25x128xbf16, #tpu.memory_space<vmem>>, vector<16x128xbf16>
    %c2_58 = arith.constant 2 : index
    %c0_59 = arith.constant 0 : index
    %c0_60 = arith.constant 0 : index
    %55 = vector.load %arg9[%c2_58, %c0_59, %c0_60] : memref<3x128x128xbf16, #tpu.memory_space<vmem>>, vector<1x128x128xbf16>
    %56 = vector.shape_cast %55 : vector<1x128x128xbf16> to vector<128x128xbf16>
    %cst_61 = arith.constant dense<0.000000e+00> : vector<16x128xf32>
    %57 = tpu.matmul %54, %56, %cst_61 {dimension_numbers = #tpu.dot_dimension_numbers<[1], [0], [0], [1], [0, 0, 1, 1], [], []>} : vector<16x128xbf16>, vector<128x128xbf16>, vector<16x128xf32> -> vector<16x128xf32>
    %58 = arith.addf %53, %57 : vector<16x128xf32>
    %c0_62 = arith.constant 0 : index
    %c0_63 = arith.constant 0 : index
    %59 = vector.load %arg10[%c0_62, %c0_63] : memref<1x128xf32, #tpu.memory_space<vmem>>, vector<1x128xf32>
    %60 = vector.broadcast %59 : vector<1x128xf32> to vector<16x128xf32>
    %61 = arith.mulf %58, %60 : vector<16x128xf32>
    %c0_64 = arith.constant 0 : index
    %c0_65 = arith.constant 0 : index
    %62 = vector.load %arg11[%c0_64, %c0_65] : memref<1x128xf32, #tpu.memory_space<vmem>>, vector<1x128xf32>
    %63 = vector.broadcast %62 : vector<1x128xf32> to vector<16x128xf32>
    %64 = arith.addf %61, %63 : vector<16x128xf32>
    %cst_66 = arith.constant 0.000000e+00 : f32
    %65 = vector.broadcast %cst_66 : f32 to vector<16x128xf32>
    %66 = arith.maximumf %64, %65 : vector<16x128xf32>
    %67 = vector.shape_cast %66 : vector<16x128xf32> to vector<1x16x128xf32>
    %68 = arith.truncf %67 : vector<1x16x128xf32> to vector<1x16x128xbf16>
    %c0_67 = arith.constant 0 : index
    %c0_68 = arith.constant 0 : index
    %c0_69 = arith.constant 0 : index
    %69 = vector.load %arg12[%c0_67, %c0_68, %c0_69] : memref<1x16x128xbf16, #tpu.memory_space<vmem>>, vector<1x16x128xbf16>
    tpu.vector_store %arg12[%c0_67, %c0_68, %c0_69], %68 {strides = array<i32>} : memref<1x16x128xbf16, #tpu.memory_space<vmem>>, vector<1x16x128xbf16>,
    return
  }
  func.func @transform_0(%arg0: i32) -> (i32, i32, i32) {
    %c0_i32 = arith.constant 0 : i32
    %c0_i32_0 = arith.constant 0 : i32
    %c0_i32_1 = arith.constant 0 : i32
    return %arg0, %c0_i32, %c0_i32_0 : i32, i32, i32
  }
  func.func @transform_1(%arg0: i32) -> (i32, i32) {
    %c0_i32 = arith.constant 0 : i32
    %c0_i32_0 = arith.constant 0 : i32
    %c0_i32_1 = arith.constant 0 : i32
    return %c0_i32, %c0_i32_0 : i32, i32
  }
  func.func @transform_2(%arg0: i32) -> (i32, i32) {
    %c0_i32 = arith.constant 0 : i32
    %c0_i32_0 = arith.constant 0 : i32
    %c0_i32_1 = arith.constant 0 : i32
    return %c0_i32, %c0_i32_0 : i32, i32
  }
  func.func @transform_3(%arg0: i32) -> (i32, i32) {
    %c0_i32 = arith.constant 0 : i32
    %c0_i32_0 = arith.constant 0 : i32
    %c0_i32_1 = arith.constant 0 : i32
    return %c0_i32, %c0_i32_0 : i32, i32
  }
  func.func @transform_4(%arg0: i32) -> (i32, i32) {
    %c0_i32 = arith.constant 0 : i32
    %c0_i32_0 = arith.constant 0 : i32
    %c0_i32_1 = arith.constant 0 : i32
    return %c0_i32, %c0_i32_0 : i32, i32
  }
  func.func @transform_5(%arg0: i32) -> (i32, i32, i32) {
    %c0_i32 = arith.constant 0 : i32
    %c0_i32_0 = arith.constant 0 : i32
    %c0_i32_1 = arith.constant 0 : i32
    %c0_i32_2 = arith.constant 0 : i32
    return %c0_i32, %c0_i32_0, %c0_i32_1 : i32, i32, i32
  }
  func.func @transform_6(%arg0: i32) -> (i32, i32) {
    %c0_i32 = arith.constant 0 : i32
    %c0_i32_0 = arith.constant 0 : i32
    %c0_i32_1 = arith.constant 0 : i32
    return %c0_i32, %c0_i32_0 : i32, i32
  }
  func.func @transform_7(%arg0: i32) -> (i32, i32) {
    %c0_i32 = arith.constant 0 : i32
    %c0_i32_0 = arith.constant 0 : i32
    %c0_i32_1 = arith.constant 0 : i32
    return %c0_i32, %c0_i32_0 : i32, i32
  }
  func.func @transform_8(%arg0: i32) -> (i32, i32, i32) {
    %c0_i32 = arith.constant 0 : i32
    %c0_i32_0 = arith.constant 0 : i32
    %c0_i32_1 = arith.constant 0 : i32
    %c0_i32_2 = arith.constant 0 : i32
    return %c0_i32, %c0_i32_0, %c0_i32_1 : i32, i32, i32
  }
  func.func @transform_9(%arg0: i32) -> (i32, i32) {
    %c0_i32 = arith.constant 0 : i32
    %c0_i32_0 = arith.constant 0 : i32
    %c0_i32_1 = arith.constant 0 : i32
    return %c0_i32, %c0_i32_0 : i32, i32
  }
  func.func @transform_10(%arg0: i32) -> (i32, i32) {
    %c0_i32 = arith.constant 0 : i32
    %c0_i32_0 = arith.constant 0 : i32
    %c0_i32_1 = arith.constant 0 : i32
    return %c0_i32, %c0_i32_0 : i32, i32
  }
  func.func @transform_11(%arg0: i32) -> (i32, i32, i32) {
    %c0_i32 = arith.constant 0 : i32
    %c0_i32_0 = arith.constant 0 : i32
    %c0_i32_1 = arith.constant 0 : i32
    return %arg0, %c0_i32, %c0_i32_0 : i32, i32, i32
  }
}

module attributes {stable_mosaic.version = 11 : i64} {
  func.func @_down_kernel(%arg0: i32, %arg1: memref<1x8x128xbf16, #tpu.memory_space<vmem>>, %arg2: memref<4x8xbf16, #tpu.memory_space<vmem>>, %arg3: memref<4x8xbf16, #tpu.memory_space<vmem>>, %arg4: memref<128x64xbf16, #tpu.memory_space<vmem>>, %arg5: memref<128x64xbf16, #tpu.memory_space<vmem>>, %arg6: memref<3x64x128xbf16, #tpu.memory_space<vmem>>, %arg7: memref<1x128xf32, #tpu.memory_space<vmem>>, %arg8: memref<1x128xf32, #tpu.memory_space<vmem>>, %arg9: memref<3x128x128xbf16, #tpu.memory_space<vmem>>, %arg10: memref<1x128xf32, #tpu.memory_space<vmem>>, %arg11: memref<1x128xf32, #tpu.memory_space<vmem>>, %arg12: memref<1x4x128xbf16, #tpu.memory_space<vmem>>, %arg13: memref<13x64xbf16, #tpu.memory_space<vmem>>, %arg14: memref<13x128xbf16, #tpu.memory_space<vmem>>) attributes {dimension_semantics = [#tpu.dimension_semantics<parallel>], iteration_bounds = array<i64: 2>, scalar_prefetch = 0 : i64, scratch_operands = 2 : i64, tpu.core_type = #tpu.core_type<tc>, window_params = [{transform_indices = @transform_0, window_bounds = array<i64: 1, 8, 128>}, {pipeline_mode = #tpu.pipeline_mode<synchronous>, transform_indices = @transform_1, window_bounds = array<i64: 4, 8>}, {pipeline_mode = #tpu.pipeline_mode<synchronous>, transform_indices = @transform_2, window_bounds = array<i64: 4, 8>}, {pipeline_mode = #tpu.pipeline_mode<synchronous>, transform_indices = @transform_3, window_bounds = array<i64: 128, 64>}, {pipeline_mode = #tpu.pipeline_mode<synchronous>, transform_indices = @transform_4, window_bounds = array<i64: 128, 64>}, {pipeline_mode = #tpu.pipeline_mode<synchronous>, transform_indices = @transform_5, window_bounds = array<i64: 3, 64, 128>}, {pipeline_mode = #tpu.pipeline_mode<synchronous>, transform_indices = @transform_6, window_bounds = array<i64: 1, 128>}, {pipeline_mode = #tpu.pipeline_mode<synchronous>, transform_indices = @transform_7, window_bounds = array<i64: 1, 128>}, {pipeline_mode = #tpu.pipeline_mode<synchronous>, transform_indices = @transform_8, window_bounds = array<i64: 3, 128, 128>}, {pipeline_mode = #tpu.pipeline_mode<synchronous>, transform_indices = @transform_9, window_bounds = array<i64: 1, 128>}, {pipeline_mode = #tpu.pipeline_mode<synchronous>, transform_indices = @transform_10, window_bounds = array<i64: 1, 128>}, {transform_indices = @transform_11, window_bounds = array<i64: 1, 4, 128>}]} {
    %c0 = arith.constant 0 : index
    %c0_0 = arith.constant 0 : index
    %c0_1 = arith.constant 0 : index
    %0 = vector.load %arg1[%c0, %c0_0, %c0_1] : memref<1x8x128xbf16, #tpu.memory_space<vmem>>, vector<1x8x128xbf16>
    %1 = vector.shape_cast %0 : vector<1x8x128xbf16> to vector<8x128xbf16>
    %c0_2 = arith.constant 0 : index
    %c0_3 = arith.constant 0 : index
    %2 = vector.load %arg2[%c0_2, %c0_3] : memref<4x8xbf16, #tpu.memory_space<vmem>>, vector<4x8xbf16>
    %cst = arith.constant dense<0.000000e+00> : vector<4x128xf32>
    %3 = tpu.matmul %2, %1, %cst {dimension_numbers = #tpu.dot_dimension_numbers<[1], [0], [0], [1], [0, 0, 1, 1], [], []>} : vector<4x8xbf16>, vector<8x128xbf16>, vector<4x128xf32> -> vector<4x128xf32>
    %c0_4 = arith.constant 0 : index
    %c0_5 = arith.constant 0 : index
    %4 = vector.load %arg3[%c0_4, %c0_5] : memref<4x8xbf16, #tpu.memory_space<vmem>>, vector<4x8xbf16>
    %cst_6 = arith.constant dense<0.000000e+00> : vector<4x128xf32>
    %5 = tpu.matmul %4, %1, %cst_6 {dimension_numbers = #tpu.dot_dimension_numbers<[1], [0], [0], [1], [0, 0, 1, 1], [], []>} : vector<4x8xbf16>, vector<8x128xbf16>, vector<4x128xf32> -> vector<4x128xf32>
    %6 = arith.maximumf %3, %5 : vector<4x128xf32>
    %7 = arith.truncf %6 : vector<4x128xf32> to vector<4x128xbf16>
    %c0_7 = arith.constant 0 : index
    %c0_8 = arith.constant 0 : index
    %8 = vector.load %arg4[%c0_7, %c0_8] : memref<128x64xbf16, #tpu.memory_space<vmem>>, vector<128x64xbf16>
    %cst_9 = arith.constant dense<0.000000e+00> : vector<4x64xf32>
    %9 = tpu.matmul %7, %8, %cst_9 {dimension_numbers = #tpu.dot_dimension_numbers<[1], [0], [0], [1], [0, 0, 1, 1], [], []>} : vector<4x128xbf16>, vector<128x64xbf16>, vector<4x64xf32> -> vector<4x64xf32>
    %c0_10 = arith.constant 0 : index
    %c0_11 = arith.constant 0 : index
    %10 = vector.load %arg5[%c0_10, %c0_11] : memref<128x64xbf16, #tpu.memory_space<vmem>>, vector<128x64xbf16>
    %cst_12 = arith.constant dense<0.000000e+00> : vector<4x64xf32>
    %11 = tpu.matmul %7, %10, %cst_12 {dimension_numbers = #tpu.dot_dimension_numbers<[1], [0], [0], [1], [0, 0, 1, 1], [], []>} : vector<4x128xbf16>, vector<128x64xbf16>, vector<4x64xf32> -> vector<4x64xf32>
    %12 = arith.maximumf %9, %11 : vector<4x64xf32>
    %cst_13 = arith.constant 0.000000e+00 : bf16
    %13 = vector.broadcast %cst_13 : bf16 to vector<1x64xbf16>
    %c7 = arith.constant 7 : index
    %c0_14 = arith.constant 0 : index
    %14 = vector.load %arg13[%c7, %c0_14] : memref<13x64xbf16, #tpu.memory_space<vmem>>, vector<1x64xbf16>
    tpu.vector_store %arg13[%c7, %c0_14], %13 {strides = array<i32>} : memref<13x64xbf16, #tpu.memory_space<vmem>>, vector<1x64xbf16>,
    %c12 = arith.constant 12 : index
    %c0_15 = arith.constant 0 : index
    %15 = vector.load %arg13[%c12, %c0_15] : memref<13x64xbf16, #tpu.memory_space<vmem>>, vector<1x64xbf16>
    tpu.vector_store %arg13[%c12, %c0_15], %13 {strides = array<i32>} : memref<13x64xbf16, #tpu.memory_space<vmem>>, vector<1x64xbf16>,
    %16 = arith.truncf %12 : vector<4x64xf32> to vector<4x64xbf16>
    %c8 = arith.constant 8 : index
    %c0_16 = arith.constant 0 : index
    %17 = vector.load %arg13[%c8, %c0_16] : memref<13x64xbf16, #tpu.memory_space<vmem>>, vector<4x64xbf16>
    tpu.vector_store %arg13[%c8, %c0_16], %16 {strides = array<i32>} : memref<13x64xbf16, #tpu.memory_space<vmem>>, vector<4x64xbf16>,
    %c7_17 = arith.constant 7 : index
    %c0_18 = arith.constant 0 : index
    %18 = vector.load %arg13[%c7_17, %c0_18] : memref<13x64xbf16, #tpu.memory_space<vmem>>, vector<4x64xbf16>
    %c0_19 = arith.constant 0 : index
    %c0_20 = arith.constant 0 : index
    %c0_21 = arith.constant 0 : index
    %19 = vector.load %arg6[%c0_19, %c0_20, %c0_21] : memref<3x64x128xbf16, #tpu.memory_space<vmem>>, vector<1x64x128xbf16>
    %20 = vector.shape_cast %19 : vector<1x64x128xbf16> to vector<64x128xbf16>
    %cst_22 = arith.constant dense<0.000000e+00> : vector<4x128xf32>
    %21 = tpu.matmul %18, %20, %cst_22 {dimension_numbers = #tpu.dot_dimension_numbers<[1], [0], [0], [1], [0, 0, 1, 1], [], []>} : vector<4x64xbf16>, vector<64x128xbf16>, vector<4x128xf32> -> vector<4x128xf32>
    %c8_23 = arith.constant 8 : index
    %c0_24 = arith.constant 0 : index
    %22 = vector.load %arg13[%c8_23, %c0_24] : memref<13x64xbf16, #tpu.memory_space<vmem>>, vector<4x64xbf16>
    %c1 = arith.constant 1 : index
    %c0_25 = arith.constant 0 : index
    %c0_26 = arith.constant 0 : index
    %23 = vector.load %arg6[%c1, %c0_25, %c0_26] : memref<3x64x128xbf16, #tpu.memory_space<vmem>>, vector<1x64x128xbf16>
    %24 = vector.shape_cast %23 : vector<1x64x128xbf16> to vector<64x128xbf16>
    %cst_27 = arith.constant dense<0.000000e+00> : vector<4x128xf32>
    %25 = tpu.matmul %22, %24, %cst_27 {dimension_numbers = #tpu.dot_dimension_numbers<[1], [0], [0], [1], [0, 0, 1, 1], [], []>} : vector<4x64xbf16>, vector<64x128xbf16>, vector<4x128xf32> -> vector<4x128xf32>
    %26 = arith.addf %21, %25 : vector<4x128xf32>
    %c9 = arith.constant 9 : index
    %c0_28 = arith.constant 0 : index
    %27 = vector.load %arg13[%c9, %c0_28] : memref<13x64xbf16, #tpu.memory_space<vmem>>, vector<4x64xbf16>
    %c2 = arith.constant 2 : index
    %c0_29 = arith.constant 0 : index
    %c0_30 = arith.constant 0 : index
    %28 = vector.load %arg6[%c2, %c0_29, %c0_30] : memref<3x64x128xbf16, #tpu.memory_space<vmem>>, vector<1x64x128xbf16>
    %29 = vector.shape_cast %28 : vector<1x64x128xbf16> to vector<64x128xbf16>
    %cst_31 = arith.constant dense<0.000000e+00> : vector<4x128xf32>
    %30 = tpu.matmul %27, %29, %cst_31 {dimension_numbers = #tpu.dot_dimension_numbers<[1], [0], [0], [1], [0, 0, 1, 1], [], []>} : vector<4x64xbf16>, vector<64x128xbf16>, vector<4x128xf32> -> vector<4x128xf32>
    %31 = arith.addf %26, %30 : vector<4x128xf32>
    %c0_32 = arith.constant 0 : index
    %c0_33 = arith.constant 0 : index
    %32 = vector.load %arg7[%c0_32, %c0_33] : memref<1x128xf32, #tpu.memory_space<vmem>>, vector<1x128xf32>
    %33 = vector.broadcast %32 : vector<1x128xf32> to vector<4x128xf32>
    %34 = arith.mulf %31, %33 : vector<4x128xf32>
    %c0_34 = arith.constant 0 : index
    %c0_35 = arith.constant 0 : index
    %35 = vector.load %arg8[%c0_34, %c0_35] : memref<1x128xf32, #tpu.memory_space<vmem>>, vector<1x128xf32>
    %36 = vector.broadcast %35 : vector<1x128xf32> to vector<4x128xf32>
    %37 = arith.addf %34, %36 : vector<4x128xf32>
    %cst_36 = arith.constant 0.000000e+00 : f32
    %38 = vector.broadcast %cst_36 : f32 to vector<4x128xf32>
    %39 = arith.maximumf %37, %38 : vector<4x128xf32>
    %cst_37 = arith.constant 0.000000e+00 : bf16
    %40 = vector.broadcast %cst_37 : bf16 to vector<1x128xbf16>
    %c7_38 = arith.constant 7 : index
    %c0_39 = arith.constant 0 : index
    %41 = vector.load %arg14[%c7_38, %c0_39] : memref<13x128xbf16, #tpu.memory_space<vmem>>, vector<1x128xbf16>
    tpu.vector_store %arg14[%c7_38, %c0_39], %40 {strides = array<i32>} : memref<13x128xbf16, #tpu.memory_space<vmem>>, vector<1x128xbf16>,
    %c12_40 = arith.constant 12 : index
    %c0_41 = arith.constant 0 : index
    %42 = vector.load %arg14[%c12_40, %c0_41] : memref<13x128xbf16, #tpu.memory_space<vmem>>, vector<1x128xbf16>
    tpu.vector_store %arg14[%c12_40, %c0_41], %40 {strides = array<i32>} : memref<13x128xbf16, #tpu.memory_space<vmem>>, vector<1x128xbf16>,
    %43 = arith.truncf %39 : vector<4x128xf32> to vector<4x128xbf16>
    %c8_42 = arith.constant 8 : index
    %c0_43 = arith.constant 0 : index
    %44 = vector.load %arg14[%c8_42, %c0_43] : memref<13x128xbf16, #tpu.memory_space<vmem>>, vector<4x128xbf16>
    tpu.vector_store %arg14[%c8_42, %c0_43], %43 {strides = array<i32>} : memref<13x128xbf16, #tpu.memory_space<vmem>>, vector<4x128xbf16>,
    %c7_44 = arith.constant 7 : index
    %c0_45 = arith.constant 0 : index
    %45 = vector.load %arg14[%c7_44, %c0_45] : memref<13x128xbf16, #tpu.memory_space<vmem>>, vector<4x128xbf16>
    %c0_46 = arith.constant 0 : index
    %c0_47 = arith.constant 0 : index
    %c0_48 = arith.constant 0 : index
    %46 = vector.load %arg9[%c0_46, %c0_47, %c0_48] : memref<3x128x128xbf16, #tpu.memory_space<vmem>>, vector<1x128x128xbf16>
    %47 = vector.shape_cast %46 : vector<1x128x128xbf16> to vector<128x128xbf16>
    %cst_49 = arith.constant dense<0.000000e+00> : vector<4x128xf32>
    %48 = tpu.matmul %45, %47, %cst_49 {dimension_numbers = #tpu.dot_dimension_numbers<[1], [0], [0], [1], [0, 0, 1, 1], [], []>} : vector<4x128xbf16>, vector<128x128xbf16>, vector<4x128xf32> -> vector<4x128xf32>
    %c8_50 = arith.constant 8 : index
    %c0_51 = arith.constant 0 : index
    %49 = vector.load %arg14[%c8_50, %c0_51] : memref<13x128xbf16, #tpu.memory_space<vmem>>, vector<4x128xbf16>
    %c1_52 = arith.constant 1 : index
    %c0_53 = arith.constant 0 : index
    %c0_54 = arith.constant 0 : index
    %50 = vector.load %arg9[%c1_52, %c0_53, %c0_54] : memref<3x128x128xbf16, #tpu.memory_space<vmem>>, vector<1x128x128xbf16>
    %51 = vector.shape_cast %50 : vector<1x128x128xbf16> to vector<128x128xbf16>
    %cst_55 = arith.constant dense<0.000000e+00> : vector<4x128xf32>
    %52 = tpu.matmul %49, %51, %cst_55 {dimension_numbers = #tpu.dot_dimension_numbers<[1], [0], [0], [1], [0, 0, 1, 1], [], []>} : vector<4x128xbf16>, vector<128x128xbf16>, vector<4x128xf32> -> vector<4x128xf32>
    %53 = arith.addf %48, %52 : vector<4x128xf32>
    %c9_56 = arith.constant 9 : index
    %c0_57 = arith.constant 0 : index
    %54 = vector.load %arg14[%c9_56, %c0_57] : memref<13x128xbf16, #tpu.memory_space<vmem>>, vector<4x128xbf16>
    %c2_58 = arith.constant 2 : index
    %c0_59 = arith.constant 0 : index
    %c0_60 = arith.constant 0 : index
    %55 = vector.load %arg9[%c2_58, %c0_59, %c0_60] : memref<3x128x128xbf16, #tpu.memory_space<vmem>>, vector<1x128x128xbf16>
    %56 = vector.shape_cast %55 : vector<1x128x128xbf16> to vector<128x128xbf16>
    %cst_61 = arith.constant dense<0.000000e+00> : vector<4x128xf32>
    %57 = tpu.matmul %54, %56, %cst_61 {dimension_numbers = #tpu.dot_dimension_numbers<[1], [0], [0], [1], [0, 0, 1, 1], [], []>} : vector<4x128xbf16>, vector<128x128xbf16>, vector<4x128xf32> -> vector<4x128xf32>
    %58 = arith.addf %53, %57 : vector<4x128xf32>
    %c0_62 = arith.constant 0 : index
    %c0_63 = arith.constant 0 : index
    %59 = vector.load %arg10[%c0_62, %c0_63] : memref<1x128xf32, #tpu.memory_space<vmem>>, vector<1x128xf32>
    %60 = vector.broadcast %59 : vector<1x128xf32> to vector<4x128xf32>
    %61 = arith.mulf %58, %60 : vector<4x128xf32>
    %c0_64 = arith.constant 0 : index
    %c0_65 = arith.constant 0 : index
    %62 = vector.load %arg11[%c0_64, %c0_65] : memref<1x128xf32, #tpu.memory_space<vmem>>, vector<1x128xf32>
    %63 = vector.broadcast %62 : vector<1x128xf32> to vector<4x128xf32>
    %64 = arith.addf %61, %63 : vector<4x128xf32>
    %cst_66 = arith.constant 0.000000e+00 : f32
    %65 = vector.broadcast %cst_66 : f32 to vector<4x128xf32>
    %66 = arith.maximumf %64, %65 : vector<4x128xf32>
    %67 = vector.shape_cast %66 : vector<4x128xf32> to vector<1x4x128xf32>
    %68 = arith.truncf %67 : vector<1x4x128xf32> to vector<1x4x128xbf16>
    %c0_67 = arith.constant 0 : index
    %c0_68 = arith.constant 0 : index
    %c0_69 = arith.constant 0 : index
    %69 = vector.load %arg12[%c0_67, %c0_68, %c0_69] : memref<1x4x128xbf16, #tpu.memory_space<vmem>>, vector<1x4x128xbf16>
    tpu.vector_store %arg12[%c0_67, %c0_68, %c0_69], %68 {strides = array<i32>} : memref<1x4x128xbf16, #tpu.memory_space<vmem>>, vector<1x4x128xbf16>,
    return
  }
  func.func @transform_0(%arg0: i32) -> (i32, i32, i32) {
    %c0_i32 = arith.constant 0 : i32
    %c0_i32_0 = arith.constant 0 : i32
    %c0_i32_1 = arith.constant 0 : i32
    return %arg0, %c0_i32, %c0_i32_0 : i32, i32, i32
  }
  func.func @transform_1(%arg0: i32) -> (i32, i32) {
    %c0_i32 = arith.constant 0 : i32
    %c0_i32_0 = arith.constant 0 : i32
    %c0_i32_1 = arith.constant 0 : i32
    return %c0_i32, %c0_i32_0 : i32, i32
  }
  func.func @transform_2(%arg0: i32) -> (i32, i32) {
    %c0_i32 = arith.constant 0 : i32
    %c0_i32_0 = arith.constant 0 : i32
    %c0_i32_1 = arith.constant 0 : i32
    return %c0_i32, %c0_i32_0 : i32, i32
  }
  func.func @transform_3(%arg0: i32) -> (i32, i32) {
    %c0_i32 = arith.constant 0 : i32
    %c0_i32_0 = arith.constant 0 : i32
    %c0_i32_1 = arith.constant 0 : i32
    return %c0_i32, %c0_i32_0 : i32, i32
  }
  func.func @transform_4(%arg0: i32) -> (i32, i32) {
    %c0_i32 = arith.constant 0 : i32
    %c0_i32_0 = arith.constant 0 : i32
    %c0_i32_1 = arith.constant 0 : i32
    return %c0_i32, %c0_i32_0 : i32, i32
  }
  func.func @transform_5(%arg0: i32) -> (i32, i32, i32) {
    %c0_i32 = arith.constant 0 : i32
    %c0_i32_0 = arith.constant 0 : i32
    %c0_i32_1 = arith.constant 0 : i32
    %c0_i32_2 = arith.constant 0 : i32
    return %c0_i32, %c0_i32_0, %c0_i32_1 : i32, i32, i32
  }
  func.func @transform_6(%arg0: i32) -> (i32, i32) {
    %c0_i32 = arith.constant 0 : i32
    %c0_i32_0 = arith.constant 0 : i32
    %c0_i32_1 = arith.constant 0 : i32
    return %c0_i32, %c0_i32_0 : i32, i32
  }
  func.func @transform_7(%arg0: i32) -> (i32, i32) {
    %c0_i32 = arith.constant 0 : i32
    %c0_i32_0 = arith.constant 0 : i32
    %c0_i32_1 = arith.constant 0 : i32
    return %c0_i32, %c0_i32_0 : i32, i32
  }
  func.func @transform_8(%arg0: i32) -> (i32, i32, i32) {
    %c0_i32 = arith.constant 0 : i32
    %c0_i32_0 = arith.constant 0 : i32
    %c0_i32_1 = arith.constant 0 : i32
    %c0_i32_2 = arith.constant 0 : i32
    return %c0_i32, %c0_i32_0, %c0_i32_1 : i32, i32, i32
  }
  func.func @transform_9(%arg0: i32) -> (i32, i32) {
    %c0_i32 = arith.constant 0 : i32
    %c0_i32_0 = arith.constant 0 : i32
    %c0_i32_1 = arith.constant 0 : i32
    return %c0_i32, %c0_i32_0 : i32, i32
  }
  func.func @transform_10(%arg0: i32) -> (i32, i32) {
    %c0_i32 = arith.constant 0 : i32
    %c0_i32_0 = arith.constant 0 : i32
    %c0_i32_1 = arith.constant 0 : i32
    return %c0_i32, %c0_i32_0 : i32, i32
  }
  func.func @transform_11(%arg0: i32) -> (i32, i32, i32) {
    %c0_i32 = arith.constant 0 : i32
    %c0_i32_0 = arith.constant 0 : i32
    %c0_i32_1 = arith.constant 0 : i32
    return %arg0, %c0_i32, %c0_i32_0 : i32, i32, i32
  }
}

module attributes {stable_mosaic.version = 11 : i64} {
  func.func @_down_kernel(%arg0: i32, %arg1: memref<1x16x128xbf16, #tpu.memory_space<vmem>>, %arg2: memref<8x16xbf16, #tpu.memory_space<vmem>>, %arg3: memref<8x16xbf16, #tpu.memory_space<vmem>>, %arg4: memref<128x64xbf16, #tpu.memory_space<vmem>>, %arg5: memref<128x64xbf16, #tpu.memory_space<vmem>>, %arg6: memref<3x64x128xbf16, #tpu.memory_space<vmem>>, %arg7: memref<1x128xf32, #tpu.memory_space<vmem>>, %arg8: memref<1x128xf32, #tpu.memory_space<vmem>>, %arg9: memref<3x128x128xbf16, #tpu.memory_space<vmem>>, %arg10: memref<1x128xf32, #tpu.memory_space<vmem>>, %arg11: memref<1x128xf32, #tpu.memory_space<vmem>>, %arg12: memref<1x8x128xbf16, #tpu.memory_space<vmem>>, %arg13: memref<17x64xbf16, #tpu.memory_space<vmem>>, %arg14: memref<17x128xbf16, #tpu.memory_space<vmem>>) attributes {dimension_semantics = [#tpu.dimension_semantics<parallel>], iteration_bounds = array<i64: 2>, scalar_prefetch = 0 : i64, scratch_operands = 2 : i64, tpu.core_type = #tpu.core_type<tc>, window_params = [{transform_indices = @transform_0, window_bounds = array<i64: 1, 16, 128>}, {pipeline_mode = #tpu.pipeline_mode<synchronous>, transform_indices = @transform_1, window_bounds = array<i64: 8, 16>}, {pipeline_mode = #tpu.pipeline_mode<synchronous>, transform_indices = @transform_2, window_bounds = array<i64: 8, 16>}, {pipeline_mode = #tpu.pipeline_mode<synchronous>, transform_indices = @transform_3, window_bounds = array<i64: 128, 64>}, {pipeline_mode = #tpu.pipeline_mode<synchronous>, transform_indices = @transform_4, window_bounds = array<i64: 128, 64>}, {pipeline_mode = #tpu.pipeline_mode<synchronous>, transform_indices = @transform_5, window_bounds = array<i64: 3, 64, 128>}, {pipeline_mode = #tpu.pipeline_mode<synchronous>, transform_indices = @transform_6, window_bounds = array<i64: 1, 128>}, {pipeline_mode = #tpu.pipeline_mode<synchronous>, transform_indices = @transform_7, window_bounds = array<i64: 1, 128>}, {pipeline_mode = #tpu.pipeline_mode<synchronous>, transform_indices = @transform_8, window_bounds = array<i64: 3, 128, 128>}, {pipeline_mode = #tpu.pipeline_mode<synchronous>, transform_indices = @transform_9, window_bounds = array<i64: 1, 128>}, {pipeline_mode = #tpu.pipeline_mode<synchronous>, transform_indices = @transform_10, window_bounds = array<i64: 1, 128>}, {transform_indices = @transform_11, window_bounds = array<i64: 1, 8, 128>}]} {
    %c0 = arith.constant 0 : index
    %c0_0 = arith.constant 0 : index
    %c0_1 = arith.constant 0 : index
    %0 = vector.load %arg1[%c0, %c0_0, %c0_1] : memref<1x16x128xbf16, #tpu.memory_space<vmem>>, vector<1x16x128xbf16>
    %1 = vector.shape_cast %0 : vector<1x16x128xbf16> to vector<16x128xbf16>
    %c0_2 = arith.constant 0 : index
    %c0_3 = arith.constant 0 : index
    %2 = vector.load %arg2[%c0_2, %c0_3] : memref<8x16xbf16, #tpu.memory_space<vmem>>, vector<8x16xbf16>
    %cst = arith.constant dense<0.000000e+00> : vector<8x128xf32>
    %3 = tpu.matmul %2, %1, %cst {dimension_numbers = #tpu.dot_dimension_numbers<[1], [0], [0], [1], [0, 0, 1, 1], [], []>} : vector<8x16xbf16>, vector<16x128xbf16>, vector<8x128xf32> -> vector<8x128xf32>
    %c0_4 = arith.constant 0 : index
    %c0_5 = arith.constant 0 : index
    %4 = vector.load %arg3[%c0_4, %c0_5] : memref<8x16xbf16, #tpu.memory_space<vmem>>, vector<8x16xbf16>
    %cst_6 = arith.constant dense<0.000000e+00> : vector<8x128xf32>
    %5 = tpu.matmul %4, %1, %cst_6 {dimension_numbers = #tpu.dot_dimension_numbers<[1], [0], [0], [1], [0, 0, 1, 1], [], []>} : vector<8x16xbf16>, vector<16x128xbf16>, vector<8x128xf32> -> vector<8x128xf32>
    %6 = arith.maximumf %3, %5 : vector<8x128xf32>
    %7 = arith.truncf %6 : vector<8x128xf32> to vector<8x128xbf16>
    %c0_7 = arith.constant 0 : index
    %c0_8 = arith.constant 0 : index
    %8 = vector.load %arg4[%c0_7, %c0_8] : memref<128x64xbf16, #tpu.memory_space<vmem>>, vector<128x64xbf16>
    %cst_9 = arith.constant dense<0.000000e+00> : vector<8x64xf32>
    %9 = tpu.matmul %7, %8, %cst_9 {dimension_numbers = #tpu.dot_dimension_numbers<[1], [0], [0], [1], [0, 0, 1, 1], [], []>} : vector<8x128xbf16>, vector<128x64xbf16>, vector<8x64xf32> -> vector<8x64xf32>
    %c0_10 = arith.constant 0 : index
    %c0_11 = arith.constant 0 : index
    %10 = vector.load %arg5[%c0_10, %c0_11] : memref<128x64xbf16, #tpu.memory_space<vmem>>, vector<128x64xbf16>
    %cst_12 = arith.constant dense<0.000000e+00> : vector<8x64xf32>
    %11 = tpu.matmul %7, %10, %cst_12 {dimension_numbers = #tpu.dot_dimension_numbers<[1], [0], [0], [1], [0, 0, 1, 1], [], []>} : vector<8x128xbf16>, vector<128x64xbf16>, vector<8x64xf32> -> vector<8x64xf32>
    %12 = arith.maximumf %9, %11 : vector<8x64xf32>
    %cst_13 = arith.constant 0.000000e+00 : bf16
    %13 = vector.broadcast %cst_13 : bf16 to vector<1x64xbf16>
    %c7 = arith.constant 7 : index
    %c0_14 = arith.constant 0 : index
    %14 = vector.load %arg13[%c7, %c0_14] : memref<17x64xbf16, #tpu.memory_space<vmem>>, vector<1x64xbf16>
    tpu.vector_store %arg13[%c7, %c0_14], %13 {strides = array<i32>} : memref<17x64xbf16, #tpu.memory_space<vmem>>, vector<1x64xbf16>,
    %c16 = arith.constant 16 : index
    %c0_15 = arith.constant 0 : index
    %15 = vector.load %arg13[%c16, %c0_15] : memref<17x64xbf16, #tpu.memory_space<vmem>>, vector<1x64xbf16>
    tpu.vector_store %arg13[%c16, %c0_15], %13 {strides = array<i32>} : memref<17x64xbf16, #tpu.memory_space<vmem>>, vector<1x64xbf16>,
    %16 = arith.truncf %12 : vector<8x64xf32> to vector<8x64xbf16>
    %c8 = arith.constant 8 : index
    %c0_16 = arith.constant 0 : index
    %17 = vector.load %arg13[%c8, %c0_16] : memref<17x64xbf16, #tpu.memory_space<vmem>>, vector<8x64xbf16>
    tpu.vector_store %arg13[%c8, %c0_16], %16 {strides = array<i32>} : memref<17x64xbf16, #tpu.memory_space<vmem>>, vector<8x64xbf16>,
    %c7_17 = arith.constant 7 : index
    %c0_18 = arith.constant 0 : index
    %18 = vector.load %arg13[%c7_17, %c0_18] : memref<17x64xbf16, #tpu.memory_space<vmem>>, vector<8x64xbf16>
    %c0_19 = arith.constant 0 : index
    %c0_20 = arith.constant 0 : index
    %c0_21 = arith.constant 0 : index
    %19 = vector.load %arg6[%c0_19, %c0_20, %c0_21] : memref<3x64x128xbf16, #tpu.memory_space<vmem>>, vector<1x64x128xbf16>
    %20 = vector.shape_cast %19 : vector<1x64x128xbf16> to vector<64x128xbf16>
    %cst_22 = arith.constant dense<0.000000e+00> : vector<8x128xf32>
    %21 = tpu.matmul %18, %20, %cst_22 {dimension_numbers = #tpu.dot_dimension_numbers<[1], [0], [0], [1], [0, 0, 1, 1], [], []>} : vector<8x64xbf16>, vector<64x128xbf16>, vector<8x128xf32> -> vector<8x128xf32>
    %c8_23 = arith.constant 8 : index
    %c0_24 = arith.constant 0 : index
    %22 = vector.load %arg13[%c8_23, %c0_24] : memref<17x64xbf16, #tpu.memory_space<vmem>>, vector<8x64xbf16>
    %c1 = arith.constant 1 : index
    %c0_25 = arith.constant 0 : index
    %c0_26 = arith.constant 0 : index
    %23 = vector.load %arg6[%c1, %c0_25, %c0_26] : memref<3x64x128xbf16, #tpu.memory_space<vmem>>, vector<1x64x128xbf16>
    %24 = vector.shape_cast %23 : vector<1x64x128xbf16> to vector<64x128xbf16>
    %cst_27 = arith.constant dense<0.000000e+00> : vector<8x128xf32>
    %25 = tpu.matmul %22, %24, %cst_27 {dimension_numbers = #tpu.dot_dimension_numbers<[1], [0], [0], [1], [0, 0, 1, 1], [], []>} : vector<8x64xbf16>, vector<64x128xbf16>, vector<8x128xf32> -> vector<8x128xf32>
    %26 = arith.addf %21, %25 : vector<8x128xf32>
    %c9 = arith.constant 9 : index
    %c0_28 = arith.constant 0 : index
    %27 = vector.load %arg13[%c9, %c0_28] : memref<17x64xbf16, #tpu.memory_space<vmem>>, vector<8x64xbf16>
    %c2 = arith.constant 2 : index
    %c0_29 = arith.constant 0 : index
    %c0_30 = arith.constant 0 : index
    %28 = vector.load %arg6[%c2, %c0_29, %c0_30] : memref<3x64x128xbf16, #tpu.memory_space<vmem>>, vector<1x64x128xbf16>
    %29 = vector.shape_cast %28 : vector<1x64x128xbf16> to vector<64x128xbf16>
    %cst_31 = arith.constant dense<0.000000e+00> : vector<8x128xf32>
    %30 = tpu.matmul %27, %29, %cst_31 {dimension_numbers = #tpu.dot_dimension_numbers<[1], [0], [0], [1], [0, 0, 1, 1], [], []>} : vector<8x64xbf16>, vector<64x128xbf16>, vector<8x128xf32> -> vector<8x128xf32>
    %31 = arith.addf %26, %30 : vector<8x128xf32>
    %c0_32 = arith.constant 0 : index
    %c0_33 = arith.constant 0 : index
    %32 = vector.load %arg7[%c0_32, %c0_33] : memref<1x128xf32, #tpu.memory_space<vmem>>, vector<1x128xf32>
    %33 = vector.broadcast %32 : vector<1x128xf32> to vector<8x128xf32>
    %34 = arith.mulf %31, %33 : vector<8x128xf32>
    %c0_34 = arith.constant 0 : index
    %c0_35 = arith.constant 0 : index
    %35 = vector.load %arg8[%c0_34, %c0_35] : memref<1x128xf32, #tpu.memory_space<vmem>>, vector<1x128xf32>
    %36 = vector.broadcast %35 : vector<1x128xf32> to vector<8x128xf32>
    %37 = arith.addf %34, %36 : vector<8x128xf32>
    %cst_36 = arith.constant 0.000000e+00 : f32
    %38 = vector.broadcast %cst_36 : f32 to vector<8x128xf32>
    %39 = arith.maximumf %37, %38 : vector<8x128xf32>
    %cst_37 = arith.constant 0.000000e+00 : bf16
    %40 = vector.broadcast %cst_37 : bf16 to vector<1x128xbf16>
    %c7_38 = arith.constant 7 : index
    %c0_39 = arith.constant 0 : index
    %41 = vector.load %arg14[%c7_38, %c0_39] : memref<17x128xbf16, #tpu.memory_space<vmem>>, vector<1x128xbf16>
    tpu.vector_store %arg14[%c7_38, %c0_39], %40 {strides = array<i32>} : memref<17x128xbf16, #tpu.memory_space<vmem>>, vector<1x128xbf16>,
    %c16_40 = arith.constant 16 : index
    %c0_41 = arith.constant 0 : index
    %42 = vector.load %arg14[%c16_40, %c0_41] : memref<17x128xbf16, #tpu.memory_space<vmem>>, vector<1x128xbf16>
    tpu.vector_store %arg14[%c16_40, %c0_41], %40 {strides = array<i32>} : memref<17x128xbf16, #tpu.memory_space<vmem>>, vector<1x128xbf16>,
    %43 = arith.truncf %39 : vector<8x128xf32> to vector<8x128xbf16>
    %c8_42 = arith.constant 8 : index
    %c0_43 = arith.constant 0 : index
    %44 = vector.load %arg14[%c8_42, %c0_43] : memref<17x128xbf16, #tpu.memory_space<vmem>>, vector<8x128xbf16>
    tpu.vector_store %arg14[%c8_42, %c0_43], %43 {strides = array<i32>} : memref<17x128xbf16, #tpu.memory_space<vmem>>, vector<8x128xbf16>,
    %c7_44 = arith.constant 7 : index
    %c0_45 = arith.constant 0 : index
    %45 = vector.load %arg14[%c7_44, %c0_45] : memref<17x128xbf16, #tpu.memory_space<vmem>>, vector<8x128xbf16>
    %c0_46 = arith.constant 0 : index
    %c0_47 = arith.constant 0 : index
    %c0_48 = arith.constant 0 : index
    %46 = vector.load %arg9[%c0_46, %c0_47, %c0_48] : memref<3x128x128xbf16, #tpu.memory_space<vmem>>, vector<1x128x128xbf16>
    %47 = vector.shape_cast %46 : vector<1x128x128xbf16> to vector<128x128xbf16>
    %cst_49 = arith.constant dense<0.000000e+00> : vector<8x128xf32>
    %48 = tpu.matmul %45, %47, %cst_49 {dimension_numbers = #tpu.dot_dimension_numbers<[1], [0], [0], [1], [0, 0, 1, 1], [], []>} : vector<8x128xbf16>, vector<128x128xbf16>, vector<8x128xf32> -> vector<8x128xf32>
    %c8_50 = arith.constant 8 : index
    %c0_51 = arith.constant 0 : index
    %49 = vector.load %arg14[%c8_50, %c0_51] : memref<17x128xbf16, #tpu.memory_space<vmem>>, vector<8x128xbf16>
    %c1_52 = arith.constant 1 : index
    %c0_53 = arith.constant 0 : index
    %c0_54 = arith.constant 0 : index
    %50 = vector.load %arg9[%c1_52, %c0_53, %c0_54] : memref<3x128x128xbf16, #tpu.memory_space<vmem>>, vector<1x128x128xbf16>
    %51 = vector.shape_cast %50 : vector<1x128x128xbf16> to vector<128x128xbf16>
    %cst_55 = arith.constant dense<0.000000e+00> : vector<8x128xf32>
    %52 = tpu.matmul %49, %51, %cst_55 {dimension_numbers = #tpu.dot_dimension_numbers<[1], [0], [0], [1], [0, 0, 1, 1], [], []>} : vector<8x128xbf16>, vector<128x128xbf16>, vector<8x128xf32> -> vector<8x128xf32>
    %53 = arith.addf %48, %52 : vector<8x128xf32>
    %c9_56 = arith.constant 9 : index
    %c0_57 = arith.constant 0 : index
    %54 = vector.load %arg14[%c9_56, %c0_57] : memref<17x128xbf16, #tpu.memory_space<vmem>>, vector<8x128xbf16>
    %c2_58 = arith.constant 2 : index
    %c0_59 = arith.constant 0 : index
    %c0_60 = arith.constant 0 : index
    %55 = vector.load %arg9[%c2_58, %c0_59, %c0_60] : memref<3x128x128xbf16, #tpu.memory_space<vmem>>, vector<1x128x128xbf16>
    %56 = vector.shape_cast %55 : vector<1x128x128xbf16> to vector<128x128xbf16>
    %cst_61 = arith.constant dense<0.000000e+00> : vector<8x128xf32>
    %57 = tpu.matmul %54, %56, %cst_61 {dimension_numbers = #tpu.dot_dimension_numbers<[1], [0], [0], [1], [0, 0, 1, 1], [], []>} : vector<8x128xbf16>, vector<128x128xbf16>, vector<8x128xf32> -> vector<8x128xf32>
    %58 = arith.addf %53, %57 : vector<8x128xf32>
    %c0_62 = arith.constant 0 : index
    %c0_63 = arith.constant 0 : index
    %59 = vector.load %arg10[%c0_62, %c0_63] : memref<1x128xf32, #tpu.memory_space<vmem>>, vector<1x128xf32>
    %60 = vector.broadcast %59 : vector<1x128xf32> to vector<8x128xf32>
    %61 = arith.mulf %58, %60 : vector<8x128xf32>
    %c0_64 = arith.constant 0 : index
    %c0_65 = arith.constant 0 : index
    %62 = vector.load %arg11[%c0_64, %c0_65] : memref<1x128xf32, #tpu.memory_space<vmem>>, vector<1x128xf32>
    %63 = vector.broadcast %62 : vector<1x128xf32> to vector<8x128xf32>
    %64 = arith.addf %61, %63 : vector<8x128xf32>
    %cst_66 = arith.constant 0.000000e+00 : f32
    %65 = vector.broadcast %cst_66 : f32 to vector<8x128xf32>
    %66 = arith.maximumf %64, %65 : vector<8x128xf32>
    %67 = vector.shape_cast %66 : vector<8x128xf32> to vector<1x8x128xf32>
    %68 = arith.truncf %67 : vector<1x8x128xf32> to vector<1x8x128xbf16>
    %c0_67 = arith.constant 0 : index
    %c0_68 = arith.constant 0 : index
    %c0_69 = arith.constant 0 : index
    %69 = vector.load %arg12[%c0_67, %c0_68, %c0_69] : memref<1x8x128xbf16, #tpu.memory_space<vmem>>, vector<1x8x128xbf16>
    tpu.vector_store %arg12[%c0_67, %c0_68, %c0_69], %68 {strides = array<i32>} : memref<1x8x128xbf16, #tpu.memory_space<vmem>>, vector<1x8x128xbf16>,
    return
  }
  func.func @transform_0(%arg0: i32) -> (i32, i32, i32) {
    %c0_i32 = arith.constant 0 : i32
    %c0_i32_0 = arith.constant 0 : i32
    %c0_i32_1 = arith.constant 0 : i32
    return %arg0, %c0_i32, %c0_i32_0 : i32, i32, i32
  }
  func.func @transform_1(%arg0: i32) -> (i32, i32) {
    %c0_i32 = arith.constant 0 : i32
    %c0_i32_0 = arith.constant 0 : i32
    %c0_i32_1 = arith.constant 0 : i32
    return %c0_i32, %c0_i32_0 : i32, i32
  }
  func.func @transform_2(%arg0: i32) -> (i32, i32) {
    %c0_i32 = arith.constant 0 : i32
    %c0_i32_0 = arith.constant 0 : i32
    %c0_i32_1 = arith.constant 0 : i32
    return %c0_i32, %c0_i32_0 : i32, i32
  }
  func.func @transform_3(%arg0: i32) -> (i32, i32) {
    %c0_i32 = arith.constant 0 : i32
    %c0_i32_0 = arith.constant 0 : i32
    %c0_i32_1 = arith.constant 0 : i32
    return %c0_i32, %c0_i32_0 : i32, i32
  }
  func.func @transform_4(%arg0: i32) -> (i32, i32) {
    %c0_i32 = arith.constant 0 : i32
    %c0_i32_0 = arith.constant 0 : i32
    %c0_i32_1 = arith.constant 0 : i32
    return %c0_i32, %c0_i32_0 : i32, i32
  }
  func.func @transform_5(%arg0: i32) -> (i32, i32, i32) {
    %c0_i32 = arith.constant 0 : i32
    %c0_i32_0 = arith.constant 0 : i32
    %c0_i32_1 = arith.constant 0 : i32
    %c0_i32_2 = arith.constant 0 : i32
    return %c0_i32, %c0_i32_0, %c0_i32_1 : i32, i32, i32
  }
  func.func @transform_6(%arg0: i32) -> (i32, i32) {
    %c0_i32 = arith.constant 0 : i32
    %c0_i32_0 = arith.constant 0 : i32
    %c0_i32_1 = arith.constant 0 : i32
    return %c0_i32, %c0_i32_0 : i32, i32
  }
  func.func @transform_7(%arg0: i32) -> (i32, i32) {
    %c0_i32 = arith.constant 0 : i32
    %c0_i32_0 = arith.constant 0 : i32
    %c0_i32_1 = arith.constant 0 : i32
    return %c0_i32, %c0_i32_0 : i32, i32
  }
  func.func @transform_8(%arg0: i32) -> (i32, i32, i32) {
    %c0_i32 = arith.constant 0 : i32
    %c0_i32_0 = arith.constant 0 : i32
    %c0_i32_1 = arith.constant 0 : i32
    %c0_i32_2 = arith.constant 0 : i32
    return %c0_i32, %c0_i32_0, %c0_i32_1 : i32, i32, i32
  }
  func.func @transform_9(%arg0: i32) -> (i32, i32) {
    %c0_i32 = arith.constant 0 : i32
    %c0_i32_0 = arith.constant 0 : i32
    %c0_i32_1 = arith.constant 0 : i32
    return %c0_i32, %c0_i32_0 : i32, i32
  }
  func.func @transform_10(%arg0: i32) -> (i32, i32) {
    %c0_i32 = arith.constant 0 : i32
    %c0_i32_0 = arith.constant 0 : i32
    %c0_i32_1 = arith.constant 0 : i32
    return %c0_i32, %c0_i32_0 : i32, i32
  }
  func.func @transform_11(%arg0: i32) -> (i32, i32, i32) {
    %c0_i32 = arith.constant 0 : i32
    %c0_i32_0 = arith.constant 0 : i32
    %c0_i32_1 = arith.constant 0 : i32
    return %arg0, %c0_i32, %c0_i32_0 : i32, i32, i32
  }
}

module attributes {stable_mosaic.version = 11 : i64} {
  func.func @_up_kernel(%arg0: i32, %arg1: memref<1x4x128xbf16, #tpu.memory_space<vmem>>, %arg2: memref<1x8x128xbf16, #tpu.memory_space<vmem>>, %arg3: memref<8x4xbf16, #tpu.memory_space<vmem>>, %arg4: memref<128x128xbf16, #tpu.memory_space<vmem>>, %arg5: memref<1x128xf32, #tpu.memory_space<vmem>>, %arg6: memref<3x128x128xbf16, #tpu.memory_space<vmem>>, %arg7: memref<3x128x128xbf16, #tpu.memory_space<vmem>>, %arg8: memref<1x128xf32, #tpu.memory_space<vmem>>, %arg9: memref<1x128xf32, #tpu.memory_space<vmem>>, %arg10: memref<3x128x128xbf16, #tpu.memory_space<vmem>>, %arg11: memref<1x128xf32, #tpu.memory_space<vmem>>, %arg12: memref<1x128xf32, #tpu.memory_space<vmem>>, %arg13: memref<1x8x128xbf16, #tpu.memory_space<vmem>>, %arg14: memref<17x128xbf16, #tpu.memory_space<vmem>>, %arg15: memref<17x128xbf16, #tpu.memory_space<vmem>>, %arg16: memref<17x128xbf16, #tpu.memory_space<vmem>>) attributes {dimension_semantics = [#tpu.dimension_semantics<parallel>], iteration_bounds = array<i64: 2>, scalar_prefetch = 0 : i64, scratch_operands = 3 : i64, tpu.core_type = #tpu.core_type<tc>, window_params = [{transform_indices = @transform_0, window_bounds = array<i64: 1, 4, 128>}, {transform_indices = @transform_1, window_bounds = array<i64: 1, 8, 128>}, {pipeline_mode = #tpu.pipeline_mode<synchronous>, transform_indices = @transform_2, window_bounds = array<i64: 8, 4>}, {pipeline_mode = #tpu.pipeline_mode<synchronous>, transform_indices = @transform_3, window_bounds = array<i64: 128, 128>}, {pipeline_mode = #tpu.pipeline_mode<synchronous>, transform_indices = @transform_4, window_bounds = array<i64: 1, 128>}, {pipeline_mode = #tpu.pipeline_mode<synchronous>, transform_indices = @transform_5, window_bounds = array<i64: 3, 128, 128>}, {pipeline_mode = #tpu.pipeline_mode<synchronous>, transform_indices = @transform_6, window_bounds = array<i64: 3, 128, 128>}, {pipeline_mode = #tpu.pipeline_mode<synchronous>, transform_indices = @transform_7, window_bounds = array<i64: 1, 128>}, {pipeline_mode = #tpu.pipeline_mode<synchronous>, transform_indices = @transform_8, window_bounds = array<i64: 1, 128>}, {pipeline_mode = #tpu.pipeline_mode<synchronous>, transform_indices = @transform_9, window_bounds = array<i64: 3, 128, 128>}, {pipeline_mode = #tpu.pipeline_mode<synchronous>, transform_indices = @transform_10, window_bounds = array<i64: 1, 128>}, {pipeline_mode = #tpu.pipeline_mode<synchronous>, transform_indices = @transform_11, window_bounds = array<i64: 1, 128>}, {transform_indices = @transform_12, window_bounds = array<i64: 1, 8, 128>}]} {
    %c0 = arith.constant 0 : index
    %c0_0 = arith.constant 0 : index
    %0 = vector.load %arg3[%c0, %c0_0] : memref<8x4xbf16, #tpu.memory_space<vmem>>, vector<8x4xbf16>
    %c0_1 = arith.constant 0 : index
    %c0_2 = arith.constant 0 : index
    %c0_3 = arith.constant 0 : index
    %1 = vector.load %arg1[%c0_1, %c0_2, %c0_3] : memref<1x4x128xbf16, #tpu.memory_space<vmem>>, vector<1x4x128xbf16>
    %2 = vector.shape_cast %1 : vector<1x4x128xbf16> to vector<4x128xbf16>
    %cst = arith.constant dense<0.000000e+00> : vector<8x128xf32>
    %3 = tpu.matmul %0, %2, %cst {dimension_numbers = #tpu.dot_dimension_numbers<[1], [0], [0], [1], [0, 0, 1, 1], [], []>} : vector<8x4xbf16>, vector<4x128xbf16>, vector<8x128xf32> -> vector<8x128xf32>
    %4 = arith.truncf %3 : vector<8x128xf32> to vector<8x128xbf16>
    %c0_4 = arith.constant 0 : index
    %c0_5 = arith.constant 0 : index
    %5 = vector.load %arg4[%c0_4, %c0_5] : memref<128x128xbf16, #tpu.memory_space<vmem>>, vector<128x128xbf16>
    %cst_6 = arith.constant dense<0.000000e+00> : vector<8x128xf32>
    %6 = tpu.matmul %4, %5, %cst_6 {dimension_numbers = #tpu.dot_dimension_numbers<[1], [0], [0], [1], [0, 0, 1, 1], [], []>} : vector<8x128xbf16>, vector<128x128xbf16>, vector<8x128xf32> -> vector<8x128xf32>
    %c0_7 = arith.constant 0 : index
    %c0_8 = arith.constant 0 : index
    %7 = vector.load %arg5[%c0_7, %c0_8] : memref<1x128xf32, #tpu.memory_space<vmem>>, vector<1x128xf32>
    %8 = vector.broadcast %7 : vector<1x128xf32> to vector<8x128xf32>
    %9 = arith.addf %6, %8 : vector<8x128xf32>
    %c0_9 = arith.constant 0 : index
    %c0_10 = arith.constant 0 : index
    %c0_11 = arith.constant 0 : index
    %10 = vector.load %arg2[%c0_9, %c0_10, %c0_11] : memref<1x8x128xbf16, #tpu.memory_space<vmem>>, vector<1x8x128xbf16>
    %11 = vector.shape_cast %10 : vector<1x8x128xbf16> to vector<8x128xbf16>
    %cst_12 = arith.constant 0.000000e+00 : bf16
    %12 = vector.broadcast %cst_12 : bf16 to vector<1x128xbf16>
    %c7 = arith.constant 7 : index
    %c0_13 = arith.constant 0 : index
    %13 = vector.load %arg14[%c7, %c0_13] : memref<17x128xbf16, #tpu.memory_space<vmem>>, vector<1x128xbf16>
    tpu.vector_store %arg14[%c7, %c0_13], %12 {strides = array<i32>} : memref<17x128xbf16, #tpu.memory_space<vmem>>, vector<1x128xbf16>,
    %c16 = arith.constant 16 : index
    %c0_14 = arith.constant 0 : index
    %14 = vector.load %arg14[%c16, %c0_14] : memref<17x128xbf16, #tpu.memory_space<vmem>>, vector<1x128xbf16>
    tpu.vector_store %arg14[%c16, %c0_14], %12 {strides = array<i32>} : memref<17x128xbf16, #tpu.memory_space<vmem>>, vector<1x128xbf16>,
    %c8 = arith.constant 8 : index
    %c0_15 = arith.constant 0 : index
    %15 = vector.load %arg14[%c8, %c0_15] : memref<17x128xbf16, #tpu.memory_space<vmem>>, vector<8x128xbf16>
    tpu.vector_store %arg14[%c8, %c0_15], %11 {strides = array<i32>} : memref<17x128xbf16, #tpu.memory_space<vmem>>, vector<8x128xbf16>,
    %cst_16 = arith.constant 0.000000e+00 : bf16
    %16 = vector.broadcast %cst_16 : bf16 to vector<1x128xbf16>
    %c7_17 = arith.constant 7 : index
    %c0_18 = arith.constant 0 : index
    %17 = vector.load %arg15[%c7_17, %c0_18] : memref<17x128xbf16, #tpu.memory_space<vmem>>, vector<1x128xbf16>
    tpu.vector_store %arg15[%c7_17, %c0_18], %16 {strides = array<i32>} : memref<17x128xbf16, #tpu.memory_space<vmem>>, vector<1x128xbf16>,
    %c16_19 = arith.constant 16 : index
    %c0_20 = arith.constant 0 : index
    %18 = vector.load %arg15[%c16_19, %c0_20] : memref<17x128xbf16, #tpu.memory_space<vmem>>, vector<1x128xbf16>
    tpu.vector_store %arg15[%c16_19, %c0_20], %16 {strides = array<i32>} : memref<17x128xbf16, #tpu.memory_space<vmem>>, vector<1x128xbf16>,
    %19 = arith.truncf %9 : vector<8x128xf32> to vector<8x128xbf16>
    %c8_21 = arith.constant 8 : index
    %c0_22 = arith.constant 0 : index
    %20 = vector.load %arg15[%c8_21, %c0_22] : memref<17x128xbf16, #tpu.memory_space<vmem>>, vector<8x128xbf16>
    tpu.vector_store %arg15[%c8_21, %c0_22], %19 {strides = array<i32>} : memref<17x128xbf16, #tpu.memory_space<vmem>>, vector<8x128xbf16>,
    %c7_23 = arith.constant 7 : index
    %c0_24 = arith.constant 0 : index
    %21 = vector.load %arg14[%c7_23, %c0_24] : memref<17x128xbf16, #tpu.memory_space<vmem>>, vector<8x128xbf16>
    %c0_25 = arith.constant 0 : index
    %c0_26 = arith.constant 0 : index
    %c0_27 = arith.constant 0 : index
    %22 = vector.load %arg6[%c0_25, %c0_26, %c0_27] : memref<3x128x128xbf16, #tpu.memory_space<vmem>>, vector<1x128x128xbf16>
    %23 = vector.shape_cast %22 : vector<1x128x128xbf16> to vector<128x128xbf16>
    %cst_28 = arith.constant dense<0.000000e+00> : vector<8x128xf32>
    %24 = tpu.matmul %21, %23, %cst_28 {dimension_numbers = #tpu.dot_dimension_numbers<[1], [0], [0], [1], [0, 0, 1, 1], [], []>} : vector<8x128xbf16>, vector<128x128xbf16>, vector<8x128xf32> -> vector<8x128xf32>
    %c8_29 = arith.constant 8 : index
    %c0_30 = arith.constant 0 : index
    %25 = vector.load %arg14[%c8_29, %c0_30] : memref<17x128xbf16, #tpu.memory_space<vmem>>, vector<8x128xbf16>
    %c1 = arith.constant 1 : index
    %c0_31 = arith.constant 0 : index
    %c0_32 = arith.constant 0 : index
    %26 = vector.load %arg6[%c1, %c0_31, %c0_32] : memref<3x128x128xbf16, #tpu.memory_space<vmem>>, vector<1x128x128xbf16>
    %27 = vector.shape_cast %26 : vector<1x128x128xbf16> to vector<128x128xbf16>
    %cst_33 = arith.constant dense<0.000000e+00> : vector<8x128xf32>
    %28 = tpu.matmul %25, %27, %cst_33 {dimension_numbers = #tpu.dot_dimension_numbers<[1], [0], [0], [1], [0, 0, 1, 1], [], []>} : vector<8x128xbf16>, vector<128x128xbf16>, vector<8x128xf32> -> vector<8x128xf32>
    %29 = arith.addf %24, %28 : vector<8x128xf32>
    %c9 = arith.constant 9 : index
    %c0_34 = arith.constant 0 : index
    %30 = vector.load %arg14[%c9, %c0_34] : memref<17x128xbf16, #tpu.memory_space<vmem>>, vector<8x128xbf16>
    %c2 = arith.constant 2 : index
    %c0_35 = arith.constant 0 : index
    %c0_36 = arith.constant 0 : index
    %31 = vector.load %arg6[%c2, %c0_35, %c0_36] : memref<3x128x128xbf16, #tpu.memory_space<vmem>>, vector<1x128x128xbf16>
    %32 = vector.shape_cast %31 : vector<1x128x128xbf16> to vector<128x128xbf16>
    %cst_37 = arith.constant dense<0.000000e+00> : vector<8x128xf32>
    %33 = tpu.matmul %30, %32, %cst_37 {dimension_numbers = #tpu.dot_dimension_numbers<[1], [0], [0], [1], [0, 0, 1, 1], [], []>} : vector<8x128xbf16>, vector<128x128xbf16>, vector<8x128xf32> -> vector<8x128xf32>
    %34 = arith.addf %29, %33 : vector<8x128xf32>
    %c7_38 = arith.constant 7 : index
    %c0_39 = arith.constant 0 : index
    %35 = vector.load %arg15[%c7_38, %c0_39] : memref<17x128xbf16, #tpu.memory_space<vmem>>, vector<8x128xbf16>
    %c0_40 = arith.constant 0 : index
    %c0_41 = arith.constant 0 : index
    %c0_42 = arith.constant 0 : index
    %36 = vector.load %arg7[%c0_40, %c0_41, %c0_42] : memref<3x128x128xbf16, #tpu.memory_space<vmem>>, vector<1x128x128xbf16>
    %37 = vector.shape_cast %36 : vector<1x128x128xbf16> to vector<128x128xbf16>
    %cst_43 = arith.constant dense<0.000000e+00> : vector<8x128xf32>
    %38 = tpu.matmul %35, %37, %cst_43 {dimension_numbers = #tpu.dot_dimension_numbers<[1], [0], [0], [1], [0, 0, 1, 1], [], []>} : vector<8x128xbf16>, vector<128x128xbf16>, vector<8x128xf32> -> vector<8x128xf32>
    %c8_44 = arith.constant 8 : index
    %c0_45 = arith.constant 0 : index
    %39 = vector.load %arg15[%c8_44, %c0_45] : memref<17x128xbf16, #tpu.memory_space<vmem>>, vector<8x128xbf16>
    %c1_46 = arith.constant 1 : index
    %c0_47 = arith.constant 0 : index
    %c0_48 = arith.constant 0 : index
    %40 = vector.load %arg7[%c1_46, %c0_47, %c0_48] : memref<3x128x128xbf16, #tpu.memory_space<vmem>>, vector<1x128x128xbf16>
    %41 = vector.shape_cast %40 : vector<1x128x128xbf16> to vector<128x128xbf16>
    %cst_49 = arith.constant dense<0.000000e+00> : vector<8x128xf32>
    %42 = tpu.matmul %39, %41, %cst_49 {dimension_numbers = #tpu.dot_dimension_numbers<[1], [0], [0], [1], [0, 0, 1, 1], [], []>} : vector<8x128xbf16>, vector<128x128xbf16>, vector<8x128xf32> -> vector<8x128xf32>
    %43 = arith.addf %38, %42 : vector<8x128xf32>
    %c9_50 = arith.constant 9 : index
    %c0_51 = arith.constant 0 : index
    %44 = vector.load %arg15[%c9_50, %c0_51] : memref<17x128xbf16, #tpu.memory_space<vmem>>, vector<8x128xbf16>
    %c2_52 = arith.constant 2 : index
    %c0_53 = arith.constant 0 : index
    %c0_54 = arith.constant 0 : index
    %45 = vector.load %arg7[%c2_52, %c0_53, %c0_54] : memref<3x128x128xbf16, #tpu.memory_space<vmem>>, vector<1x128x128xbf16>
    %46 = vector.shape_cast %45 : vector<1x128x128xbf16> to vector<128x128xbf16>
    %cst_55 = arith.constant dense<0.000000e+00> : vector<8x128xf32>
    %47 = tpu.matmul %44, %46, %cst_55 {dimension_numbers = #tpu.dot_dimension_numbers<[1], [0], [0], [1], [0, 0, 1, 1], [], []>} : vector<8x128xbf16>, vector<128x128xbf16>, vector<8x128xf32> -> vector<8x128xf32>
    %48 = arith.addf %43, %47 : vector<8x128xf32>
    %49 = arith.addf %34, %48 : vector<8x128xf32>
    %c0_56 = arith.constant 0 : index
    %c0_57 = arith.constant 0 : index
    %50 = vector.load %arg8[%c0_56, %c0_57] : memref<1x128xf32, #tpu.memory_space<vmem>>, vector<1x128xf32>
    %51 = vector.broadcast %50 : vector<1x128xf32> to vector<8x128xf32>
    %52 = arith.mulf %49, %51 : vector<8x128xf32>
    %c0_58 = arith.constant 0 : index
    %c0_59 = arith.constant 0 : index
    %53 = vector.load %arg9[%c0_58, %c0_59] : memref<1x128xf32, #tpu.memory_space<vmem>>, vector<1x128xf32>
    %54 = vector.broadcast %53 : vector<1x128xf32> to vector<8x128xf32>
    %55 = arith.addf %52, %54 : vector<8x128xf32>
    %cst_60 = arith.constant 0.000000e+00 : f32
    %56 = vector.broadcast %cst_60 : f32 to vector<8x128xf32>
    %57 = arith.maximumf %55, %56 : vector<8x128xf32>
    %cst_61 = arith.constant 0.000000e+00 : bf16
    %58 = vector.broadcast %cst_61 : bf16 to vector<1x128xbf16>
    %c7_62 = arith.constant 7 : index
    %c0_63 = arith.constant 0 : index
    %59 = vector.load %arg16[%c7_62, %c0_63] : memref<17x128xbf16, #tpu.memory_space<vmem>>, vector<1x128xbf16>
    tpu.vector_store %arg16[%c7_62, %c0_63], %58 {strides = array<i32>} : memref<17x128xbf16, #tpu.memory_space<vmem>>, vector<1x128xbf16>,
    %c16_64 = arith.constant 16 : index
    %c0_65 = arith.constant 0 : index
    %60 = vector.load %arg16[%c16_64, %c0_65] : memref<17x128xbf16, #tpu.memory_space<vmem>>, vector<1x128xbf16>
    tpu.vector_store %arg16[%c16_64, %c0_65], %58 {strides = array<i32>} : memref<17x128xbf16, #tpu.memory_space<vmem>>, vector<1x128xbf16>,
    %61 = arith.truncf %57 : vector<8x128xf32> to vector<8x128xbf16>
    %c8_66 = arith.constant 8 : index
    %c0_67 = arith.constant 0 : index
    %62 = vector.load %arg16[%c8_66, %c0_67] : memref<17x128xbf16, #tpu.memory_space<vmem>>, vector<8x128xbf16>
    tpu.vector_store %arg16[%c8_66, %c0_67], %61 {strides = array<i32>} : memref<17x128xbf16, #tpu.memory_space<vmem>>, vector<8x128xbf16>,
    %c7_68 = arith.constant 7 : index
    %c0_69 = arith.constant 0 : index
    %63 = vector.load %arg16[%c7_68, %c0_69] : memref<17x128xbf16, #tpu.memory_space<vmem>>, vector<8x128xbf16>
    %c0_70 = arith.constant 0 : index
    %c0_71 = arith.constant 0 : index
    %c0_72 = arith.constant 0 : index
    %64 = vector.load %arg10[%c0_70, %c0_71, %c0_72] : memref<3x128x128xbf16, #tpu.memory_space<vmem>>, vector<1x128x128xbf16>
    %65 = vector.shape_cast %64 : vector<1x128x128xbf16> to vector<128x128xbf16>
    %cst_73 = arith.constant dense<0.000000e+00> : vector<8x128xf32>
    %66 = tpu.matmul %63, %65, %cst_73 {dimension_numbers = #tpu.dot_dimension_numbers<[1], [0], [0], [1], [0, 0, 1, 1], [], []>} : vector<8x128xbf16>, vector<128x128xbf16>, vector<8x128xf32> -> vector<8x128xf32>
    %c8_74 = arith.constant 8 : index
    %c0_75 = arith.constant 0 : index
    %67 = vector.load %arg16[%c8_74, %c0_75] : memref<17x128xbf16, #tpu.memory_space<vmem>>, vector<8x128xbf16>
    %c1_76 = arith.constant 1 : index
    %c0_77 = arith.constant 0 : index
    %c0_78 = arith.constant 0 : index
    %68 = vector.load %arg10[%c1_76, %c0_77, %c0_78] : memref<3x128x128xbf16, #tpu.memory_space<vmem>>, vector<1x128x128xbf16>
    %69 = vector.shape_cast %68 : vector<1x128x128xbf16> to vector<128x128xbf16>
    %cst_79 = arith.constant dense<0.000000e+00> : vector<8x128xf32>
    %70 = tpu.matmul %67, %69, %cst_79 {dimension_numbers = #tpu.dot_dimension_numbers<[1], [0], [0], [1], [0, 0, 1, 1], [], []>} : vector<8x128xbf16>, vector<128x128xbf16>, vector<8x128xf32> -> vector<8x128xf32>
    %71 = arith.addf %66, %70 : vector<8x128xf32>
    %c9_80 = arith.constant 9 : index
    %c0_81 = arith.constant 0 : index
    %72 = vector.load %arg16[%c9_80, %c0_81] : memref<17x128xbf16, #tpu.memory_space<vmem>>, vector<8x128xbf16>
    %c2_82 = arith.constant 2 : index
    %c0_83 = arith.constant 0 : index
    %c0_84 = arith.constant 0 : index
    %73 = vector.load %arg10[%c2_82, %c0_83, %c0_84] : memref<3x128x128xbf16, #tpu.memory_space<vmem>>, vector<1x128x128xbf16>
    %74 = vector.shape_cast %73 : vector<1x128x128xbf16> to vector<128x128xbf16>
    %cst_85 = arith.constant dense<0.000000e+00> : vector<8x128xf32>
    %75 = tpu.matmul %72, %74, %cst_85 {dimension_numbers = #tpu.dot_dimension_numbers<[1], [0], [0], [1], [0, 0, 1, 1], [], []>} : vector<8x128xbf16>, vector<128x128xbf16>, vector<8x128xf32> -> vector<8x128xf32>
    %76 = arith.addf %71, %75 : vector<8x128xf32>
    %c0_86 = arith.constant 0 : index
    %c0_87 = arith.constant 0 : index
    %77 = vector.load %arg11[%c0_86, %c0_87] : memref<1x128xf32, #tpu.memory_space<vmem>>, vector<1x128xf32>
    %78 = vector.broadcast %77 : vector<1x128xf32> to vector<8x128xf32>
    %79 = arith.mulf %76, %78 : vector<8x128xf32>
    %c0_88 = arith.constant 0 : index
    %c0_89 = arith.constant 0 : index
    %80 = vector.load %arg12[%c0_88, %c0_89] : memref<1x128xf32, #tpu.memory_space<vmem>>, vector<1x128xf32>
    %81 = vector.broadcast %80 : vector<1x128xf32> to vector<8x128xf32>
    %82 = arith.addf %79, %81 : vector<8x128xf32>
    %cst_90 = arith.constant 0.000000e+00 : f32
    %83 = vector.broadcast %cst_90 : f32 to vector<8x128xf32>
    %84 = arith.maximumf %82, %83 : vector<8x128xf32>
    %85 = vector.shape_cast %84 : vector<8x128xf32> to vector<1x8x128xf32>
    %86 = arith.truncf %85 : vector<1x8x128xf32> to vector<1x8x128xbf16>
    %c0_91 = arith.constant 0 : index
    %c0_92 = arith.constant 0 : index
    %c0_93 = arith.constant 0 : index
    %87 = vector.load %arg13[%c0_91, %c0_92, %c0_93] : memref<1x8x128xbf16, #tpu.memory_space<vmem>>, vector<1x8x128xbf16>
    tpu.vector_store %arg13[%c0_91, %c0_92, %c0_93], %86 {strides = array<i32>} : memref<1x8x128xbf16, #tpu.memory_space<vmem>>, vector<1x8x128xbf16>,
    return
  }
  func.func @transform_0(%arg0: i32) -> (i32, i32, i32) {
    %c0_i32 = arith.constant 0 : i32
    %c0_i32_0 = arith.constant 0 : i32
    %c0_i32_1 = arith.constant 0 : i32
    return %arg0, %c0_i32, %c0_i32_0 : i32, i32, i32
  }
  func.func @transform_1(%arg0: i32) -> (i32, i32, i32) {
    %c0_i32 = arith.constant 0 : i32
    %c0_i32_0 = arith.constant 0 : i32
    %c0_i32_1 = arith.constant 0 : i32
    return %arg0, %c0_i32, %c0_i32_0 : i32, i32, i32
  }
  func.func @transform_2(%arg0: i32) -> (i32, i32) {
    %c0_i32 = arith.constant 0 : i32
    %c0_i32_0 = arith.constant 0 : i32
    %c0_i32_1 = arith.constant 0 : i32
    return %c0_i32, %c0_i32_0 : i32, i32
  }
  func.func @transform_3(%arg0: i32) -> (i32, i32) {
    %c0_i32 = arith.constant 0 : i32
    %c0_i32_0 = arith.constant 0 : i32
    %c0_i32_1 = arith.constant 0 : i32
    return %c0_i32, %c0_i32_0 : i32, i32
  }
  func.func @transform_4(%arg0: i32) -> (i32, i32) {
    %c0_i32 = arith.constant 0 : i32
    %c0_i32_0 = arith.constant 0 : i32
    %c0_i32_1 = arith.constant 0 : i32
    return %c0_i32, %c0_i32_0 : i32, i32
  }
  func.func @transform_5(%arg0: i32) -> (i32, i32, i32) {
    %c0_i32 = arith.constant 0 : i32
    %c0_i32_0 = arith.constant 0 : i32
    %c0_i32_1 = arith.constant 0 : i32
    %c0_i32_2 = arith.constant 0 : i32
    return %c0_i32, %c0_i32_0, %c0_i32_1 : i32, i32, i32
  }
  func.func @transform_6(%arg0: i32) -> (i32, i32, i32) {
    %c0_i32 = arith.constant 0 : i32
    %c0_i32_0 = arith.constant 0 : i32
    %c0_i32_1 = arith.constant 0 : i32
    %c0_i32_2 = arith.constant 0 : i32
    return %c0_i32, %c0_i32_0, %c0_i32_1 : i32, i32, i32
  }
  func.func @transform_7(%arg0: i32) -> (i32, i32) {
    %c0_i32 = arith.constant 0 : i32
    %c0_i32_0 = arith.constant 0 : i32
    %c0_i32_1 = arith.constant 0 : i32
    return %c0_i32, %c0_i32_0 : i32, i32
  }
  func.func @transform_8(%arg0: i32) -> (i32, i32) {
    %c0_i32 = arith.constant 0 : i32
    %c0_i32_0 = arith.constant 0 : i32
    %c0_i32_1 = arith.constant 0 : i32
    return %c0_i32, %c0_i32_0 : i32, i32
  }
  func.func @transform_9(%arg0: i32) -> (i32, i32, i32) {
    %c0_i32 = arith.constant 0 : i32
    %c0_i32_0 = arith.constant 0 : i32
    %c0_i32_1 = arith.constant 0 : i32
    %c0_i32_2 = arith.constant 0 : i32
    return %c0_i32, %c0_i32_0, %c0_i32_1 : i32, i32, i32
  }
  func.func @transform_10(%arg0: i32) -> (i32, i32) {
    %c0_i32 = arith.constant 0 : i32
    %c0_i32_0 = arith.constant 0 : i32
    %c0_i32_1 = arith.constant 0 : i32
    return %c0_i32, %c0_i32_0 : i32, i32
  }
  func.func @transform_11(%arg0: i32) -> (i32, i32) {
    %c0_i32 = arith.constant 0 : i32
    %c0_i32_0 = arith.constant 0 : i32
    %c0_i32_1 = arith.constant 0 : i32
    return %c0_i32, %c0_i32_0 : i32, i32
  }
  func.func @transform_12(%arg0: i32) -> (i32, i32, i32) {
    %c0_i32 = arith.constant 0 : i32
    %c0_i32_0 = arith.constant 0 : i32
    %c0_i32_1 = arith.constant 0 : i32
    return %arg0, %c0_i32, %c0_i32_0 : i32, i32, i32
  }
}

module attributes {stable_mosaic.version = 11 : i64} {
  func.func @_down_kernel(%arg0: i32, %arg1: memref<1x4x128xbf16, #tpu.memory_space<vmem>>, %arg2: memref<2x4xbf16, #tpu.memory_space<vmem>>, %arg3: memref<2x4xbf16, #tpu.memory_space<vmem>>, %arg4: memref<128x64xbf16, #tpu.memory_space<vmem>>, %arg5: memref<128x64xbf16, #tpu.memory_space<vmem>>, %arg6: memref<3x64x128xbf16, #tpu.memory_space<vmem>>, %arg7: memref<1x128xf32, #tpu.memory_space<vmem>>, %arg8: memref<1x128xf32, #tpu.memory_space<vmem>>, %arg9: memref<3x128x128xbf16, #tpu.memory_space<vmem>>, %arg10: memref<1x128xf32, #tpu.memory_space<vmem>>, %arg11: memref<1x128xf32, #tpu.memory_space<vmem>>, %arg12: memref<1x2x128xbf16, #tpu.memory_space<vmem>>, %arg13: memref<11x64xbf16, #tpu.memory_space<vmem>>, %arg14: memref<11x128xbf16, #tpu.memory_space<vmem>>) attributes {dimension_semantics = [#tpu.dimension_semantics<parallel>], iteration_bounds = array<i64: 2>, scalar_prefetch = 0 : i64, scratch_operands = 2 : i64, tpu.core_type = #tpu.core_type<tc>, window_params = [{transform_indices = @transform_0, window_bounds = array<i64: 1, 4, 128>}, {pipeline_mode = #tpu.pipeline_mode<synchronous>, transform_indices = @transform_1, window_bounds = array<i64: 2, 4>}, {pipeline_mode = #tpu.pipeline_mode<synchronous>, transform_indices = @transform_2, window_bounds = array<i64: 2, 4>}, {pipeline_mode = #tpu.pipeline_mode<synchronous>, transform_indices = @transform_3, window_bounds = array<i64: 128, 64>}, {pipeline_mode = #tpu.pipeline_mode<synchronous>, transform_indices = @transform_4, window_bounds = array<i64: 128, 64>}, {pipeline_mode = #tpu.pipeline_mode<synchronous>, transform_indices = @transform_5, window_bounds = array<i64: 3, 64, 128>}, {pipeline_mode = #tpu.pipeline_mode<synchronous>, transform_indices = @transform_6, window_bounds = array<i64: 1, 128>}, {pipeline_mode = #tpu.pipeline_mode<synchronous>, transform_indices = @transform_7, window_bounds = array<i64: 1, 128>}, {pipeline_mode = #tpu.pipeline_mode<synchronous>, transform_indices = @transform_8, window_bounds = array<i64: 3, 128, 128>}, {pipeline_mode = #tpu.pipeline_mode<synchronous>, transform_indices = @transform_9, window_bounds = array<i64: 1, 128>}, {pipeline_mode = #tpu.pipeline_mode<synchronous>, transform_indices = @transform_10, window_bounds = array<i64: 1, 128>}, {transform_indices = @transform_11, window_bounds = array<i64: 1, 2, 128>}]} {
    %c0 = arith.constant 0 : index
    %c0_0 = arith.constant 0 : index
    %c0_1 = arith.constant 0 : index
    %0 = vector.load %arg1[%c0, %c0_0, %c0_1] : memref<1x4x128xbf16, #tpu.memory_space<vmem>>, vector<1x4x128xbf16>
    %1 = vector.shape_cast %0 : vector<1x4x128xbf16> to vector<4x128xbf16>
    %c0_2 = arith.constant 0 : index
    %c0_3 = arith.constant 0 : index
    %2 = vector.load %arg2[%c0_2, %c0_3] : memref<2x4xbf16, #tpu.memory_space<vmem>>, vector<2x4xbf16>
    %cst = arith.constant dense<0.000000e+00> : vector<2x128xf32>
    %3 = tpu.matmul %2, %1, %cst {dimension_numbers = #tpu.dot_dimension_numbers<[1], [0], [0], [1], [0, 0, 1, 1], [], []>} : vector<2x4xbf16>, vector<4x128xbf16>, vector<2x128xf32> -> vector<2x128xf32>
    %c0_4 = arith.constant 0 : index
    %c0_5 = arith.constant 0 : index
    %4 = vector.load %arg3[%c0_4, %c0_5] : memref<2x4xbf16, #tpu.memory_space<vmem>>, vector<2x4xbf16>
    %cst_6 = arith.constant dense<0.000000e+00> : vector<2x128xf32>
    %5 = tpu.matmul %4, %1, %cst_6 {dimension_numbers = #tpu.dot_dimension_numbers<[1], [0], [0], [1], [0, 0, 1, 1], [], []>} : vector<2x4xbf16>, vector<4x128xbf16>, vector<2x128xf32> -> vector<2x128xf32>
    %6 = arith.maximumf %3, %5 : vector<2x128xf32>
    %7 = arith.truncf %6 : vector<2x128xf32> to vector<2x128xbf16>
    %c0_7 = arith.constant 0 : index
    %c0_8 = arith.constant 0 : index
    %8 = vector.load %arg4[%c0_7, %c0_8] : memref<128x64xbf16, #tpu.memory_space<vmem>>, vector<128x64xbf16>
    %cst_9 = arith.constant dense<0.000000e+00> : vector<2x64xf32>
    %9 = tpu.matmul %7, %8, %cst_9 {dimension_numbers = #tpu.dot_dimension_numbers<[1], [0], [0], [1], [0, 0, 1, 1], [], []>} : vector<2x128xbf16>, vector<128x64xbf16>, vector<2x64xf32> -> vector<2x64xf32>
    %c0_10 = arith.constant 0 : index
    %c0_11 = arith.constant 0 : index
    %10 = vector.load %arg5[%c0_10, %c0_11] : memref<128x64xbf16, #tpu.memory_space<vmem>>, vector<128x64xbf16>
    %cst_12 = arith.constant dense<0.000000e+00> : vector<2x64xf32>
    %11 = tpu.matmul %7, %10, %cst_12 {dimension_numbers = #tpu.dot_dimension_numbers<[1], [0], [0], [1], [0, 0, 1, 1], [], []>} : vector<2x128xbf16>, vector<128x64xbf16>, vector<2x64xf32> -> vector<2x64xf32>
    %12 = arith.maximumf %9, %11 : vector<2x64xf32>
    %cst_13 = arith.constant 0.000000e+00 : bf16
    %13 = vector.broadcast %cst_13 : bf16 to vector<1x64xbf16>
    %c7 = arith.constant 7 : index
    %c0_14 = arith.constant 0 : index
    %14 = vector.load %arg13[%c7, %c0_14] : memref<11x64xbf16, #tpu.memory_space<vmem>>, vector<1x64xbf16>
    tpu.vector_store %arg13[%c7, %c0_14], %13 {strides = array<i32>} : memref<11x64xbf16, #tpu.memory_space<vmem>>, vector<1x64xbf16>,
    %c10 = arith.constant 10 : index
    %c0_15 = arith.constant 0 : index
    %15 = vector.load %arg13[%c10, %c0_15] : memref<11x64xbf16, #tpu.memory_space<vmem>>, vector<1x64xbf16>
    tpu.vector_store %arg13[%c10, %c0_15], %13 {strides = array<i32>} : memref<11x64xbf16, #tpu.memory_space<vmem>>, vector<1x64xbf16>,
    %16 = arith.truncf %12 : vector<2x64xf32> to vector<2x64xbf16>
    %c8 = arith.constant 8 : index
    %c0_16 = arith.constant 0 : index
    %17 = vector.load %arg13[%c8, %c0_16] : memref<11x64xbf16, #tpu.memory_space<vmem>>, vector<2x64xbf16>
    tpu.vector_store %arg13[%c8, %c0_16], %16 {strides = array<i32>} : memref<11x64xbf16, #tpu.memory_space<vmem>>, vector<2x64xbf16>,
    %c7_17 = arith.constant 7 : index
    %c0_18 = arith.constant 0 : index
    %18 = vector.load %arg13[%c7_17, %c0_18] : memref<11x64xbf16, #tpu.memory_space<vmem>>, vector<2x64xbf16>
    %c0_19 = arith.constant 0 : index
    %c0_20 = arith.constant 0 : index
    %c0_21 = arith.constant 0 : index
    %19 = vector.load %arg6[%c0_19, %c0_20, %c0_21] : memref<3x64x128xbf16, #tpu.memory_space<vmem>>, vector<1x64x128xbf16>
    %20 = vector.shape_cast %19 : vector<1x64x128xbf16> to vector<64x128xbf16>
    %cst_22 = arith.constant dense<0.000000e+00> : vector<2x128xf32>
    %21 = tpu.matmul %18, %20, %cst_22 {dimension_numbers = #tpu.dot_dimension_numbers<[1], [0], [0], [1], [0, 0, 1, 1], [], []>} : vector<2x64xbf16>, vector<64x128xbf16>, vector<2x128xf32> -> vector<2x128xf32>
    %c8_23 = arith.constant 8 : index
    %c0_24 = arith.constant 0 : index
    %22 = vector.load %arg13[%c8_23, %c0_24] : memref<11x64xbf16, #tpu.memory_space<vmem>>, vector<2x64xbf16>
    %c1 = arith.constant 1 : index
    %c0_25 = arith.constant 0 : index
    %c0_26 = arith.constant 0 : index
    %23 = vector.load %arg6[%c1, %c0_25, %c0_26] : memref<3x64x128xbf16, #tpu.memory_space<vmem>>, vector<1x64x128xbf16>
    %24 = vector.shape_cast %23 : vector<1x64x128xbf16> to vector<64x128xbf16>
    %cst_27 = arith.constant dense<0.000000e+00> : vector<2x128xf32>
    %25 = tpu.matmul %22, %24, %cst_27 {dimension_numbers = #tpu.dot_dimension_numbers<[1], [0], [0], [1], [0, 0, 1, 1], [], []>} : vector<2x64xbf16>, vector<64x128xbf16>, vector<2x128xf32> -> vector<2x128xf32>
    %26 = arith.addf %21, %25 : vector<2x128xf32>
    %c9 = arith.constant 9 : index
    %c0_28 = arith.constant 0 : index
    %27 = vector.load %arg13[%c9, %c0_28] : memref<11x64xbf16, #tpu.memory_space<vmem>>, vector<2x64xbf16>
    %c2 = arith.constant 2 : index
    %c0_29 = arith.constant 0 : index
    %c0_30 = arith.constant 0 : index
    %28 = vector.load %arg6[%c2, %c0_29, %c0_30] : memref<3x64x128xbf16, #tpu.memory_space<vmem>>, vector<1x64x128xbf16>
    %29 = vector.shape_cast %28 : vector<1x64x128xbf16> to vector<64x128xbf16>
    %cst_31 = arith.constant dense<0.000000e+00> : vector<2x128xf32>
    %30 = tpu.matmul %27, %29, %cst_31 {dimension_numbers = #tpu.dot_dimension_numbers<[1], [0], [0], [1], [0, 0, 1, 1], [], []>} : vector<2x64xbf16>, vector<64x128xbf16>, vector<2x128xf32> -> vector<2x128xf32>
    %31 = arith.addf %26, %30 : vector<2x128xf32>
    %c0_32 = arith.constant 0 : index
    %c0_33 = arith.constant 0 : index
    %32 = vector.load %arg7[%c0_32, %c0_33] : memref<1x128xf32, #tpu.memory_space<vmem>>, vector<1x128xf32>
    %33 = vector.broadcast %32 : vector<1x128xf32> to vector<2x128xf32>
    %34 = arith.mulf %31, %33 : vector<2x128xf32>
    %c0_34 = arith.constant 0 : index
    %c0_35 = arith.constant 0 : index
    %35 = vector.load %arg8[%c0_34, %c0_35] : memref<1x128xf32, #tpu.memory_space<vmem>>, vector<1x128xf32>
    %36 = vector.broadcast %35 : vector<1x128xf32> to vector<2x128xf32>
    %37 = arith.addf %34, %36 : vector<2x128xf32>
    %cst_36 = arith.constant 0.000000e+00 : f32
    %38 = vector.broadcast %cst_36 : f32 to vector<2x128xf32>
    %39 = arith.maximumf %37, %38 : vector<2x128xf32>
    %cst_37 = arith.constant 0.000000e+00 : bf16
    %40 = vector.broadcast %cst_37 : bf16 to vector<1x128xbf16>
    %c7_38 = arith.constant 7 : index
    %c0_39 = arith.constant 0 : index
    %41 = vector.load %arg14[%c7_38, %c0_39] : memref<11x128xbf16, #tpu.memory_space<vmem>>, vector<1x128xbf16>
    tpu.vector_store %arg14[%c7_38, %c0_39], %40 {strides = array<i32>} : memref<11x128xbf16, #tpu.memory_space<vmem>>, vector<1x128xbf16>,
    %c10_40 = arith.constant 10 : index
    %c0_41 = arith.constant 0 : index
    %42 = vector.load %arg14[%c10_40, %c0_41] : memref<11x128xbf16, #tpu.memory_space<vmem>>, vector<1x128xbf16>
    tpu.vector_store %arg14[%c10_40, %c0_41], %40 {strides = array<i32>} : memref<11x128xbf16, #tpu.memory_space<vmem>>, vector<1x128xbf16>,
    %43 = arith.truncf %39 : vector<2x128xf32> to vector<2x128xbf16>
    %c8_42 = arith.constant 8 : index
    %c0_43 = arith.constant 0 : index
    %44 = vector.load %arg14[%c8_42, %c0_43] : memref<11x128xbf16, #tpu.memory_space<vmem>>, vector<2x128xbf16>
    tpu.vector_store %arg14[%c8_42, %c0_43], %43 {strides = array<i32>} : memref<11x128xbf16, #tpu.memory_space<vmem>>, vector<2x128xbf16>,
    %c7_44 = arith.constant 7 : index
    %c0_45 = arith.constant 0 : index
    %45 = vector.load %arg14[%c7_44, %c0_45] : memref<11x128xbf16, #tpu.memory_space<vmem>>, vector<2x128xbf16>
    %c0_46 = arith.constant 0 : index
    %c0_47 = arith.constant 0 : index
    %c0_48 = arith.constant 0 : index
    %46 = vector.load %arg9[%c0_46, %c0_47, %c0_48] : memref<3x128x128xbf16, #tpu.memory_space<vmem>>, vector<1x128x128xbf16>
    %47 = vector.shape_cast %46 : vector<1x128x128xbf16> to vector<128x128xbf16>
    %cst_49 = arith.constant dense<0.000000e+00> : vector<2x128xf32>
    %48 = tpu.matmul %45, %47, %cst_49 {dimension_numbers = #tpu.dot_dimension_numbers<[1], [0], [0], [1], [0, 0, 1, 1], [], []>} : vector<2x128xbf16>, vector<128x128xbf16>, vector<2x128xf32> -> vector<2x128xf32>
    %c8_50 = arith.constant 8 : index
    %c0_51 = arith.constant 0 : index
    %49 = vector.load %arg14[%c8_50, %c0_51] : memref<11x128xbf16, #tpu.memory_space<vmem>>, vector<2x128xbf16>
    %c1_52 = arith.constant 1 : index
    %c0_53 = arith.constant 0 : index
    %c0_54 = arith.constant 0 : index
    %50 = vector.load %arg9[%c1_52, %c0_53, %c0_54] : memref<3x128x128xbf16, #tpu.memory_space<vmem>>, vector<1x128x128xbf16>
    %51 = vector.shape_cast %50 : vector<1x128x128xbf16> to vector<128x128xbf16>
    %cst_55 = arith.constant dense<0.000000e+00> : vector<2x128xf32>
    %52 = tpu.matmul %49, %51, %cst_55 {dimension_numbers = #tpu.dot_dimension_numbers<[1], [0], [0], [1], [0, 0, 1, 1], [], []>} : vector<2x128xbf16>, vector<128x128xbf16>, vector<2x128xf32> -> vector<2x128xf32>
    %53 = arith.addf %48, %52 : vector<2x128xf32>
    %c9_56 = arith.constant 9 : index
    %c0_57 = arith.constant 0 : index
    %54 = vector.load %arg14[%c9_56, %c0_57] : memref<11x128xbf16, #tpu.memory_space<vmem>>, vector<2x128xbf16>
    %c2_58 = arith.constant 2 : index
    %c0_59 = arith.constant 0 : index
    %c0_60 = arith.constant 0 : index
    %55 = vector.load %arg9[%c2_58, %c0_59, %c0_60] : memref<3x128x128xbf16, #tpu.memory_space<vmem>>, vector<1x128x128xbf16>
    %56 = vector.shape_cast %55 : vector<1x128x128xbf16> to vector<128x128xbf16>
    %cst_61 = arith.constant dense<0.000000e+00> : vector<2x128xf32>
    %57 = tpu.matmul %54, %56, %cst_61 {dimension_numbers = #tpu.dot_dimension_numbers<[1], [0], [0], [1], [0, 0, 1, 1], [], []>} : vector<2x128xbf16>, vector<128x128xbf16>, vector<2x128xf32> -> vector<2x128xf32>
    %58 = arith.addf %53, %57 : vector<2x128xf32>
    %c0_62 = arith.constant 0 : index
    %c0_63 = arith.constant 0 : index
    %59 = vector.load %arg10[%c0_62, %c0_63] : memref<1x128xf32, #tpu.memory_space<vmem>>, vector<1x128xf32>
    %60 = vector.broadcast %59 : vector<1x128xf32> to vector<2x128xf32>
    %61 = arith.mulf %58, %60 : vector<2x128xf32>
    %c0_64 = arith.constant 0 : index
    %c0_65 = arith.constant 0 : index
    %62 = vector.load %arg11[%c0_64, %c0_65] : memref<1x128xf32, #tpu.memory_space<vmem>>, vector<1x128xf32>
    %63 = vector.broadcast %62 : vector<1x128xf32> to vector<2x128xf32>
    %64 = arith.addf %61, %63 : vector<2x128xf32>
    %cst_66 = arith.constant 0.000000e+00 : f32
    %65 = vector.broadcast %cst_66 : f32 to vector<2x128xf32>
    %66 = arith.maximumf %64, %65 : vector<2x128xf32>
    %67 = vector.shape_cast %66 : vector<2x128xf32> to vector<1x2x128xf32>
    %68 = arith.truncf %67 : vector<1x2x128xf32> to vector<1x2x128xbf16>
    %c0_67 = arith.constant 0 : index
    %c0_68 = arith.constant 0 : index
    %c0_69 = arith.constant 0 : index
    %69 = vector.load %arg12[%c0_67, %c0_68, %c0_69] : memref<1x2x128xbf16, #tpu.memory_space<vmem>>, vector<1x2x128xbf16>
    tpu.vector_store %arg12[%c0_67, %c0_68, %c0_69], %68 {strides = array<i32>} : memref<1x2x128xbf16, #tpu.memory_space<vmem>>, vector<1x2x128xbf16>,
    return
  }
  func.func @transform_0(%arg0: i32) -> (i32, i32, i32) {
    %c0_i32 = arith.constant 0 : i32
    %c0_i32_0 = arith.constant 0 : i32
    %c0_i32_1 = arith.constant 0 : i32
    return %arg0, %c0_i32, %c0_i32_0 : i32, i32, i32
  }
  func.func @transform_1(%arg0: i32) -> (i32, i32) {
    %c0_i32 = arith.constant 0 : i32
    %c0_i32_0 = arith.constant 0 : i32
    %c0_i32_1 = arith.constant 0 : i32
    return %c0_i32, %c0_i32_0 : i32, i32
  }
  func.func @transform_2(%arg0: i32) -> (i32, i32) {
    %c0_i32 = arith.constant 0 : i32
    %c0_i32_0 = arith.constant 0 : i32
    %c0_i32_1 = arith.constant 0 : i32
    return %c0_i32, %c0_i32_0 : i32, i32
  }
  func.func @transform_3(%arg0: i32) -> (i32, i32) {
    %c0_i32 = arith.constant 0 : i32
    %c0_i32_0 = arith.constant 0 : i32
    %c0_i32_1 = arith.constant 0 : i32
    return %c0_i32, %c0_i32_0 : i32, i32
  }
  func.func @transform_4(%arg0: i32) -> (i32, i32) {
    %c0_i32 = arith.constant 0 : i32
    %c0_i32_0 = arith.constant 0 : i32
    %c0_i32_1 = arith.constant 0 : i32
    return %c0_i32, %c0_i32_0 : i32, i32
  }
  func.func @transform_5(%arg0: i32) -> (i32, i32, i32) {
    %c0_i32 = arith.constant 0 : i32
    %c0_i32_0 = arith.constant 0 : i32
    %c0_i32_1 = arith.constant 0 : i32
    %c0_i32_2 = arith.constant 0 : i32
    return %c0_i32, %c0_i32_0, %c0_i32_1 : i32, i32, i32
  }
  func.func @transform_6(%arg0: i32) -> (i32, i32) {
    %c0_i32 = arith.constant 0 : i32
    %c0_i32_0 = arith.constant 0 : i32
    %c0_i32_1 = arith.constant 0 : i32
    return %c0_i32, %c0_i32_0 : i32, i32
  }
  func.func @transform_7(%arg0: i32) -> (i32, i32) {
    %c0_i32 = arith.constant 0 : i32
    %c0_i32_0 = arith.constant 0 : i32
    %c0_i32_1 = arith.constant 0 : i32
    return %c0_i32, %c0_i32_0 : i32, i32
  }
  func.func @transform_8(%arg0: i32) -> (i32, i32, i32) {
    %c0_i32 = arith.constant 0 : i32
    %c0_i32_0 = arith.constant 0 : i32
    %c0_i32_1 = arith.constant 0 : i32
    %c0_i32_2 = arith.constant 0 : i32
    return %c0_i32, %c0_i32_0, %c0_i32_1 : i32, i32, i32
  }
  func.func @transform_9(%arg0: i32) -> (i32, i32) {
    %c0_i32 = arith.constant 0 : i32
    %c0_i32_0 = arith.constant 0 : i32
    %c0_i32_1 = arith.constant 0 : i32
    return %c0_i32, %c0_i32_0 : i32, i32
  }
  func.func @transform_10(%arg0: i32) -> (i32, i32) {
    %c0_i32 = arith.constant 0 : i32
    %c0_i32_0 = arith.constant 0 : i32
    %c0_i32_1 = arith.constant 0 : i32
    return %c0_i32, %c0_i32_0 : i32, i32
  }
  func.func @transform_11(%arg0: i32) -> (i32, i32, i32) {
    %c0_i32 = arith.constant 0 : i32
    %c0_i32_0 = arith.constant 0 : i32
    %c0_i32_1 = arith.constant 0 : i32
    return %arg0, %c0_i32, %c0_i32_0 : i32, i32, i32
  }
}

module attributes {stable_mosaic.version = 11 : i64} {
  func.func @_up_kernel(%arg0: i32, %arg1: memref<1x2x128xbf16, #tpu.memory_space<vmem>>, %arg2: memref<1x4x128xbf16, #tpu.memory_space<vmem>>, %arg3: memref<4x2xbf16, #tpu.memory_space<vmem>>, %arg4: memref<128x128xbf16, #tpu.memory_space<vmem>>, %arg5: memref<1x128xf32, #tpu.memory_space<vmem>>, %arg6: memref<3x128x128xbf16, #tpu.memory_space<vmem>>, %arg7: memref<3x128x128xbf16, #tpu.memory_space<vmem>>, %arg8: memref<1x128xf32, #tpu.memory_space<vmem>>, %arg9: memref<1x128xf32, #tpu.memory_space<vmem>>, %arg10: memref<3x128x128xbf16, #tpu.memory_space<vmem>>, %arg11: memref<1x128xf32, #tpu.memory_space<vmem>>, %arg12: memref<1x128xf32, #tpu.memory_space<vmem>>, %arg13: memref<1x4x128xbf16, #tpu.memory_space<vmem>>, %arg14: memref<13x128xbf16, #tpu.memory_space<vmem>>, %arg15: memref<13x128xbf16, #tpu.memory_space<vmem>>, %arg16: memref<13x128xbf16, #tpu.memory_space<vmem>>) attributes {dimension_semantics = [#tpu.dimension_semantics<parallel>], iteration_bounds = array<i64: 2>, scalar_prefetch = 0 : i64, scratch_operands = 3 : i64, tpu.core_type = #tpu.core_type<tc>, window_params = [{transform_indices = @transform_0, window_bounds = array<i64: 1, 2, 128>}, {transform_indices = @transform_1, window_bounds = array<i64: 1, 4, 128>}, {pipeline_mode = #tpu.pipeline_mode<synchronous>, transform_indices = @transform_2, window_bounds = array<i64: 4, 2>}, {pipeline_mode = #tpu.pipeline_mode<synchronous>, transform_indices = @transform_3, window_bounds = array<i64: 128, 128>}, {pipeline_mode = #tpu.pipeline_mode<synchronous>, transform_indices = @transform_4, window_bounds = array<i64: 1, 128>}, {pipeline_mode = #tpu.pipeline_mode<synchronous>, transform_indices = @transform_5, window_bounds = array<i64: 3, 128, 128>}, {pipeline_mode = #tpu.pipeline_mode<synchronous>, transform_indices = @transform_6, window_bounds = array<i64: 3, 128, 128>}, {pipeline_mode = #tpu.pipeline_mode<synchronous>, transform_indices = @transform_7, window_bounds = array<i64: 1, 128>}, {pipeline_mode = #tpu.pipeline_mode<synchronous>, transform_indices = @transform_8, window_bounds = array<i64: 1, 128>}, {pipeline_mode = #tpu.pipeline_mode<synchronous>, transform_indices = @transform_9, window_bounds = array<i64: 3, 128, 128>}, {pipeline_mode = #tpu.pipeline_mode<synchronous>, transform_indices = @transform_10, window_bounds = array<i64: 1, 128>}, {pipeline_mode = #tpu.pipeline_mode<synchronous>, transform_indices = @transform_11, window_bounds = array<i64: 1, 128>}, {transform_indices = @transform_12, window_bounds = array<i64: 1, 4, 128>}]} {
    %c0 = arith.constant 0 : index
    %c0_0 = arith.constant 0 : index
    %0 = vector.load %arg3[%c0, %c0_0] : memref<4x2xbf16, #tpu.memory_space<vmem>>, vector<4x2xbf16>
    %c0_1 = arith.constant 0 : index
    %c0_2 = arith.constant 0 : index
    %c0_3 = arith.constant 0 : index
    %1 = vector.load %arg1[%c0_1, %c0_2, %c0_3] : memref<1x2x128xbf16, #tpu.memory_space<vmem>>, vector<1x2x128xbf16>
    %2 = vector.shape_cast %1 : vector<1x2x128xbf16> to vector<2x128xbf16>
    %cst = arith.constant dense<0.000000e+00> : vector<4x128xf32>
    %3 = tpu.matmul %0, %2, %cst {dimension_numbers = #tpu.dot_dimension_numbers<[1], [0], [0], [1], [0, 0, 1, 1], [], []>} : vector<4x2xbf16>, vector<2x128xbf16>, vector<4x128xf32> -> vector<4x128xf32>
    %4 = arith.truncf %3 : vector<4x128xf32> to vector<4x128xbf16>
    %c0_4 = arith.constant 0 : index
    %c0_5 = arith.constant 0 : index
    %5 = vector.load %arg4[%c0_4, %c0_5] : memref<128x128xbf16, #tpu.memory_space<vmem>>, vector<128x128xbf16>
    %cst_6 = arith.constant dense<0.000000e+00> : vector<4x128xf32>
    %6 = tpu.matmul %4, %5, %cst_6 {dimension_numbers = #tpu.dot_dimension_numbers<[1], [0], [0], [1], [0, 0, 1, 1], [], []>} : vector<4x128xbf16>, vector<128x128xbf16>, vector<4x128xf32> -> vector<4x128xf32>
    %c0_7 = arith.constant 0 : index
    %c0_8 = arith.constant 0 : index
    %7 = vector.load %arg5[%c0_7, %c0_8] : memref<1x128xf32, #tpu.memory_space<vmem>>, vector<1x128xf32>
    %8 = vector.broadcast %7 : vector<1x128xf32> to vector<4x128xf32>
    %9 = arith.addf %6, %8 : vector<4x128xf32>
    %c0_9 = arith.constant 0 : index
    %c0_10 = arith.constant 0 : index
    %c0_11 = arith.constant 0 : index
    %10 = vector.load %arg2[%c0_9, %c0_10, %c0_11] : memref<1x4x128xbf16, #tpu.memory_space<vmem>>, vector<1x4x128xbf16>
    %11 = vector.shape_cast %10 : vector<1x4x128xbf16> to vector<4x128xbf16>
    %cst_12 = arith.constant 0.000000e+00 : bf16
    %12 = vector.broadcast %cst_12 : bf16 to vector<1x128xbf16>
    %c7 = arith.constant 7 : index
    %c0_13 = arith.constant 0 : index
    %13 = vector.load %arg14[%c7, %c0_13] : memref<13x128xbf16, #tpu.memory_space<vmem>>, vector<1x128xbf16>
    tpu.vector_store %arg14[%c7, %c0_13], %12 {strides = array<i32>} : memref<13x128xbf16, #tpu.memory_space<vmem>>, vector<1x128xbf16>,
    %c12 = arith.constant 12 : index
    %c0_14 = arith.constant 0 : index
    %14 = vector.load %arg14[%c12, %c0_14] : memref<13x128xbf16, #tpu.memory_space<vmem>>, vector<1x128xbf16>
    tpu.vector_store %arg14[%c12, %c0_14], %12 {strides = array<i32>} : memref<13x128xbf16, #tpu.memory_space<vmem>>, vector<1x128xbf16>,
    %c8 = arith.constant 8 : index
    %c0_15 = arith.constant 0 : index
    %15 = vector.load %arg14[%c8, %c0_15] : memref<13x128xbf16, #tpu.memory_space<vmem>>, vector<4x128xbf16>
    tpu.vector_store %arg14[%c8, %c0_15], %11 {strides = array<i32>} : memref<13x128xbf16, #tpu.memory_space<vmem>>, vector<4x128xbf16>,
    %cst_16 = arith.constant 0.000000e+00 : bf16
    %16 = vector.broadcast %cst_16 : bf16 to vector<1x128xbf16>
    %c7_17 = arith.constant 7 : index
    %c0_18 = arith.constant 0 : index
    %17 = vector.load %arg15[%c7_17, %c0_18] : memref<13x128xbf16, #tpu.memory_space<vmem>>, vector<1x128xbf16>
    tpu.vector_store %arg15[%c7_17, %c0_18], %16 {strides = array<i32>} : memref<13x128xbf16, #tpu.memory_space<vmem>>, vector<1x128xbf16>,
    %c12_19 = arith.constant 12 : index
    %c0_20 = arith.constant 0 : index
    %18 = vector.load %arg15[%c12_19, %c0_20] : memref<13x128xbf16, #tpu.memory_space<vmem>>, vector<1x128xbf16>
    tpu.vector_store %arg15[%c12_19, %c0_20], %16 {strides = array<i32>} : memref<13x128xbf16, #tpu.memory_space<vmem>>, vector<1x128xbf16>,
    %19 = arith.truncf %9 : vector<4x128xf32> to vector<4x128xbf16>
    %c8_21 = arith.constant 8 : index
    %c0_22 = arith.constant 0 : index
    %20 = vector.load %arg15[%c8_21, %c0_22] : memref<13x128xbf16, #tpu.memory_space<vmem>>, vector<4x128xbf16>
    tpu.vector_store %arg15[%c8_21, %c0_22], %19 {strides = array<i32>} : memref<13x128xbf16, #tpu.memory_space<vmem>>, vector<4x128xbf16>,
    %c7_23 = arith.constant 7 : index
    %c0_24 = arith.constant 0 : index
    %21 = vector.load %arg14[%c7_23, %c0_24] : memref<13x128xbf16, #tpu.memory_space<vmem>>, vector<4x128xbf16>
    %c0_25 = arith.constant 0 : index
    %c0_26 = arith.constant 0 : index
    %c0_27 = arith.constant 0 : index
    %22 = vector.load %arg6[%c0_25, %c0_26, %c0_27] : memref<3x128x128xbf16, #tpu.memory_space<vmem>>, vector<1x128x128xbf16>
    %23 = vector.shape_cast %22 : vector<1x128x128xbf16> to vector<128x128xbf16>
    %cst_28 = arith.constant dense<0.000000e+00> : vector<4x128xf32>
    %24 = tpu.matmul %21, %23, %cst_28 {dimension_numbers = #tpu.dot_dimension_numbers<[1], [0], [0], [1], [0, 0, 1, 1], [], []>} : vector<4x128xbf16>, vector<128x128xbf16>, vector<4x128xf32> -> vector<4x128xf32>
    %c8_29 = arith.constant 8 : index
    %c0_30 = arith.constant 0 : index
    %25 = vector.load %arg14[%c8_29, %c0_30] : memref<13x128xbf16, #tpu.memory_space<vmem>>, vector<4x128xbf16>
    %c1 = arith.constant 1 : index
    %c0_31 = arith.constant 0 : index
    %c0_32 = arith.constant 0 : index
    %26 = vector.load %arg6[%c1, %c0_31, %c0_32] : memref<3x128x128xbf16, #tpu.memory_space<vmem>>, vector<1x128x128xbf16>
    %27 = vector.shape_cast %26 : vector<1x128x128xbf16> to vector<128x128xbf16>
    %cst_33 = arith.constant dense<0.000000e+00> : vector<4x128xf32>
    %28 = tpu.matmul %25, %27, %cst_33 {dimension_numbers = #tpu.dot_dimension_numbers<[1], [0], [0], [1], [0, 0, 1, 1], [], []>} : vector<4x128xbf16>, vector<128x128xbf16>, vector<4x128xf32> -> vector<4x128xf32>
    %29 = arith.addf %24, %28 : vector<4x128xf32>
    %c9 = arith.constant 9 : index
    %c0_34 = arith.constant 0 : index
    %30 = vector.load %arg14[%c9, %c0_34] : memref<13x128xbf16, #tpu.memory_space<vmem>>, vector<4x128xbf16>
    %c2 = arith.constant 2 : index
    %c0_35 = arith.constant 0 : index
    %c0_36 = arith.constant 0 : index
    %31 = vector.load %arg6[%c2, %c0_35, %c0_36] : memref<3x128x128xbf16, #tpu.memory_space<vmem>>, vector<1x128x128xbf16>
    %32 = vector.shape_cast %31 : vector<1x128x128xbf16> to vector<128x128xbf16>
    %cst_37 = arith.constant dense<0.000000e+00> : vector<4x128xf32>
    %33 = tpu.matmul %30, %32, %cst_37 {dimension_numbers = #tpu.dot_dimension_numbers<[1], [0], [0], [1], [0, 0, 1, 1], [], []>} : vector<4x128xbf16>, vector<128x128xbf16>, vector<4x128xf32> -> vector<4x128xf32>
    %34 = arith.addf %29, %33 : vector<4x128xf32>
    %c7_38 = arith.constant 7 : index
    %c0_39 = arith.constant 0 : index
    %35 = vector.load %arg15[%c7_38, %c0_39] : memref<13x128xbf16, #tpu.memory_space<vmem>>, vector<4x128xbf16>
    %c0_40 = arith.constant 0 : index
    %c0_41 = arith.constant 0 : index
    %c0_42 = arith.constant 0 : index
    %36 = vector.load %arg7[%c0_40, %c0_41, %c0_42] : memref<3x128x128xbf16, #tpu.memory_space<vmem>>, vector<1x128x128xbf16>
    %37 = vector.shape_cast %36 : vector<1x128x128xbf16> to vector<128x128xbf16>
    %cst_43 = arith.constant dense<0.000000e+00> : vector<4x128xf32>
    %38 = tpu.matmul %35, %37, %cst_43 {dimension_numbers = #tpu.dot_dimension_numbers<[1], [0], [0], [1], [0, 0, 1, 1], [], []>} : vector<4x128xbf16>, vector<128x128xbf16>, vector<4x128xf32> -> vector<4x128xf32>
    %c8_44 = arith.constant 8 : index
    %c0_45 = arith.constant 0 : index
    %39 = vector.load %arg15[%c8_44, %c0_45] : memref<13x128xbf16, #tpu.memory_space<vmem>>, vector<4x128xbf16>
    %c1_46 = arith.constant 1 : index
    %c0_47 = arith.constant 0 : index
    %c0_48 = arith.constant 0 : index
    %40 = vector.load %arg7[%c1_46, %c0_47, %c0_48] : memref<3x128x128xbf16, #tpu.memory_space<vmem>>, vector<1x128x128xbf16>
    %41 = vector.shape_cast %40 : vector<1x128x128xbf16> to vector<128x128xbf16>
    %cst_49 = arith.constant dense<0.000000e+00> : vector<4x128xf32>
    %42 = tpu.matmul %39, %41, %cst_49 {dimension_numbers = #tpu.dot_dimension_numbers<[1], [0], [0], [1], [0, 0, 1, 1], [], []>} : vector<4x128xbf16>, vector<128x128xbf16>, vector<4x128xf32> -> vector<4x128xf32>
    %43 = arith.addf %38, %42 : vector<4x128xf32>
    %c9_50 = arith.constant 9 : index
    %c0_51 = arith.constant 0 : index
    %44 = vector.load %arg15[%c9_50, %c0_51] : memref<13x128xbf16, #tpu.memory_space<vmem>>, vector<4x128xbf16>
    %c2_52 = arith.constant 2 : index
    %c0_53 = arith.constant 0 : index
    %c0_54 = arith.constant 0 : index
    %45 = vector.load %arg7[%c2_52, %c0_53, %c0_54] : memref<3x128x128xbf16, #tpu.memory_space<vmem>>, vector<1x128x128xbf16>
    %46 = vector.shape_cast %45 : vector<1x128x128xbf16> to vector<128x128xbf16>
    %cst_55 = arith.constant dense<0.000000e+00> : vector<4x128xf32>
    %47 = tpu.matmul %44, %46, %cst_55 {dimension_numbers = #tpu.dot_dimension_numbers<[1], [0], [0], [1], [0, 0, 1, 1], [], []>} : vector<4x128xbf16>, vector<128x128xbf16>, vector<4x128xf32> -> vector<4x128xf32>
    %48 = arith.addf %43, %47 : vector<4x128xf32>
    %49 = arith.addf %34, %48 : vector<4x128xf32>
    %c0_56 = arith.constant 0 : index
    %c0_57 = arith.constant 0 : index
    %50 = vector.load %arg8[%c0_56, %c0_57] : memref<1x128xf32, #tpu.memory_space<vmem>>, vector<1x128xf32>
    %51 = vector.broadcast %50 : vector<1x128xf32> to vector<4x128xf32>
    %52 = arith.mulf %49, %51 : vector<4x128xf32>
    %c0_58 = arith.constant 0 : index
    %c0_59 = arith.constant 0 : index
    %53 = vector.load %arg9[%c0_58, %c0_59] : memref<1x128xf32, #tpu.memory_space<vmem>>, vector<1x128xf32>
    %54 = vector.broadcast %53 : vector<1x128xf32> to vector<4x128xf32>
    %55 = arith.addf %52, %54 : vector<4x128xf32>
    %cst_60 = arith.constant 0.000000e+00 : f32
    %56 = vector.broadcast %cst_60 : f32 to vector<4x128xf32>
    %57 = arith.maximumf %55, %56 : vector<4x128xf32>
    %cst_61 = arith.constant 0.000000e+00 : bf16
    %58 = vector.broadcast %cst_61 : bf16 to vector<1x128xbf16>
    %c7_62 = arith.constant 7 : index
    %c0_63 = arith.constant 0 : index
    %59 = vector.load %arg16[%c7_62, %c0_63] : memref<13x128xbf16, #tpu.memory_space<vmem>>, vector<1x128xbf16>
    tpu.vector_store %arg16[%c7_62, %c0_63], %58 {strides = array<i32>} : memref<13x128xbf16, #tpu.memory_space<vmem>>, vector<1x128xbf16>,
    %c12_64 = arith.constant 12 : index
    %c0_65 = arith.constant 0 : index
    %60 = vector.load %arg16[%c12_64, %c0_65] : memref<13x128xbf16, #tpu.memory_space<vmem>>, vector<1x128xbf16>
    tpu.vector_store %arg16[%c12_64, %c0_65], %58 {strides = array<i32>} : memref<13x128xbf16, #tpu.memory_space<vmem>>, vector<1x128xbf16>,
    %61 = arith.truncf %57 : vector<4x128xf32> to vector<4x128xbf16>
    %c8_66 = arith.constant 8 : index
    %c0_67 = arith.constant 0 : index
    %62 = vector.load %arg16[%c8_66, %c0_67] : memref<13x128xbf16, #tpu.memory_space<vmem>>, vector<4x128xbf16>
    tpu.vector_store %arg16[%c8_66, %c0_67], %61 {strides = array<i32>} : memref<13x128xbf16, #tpu.memory_space<vmem>>, vector<4x128xbf16>,
    %c7_68 = arith.constant 7 : index
    %c0_69 = arith.constant 0 : index
    %63 = vector.load %arg16[%c7_68, %c0_69] : memref<13x128xbf16, #tpu.memory_space<vmem>>, vector<4x128xbf16>
    %c0_70 = arith.constant 0 : index
    %c0_71 = arith.constant 0 : index
    %c0_72 = arith.constant 0 : index
    %64 = vector.load %arg10[%c0_70, %c0_71, %c0_72] : memref<3x128x128xbf16, #tpu.memory_space<vmem>>, vector<1x128x128xbf16>
    %65 = vector.shape_cast %64 : vector<1x128x128xbf16> to vector<128x128xbf16>
    %cst_73 = arith.constant dense<0.000000e+00> : vector<4x128xf32>
    %66 = tpu.matmul %63, %65, %cst_73 {dimension_numbers = #tpu.dot_dimension_numbers<[1], [0], [0], [1], [0, 0, 1, 1], [], []>} : vector<4x128xbf16>, vector<128x128xbf16>, vector<4x128xf32> -> vector<4x128xf32>
    %c8_74 = arith.constant 8 : index
    %c0_75 = arith.constant 0 : index
    %67 = vector.load %arg16[%c8_74, %c0_75] : memref<13x128xbf16, #tpu.memory_space<vmem>>, vector<4x128xbf16>
    %c1_76 = arith.constant 1 : index
    %c0_77 = arith.constant 0 : index
    %c0_78 = arith.constant 0 : index
    %68 = vector.load %arg10[%c1_76, %c0_77, %c0_78] : memref<3x128x128xbf16, #tpu.memory_space<vmem>>, vector<1x128x128xbf16>
    %69 = vector.shape_cast %68 : vector<1x128x128xbf16> to vector<128x128xbf16>
    %cst_79 = arith.constant dense<0.000000e+00> : vector<4x128xf32>
    %70 = tpu.matmul %67, %69, %cst_79 {dimension_numbers = #tpu.dot_dimension_numbers<[1], [0], [0], [1], [0, 0, 1, 1], [], []>} : vector<4x128xbf16>, vector<128x128xbf16>, vector<4x128xf32> -> vector<4x128xf32>
    %71 = arith.addf %66, %70 : vector<4x128xf32>
    %c9_80 = arith.constant 9 : index
    %c0_81 = arith.constant 0 : index
    %72 = vector.load %arg16[%c9_80, %c0_81] : memref<13x128xbf16, #tpu.memory_space<vmem>>, vector<4x128xbf16>
    %c2_82 = arith.constant 2 : index
    %c0_83 = arith.constant 0 : index
    %c0_84 = arith.constant 0 : index
    %73 = vector.load %arg10[%c2_82, %c0_83, %c0_84] : memref<3x128x128xbf16, #tpu.memory_space<vmem>>, vector<1x128x128xbf16>
    %74 = vector.shape_cast %73 : vector<1x128x128xbf16> to vector<128x128xbf16>
    %cst_85 = arith.constant dense<0.000000e+00> : vector<4x128xf32>
    %75 = tpu.matmul %72, %74, %cst_85 {dimension_numbers = #tpu.dot_dimension_numbers<[1], [0], [0], [1], [0, 0, 1, 1], [], []>} : vector<4x128xbf16>, vector<128x128xbf16>, vector<4x128xf32> -> vector<4x128xf32>
    %76 = arith.addf %71, %75 : vector<4x128xf32>
    %c0_86 = arith.constant 0 : index
    %c0_87 = arith.constant 0 : index
    %77 = vector.load %arg11[%c0_86, %c0_87] : memref<1x128xf32, #tpu.memory_space<vmem>>, vector<1x128xf32>
    %78 = vector.broadcast %77 : vector<1x128xf32> to vector<4x128xf32>
    %79 = arith.mulf %76, %78 : vector<4x128xf32>
    %c0_88 = arith.constant 0 : index
    %c0_89 = arith.constant 0 : index
    %80 = vector.load %arg12[%c0_88, %c0_89] : memref<1x128xf32, #tpu.memory_space<vmem>>, vector<1x128xf32>
    %81 = vector.broadcast %80 : vector<1x128xf32> to vector<4x128xf32>
    %82 = arith.addf %79, %81 : vector<4x128xf32>
    %cst_90 = arith.constant 0.000000e+00 : f32
    %83 = vector.broadcast %cst_90 : f32 to vector<4x128xf32>
    %84 = arith.maximumf %82, %83 : vector<4x128xf32>
    %85 = vector.shape_cast %84 : vector<4x128xf32> to vector<1x4x128xf32>
    %86 = arith.truncf %85 : vector<1x4x128xf32> to vector<1x4x128xbf16>
    %c0_91 = arith.constant 0 : index
    %c0_92 = arith.constant 0 : index
    %c0_93 = arith.constant 0 : index
    %87 = vector.load %arg13[%c0_91, %c0_92, %c0_93] : memref<1x4x128xbf16, #tpu.memory_space<vmem>>, vector<1x4x128xbf16>
    tpu.vector_store %arg13[%c0_91, %c0_92, %c0_93], %86 {strides = array<i32>} : memref<1x4x128xbf16, #tpu.memory_space<vmem>>, vector<1x4x128xbf16>,
    return
  }
  func.func @transform_0(%arg0: i32) -> (i32, i32, i32) {
    %c0_i32 = arith.constant 0 : i32
    %c0_i32_0 = arith.constant 0 : i32
    %c0_i32_1 = arith.constant 0 : i32
    return %arg0, %c0_i32, %c0_i32_0 : i32, i32, i32
  }
  func.func @transform_1(%arg0: i32) -> (i32, i32, i32) {
    %c0_i32 = arith.constant 0 : i32
    %c0_i32_0 = arith.constant 0 : i32
    %c0_i32_1 = arith.constant 0 : i32
    return %arg0, %c0_i32, %c0_i32_0 : i32, i32, i32
  }
  func.func @transform_2(%arg0: i32) -> (i32, i32) {
    %c0_i32 = arith.constant 0 : i32
    %c0_i32_0 = arith.constant 0 : i32
    %c0_i32_1 = arith.constant 0 : i32
    return %c0_i32, %c0_i32_0 : i32, i32
  }
  func.func @transform_3(%arg0: i32) -> (i32, i32) {
    %c0_i32 = arith.constant 0 : i32
    %c0_i32_0 = arith.constant 0 : i32
    %c0_i32_1 = arith.constant 0 : i32
    return %c0_i32, %c0_i32_0 : i32, i32
  }
  func.func @transform_4(%arg0: i32) -> (i32, i32) {
    %c0_i32 = arith.constant 0 : i32
    %c0_i32_0 = arith.constant 0 : i32
    %c0_i32_1 = arith.constant 0 : i32
    return %c0_i32, %c0_i32_0 : i32, i32
  }
  func.func @transform_5(%arg0: i32) -> (i32, i32, i32) {
    %c0_i32 = arith.constant 0 : i32
    %c0_i32_0 = arith.constant 0 : i32
    %c0_i32_1 = arith.constant 0 : i32
    %c0_i32_2 = arith.constant 0 : i32
    return %c0_i32, %c0_i32_0, %c0_i32_1 : i32, i32, i32
  }
  func.func @transform_6(%arg0: i32) -> (i32, i32, i32) {
    %c0_i32 = arith.constant 0 : i32
    %c0_i32_0 = arith.constant 0 : i32
    %c0_i32_1 = arith.constant 0 : i32
    %c0_i32_2 = arith.constant 0 : i32
    return %c0_i32, %c0_i32_0, %c0_i32_1 : i32, i32, i32
  }
  func.func @transform_7(%arg0: i32) -> (i32, i32) {
    %c0_i32 = arith.constant 0 : i32
    %c0_i32_0 = arith.constant 0 : i32
    %c0_i32_1 = arith.constant 0 : i32
    return %c0_i32, %c0_i32_0 : i32, i32
  }
  func.func @transform_8(%arg0: i32) -> (i32, i32) {
    %c0_i32 = arith.constant 0 : i32
    %c0_i32_0 = arith.constant 0 : i32
    %c0_i32_1 = arith.constant 0 : i32
    return %c0_i32, %c0_i32_0 : i32, i32
  }
  func.func @transform_9(%arg0: i32) -> (i32, i32, i32) {
    %c0_i32 = arith.constant 0 : i32
    %c0_i32_0 = arith.constant 0 : i32
    %c0_i32_1 = arith.constant 0 : i32
    %c0_i32_2 = arith.constant 0 : i32
    return %c0_i32, %c0_i32_0, %c0_i32_1 : i32, i32, i32
  }
  func.func @transform_10(%arg0: i32) -> (i32, i32) {
    %c0_i32 = arith.constant 0 : i32
    %c0_i32_0 = arith.constant 0 : i32
    %c0_i32_1 = arith.constant 0 : i32
    return %c0_i32, %c0_i32_0 : i32, i32
  }
  func.func @transform_11(%arg0: i32) -> (i32, i32) {
    %c0_i32 = arith.constant 0 : i32
    %c0_i32_0 = arith.constant 0 : i32
    %c0_i32_1 = arith.constant 0 : i32
    return %c0_i32, %c0_i32_0 : i32, i32
  }
  func.func @transform_12(%arg0: i32) -> (i32, i32, i32) {
    %c0_i32 = arith.constant 0 : i32
    %c0_i32_0 = arith.constant 0 : i32
    %c0_i32_1 = arith.constant 0 : i32
    return %arg0, %c0_i32, %c0_i32_0 : i32, i32, i32
  }
}

module attributes {stable_mosaic.version = 11 : i64} {
  func.func @_up_kernel(%arg0: i32, %arg1: memref<1x8x128xbf16, #tpu.memory_space<vmem>>, %arg2: memref<1x16x128xbf16, #tpu.memory_space<vmem>>, %arg3: memref<16x8xbf16, #tpu.memory_space<vmem>>, %arg4: memref<128x128xbf16, #tpu.memory_space<vmem>>, %arg5: memref<1x128xf32, #tpu.memory_space<vmem>>, %arg6: memref<3x128x128xbf16, #tpu.memory_space<vmem>>, %arg7: memref<3x128x128xbf16, #tpu.memory_space<vmem>>, %arg8: memref<1x128xf32, #tpu.memory_space<vmem>>, %arg9: memref<1x128xf32, #tpu.memory_space<vmem>>, %arg10: memref<3x128x128xbf16, #tpu.memory_space<vmem>>, %arg11: memref<1x128xf32, #tpu.memory_space<vmem>>, %arg12: memref<1x128xf32, #tpu.memory_space<vmem>>, %arg13: memref<1x16x128xbf16, #tpu.memory_space<vmem>>, %arg14: memref<25x128xbf16, #tpu.memory_space<vmem>>, %arg15: memref<25x128xbf16, #tpu.memory_space<vmem>>, %arg16: memref<25x128xbf16, #tpu.memory_space<vmem>>) attributes {dimension_semantics = [#tpu.dimension_semantics<parallel>], iteration_bounds = array<i64: 2>, scalar_prefetch = 0 : i64, scratch_operands = 3 : i64, tpu.core_type = #tpu.core_type<tc>, window_params = [{transform_indices = @transform_0, window_bounds = array<i64: 1, 8, 128>}, {transform_indices = @transform_1, window_bounds = array<i64: 1, 16, 128>}, {pipeline_mode = #tpu.pipeline_mode<synchronous>, transform_indices = @transform_2, window_bounds = array<i64: 16, 8>}, {pipeline_mode = #tpu.pipeline_mode<synchronous>, transform_indices = @transform_3, window_bounds = array<i64: 128, 128>}, {pipeline_mode = #tpu.pipeline_mode<synchronous>, transform_indices = @transform_4, window_bounds = array<i64: 1, 128>}, {pipeline_mode = #tpu.pipeline_mode<synchronous>, transform_indices = @transform_5, window_bounds = array<i64: 3, 128, 128>}, {pipeline_mode = #tpu.pipeline_mode<synchronous>, transform_indices = @transform_6, window_bounds = array<i64: 3, 128, 128>}, {pipeline_mode = #tpu.pipeline_mode<synchronous>, transform_indices = @transform_7, window_bounds = array<i64: 1, 128>}, {pipeline_mode = #tpu.pipeline_mode<synchronous>, transform_indices = @transform_8, window_bounds = array<i64: 1, 128>}, {pipeline_mode = #tpu.pipeline_mode<synchronous>, transform_indices = @transform_9, window_bounds = array<i64: 3, 128, 128>}, {pipeline_mode = #tpu.pipeline_mode<synchronous>, transform_indices = @transform_10, window_bounds = array<i64: 1, 128>}, {pipeline_mode = #tpu.pipeline_mode<synchronous>, transform_indices = @transform_11, window_bounds = array<i64: 1, 128>}, {transform_indices = @transform_12, window_bounds = array<i64: 1, 16, 128>}]} {
    %c0 = arith.constant 0 : index
    %c0_0 = arith.constant 0 : index
    %0 = vector.load %arg3[%c0, %c0_0] : memref<16x8xbf16, #tpu.memory_space<vmem>>, vector<16x8xbf16>
    %c0_1 = arith.constant 0 : index
    %c0_2 = arith.constant 0 : index
    %c0_3 = arith.constant 0 : index
    %1 = vector.load %arg1[%c0_1, %c0_2, %c0_3] : memref<1x8x128xbf16, #tpu.memory_space<vmem>>, vector<1x8x128xbf16>
    %2 = vector.shape_cast %1 : vector<1x8x128xbf16> to vector<8x128xbf16>
    %cst = arith.constant dense<0.000000e+00> : vector<16x128xf32>
    %3 = tpu.matmul %0, %2, %cst {dimension_numbers = #tpu.dot_dimension_numbers<[1], [0], [0], [1], [0, 0, 1, 1], [], []>} : vector<16x8xbf16>, vector<8x128xbf16>, vector<16x128xf32> -> vector<16x128xf32>
    %4 = arith.truncf %3 : vector<16x128xf32> to vector<16x128xbf16>
    %c0_4 = arith.constant 0 : index
    %c0_5 = arith.constant 0 : index
    %5 = vector.load %arg4[%c0_4, %c0_5] : memref<128x128xbf16, #tpu.memory_space<vmem>>, vector<128x128xbf16>
    %cst_6 = arith.constant dense<0.000000e+00> : vector<16x128xf32>
    %6 = tpu.matmul %4, %5, %cst_6 {dimension_numbers = #tpu.dot_dimension_numbers<[1], [0], [0], [1], [0, 0, 1, 1], [], []>} : vector<16x128xbf16>, vector<128x128xbf16>, vector<16x128xf32> -> vector<16x128xf32>
    %c0_7 = arith.constant 0 : index
    %c0_8 = arith.constant 0 : index
    %7 = vector.load %arg5[%c0_7, %c0_8] : memref<1x128xf32, #tpu.memory_space<vmem>>, vector<1x128xf32>
    %8 = vector.broadcast %7 : vector<1x128xf32> to vector<16x128xf32>
    %9 = arith.addf %6, %8 : vector<16x128xf32>
    %c0_9 = arith.constant 0 : index
    %c0_10 = arith.constant 0 : index
    %c0_11 = arith.constant 0 : index
    %10 = vector.load %arg2[%c0_9, %c0_10, %c0_11] : memref<1x16x128xbf16, #tpu.memory_space<vmem>>, vector<1x16x128xbf16>
    %11 = vector.shape_cast %10 : vector<1x16x128xbf16> to vector<16x128xbf16>
    %cst_12 = arith.constant 0.000000e+00 : bf16
    %12 = vector.broadcast %cst_12 : bf16 to vector<1x128xbf16>
    %c7 = arith.constant 7 : index
    %c0_13 = arith.constant 0 : index
    %13 = vector.load %arg14[%c7, %c0_13] : memref<25x128xbf16, #tpu.memory_space<vmem>>, vector<1x128xbf16>
    tpu.vector_store %arg14[%c7, %c0_13], %12 {strides = array<i32>} : memref<25x128xbf16, #tpu.memory_space<vmem>>, vector<1x128xbf16>,
    %c24 = arith.constant 24 : index
    %c0_14 = arith.constant 0 : index
    %14 = vector.load %arg14[%c24, %c0_14] : memref<25x128xbf16, #tpu.memory_space<vmem>>, vector<1x128xbf16>
    tpu.vector_store %arg14[%c24, %c0_14], %12 {strides = array<i32>} : memref<25x128xbf16, #tpu.memory_space<vmem>>, vector<1x128xbf16>,
    %c8 = arith.constant 8 : index
    %c0_15 = arith.constant 0 : index
    %15 = vector.load %arg14[%c8, %c0_15] : memref<25x128xbf16, #tpu.memory_space<vmem>>, vector<16x128xbf16>
    tpu.vector_store %arg14[%c8, %c0_15], %11 {strides = array<i32>} : memref<25x128xbf16, #tpu.memory_space<vmem>>, vector<16x128xbf16>,
    %cst_16 = arith.constant 0.000000e+00 : bf16
    %16 = vector.broadcast %cst_16 : bf16 to vector<1x128xbf16>
    %c7_17 = arith.constant 7 : index
    %c0_18 = arith.constant 0 : index
    %17 = vector.load %arg15[%c7_17, %c0_18] : memref<25x128xbf16, #tpu.memory_space<vmem>>, vector<1x128xbf16>
    tpu.vector_store %arg15[%c7_17, %c0_18], %16 {strides = array<i32>} : memref<25x128xbf16, #tpu.memory_space<vmem>>, vector<1x128xbf16>,
    %c24_19 = arith.constant 24 : index
    %c0_20 = arith.constant 0 : index
    %18 = vector.load %arg15[%c24_19, %c0_20] : memref<25x128xbf16, #tpu.memory_space<vmem>>, vector<1x128xbf16>
    tpu.vector_store %arg15[%c24_19, %c0_20], %16 {strides = array<i32>} : memref<25x128xbf16, #tpu.memory_space<vmem>>, vector<1x128xbf16>,
    %19 = arith.truncf %9 : vector<16x128xf32> to vector<16x128xbf16>
    %c8_21 = arith.constant 8 : index
    %c0_22 = arith.constant 0 : index
    %20 = vector.load %arg15[%c8_21, %c0_22] : memref<25x128xbf16, #tpu.memory_space<vmem>>, vector<16x128xbf16>
    tpu.vector_store %arg15[%c8_21, %c0_22], %19 {strides = array<i32>} : memref<25x128xbf16, #tpu.memory_space<vmem>>, vector<16x128xbf16>,
    %c7_23 = arith.constant 7 : index
    %c0_24 = arith.constant 0 : index
    %21 = vector.load %arg14[%c7_23, %c0_24] : memref<25x128xbf16, #tpu.memory_space<vmem>>, vector<16x128xbf16>
    %c0_25 = arith.constant 0 : index
    %c0_26 = arith.constant 0 : index
    %c0_27 = arith.constant 0 : index
    %22 = vector.load %arg6[%c0_25, %c0_26, %c0_27] : memref<3x128x128xbf16, #tpu.memory_space<vmem>>, vector<1x128x128xbf16>
    %23 = vector.shape_cast %22 : vector<1x128x128xbf16> to vector<128x128xbf16>
    %cst_28 = arith.constant dense<0.000000e+00> : vector<16x128xf32>
    %24 = tpu.matmul %21, %23, %cst_28 {dimension_numbers = #tpu.dot_dimension_numbers<[1], [0], [0], [1], [0, 0, 1, 1], [], []>} : vector<16x128xbf16>, vector<128x128xbf16>, vector<16x128xf32> -> vector<16x128xf32>
    %c8_29 = arith.constant 8 : index
    %c0_30 = arith.constant 0 : index
    %25 = vector.load %arg14[%c8_29, %c0_30] : memref<25x128xbf16, #tpu.memory_space<vmem>>, vector<16x128xbf16>
    %c1 = arith.constant 1 : index
    %c0_31 = arith.constant 0 : index
    %c0_32 = arith.constant 0 : index
    %26 = vector.load %arg6[%c1, %c0_31, %c0_32] : memref<3x128x128xbf16, #tpu.memory_space<vmem>>, vector<1x128x128xbf16>
    %27 = vector.shape_cast %26 : vector<1x128x128xbf16> to vector<128x128xbf16>
    %cst_33 = arith.constant dense<0.000000e+00> : vector<16x128xf32>
    %28 = tpu.matmul %25, %27, %cst_33 {dimension_numbers = #tpu.dot_dimension_numbers<[1], [0], [0], [1], [0, 0, 1, 1], [], []>} : vector<16x128xbf16>, vector<128x128xbf16>, vector<16x128xf32> -> vector<16x128xf32>
    %29 = arith.addf %24, %28 : vector<16x128xf32>
    %c9 = arith.constant 9 : index
    %c0_34 = arith.constant 0 : index
    %30 = vector.load %arg14[%c9, %c0_34] : memref<25x128xbf16, #tpu.memory_space<vmem>>, vector<16x128xbf16>
    %c2 = arith.constant 2 : index
    %c0_35 = arith.constant 0 : index
    %c0_36 = arith.constant 0 : index
    %31 = vector.load %arg6[%c2, %c0_35, %c0_36] : memref<3x128x128xbf16, #tpu.memory_space<vmem>>, vector<1x128x128xbf16>
    %32 = vector.shape_cast %31 : vector<1x128x128xbf16> to vector<128x128xbf16>
    %cst_37 = arith.constant dense<0.000000e+00> : vector<16x128xf32>
    %33 = tpu.matmul %30, %32, %cst_37 {dimension_numbers = #tpu.dot_dimension_numbers<[1], [0], [0], [1], [0, 0, 1, 1], [], []>} : vector<16x128xbf16>, vector<128x128xbf16>, vector<16x128xf32> -> vector<16x128xf32>
    %34 = arith.addf %29, %33 : vector<16x128xf32>
    %c7_38 = arith.constant 7 : index
    %c0_39 = arith.constant 0 : index
    %35 = vector.load %arg15[%c7_38, %c0_39] : memref<25x128xbf16, #tpu.memory_space<vmem>>, vector<16x128xbf16>
    %c0_40 = arith.constant 0 : index
    %c0_41 = arith.constant 0 : index
    %c0_42 = arith.constant 0 : index
    %36 = vector.load %arg7[%c0_40, %c0_41, %c0_42] : memref<3x128x128xbf16, #tpu.memory_space<vmem>>, vector<1x128x128xbf16>
    %37 = vector.shape_cast %36 : vector<1x128x128xbf16> to vector<128x128xbf16>
    %cst_43 = arith.constant dense<0.000000e+00> : vector<16x128xf32>
    %38 = tpu.matmul %35, %37, %cst_43 {dimension_numbers = #tpu.dot_dimension_numbers<[1], [0], [0], [1], [0, 0, 1, 1], [], []>} : vector<16x128xbf16>, vector<128x128xbf16>, vector<16x128xf32> -> vector<16x128xf32>
    %c8_44 = arith.constant 8 : index
    %c0_45 = arith.constant 0 : index
    %39 = vector.load %arg15[%c8_44, %c0_45] : memref<25x128xbf16, #tpu.memory_space<vmem>>, vector<16x128xbf16>
    %c1_46 = arith.constant 1 : index
    %c0_47 = arith.constant 0 : index
    %c0_48 = arith.constant 0 : index
    %40 = vector.load %arg7[%c1_46, %c0_47, %c0_48] : memref<3x128x128xbf16, #tpu.memory_space<vmem>>, vector<1x128x128xbf16>
    %41 = vector.shape_cast %40 : vector<1x128x128xbf16> to vector<128x128xbf16>
    %cst_49 = arith.constant dense<0.000000e+00> : vector<16x128xf32>
    %42 = tpu.matmul %39, %41, %cst_49 {dimension_numbers = #tpu.dot_dimension_numbers<[1], [0], [0], [1], [0, 0, 1, 1], [], []>} : vector<16x128xbf16>, vector<128x128xbf16>, vector<16x128xf32> -> vector<16x128xf32>
    %43 = arith.addf %38, %42 : vector<16x128xf32>
    %c9_50 = arith.constant 9 : index
    %c0_51 = arith.constant 0 : index
    %44 = vector.load %arg15[%c9_50, %c0_51] : memref<25x128xbf16, #tpu.memory_space<vmem>>, vector<16x128xbf16>
    %c2_52 = arith.constant 2 : index
    %c0_53 = arith.constant 0 : index
    %c0_54 = arith.constant 0 : index
    %45 = vector.load %arg7[%c2_52, %c0_53, %c0_54] : memref<3x128x128xbf16, #tpu.memory_space<vmem>>, vector<1x128x128xbf16>
    %46 = vector.shape_cast %45 : vector<1x128x128xbf16> to vector<128x128xbf16>
    %cst_55 = arith.constant dense<0.000000e+00> : vector<16x128xf32>
    %47 = tpu.matmul %44, %46, %cst_55 {dimension_numbers = #tpu.dot_dimension_numbers<[1], [0], [0], [1], [0, 0, 1, 1], [], []>} : vector<16x128xbf16>, vector<128x128xbf16>, vector<16x128xf32> -> vector<16x128xf32>
    %48 = arith.addf %43, %47 : vector<16x128xf32>
    %49 = arith.addf %34, %48 : vector<16x128xf32>
    %c0_56 = arith.constant 0 : index
    %c0_57 = arith.constant 0 : index
    %50 = vector.load %arg8[%c0_56, %c0_57] : memref<1x128xf32, #tpu.memory_space<vmem>>, vector<1x128xf32>
    %51 = vector.broadcast %50 : vector<1x128xf32> to vector<16x128xf32>
    %52 = arith.mulf %49, %51 : vector<16x128xf32>
    %c0_58 = arith.constant 0 : index
    %c0_59 = arith.constant 0 : index
    %53 = vector.load %arg9[%c0_58, %c0_59] : memref<1x128xf32, #tpu.memory_space<vmem>>, vector<1x128xf32>
    %54 = vector.broadcast %53 : vector<1x128xf32> to vector<16x128xf32>
    %55 = arith.addf %52, %54 : vector<16x128xf32>
    %cst_60 = arith.constant 0.000000e+00 : f32
    %56 = vector.broadcast %cst_60 : f32 to vector<16x128xf32>
    %57 = arith.maximumf %55, %56 : vector<16x128xf32>
    %cst_61 = arith.constant 0.000000e+00 : bf16
    %58 = vector.broadcast %cst_61 : bf16 to vector<1x128xbf16>
    %c7_62 = arith.constant 7 : index
    %c0_63 = arith.constant 0 : index
    %59 = vector.load %arg16[%c7_62, %c0_63] : memref<25x128xbf16, #tpu.memory_space<vmem>>, vector<1x128xbf16>
    tpu.vector_store %arg16[%c7_62, %c0_63], %58 {strides = array<i32>} : memref<25x128xbf16, #tpu.memory_space<vmem>>, vector<1x128xbf16>,
    %c24_64 = arith.constant 24 : index
    %c0_65 = arith.constant 0 : index
    %60 = vector.load %arg16[%c24_64, %c0_65] : memref<25x128xbf16, #tpu.memory_space<vmem>>, vector<1x128xbf16>
    tpu.vector_store %arg16[%c24_64, %c0_65], %58 {strides = array<i32>} : memref<25x128xbf16, #tpu.memory_space<vmem>>, vector<1x128xbf16>,
    %61 = arith.truncf %57 : vector<16x128xf32> to vector<16x128xbf16>
    %c8_66 = arith.constant 8 : index
    %c0_67 = arith.constant 0 : index
    %62 = vector.load %arg16[%c8_66, %c0_67] : memref<25x128xbf16, #tpu.memory_space<vmem>>, vector<16x128xbf16>
    tpu.vector_store %arg16[%c8_66, %c0_67], %61 {strides = array<i32>} : memref<25x128xbf16, #tpu.memory_space<vmem>>, vector<16x128xbf16>,
    %c7_68 = arith.constant 7 : index
    %c0_69 = arith.constant 0 : index
    %63 = vector.load %arg16[%c7_68, %c0_69] : memref<25x128xbf16, #tpu.memory_space<vmem>>, vector<16x128xbf16>
    %c0_70 = arith.constant 0 : index
    %c0_71 = arith.constant 0 : index
    %c0_72 = arith.constant 0 : index
    %64 = vector.load %arg10[%c0_70, %c0_71, %c0_72] : memref<3x128x128xbf16, #tpu.memory_space<vmem>>, vector<1x128x128xbf16>
    %65 = vector.shape_cast %64 : vector<1x128x128xbf16> to vector<128x128xbf16>
    %cst_73 = arith.constant dense<0.000000e+00> : vector<16x128xf32>
    %66 = tpu.matmul %63, %65, %cst_73 {dimension_numbers = #tpu.dot_dimension_numbers<[1], [0], [0], [1], [0, 0, 1, 1], [], []>} : vector<16x128xbf16>, vector<128x128xbf16>, vector<16x128xf32> -> vector<16x128xf32>
    %c8_74 = arith.constant 8 : index
    %c0_75 = arith.constant 0 : index
    %67 = vector.load %arg16[%c8_74, %c0_75] : memref<25x128xbf16, #tpu.memory_space<vmem>>, vector<16x128xbf16>
    %c1_76 = arith.constant 1 : index
    %c0_77 = arith.constant 0 : index
    %c0_78 = arith.constant 0 : index
    %68 = vector.load %arg10[%c1_76, %c0_77, %c0_78] : memref<3x128x128xbf16, #tpu.memory_space<vmem>>, vector<1x128x128xbf16>
    %69 = vector.shape_cast %68 : vector<1x128x128xbf16> to vector<128x128xbf16>
    %cst_79 = arith.constant dense<0.000000e+00> : vector<16x128xf32>
    %70 = tpu.matmul %67, %69, %cst_79 {dimension_numbers = #tpu.dot_dimension_numbers<[1], [0], [0], [1], [0, 0, 1, 1], [], []>} : vector<16x128xbf16>, vector<128x128xbf16>, vector<16x128xf32> -> vector<16x128xf32>
    %71 = arith.addf %66, %70 : vector<16x128xf32>
    %c9_80 = arith.constant 9 : index
    %c0_81 = arith.constant 0 : index
    %72 = vector.load %arg16[%c9_80, %c0_81] : memref<25x128xbf16, #tpu.memory_space<vmem>>, vector<16x128xbf16>
    %c2_82 = arith.constant 2 : index
    %c0_83 = arith.constant 0 : index
    %c0_84 = arith.constant 0 : index
    %73 = vector.load %arg10[%c2_82, %c0_83, %c0_84] : memref<3x128x128xbf16, #tpu.memory_space<vmem>>, vector<1x128x128xbf16>
    %74 = vector.shape_cast %73 : vector<1x128x128xbf16> to vector<128x128xbf16>
    %cst_85 = arith.constant dense<0.000000e+00> : vector<16x128xf32>
    %75 = tpu.matmul %72, %74, %cst_85 {dimension_numbers = #tpu.dot_dimension_numbers<[1], [0], [0], [1], [0, 0, 1, 1], [], []>} : vector<16x128xbf16>, vector<128x128xbf16>, vector<16x128xf32> -> vector<16x128xf32>
    %76 = arith.addf %71, %75 : vector<16x128xf32>
    %c0_86 = arith.constant 0 : index
    %c0_87 = arith.constant 0 : index
    %77 = vector.load %arg11[%c0_86, %c0_87] : memref<1x128xf32, #tpu.memory_space<vmem>>, vector<1x128xf32>
    %78 = vector.broadcast %77 : vector<1x128xf32> to vector<16x128xf32>
    %79 = arith.mulf %76, %78 : vector<16x128xf32>
    %c0_88 = arith.constant 0 : index
    %c0_89 = arith.constant 0 : index
    %80 = vector.load %arg12[%c0_88, %c0_89] : memref<1x128xf32, #tpu.memory_space<vmem>>, vector<1x128xf32>
    %81 = vector.broadcast %80 : vector<1x128xf32> to vector<16x128xf32>
    %82 = arith.addf %79, %81 : vector<16x128xf32>
    %cst_90 = arith.constant 0.000000e+00 : f32
    %83 = vector.broadcast %cst_90 : f32 to vector<16x128xf32>
    %84 = arith.maximumf %82, %83 : vector<16x128xf32>
    %85 = vector.shape_cast %84 : vector<16x128xf32> to vector<1x16x128xf32>
    %86 = arith.truncf %85 : vector<1x16x128xf32> to vector<1x16x128xbf16>
    %c0_91 = arith.constant 0 : index
    %c0_92 = arith.constant 0 : index
    %c0_93 = arith.constant 0 : index
    %87 = vector.load %arg13[%c0_91, %c0_92, %c0_93] : memref<1x16x128xbf16, #tpu.memory_space<vmem>>, vector<1x16x128xbf16>
    tpu.vector_store %arg13[%c0_91, %c0_92, %c0_93], %86 {strides = array<i32>} : memref<1x16x128xbf16, #tpu.memory_space<vmem>>, vector<1x16x128xbf16>,
    return
  }
  func.func @transform_0(%arg0: i32) -> (i32, i32, i32) {
    %c0_i32 = arith.constant 0 : i32
    %c0_i32_0 = arith.constant 0 : i32
    %c0_i32_1 = arith.constant 0 : i32
    return %arg0, %c0_i32, %c0_i32_0 : i32, i32, i32
  }
  func.func @transform_1(%arg0: i32) -> (i32, i32, i32) {
    %c0_i32 = arith.constant 0 : i32
    %c0_i32_0 = arith.constant 0 : i32
    %c0_i32_1 = arith.constant 0 : i32
    return %arg0, %c0_i32, %c0_i32_0 : i32, i32, i32
  }
  func.func @transform_2(%arg0: i32) -> (i32, i32) {
    %c0_i32 = arith.constant 0 : i32
    %c0_i32_0 = arith.constant 0 : i32
    %c0_i32_1 = arith.constant 0 : i32
    return %c0_i32, %c0_i32_0 : i32, i32
  }
  func.func @transform_3(%arg0: i32) -> (i32, i32) {
    %c0_i32 = arith.constant 0 : i32
    %c0_i32_0 = arith.constant 0 : i32
    %c0_i32_1 = arith.constant 0 : i32
    return %c0_i32, %c0_i32_0 : i32, i32
  }
  func.func @transform_4(%arg0: i32) -> (i32, i32) {
    %c0_i32 = arith.constant 0 : i32
    %c0_i32_0 = arith.constant 0 : i32
    %c0_i32_1 = arith.constant 0 : i32
    return %c0_i32, %c0_i32_0 : i32, i32
  }
  func.func @transform_5(%arg0: i32) -> (i32, i32, i32) {
    %c0_i32 = arith.constant 0 : i32
    %c0_i32_0 = arith.constant 0 : i32
    %c0_i32_1 = arith.constant 0 : i32
    %c0_i32_2 = arith.constant 0 : i32
    return %c0_i32, %c0_i32_0, %c0_i32_1 : i32, i32, i32
  }
  func.func @transform_6(%arg0: i32) -> (i32, i32, i32) {
    %c0_i32 = arith.constant 0 : i32
    %c0_i32_0 = arith.constant 0 : i32
    %c0_i32_1 = arith.constant 0 : i32
    %c0_i32_2 = arith.constant 0 : i32
    return %c0_i32, %c0_i32_0, %c0_i32_1 : i32, i32, i32
  }
  func.func @transform_7(%arg0: i32) -> (i32, i32) {
    %c0_i32 = arith.constant 0 : i32
    %c0_i32_0 = arith.constant 0 : i32
    %c0_i32_1 = arith.constant 0 : i32
    return %c0_i32, %c0_i32_0 : i32, i32
  }
  func.func @transform_8(%arg0: i32) -> (i32, i32) {
    %c0_i32 = arith.constant 0 : i32
    %c0_i32_0 = arith.constant 0 : i32
    %c0_i32_1 = arith.constant 0 : i32
    return %c0_i32, %c0_i32_0 : i32, i32
  }
  func.func @transform_9(%arg0: i32) -> (i32, i32, i32) {
    %c0_i32 = arith.constant 0 : i32
    %c0_i32_0 = arith.constant 0 : i32
    %c0_i32_1 = arith.constant 0 : i32
    %c0_i32_2 = arith.constant 0 : i32
    return %c0_i32, %c0_i32_0, %c0_i32_1 : i32, i32, i32
  }
  func.func @transform_10(%arg0: i32) -> (i32, i32) {
    %c0_i32 = arith.constant 0 : i32
    %c0_i32_0 = arith.constant 0 : i32
    %c0_i32_1 = arith.constant 0 : i32
    return %c0_i32, %c0_i32_0 : i32, i32
  }
  func.func @transform_11(%arg0: i32) -> (i32, i32) {
    %c0_i32 = arith.constant 0 : i32
    %c0_i32_0 = arith.constant 0 : i32
    %c0_i32_1 = arith.constant 0 : i32
    return %c0_i32, %c0_i32_0 : i32, i32
  }
  func.func @transform_12(%arg0: i32) -> (i32, i32, i32) {
    %c0_i32 = arith.constant 0 : i32
    %c0_i32_0 = arith.constant 0 : i32
    %c0_i32_1 = arith.constant 0 : i32
    return %arg0, %c0_i32, %c0_i32_0 : i32, i32, i32
  }
}

module attributes {stable_mosaic.version = 11 : i64} {
  func.func @_up_proj_kernel(%arg0: i32, %arg1: memref<1x16x128xbf16, #tpu.memory_space<vmem>>, %arg2: memref<1x32x128xbf16, #tpu.memory_space<vmem>>, %arg3: memref<32x16xbf16, #tpu.memory_space<vmem>>, %arg4: memref<128x128xbf16, #tpu.memory_space<vmem>>, %arg5: memref<1x128xf32, #tpu.memory_space<vmem>>, %arg6: memref<3x128x128xbf16, #tpu.memory_space<vmem>>, %arg7: memref<3x128x128xbf16, #tpu.memory_space<vmem>>, %arg8: memref<1x128xf32, #tpu.memory_space<vmem>>, %arg9: memref<1x128xf32, #tpu.memory_space<vmem>>, %arg10: memref<3x128x128xbf16, #tpu.memory_space<vmem>>, %arg11: memref<1x128xf32, #tpu.memory_space<vmem>>, %arg12: memref<1x128xf32, #tpu.memory_space<vmem>>, %arg13: memref<128x64xbf16, #tpu.memory_space<vmem>>, %arg14: memref<1x64xf32, #tpu.memory_space<vmem>>, %arg15: memref<1x32x64xf32, #tpu.memory_space<vmem>>, %arg16: memref<41x128xbf16, #tpu.memory_space<vmem>>, %arg17: memref<41x128xbf16, #tpu.memory_space<vmem>>, %arg18: memref<41x128xbf16, #tpu.memory_space<vmem>>) attributes {dimension_semantics = [#tpu.dimension_semantics<parallel>], iteration_bounds = array<i64: 2>, scalar_prefetch = 0 : i64, scratch_operands = 3 : i64, tpu.core_type = #tpu.core_type<tc>, window_params = [{transform_indices = @transform_0, window_bounds = array<i64: 1, 16, 128>}, {transform_indices = @transform_1, window_bounds = array<i64: 1, 32, 128>}, {pipeline_mode = #tpu.pipeline_mode<synchronous>, transform_indices = @transform_2, window_bounds = array<i64: 32, 16>}, {pipeline_mode = #tpu.pipeline_mode<synchronous>, transform_indices = @transform_3, window_bounds = array<i64: 128, 128>}, {pipeline_mode = #tpu.pipeline_mode<synchronous>, transform_indices = @transform_4, window_bounds = array<i64: 1, 128>}, {pipeline_mode = #tpu.pipeline_mode<synchronous>, transform_indices = @transform_5, window_bounds = array<i64: 3, 128, 128>}, {pipeline_mode = #tpu.pipeline_mode<synchronous>, transform_indices = @transform_6, window_bounds = array<i64: 3, 128, 128>}, {pipeline_mode = #tpu.pipeline_mode<synchronous>, transform_indices = @transform_7, window_bounds = array<i64: 1, 128>}, {pipeline_mode = #tpu.pipeline_mode<synchronous>, transform_indices = @transform_8, window_bounds = array<i64: 1, 128>}, {pipeline_mode = #tpu.pipeline_mode<synchronous>, transform_indices = @transform_9, window_bounds = array<i64: 3, 128, 128>}, {pipeline_mode = #tpu.pipeline_mode<synchronous>, transform_indices = @transform_10, window_bounds = array<i64: 1, 128>}, {pipeline_mode = #tpu.pipeline_mode<synchronous>, transform_indices = @transform_11, window_bounds = array<i64: 1, 128>}, {pipeline_mode = #tpu.pipeline_mode<synchronous>, transform_indices = @transform_12, window_bounds = array<i64: 128, 64>}, {pipeline_mode = #tpu.pipeline_mode<synchronous>, transform_indices = @transform_13, window_bounds = array<i64: 1, 64>}, {transform_indices = @transform_14, window_bounds = array<i64: 1, 32, 64>}]} {
    %c0 = arith.constant 0 : index
    %c0_0 = arith.constant 0 : index
    %0 = vector.load %arg3[%c0, %c0_0] : memref<32x16xbf16, #tpu.memory_space<vmem>>, vector<32x16xbf16>
    %c0_1 = arith.constant 0 : index
    %c0_2 = arith.constant 0 : index
    %c0_3 = arith.constant 0 : index
    %1 = vector.load %arg1[%c0_1, %c0_2, %c0_3] : memref<1x16x128xbf16, #tpu.memory_space<vmem>>, vector<1x16x128xbf16>
    %2 = vector.shape_cast %1 : vector<1x16x128xbf16> to vector<16x128xbf16>
    %cst = arith.constant dense<0.000000e+00> : vector<32x128xf32>
    %3 = tpu.matmul %0, %2, %cst {dimension_numbers = #tpu.dot_dimension_numbers<[1], [0], [0], [1], [0, 0, 1, 1], [], []>} : vector<32x16xbf16>, vector<16x128xbf16>, vector<32x128xf32> -> vector<32x128xf32>
    %4 = arith.truncf %3 : vector<32x128xf32> to vector<32x128xbf16>
    %c0_4 = arith.constant 0 : index
    %c0_5 = arith.constant 0 : index
    %5 = vector.load %arg4[%c0_4, %c0_5] : memref<128x128xbf16, #tpu.memory_space<vmem>>, vector<128x128xbf16>
    %cst_6 = arith.constant dense<0.000000e+00> : vector<32x128xf32>
    %6 = tpu.matmul %4, %5, %cst_6 {dimension_numbers = #tpu.dot_dimension_numbers<[1], [0], [0], [1], [0, 0, 1, 1], [], []>} : vector<32x128xbf16>, vector<128x128xbf16>, vector<32x128xf32> -> vector<32x128xf32>
    %c0_7 = arith.constant 0 : index
    %c0_8 = arith.constant 0 : index
    %7 = vector.load %arg5[%c0_7, %c0_8] : memref<1x128xf32, #tpu.memory_space<vmem>>, vector<1x128xf32>
    %8 = vector.broadcast %7 : vector<1x128xf32> to vector<32x128xf32>
    %9 = arith.addf %6, %8 : vector<32x128xf32>
    %c0_9 = arith.constant 0 : index
    %c0_10 = arith.constant 0 : index
    %c0_11 = arith.constant 0 : index
    %10 = vector.load %arg2[%c0_9, %c0_10, %c0_11] : memref<1x32x128xbf16, #tpu.memory_space<vmem>>, vector<1x32x128xbf16>
    %11 = vector.shape_cast %10 : vector<1x32x128xbf16> to vector<32x128xbf16>
    %cst_12 = arith.constant 0.000000e+00 : bf16
    %12 = vector.broadcast %cst_12 : bf16 to vector<1x128xbf16>
    %c7 = arith.constant 7 : index
    %c0_13 = arith.constant 0 : index
    %13 = vector.load %arg16[%c7, %c0_13] : memref<41x128xbf16, #tpu.memory_space<vmem>>, vector<1x128xbf16>
    tpu.vector_store %arg16[%c7, %c0_13], %12 {strides = array<i32>} : memref<41x128xbf16, #tpu.memory_space<vmem>>, vector<1x128xbf16>,
    %c40 = arith.constant 40 : index
    %c0_14 = arith.constant 0 : index
    %14 = vector.load %arg16[%c40, %c0_14] : memref<41x128xbf16, #tpu.memory_space<vmem>>, vector<1x128xbf16>
    tpu.vector_store %arg16[%c40, %c0_14], %12 {strides = array<i32>} : memref<41x128xbf16, #tpu.memory_space<vmem>>, vector<1x128xbf16>,
    %c8 = arith.constant 8 : index
    %c0_15 = arith.constant 0 : index
    %15 = vector.load %arg16[%c8, %c0_15] : memref<41x128xbf16, #tpu.memory_space<vmem>>, vector<32x128xbf16>
    tpu.vector_store %arg16[%c8, %c0_15], %11 {strides = array<i32>} : memref<41x128xbf16, #tpu.memory_space<vmem>>, vector<32x128xbf16>,
    %cst_16 = arith.constant 0.000000e+00 : bf16
    %16 = vector.broadcast %cst_16 : bf16 to vector<1x128xbf16>
    %c7_17 = arith.constant 7 : index
    %c0_18 = arith.constant 0 : index
    %17 = vector.load %arg17[%c7_17, %c0_18] : memref<41x128xbf16, #tpu.memory_space<vmem>>, vector<1x128xbf16>
    tpu.vector_store %arg17[%c7_17, %c0_18], %16 {strides = array<i32>} : memref<41x128xbf16, #tpu.memory_space<vmem>>, vector<1x128xbf16>,
    %c40_19 = arith.constant 40 : index
    %c0_20 = arith.constant 0 : index
    %18 = vector.load %arg17[%c40_19, %c0_20] : memref<41x128xbf16, #tpu.memory_space<vmem>>, vector<1x128xbf16>
    tpu.vector_store %arg17[%c40_19, %c0_20], %16 {strides = array<i32>} : memref<41x128xbf16, #tpu.memory_space<vmem>>, vector<1x128xbf16>,
    %19 = arith.truncf %9 : vector<32x128xf32> to vector<32x128xbf16>
    %c8_21 = arith.constant 8 : index
    %c0_22 = arith.constant 0 : index
    %20 = vector.load %arg17[%c8_21, %c0_22] : memref<41x128xbf16, #tpu.memory_space<vmem>>, vector<32x128xbf16>
    tpu.vector_store %arg17[%c8_21, %c0_22], %19 {strides = array<i32>} : memref<41x128xbf16, #tpu.memory_space<vmem>>, vector<32x128xbf16>,
    %c7_23 = arith.constant 7 : index
    %c0_24 = arith.constant 0 : index
    %21 = vector.load %arg16[%c7_23, %c0_24] : memref<41x128xbf16, #tpu.memory_space<vmem>>, vector<32x128xbf16>
    %c0_25 = arith.constant 0 : index
    %c0_26 = arith.constant 0 : index
    %c0_27 = arith.constant 0 : index
    %22 = vector.load %arg6[%c0_25, %c0_26, %c0_27] : memref<3x128x128xbf16, #tpu.memory_space<vmem>>, vector<1x128x128xbf16>
    %23 = vector.shape_cast %22 : vector<1x128x128xbf16> to vector<128x128xbf16>
    %cst_28 = arith.constant dense<0.000000e+00> : vector<32x128xf32>
    %24 = tpu.matmul %21, %23, %cst_28 {dimension_numbers = #tpu.dot_dimension_numbers<[1], [0], [0], [1], [0, 0, 1, 1], [], []>} : vector<32x128xbf16>, vector<128x128xbf16>, vector<32x128xf32> -> vector<32x128xf32>
    %c8_29 = arith.constant 8 : index
    %c0_30 = arith.constant 0 : index
    %25 = vector.load %arg16[%c8_29, %c0_30] : memref<41x128xbf16, #tpu.memory_space<vmem>>, vector<32x128xbf16>
    %c1 = arith.constant 1 : index
    %c0_31 = arith.constant 0 : index
    %c0_32 = arith.constant 0 : index
    %26 = vector.load %arg6[%c1, %c0_31, %c0_32] : memref<3x128x128xbf16, #tpu.memory_space<vmem>>, vector<1x128x128xbf16>
    %27 = vector.shape_cast %26 : vector<1x128x128xbf16> to vector<128x128xbf16>
    %cst_33 = arith.constant dense<0.000000e+00> : vector<32x128xf32>
    %28 = tpu.matmul %25, %27, %cst_33 {dimension_numbers = #tpu.dot_dimension_numbers<[1], [0], [0], [1], [0, 0, 1, 1], [], []>} : vector<32x128xbf16>, vector<128x128xbf16>, vector<32x128xf32> -> vector<32x128xf32>
    %29 = arith.addf %24, %28 : vector<32x128xf32>
    %c9 = arith.constant 9 : index
    %c0_34 = arith.constant 0 : index
    %30 = vector.load %arg16[%c9, %c0_34] : memref<41x128xbf16, #tpu.memory_space<vmem>>, vector<32x128xbf16>
    %c2 = arith.constant 2 : index
    %c0_35 = arith.constant 0 : index
    %c0_36 = arith.constant 0 : index
    %31 = vector.load %arg6[%c2, %c0_35, %c0_36] : memref<3x128x128xbf16, #tpu.memory_space<vmem>>, vector<1x128x128xbf16>
    %32 = vector.shape_cast %31 : vector<1x128x128xbf16> to vector<128x128xbf16>
    %cst_37 = arith.constant dense<0.000000e+00> : vector<32x128xf32>
    %33 = tpu.matmul %30, %32, %cst_37 {dimension_numbers = #tpu.dot_dimension_numbers<[1], [0], [0], [1], [0, 0, 1, 1], [], []>} : vector<32x128xbf16>, vector<128x128xbf16>, vector<32x128xf32> -> vector<32x128xf32>
    %34 = arith.addf %29, %33 : vector<32x128xf32>
    %c7_38 = arith.constant 7 : index
    %c0_39 = arith.constant 0 : index
    %35 = vector.load %arg17[%c7_38, %c0_39] : memref<41x128xbf16, #tpu.memory_space<vmem>>, vector<32x128xbf16>
    %c0_40 = arith.constant 0 : index
    %c0_41 = arith.constant 0 : index
    %c0_42 = arith.constant 0 : index
    %36 = vector.load %arg7[%c0_40, %c0_41, %c0_42] : memref<3x128x128xbf16, #tpu.memory_space<vmem>>, vector<1x128x128xbf16>
    %37 = vector.shape_cast %36 : vector<1x128x128xbf16> to vector<128x128xbf16>
    %cst_43 = arith.constant dense<0.000000e+00> : vector<32x128xf32>
    %38 = tpu.matmul %35, %37, %cst_43 {dimension_numbers = #tpu.dot_dimension_numbers<[1], [0], [0], [1], [0, 0, 1, 1], [], []>} : vector<32x128xbf16>, vector<128x128xbf16>, vector<32x128xf32> -> vector<32x128xf32>
    %c8_44 = arith.constant 8 : index
    %c0_45 = arith.constant 0 : index
    %39 = vector.load %arg17[%c8_44, %c0_45] : memref<41x128xbf16, #tpu.memory_space<vmem>>, vector<32x128xbf16>
    %c1_46 = arith.constant 1 : index
    %c0_47 = arith.constant 0 : index
    %c0_48 = arith.constant 0 : index
    %40 = vector.load %arg7[%c1_46, %c0_47, %c0_48] : memref<3x128x128xbf16, #tpu.memory_space<vmem>>, vector<1x128x128xbf16>
    %41 = vector.shape_cast %40 : vector<1x128x128xbf16> to vector<128x128xbf16>
    %cst_49 = arith.constant dense<0.000000e+00> : vector<32x128xf32>
    %42 = tpu.matmul %39, %41, %cst_49 {dimension_numbers = #tpu.dot_dimension_numbers<[1], [0], [0], [1], [0, 0, 1, 1], [], []>} : vector<32x128xbf16>, vector<128x128xbf16>, vector<32x128xf32> -> vector<32x128xf32>
    %43 = arith.addf %38, %42 : vector<32x128xf32>
    %c9_50 = arith.constant 9 : index
    %c0_51 = arith.constant 0 : index
    %44 = vector.load %arg17[%c9_50, %c0_51] : memref<41x128xbf16, #tpu.memory_space<vmem>>, vector<32x128xbf16>
    %c2_52 = arith.constant 2 : index
    %c0_53 = arith.constant 0 : index
    %c0_54 = arith.constant 0 : index
    %45 = vector.load %arg7[%c2_52, %c0_53, %c0_54] : memref<3x128x128xbf16, #tpu.memory_space<vmem>>, vector<1x128x128xbf16>
    %46 = vector.shape_cast %45 : vector<1x128x128xbf16> to vector<128x128xbf16>
    %cst_55 = arith.constant dense<0.000000e+00> : vector<32x128xf32>
    %47 = tpu.matmul %44, %46, %cst_55 {dimension_numbers = #tpu.dot_dimension_numbers<[1], [0], [0], [1], [0, 0, 1, 1], [], []>} : vector<32x128xbf16>, vector<128x128xbf16>, vector<32x128xf32> -> vector<32x128xf32>
    %48 = arith.addf %43, %47 : vector<32x128xf32>
    %49 = arith.addf %34, %48 : vector<32x128xf32>
    %c0_56 = arith.constant 0 : index
    %c0_57 = arith.constant 0 : index
    %50 = vector.load %arg8[%c0_56, %c0_57] : memref<1x128xf32, #tpu.memory_space<vmem>>, vector<1x128xf32>
    %51 = vector.broadcast %50 : vector<1x128xf32> to vector<32x128xf32>
    %52 = arith.mulf %49, %51 : vector<32x128xf32>
    %c0_58 = arith.constant 0 : index
    %c0_59 = arith.constant 0 : index
    %53 = vector.load %arg9[%c0_58, %c0_59] : memref<1x128xf32, #tpu.memory_space<vmem>>, vector<1x128xf32>
    %54 = vector.broadcast %53 : vector<1x128xf32> to vector<32x128xf32>
    %55 = arith.addf %52, %54 : vector<32x128xf32>
    %cst_60 = arith.constant 0.000000e+00 : f32
    %56 = vector.broadcast %cst_60 : f32 to vector<32x128xf32>
    %57 = arith.maximumf %55, %56 : vector<32x128xf32>
    %cst_61 = arith.constant 0.000000e+00 : bf16
    %58 = vector.broadcast %cst_61 : bf16 to vector<1x128xbf16>
    %c7_62 = arith.constant 7 : index
    %c0_63 = arith.constant 0 : index
    %59 = vector.load %arg18[%c7_62, %c0_63] : memref<41x128xbf16, #tpu.memory_space<vmem>>, vector<1x128xbf16>
    tpu.vector_store %arg18[%c7_62, %c0_63], %58 {strides = array<i32>} : memref<41x128xbf16, #tpu.memory_space<vmem>>, vector<1x128xbf16>,
    %c40_64 = arith.constant 40 : index
    %c0_65 = arith.constant 0 : index
    %60 = vector.load %arg18[%c40_64, %c0_65] : memref<41x128xbf16, #tpu.memory_space<vmem>>, vector<1x128xbf16>
    tpu.vector_store %arg18[%c40_64, %c0_65], %58 {strides = array<i32>} : memref<41x128xbf16, #tpu.memory_space<vmem>>, vector<1x128xbf16>,
    %61 = arith.truncf %57 : vector<32x128xf32> to vector<32x128xbf16>
    %c8_66 = arith.constant 8 : index
    %c0_67 = arith.constant 0 : index
    %62 = vector.load %arg18[%c8_66, %c0_67] : memref<41x128xbf16, #tpu.memory_space<vmem>>, vector<32x128xbf16>
    tpu.vector_store %arg18[%c8_66, %c0_67], %61 {strides = array<i32>} : memref<41x128xbf16, #tpu.memory_space<vmem>>, vector<32x128xbf16>,
    %c7_68 = arith.constant 7 : index
    %c0_69 = arith.constant 0 : index
    %63 = vector.load %arg18[%c7_68, %c0_69] : memref<41x128xbf16, #tpu.memory_space<vmem>>, vector<32x128xbf16>
    %c0_70 = arith.constant 0 : index
    %c0_71 = arith.constant 0 : index
    %c0_72 = arith.constant 0 : index
    %64 = vector.load %arg10[%c0_70, %c0_71, %c0_72] : memref<3x128x128xbf16, #tpu.memory_space<vmem>>, vector<1x128x128xbf16>
    %65 = vector.shape_cast %64 : vector<1x128x128xbf16> to vector<128x128xbf16>
    %cst_73 = arith.constant dense<0.000000e+00> : vector<32x128xf32>
    %66 = tpu.matmul %63, %65, %cst_73 {dimension_numbers = #tpu.dot_dimension_numbers<[1], [0], [0], [1], [0, 0, 1, 1], [], []>} : vector<32x128xbf16>, vector<128x128xbf16>, vector<32x128xf32> -> vector<32x128xf32>
    %c8_74 = arith.constant 8 : index
    %c0_75 = arith.constant 0 : index
    %67 = vector.load %arg18[%c8_74, %c0_75] : memref<41x128xbf16, #tpu.memory_space<vmem>>, vector<32x128xbf16>
    %c1_76 = arith.constant 1 : index
    %c0_77 = arith.constant 0 : index
    %c0_78 = arith.constant 0 : index
    %68 = vector.load %arg10[%c1_76, %c0_77, %c0_78] : memref<3x128x128xbf16, #tpu.memory_space<vmem>>, vector<1x128x128xbf16>
    %69 = vector.shape_cast %68 : vector<1x128x128xbf16> to vector<128x128xbf16>
    %cst_79 = arith.constant dense<0.000000e+00> : vector<32x128xf32>
    %70 = tpu.matmul %67, %69, %cst_79 {dimension_numbers = #tpu.dot_dimension_numbers<[1], [0], [0], [1], [0, 0, 1, 1], [], []>} : vector<32x128xbf16>, vector<128x128xbf16>, vector<32x128xf32> -> vector<32x128xf32>
    %71 = arith.addf %66, %70 : vector<32x128xf32>
    %c9_80 = arith.constant 9 : index
    %c0_81 = arith.constant 0 : index
    %72 = vector.load %arg18[%c9_80, %c0_81] : memref<41x128xbf16, #tpu.memory_space<vmem>>, vector<32x128xbf16>
    %c2_82 = arith.constant 2 : index
    %c0_83 = arith.constant 0 : index
    %c0_84 = arith.constant 0 : index
    %73 = vector.load %arg10[%c2_82, %c0_83, %c0_84] : memref<3x128x128xbf16, #tpu.memory_space<vmem>>, vector<1x128x128xbf16>
    %74 = vector.shape_cast %73 : vector<1x128x128xbf16> to vector<128x128xbf16>
    %cst_85 = arith.constant dense<0.000000e+00> : vector<32x128xf32>
    %75 = tpu.matmul %72, %74, %cst_85 {dimension_numbers = #tpu.dot_dimension_numbers<[1], [0], [0], [1], [0, 0, 1, 1], [], []>} : vector<32x128xbf16>, vector<128x128xbf16>, vector<32x128xf32> -> vector<32x128xf32>
    %76 = arith.addf %71, %75 : vector<32x128xf32>
    %c0_86 = arith.constant 0 : index
    %c0_87 = arith.constant 0 : index
    %77 = vector.load %arg11[%c0_86, %c0_87] : memref<1x128xf32, #tpu.memory_space<vmem>>, vector<1x128xf32>
    %78 = vector.broadcast %77 : vector<1x128xf32> to vector<32x128xf32>
    %79 = arith.mulf %76, %78 : vector<32x128xf32>
    %c0_88 = arith.constant 0 : index
    %c0_89 = arith.constant 0 : index
    %80 = vector.load %arg12[%c0_88, %c0_89] : memref<1x128xf32, #tpu.memory_space<vmem>>, vector<1x128xf32>
    %81 = vector.broadcast %80 : vector<1x128xf32> to vector<32x128xf32>
    %82 = arith.addf %79, %81 : vector<32x128xf32>
    %cst_90 = arith.constant 0.000000e+00 : f32
    %83 = vector.broadcast %cst_90 : f32 to vector<32x128xf32>
    %84 = arith.maximumf %82, %83 : vector<32x128xf32>
    %85 = arith.truncf %84 : vector<32x128xf32> to vector<32x128xbf16>
    %c0_91 = arith.constant 0 : index
    %c0_92 = arith.constant 0 : index
    %86 = vector.load %arg13[%c0_91, %c0_92] : memref<128x64xbf16, #tpu.memory_space<vmem>>, vector<128x64xbf16>
    %cst_93 = arith.constant dense<0.000000e+00> : vector<32x64xf32>
    %87 = tpu.matmul %85, %86, %cst_93 {dimension_numbers = #tpu.dot_dimension_numbers<[1], [0], [0], [1], [0, 0, 1, 1], [], []>} : vector<32x128xbf16>, vector<128x64xbf16>, vector<32x64xf32> -> vector<32x64xf32>
    %c0_94 = arith.constant 0 : index
    %c0_95 = arith.constant 0 : index
    %88 = vector.load %arg14[%c0_94, %c0_95] : memref<1x64xf32, #tpu.memory_space<vmem>>, vector<1x64xf32>
    %89 = vector.broadcast %88 : vector<1x64xf32> to vector<32x64xf32>
    %90 = arith.addf %87, %89 : vector<32x64xf32>
    %91 = vector.shape_cast %90 : vector<32x64xf32> to vector<1x32x64xf32>
    %c0_96 = arith.constant 0 : index
    %c0_97 = arith.constant 0 : index
    %c0_98 = arith.constant 0 : index
    %92 = vector.load %arg15[%c0_96, %c0_97, %c0_98] : memref<1x32x64xf32, #tpu.memory_space<vmem>>, vector<1x32x64xf32>
    tpu.vector_store %arg15[%c0_96, %c0_97, %c0_98], %91 {strides = array<i32>} : memref<1x32x64xf32, #tpu.memory_space<vmem>>, vector<1x32x64xf32>,
    return
  }
  func.func @transform_0(%arg0: i32) -> (i32, i32, i32) {
    %c0_i32 = arith.constant 0 : i32
    %c0_i32_0 = arith.constant 0 : i32
    %c0_i32_1 = arith.constant 0 : i32
    return %arg0, %c0_i32, %c0_i32_0 : i32, i32, i32
  }
  func.func @transform_1(%arg0: i32) -> (i32, i32, i32) {
    %c0_i32 = arith.constant 0 : i32
    %c0_i32_0 = arith.constant 0 : i32
    %c0_i32_1 = arith.constant 0 : i32
    return %arg0, %c0_i32, %c0_i32_0 : i32, i32, i32
  }
  func.func @transform_2(%arg0: i32) -> (i32, i32) {
    %c0_i32 = arith.constant 0 : i32
    %c0_i32_0 = arith.constant 0 : i32
    %c0_i32_1 = arith.constant 0 : i32
    return %c0_i32, %c0_i32_0 : i32, i32
  }
  func.func @transform_3(%arg0: i32) -> (i32, i32) {
    %c0_i32 = arith.constant 0 : i32
    %c0_i32_0 = arith.constant 0 : i32
    %c0_i32_1 = arith.constant 0 : i32
    return %c0_i32, %c0_i32_0 : i32, i32
  }
  func.func @transform_4(%arg0: i32) -> (i32, i32) {
    %c0_i32 = arith.constant 0 : i32
    %c0_i32_0 = arith.constant 0 : i32
    %c0_i32_1 = arith.constant 0 : i32
    return %c0_i32, %c0_i32_0 : i32, i32
  }
  func.func @transform_5(%arg0: i32) -> (i32, i32, i32) {
    %c0_i32 = arith.constant 0 : i32
    %c0_i32_0 = arith.constant 0 : i32
    %c0_i32_1 = arith.constant 0 : i32
    %c0_i32_2 = arith.constant 0 : i32
    return %c0_i32, %c0_i32_0, %c0_i32_1 : i32, i32, i32
  }
  func.func @transform_6(%arg0: i32) -> (i32, i32, i32) {
    %c0_i32 = arith.constant 0 : i32
    %c0_i32_0 = arith.constant 0 : i32
    %c0_i32_1 = arith.constant 0 : i32
    %c0_i32_2 = arith.constant 0 : i32
    return %c0_i32, %c0_i32_0, %c0_i32_1 : i32, i32, i32
  }
  func.func @transform_7(%arg0: i32) -> (i32, i32) {
    %c0_i32 = arith.constant 0 : i32
    %c0_i32_0 = arith.constant 0 : i32
    %c0_i32_1 = arith.constant 0 : i32
    return %c0_i32, %c0_i32_0 : i32, i32
  }
  func.func @transform_8(%arg0: i32) -> (i32, i32) {
    %c0_i32 = arith.constant 0 : i32
    %c0_i32_0 = arith.constant 0 : i32
    %c0_i32_1 = arith.constant 0 : i32
    return %c0_i32, %c0_i32_0 : i32, i32
  }
  func.func @transform_9(%arg0: i32) -> (i32, i32, i32) {
    %c0_i32 = arith.constant 0 : i32
    %c0_i32_0 = arith.constant 0 : i32
    %c0_i32_1 = arith.constant 0 : i32
    %c0_i32_2 = arith.constant 0 : i32
    return %c0_i32, %c0_i32_0, %c0_i32_1 : i32, i32, i32
  }
  func.func @transform_10(%arg0: i32) -> (i32, i32) {
    %c0_i32 = arith.constant 0 : i32
    %c0_i32_0 = arith.constant 0 : i32
    %c0_i32_1 = arith.constant 0 : i32
    return %c0_i32, %c0_i32_0 : i32, i32
  }
  func.func @transform_11(%arg0: i32) -> (i32, i32) {
    %c0_i32 = arith.constant 0 : i32
    %c0_i32_0 = arith.constant 0 : i32
    %c0_i32_1 = arith.constant 0 : i32
    return %c0_i32, %c0_i32_0 : i32, i32
  }
  func.func @transform_12(%arg0: i32) -> (i32, i32) {
    %c0_i32 = arith.constant 0 : i32
    %c0_i32_0 = arith.constant 0 : i32
    %c0_i32_1 = arith.constant 0 : i32
    return %c0_i32, %c0_i32_0 : i32, i32
  }
  func.func @transform_13(%arg0: i32) -> (i32, i32) {
    %c0_i32 = arith.constant 0 : i32
    %c0_i32_0 = arith.constant 0 : i32
    %c0_i32_1 = arith.constant 0 : i32
    return %c0_i32, %c0_i32_0 : i32, i32
  }
  func.func @transform_14(%arg0: i32) -> (i32, i32, i32) {
    %c0_i32 = arith.constant 0 : i32
    %c0_i32_0 = arith.constant 0 : i32
    %c0_i32_1 = arith.constant 0 : i32
    return %arg0, %c0_i32, %c0_i32_0 : i32, i32, i32
  }
}

</mosaic_0001>

<bundles_post_ra>
// kernel: unet_forward.10
= control target key start
LH: loop header
LB: loop body
LE: loop exit
PB: predicated region body
PF: predicated region fallthrough
CT: control target
= control target key end

     0   :  { %s2064_s17 = smov 0   ;;  %s2348_s0 = inlined_call_operand.vmem [shape: bf16[2,32,128], index: 0, kind: input, shape index: {}]   ;;  %s2349_s1 = inlined_call_operand.vmem [shape: bf16[16,32], index: 1, kind: input, shape index: {}]   ;;  %s2350_s2 = inlined_call_operand.vmem [shape: bf16[16,32], index: 2, kind: input, shape index: {}]   ;;  %s2351_s3 = inlined_call_operand.vmem [shape: bf16[128,64], index: 3, kind: input, shape index: {}]   ;;  %s2352_s4 = inlined_call_operand.vmem [shape: bf16[128,64], index: 4, kind: input, shape index: {}]   ;;  %s2353_s5 = inlined_call_operand.vmem [shape: bf16[3,64,128], index: 5, kind: input, shape index: {}]   ;;  %s2354_s6 = inlined_call_operand.vmem [shape: f32[1,128], index: 6, kind: input, shape index: {}]   ;;  %s2355_s7 = inlined_call_operand.vmem [shape: f32[1,128], index: 7, kind: input, shape index: {}]   ;;  %s2356_s8 = inlined_call_operand.vmem [shape: bf16[3,128,128], index: 8, kind: input, shape index: {}]   ;;  %s2357_s9 = inlined_call_operand.vmem [shape: f32[1,128], index: 9, kind: input, shape index: {}]   ;;  %s2358_s10 = inlined_call_operand.vmem [shape: f32[1,128], index: 10, kind: input, shape index: {}]   ;;  %s2359_s11 = inlined_call_operand.vmem [shape: bf16[2,16,128], index: 11, kind: output, shape index: {}]  }
   0x1 LB: > { %s1531_s18 = sadd.s32 4294967295, %s2000_s17   ;;  %p1535_p0 = scmp.ge.s32.totalorder %s2000_s17, 1  ;;  %s2000_s17 = sphi %s2064_s17, %s21_s17  }
   0x2   : > { %p337_p1 = scmp.lt.s32.totalorder %s2000_s17, 3 }
   0x4   : > { %p338_p2 = pnand %p1535_p0, %p337_p1 }
   0x5   : > { %p377_p3 = scmp.lt.s32.totalorder (!%p338_p2), %s1531_s18, 1  ;;  %v2002_v0 = vmov (!%p338_p2), 0.0   ;;  %vm2003_vm0 = vmmov (!%p338_p2), 0   ;;  %v1932_v1 = vld [vmem:[%s2351_s3] sm:$0xff] (!%p338_p2)   ;;  %v1933_v2 = vld [vmem:[%s2351_s3 + $0x8] sm:$0xff] (!%p338_p2)   ;;  %v1934_v4 = vld [vmem:[%s2351_s3 + $0x10] sm:$0xff] (!%p338_p2)  }
   0x6   : > { %341 = sbr.rel (%p338_p2) target bundleno = 1061 (0x425), region = 64  ;;  %1750 = vmatprep.subr.bf16.mxu1 (!%p338_p2), %v2002_v0  ;;  %1754 = vmatprep.mubr.msk.bf16.mxu1 (!%p338_p2), %vm2003_vm0, %v2002_v0  ;;  %v1930_v6 = vld [vmem:[%s2349_s1] sm:$0xff] (!%p338_p2)   ;;  %vm411_vm1 = vcmask (!%p338_p2), 261120   ;;  %v1935_v7 = vld [vmem:[%s2351_s3 + $0x18] sm:$0xff] (!%p338_p2)   ;;  %v1937_v10 = vld [vmem:[%s2351_s3 + $0x28] sm:$0xff] (!%p338_p2)   ;;  %vm722_vm2 = vcmask (!%p338_p2), 519171  }
   0x7   : > { %1766 = vmatprep.subr.bf16.mxu0 (!%p338_p2), %v2002_v0  ;;  %1782 = vmatprep.mubr.msk.bf16.mxu0 (!%p338_p2), %vm2003_vm0, %v2002_v0  ;;  %v1936_v8 = vld [vmem:[%s2351_s3 + $0x20] sm:$0xff] (!%p338_p2)   ;;  %v1938_v11 = vld [vmem:[%s2351_s3 + $0x30] sm:$0xff] (!%p338_p2)   ;;  %v1939_v12 = vld [vmem:[%s2351_s3 + $0x38] sm:$0xff] (!%p338_p2)   ;;  %vm723_vm3 = vsmask.f32 (!%p338_p2), 7950  ;;  %vm728_vm5 = vcmask (!%p338_p2), 516096  }
   0x8   : > { %1767 = vmatpush3.bf16.msra.mxu0 (!%p338_p2), %v1932_v1  ;;  %v1931_v9 = vld [vmem:[%s2350_s2] sm:$0xff] (!%p338_p2)   ;;  %v1941_v25 = vld [vmem:[%s2352_s4 + $0x8] sm:$0xff] (!%p338_p2)   ;;  %v1942_v26 = vld [vmem:[%s2352_s4 + $0x10] sm:$0xff] (!%p338_p2)   ;;  %vm729_vm6 = vsmask.f32 (!%p338_p2), 256  ;;  %vm742_vm8 = vcmask (!%p338_p2), 519168  }
   0x9   : > { %1768 = vmatprep.subr.bf16.mxu0 (!%p338_p2), %v2002_v0  ;;  %v1940_v23 = vld [vmem:[%s2352_s4] sm:$0xff] (!%p338_p2)   ;;  %v1943_v27 = vld [vmem:[%s2352_s4 + $0x18] sm:$0xff] (!%p338_p2)   ;;  %v1945_v29 = vld [vmem:[%s2352_s4 + $0x28] sm:$0xff] (!%p338_p2)   ;;  %vm794_vm9 = vcmask (!%p338_p2), 523264   ;;  %vm843_vm10 = vsmask.f32 (!%p338_p2), 4352 }
   0xa   : > { %v1944_v28 = vld [vmem:[%s2352_s4 + $0x20] sm:$0xff] (!%p338_p2)   ;;  %v1946_v30 = vld [vmem:[%s2352_s4 + $0x30] sm:$0xff] (!%p338_p2)   ;;  %v1947_v31 = vld [vmem:[%s2352_s4 + $0x38] sm:$0xff] (!%p338_p2)   ;;  %vm949_vm11 = vsmask.f32 (!%p338_p2), 7424  ;;  %vm1052_vm12 = vcmask (!%p338_p2), 1043459  }
   0xb   : > { %v1948_v32 = vld [vmem:[%s2353_s5 + $0x20] sm:$0xff] (!%p338_p2)   ;;  %v1949_v33 = vld [vmem:[%s2353_s5 + $0x28] sm:$0xff] (!%p338_p2)   ;;  %vm724_vm4 = vmand (!%p338_p2), %vm722_vm2, %vm723_vm3  ;;  %vm1057_vm14 = vcmask (!%p338_p2), 1040384  }
   0xc   : > { %1769 = vmatpush3.bf16.msra.mxu0 (!%p338_p2), %v1933_v2  ;;  %v725_v34 = vld [vmem:[#allocation2] sm:$0x8] (!%p338_p2)  ;;  %v1950_v36 = vld [vmem:[%s2353_s5 + $0x30] sm:$0xff] (!%p338_p2)   ;;  %vm730_vm7 = vmand (!%p338_p2), %vm728_vm5, %vm729_vm6 }
   0xd   : > { %s2361_s18 = smov (!%p377_p3, %s1531_s18), 1  ;;  %1770 = vmatprep.subr.bf16.mxu0 %v2002_v0  ;;  %v726_v35 = vsel %vm724_vm4, 0, %v725_v34  ;;  %v731_v37 = vld [vmem:[#allocation2 + $0xc] sm:$0x1]  ;;  %v1951_v38 = vld [vmem:[%s2353_s5 + $0x38] sm:$0xff]   ;;  %v1965_v40 = vld [vmem:[%s2356_s8 + $0x40] sm:$0xff]  }
   0xe   : > { %s1671_s21 = sshll.u32 %s2361_s18, 4  ;;  %727 = vst [vmem:[#allocation2] sm:$0x8] %v726_v35  ;;  %v732_v39 = vsel %vm730_vm7, 0, %v731_v37  ;;  %v1966_v41 = vld [vmem:[%s2356_s8 + $0x48] sm:$0xff]   ;;  %v1967_v42 = vld [vmem:[%s2356_s8 + $0x50] sm:$0xff]   ;;  %vm1053_vm13 = vmand %vm1052_vm12, %vm723_vm3 }
   0xf   : > { %s381_s26 = scalar_lea.vmem %s2348_s0, %s1671_s21  ;;  %733 = vst [vmem:[#allocation2 + $0xc] sm:$0x1] %v732_v39  ;;  %v1955_v55 = vld [vmem:[%s2353_s5] sm:$0xff]   ;;  %v1956_v62 = vld [vmem:[%s2353_s5 + $0x8] sm:$0xff]   ;;  %v1957_v2 = vld [vmem:[%s2353_s5 + $0x10] sm:$0xff]   ;;  %s1672_s20 = sshll.u32 %s2361_s18, 3 }
  0x10   : > { %v1928_v3 = vld [vmem:[%s381_s26] sm:$0xff]   ;;  %v1929_v5 = vld [vmem:[%s381_s26 + $0x8] sm:$0xff]   ;;  %1771 = vmatpush3.bf16.msra.mxu0 %v1934_v4  ;;  %vm1058_vm15 = vmand %vm1057_vm14, %vm729_vm6  ;;  %s386_s23 = scalar_lea.vmem %s2359_s11, %s1672_s20 }
  0x11   : > { %1751 = vmatpush3.bf16.msra.mxu1 %v1928_v3  ;;  %1772 = vmatprep.subr.bf16.mxu0 %v2002_v0  ;;  %v1600_v35 = vld [vmem:[%s2354_s6] ss:$0 sm:$0xff] }
  0x12   : > { %1752 = vmatprep.subr.bf16.mxu1 %v2002_v0  ;;  %v1601_v37 = vld [vmem:[%s2355_s7] ss:$0 sm:$0xff] }
  0x14   : > { %1773 = vmatpush3.bf16.msra.mxu0 %v1935_v7  ;;  %v1958_v7 = vld [vmem:[%s2353_s5 + $0x18] sm:$0xff]  }
  0x15   : > { %1753 = vmatpush3.bf16.msra.mxu1 %v1929_v5  ;;  %1774 = vmatprep.subr.bf16.mxu0 %v2002_v0  ;;  %v745_v58 = vld [vmem:[#allocation2] sm:$0x8] }
  0x16   : > { %1758 = vmatprep.subr.bf16.mxu1 %v2002_v0 }
  0x18   : > { %1755 = vmatmul.mubr.msk.bf16.vlgmr.msra.gmra.mrb[0].mxu1 %vm411_vm1, %v1930_v6  ;;  %1775 = vmatpush3.bf16.msra.mxu0 %v1936_v8 }
  0x19   : > { %1759 = vmatpush3.bf16.msra.mxu1 %v1928_v3  ;;  %1762 = vmatprep.mubr.msk.bf16.mxu1 %vm2003_vm0, %v2002_v0 }
  0x1a   : > { %1760 = vmatprep.subr.bf16.mxu1 %v2002_v0  ;;  %1776 = vmatprep.subr.bf16.mxu0 %v2002_v0 }
  0x1c   : > { %1777 = vmatpush3.bf16.msra.mxu0 %v1937_v10 }
  0x1d   : > { %1761 = vmatpush3.bf16.msra.mxu1 %v1929_v5  ;;  %1778 = vmatprep.subr.bf16.mxu0 %v2002_v0 }
  0x1e   : > { %1842 = vmatprep.subr.bf16.mxu1 %v2002_v0 }
  0x20   : > { %1763 = vmatmul.mubr.msk.bf16.vlgmr.msra.gmra.mrb[4].mxu1 %vm411_vm1, %v1931_v9  ;;  %1779 = vmatpush3.bf16.msra.mxu0 %v1938_v11 }
  0x21   : > { %1858 = vmatprep.mubr.msk.bf16.mxu1 %vm2003_vm0, %v2002_v0  ;;  %1780 = vmatprep.subr.bf16.mxu0 %v2002_v0 }
  0x22   : > { %1843 = vmatpush3.bf16.msra.mxu1 %v1965_v40 }
  0x23   : > { %1844 = vmatprep.subr.bf16.mxu1 %v2002_v0 }
  0x24   : > { %1781 = vmatpush3.bf16.msra.mxu0 %v1939_v12  ;;  %v1959_v12 = vld [vmem:[%s2353_s5 + $0x40] sm:$0xff]  }
  0x25   : > { %1786 = vmatprep.subr.bf16.mxu0 %v2002_v0 }
  0x26   : > { %1845 = vmatpush3.bf16.msra.mxu1 %v1966_v41 }
  0x27   : > { %1846 = vmatprep.subr.bf16.mxu1 %v2002_v0 }
  0x2a   : > { %1847 = vmatpush3.bf16.msra.mxu1 %v1967_v42 }
  0x2b   : > { %1848 = vmatprep.subr.bf16.mxu1 %v2002_v0 }
  0xeb   : > { %v449_v13 = vpop.f32.mrb[0].mxu1 }
  0xec   : > { %v1756_v14 = vpop.f32.mrb[1].mxu1 }
  0xed   : > { %v452_v15 = vpop.f32.mrb[2].mxu1 }
  0xee   : > { %v1757_v16 = vpop.f32.mrb[3].mxu1 }
  0xef   : > { %v1964_v16 = vld [vmem:[#allocation2 + $0xc] ss:$0 sps:$4 sm:$0x11]  }
  0xf3   : > { %v500_v17 = vpop.f32.mrb[4].mxu1 }
  0xf4   : > { %v507_v18 = vmax.f32 %v449_v13, %v500_v17  ;;  %v1764_v19 = vpop.f32.mrb[5].mxu1 }
  0xf5   : > { %v503_v20 = vpop.f32.mrb[6].mxu1 }
  0xf6   : > { %v508_v21 = vmax.f32 %v452_v15, %v503_v20  ;;  %v1765_v22 = vpop.f32.mrb[7].mxu1  ;;  %v1960_v15 = vld [vmem:[%s2353_s5 + $0x48] sm:$0xff]   ;;  %v958_v20 = vshll.u32 %v1964_v16, 16 }
  0xf8   : > { %v509_v24 = vpack.c.bf16 %v508_v21, %v507_v18  ;;  %v1961_v18 = vld [vmem:[%s2353_s5 + $0x50] sm:$0xff]   ;;  %v1962_v21 = vld [vmem:[%s2353_s5 + $0x58] sm:$0xff]  }
  0xfa   : > { %1783 = vmatmul.mubr.bf16.vlgmr.msra.gmra.mrb[0].mxu0 %v509_v24 }
  0xfb   : > { %1787 = vmatpush3.bf16.msra.mxu0 %v1940_v23  ;;  %1802 = vmatprep.mubr.msk.bf16.mxu0 %vm2003_vm0, %v2002_v0 }
  0xfc   : > { %1788 = vmatprep.subr.bf16.mxu0 %v2002_v0 }
  0xff   : > { %1789 = vmatpush3.bf16.msra.mxu0 %v1941_v25 }
 0x100   : > { %1790 = vmatprep.subr.bf16.mxu0 %v2002_v0 }
 0x103   : > { %1791 = vmatpush3.bf16.msra.mxu0 %v1942_v26  ;;  %v1968_v26 = vld [vmem:[%s2356_s8 + $0x58] sm:$0xff]  }
 0x104   : > { %1792 = vmatprep.subr.bf16.mxu0 %v2002_v0  ;;  %1849 = vmatpush3.bf16.msra.mxu1 %v1968_v26 }
 0x105   : > { %1850 = vmatprep.subr.bf16.mxu1 %v2002_v0 }
 0x107   : > { %1793 = vmatpush3.bf16.msra.mxu0 %v1943_v27  ;;  %v1969_v27 = vld [vmem:[%s2356_s8 + $0x60] sm:$0xff]  }
 0x108   : > { %1794 = vmatprep.subr.bf16.mxu0 %v2002_v0  ;;  %1851 = vmatpush3.bf16.msra.mxu1 %v1969_v27 }
 0x109   : > { %1852 = vmatprep.subr.bf16.mxu1 %v2002_v0 }
 0x10b   : > { %1795 = vmatpush3.bf16.msra.mxu0 %v1944_v28  ;;  %v1970_v28 = vld [vmem:[%s2356_s8 + $0x68] sm:$0xff]  }
 0x10c   : > { %1796 = vmatprep.subr.bf16.mxu0 %v2002_v0  ;;  %1853 = vmatpush3.bf16.msra.mxu1 %v1970_v28  ;;  %v1665_v28 = vld [vmem:[%s2357_s9] ss:$0 sm:$0xff] }
 0x10d   : > { %1854 = vmatprep.subr.bf16.mxu1 %v2002_v0 }
 0x10f   : > { %1797 = vmatpush3.bf16.msra.mxu0 %v1945_v29  ;;  %v1054_v29 = vld [vmem:[#allocation3] sm:$0x8] }
 0x110   : > { %1798 = vmatprep.subr.bf16.mxu0 %v2002_v0 }
 0x113   : > { %1799 = vmatpush3.bf16.msra.mxu0 %v1946_v30  ;;  %v1055_v30 = vsel %vm1053_vm13, 0, %v1054_v29 }
 0x114   : > { %1800 = vmatprep.subr.bf16.mxu0 %v2002_v0  ;;  %1056 = vst [vmem:[#allocation3] sm:$0x8] %v1055_v30  ;;  %v1666_v30 = vld [vmem:[%s2358_s10] ss:$0 sm:$0xff] }
 0x117   : > { %1801 = vmatpush3.bf16.msra.mxu0 %v1947_v31  ;;  %v1971_v31 = vld [vmem:[%s2356_s8 + $0x70] sm:$0xff]  }
 0x118   : > { %1806 = vmatprep.subr.bf16.mxu0 %v2002_v0  ;;  %1855 = vmatpush3.bf16.msra.mxu1 %v1971_v31 }
 0x119   : > { %1856 = vmatprep.subr.bf16.mxu1 %v2002_v0 }
 0x11a   : > { %1803 = vmatmul.mubr.bf16.vlgmr.msra.gmra.mrb[4].mxu0 %v509_v24  ;;  %v960_v24 = vrot.slane %v958_v20, 1  ;;  %v1990_v20 = vld [vmem:[%s2356_s8 + $0xb0] sm:$0xff]  }
 0x11b   : > { %1814 = vmatprep.mubr.msk.bf16.mxu0 %vm2003_vm0, %v2002_v0  ;;  %1807 = vmatpush3.bf16.msra.mxu0 %v1948_v32  ;;  %v1059_v32 = vld [vmem:[#allocation3 + $0xc] sm:$0x1] }
 0x11c   : > { %1808 = vmatprep.subr.bf16.mxu0 %v2002_v0  ;;  %v1060_v34 = vsel %vm1058_vm15, 0, %v1059_v32 }
 0x11d   : > { %1061 = vst [vmem:[#allocation3 + $0xc] sm:$0x1] %v1060_v34 }
 0x11f   : > { %1809 = vmatpush3.bf16.msra.mxu0 %v1949_v33  ;;  %v1972_v33 = vld [vmem:[%s2356_s8 + $0x78] sm:$0xff]  }
 0x120   : > { %1810 = vmatprep.subr.bf16.mxu0 %v2002_v0  ;;  %1857 = vmatpush3.bf16.msra.mxu1 %v1972_v33 }
 0x121   : > { %1862 = vmatprep.subr.bf16.mxu1 %v2002_v0 }
 0x123   : > { %1811 = vmatpush3.bf16.msra.mxu0 %v1950_v36 }
 0x124   : > { %1812 = vmatprep.subr.bf16.mxu0 %v2002_v0 }
 0x127   : > { %1813 = vmatpush3.bf16.msra.mxu0 %v1951_v38 }
 0x128   : > { %1818 = vmatprep.subr.bf16.mxu0 %v2002_v0 }
 0x1cd   : > { %v608_v43 = vpop.f32.mrb[0].mxu0 }
 0x1ce   : > { %v1784_v44 = vpop.f32.mrb[1].mxu0 }
 0x1cf   : > { %v611_v45 = vpop.f32.mrb[2].mxu0 }
 0x1d0   : > { %v1785_v46 = vpop.f32.mrb[3].mxu0 }
 0x1ed   : > { %v713_v47 = vpop.f32.mrb[4].mxu0 }
 0x1ee   : > { %v720_v48 = vmax.f32 %v608_v43, %v713_v47  ;;  %v1804_v49 = vpop.f32.mrb[5].mxu0 }
 0x1ef   : > { %v716_v50 = vpop.f32.mrb[6].mxu0  ;;  %v1976_v49 = vld [vmem:[%s2356_s8] sm:$0xff]  }
 0x1f0   : > { %v1673_v51 = vpack.c.bf16 %v720_v48, %v720_v48  ;;  %v721_v52 = vmax.f32 %v611_v45, %v716_v50  ;;  %v1805_v53 = vpop.f32.mrb[7].mxu0 }
 0x1f1   : > { %v1977_v53 = vld [vmem:[%s2356_s8 + $0x8] sm:$0xff]  }
 0x1f2   : > { %743 = vst.msk [vmem:[#allocation2 + $0x4] sm:$0xf] %vm742_vm8, %v1673_v51  ;;  %v1674_v54 = vpack.c.bf16 %v721_v52, %v721_v52 }
 0x1f4   : > { %744 = vst.msk [vmem:[#allocation2 + $0x8] sm:$0xf] %vm742_vm8, %v1674_v54  ;;  %v1978_v54 = vld [vmem:[%s2356_s8 + $0x10] sm:$0xff]  }
 0x1f9   : > { %v746_v56 = vld [vmem:[#allocation2 + $0x4] sm:$0xf] }
 0x1fa   : > { %v1578_v61 = vcombine.low %v745_v58, %v746_v56 }
 0x1fb   : > { %v747_v57 = vld [vmem:[#allocation2 + $0x8] sm:$0xf] }
 0x1fc   : > { %v1572_v59 = vcombine.low %v746_v56, %v747_v57  ;;  %v1579_v60 = vcombine.low %v747_v57, %v747_v57  ;;  %v845_v3 = vshrl.u32 %v1578_v61, 16  ;;  %v848_v4 = vshll.u32 %v1578_v61, 16  ;;  %v1963_v14 = vld [vmem:[#allocation2 + $0x4] sm:$0xff]   ;;  %v1072_v57 = vld [vmem:[#allocation3] sm:$0x8] }
 0x1fd   : > { %v953_v17 = vshll.u32 %v1963_v14, 16  ;;  %v951_v22 = vshrl.u32 %v1963_v14, 16  ;;  %v1980_v56 = vld [vmem:[%s2356_s8 + $0x20] sm:$0xff]   ;;  %v1987_v14 = vld [vmem:[%s2356_s8 + $0x98] sm:$0xff]  }
 0x1fe   : > { %1815 = vmatmul.mubr.msk.bf16.vlgmr.msra.gmra.mrb[8].mxu0 %vm794_vm9, %v1572_v59  ;;  %v853_v63 = vshrl.u32 %v1579_v60, 16  ;;  %v856_v1 = vshll.u32 %v1579_v60, 16  ;;  %v847_v8 = vrot.slane %v845_v3, 3  ;;  %v850_v9 = vrot.slane %v848_v4, 4  ;;  %v1981_v60 = vld [vmem:[%s2356_s8 + $0x28] sm:$0xff]  }
 0x1ff   : > { %1819 = vmatpush3.bf16.msra.mxu0 %v1955_v55  ;;  %1826 = vmatprep.mubr.msk.bf16.mxu0 %vm2003_vm0, %v2002_v0  ;;  %v955_v19 = vrot.slane %v953_v17, 1  ;;  %v1979_v55 = vld [vmem:[%s2356_s8 + $0x18] sm:$0xff]   ;;  %v1989_v17 = vld [vmem:[%s2356_s8 + $0xa8] sm:$0xff]  }
 0x200   : > { %1820 = vmatprep.subr.bf16.mxu0 %v2002_v0  ;;  %v855_v5 = vrot.slane %v853_v63, 3  ;;  %v858_v6 = vrot.slane %v856_v1, 4  ;;  %v851_v11 = vor.u32 %v850_v9, %v847_v8  ;;  %v1982_v63 = vld [vmem:[%s2356_s8 + $0x30] sm:$0xff]  }
 0x201   : > { %v956_v23 = vor.u32 %v955_v19, %v951_v22 }
 0x202   : > { %v859_v10 = vor.u32 %v858_v6, %v855_v5  ;;  %v1983_v5 = vld [vmem:[%s2356_s8 + $0x38] sm:$0xff]  }
 0x203   : > { %1821 = vmatpush3.bf16.msra.mxu0 %v1956_v62  ;;  %v961_v25 = vsel %vm949_vm11, %v956_v23, %v960_v24  ;;  %v1991_v23 = vld [vmem:[%s2356_s8 + $0xb8] sm:$0xff]  }
 0x204   : > { %1822 = vmatprep.subr.bf16.mxu0 %v2002_v0  ;;  %v860_v13 = vsel %vm843_vm10, %v851_v11, %v859_v10  ;;  %v1984_v10 = vld [vmem:[%s2356_s8 + $0x80] sm:$0xff]  }
 0x207   : > { %1823 = vmatpush3.bf16.msra.mxu0 %v1957_v2 }
 0x208   : > { %1824 = vmatprep.subr.bf16.mxu0 %v2002_v0 }
 0x20b   : > { %1825 = vmatpush3.bf16.msra.mxu0 %v1958_v7 }
 0x20c   : > { %1830 = vmatprep.subr.bf16.mxu0 %v2002_v0 }
 0x20e   : > { %1827 = vmatmul.mubr.msk.bf16.vlgmr.msra.gmra.mrb[8].mxu0 %vm794_vm9, %v860_v13  ;;  %v1986_v13 = vld [vmem:[%s2356_s8 + $0x90] sm:$0xff]  }
 0x20f   : > { %1831 = vmatpush3.bf16.msra.mxu0 %v1959_v12  ;;  %1838 = vmatprep.mubr.msk.bf16.mxu0 %vm2003_vm0, %v2002_v0  ;;  %v1985_v12 = vld [vmem:[%s2356_s8 + $0x88] sm:$0xff]  }
 0x210   : > { %1832 = vmatprep.subr.bf16.mxu0 %v2002_v0 }
 0x213   : > { %1833 = vmatpush3.bf16.msra.mxu0 %v1960_v15  ;;  %v1988_v15 = vld [vmem:[%s2356_s8 + $0xa0] sm:$0xff]  }
 0x214   : > { %1834 = vmatprep.subr.bf16.mxu0 %v2002_v0 }
 0x217   : > { %1835 = vmatpush3.bf16.msra.mxu0 %v1961_v18  ;;  %v1993_v18 = vld [vmem:[#allocation3 + $0xc] ss:$0 sps:$4 sm:$0x11]  }
 0x218   : > { %1836 = vmatprep.subr.bf16.mxu0 %v2002_v0  ;;  %v1350_v22 = vshll.u32 %v1993_v18, 16 }
 0x21a   : > { %v1352_v26 = vrot.slane %v1350_v22, 1 }
 0x21b   : > { %1837 = vmatpush3.bf16.msra.mxu0 %v1962_v21 }
 0x21e   : > { %1839 = vmatmul.mubr.msk.bf16.vlgmr.msra.gmra.mrb[8].mxu0 %vm794_vm9, %v961_v25 }
 0x2f1   : > { %v1023_v36 = vpop.f32.mrb[8].mxu0 }
 0x2f2   : > { %v1039_v38 = vmul.f32 %v1600_v35, %v1023_v36  ;;  %v1840_v39 = vpop.f32.mrb[9].mxu0 }
 0x2f3   : > { %v1026_v40 = vpop.f32.mrb[10].mxu0 }
 0x2f4   : > { %v1048_v41 = vadd.f32 %v1601_v37, %v1039_v38  ;;  %v1040_v42 = vmul.f32 %v1600_v35, %v1026_v40  ;;  %v1841_v43 = vpop.f32.mrb[11].mxu0 }
 0x2f6   : > { %v1050_v44 = vmax.f32 %v1048_v41, 0.0  ;;  %v1049_v45 = vadd.f32 %v1601_v37, %v1040_v42 }
 0x2f8   : > { %v1675_v46 = vpack.c.bf16 %v1050_v44, %v1050_v44  ;;  %v1051_v47 = vmax.f32 %v1049_v45, 0.0 }
 0x2fa   : > { %1070 = vst [vmem:[#allocation3 + $0x4] sm:$0xf] %v1675_v46  ;;  %v1676_v48 = vpack.c.bf16 %v1051_v47, %v1051_v47 }
 0x2fc   : > { %1071 = vst [vmem:[#allocation3 + $0x8] sm:$0xf] %v1676_v48 }
 0x301   : > { %v1073_v50 = vld [vmem:[#allocation3 + $0x4] sm:$0xf] }
 0x302   : > { %v1629_v59 = vcombine.low %v1072_v57, %v1073_v50 }
 0x303   : > { %v1074_v51 = vld [vmem:[#allocation3 + $0x8] sm:$0xf] }
 0x304   : > { %v1620_v52 = vcombine.low %v1073_v50, %v1074_v51  ;;  %v1630_v58 = vcombine.low %v1074_v51, %v1074_v51  ;;  %v1208_v1 = vshrl.u32 %v1629_v59, 16  ;;  %v1211_v2 = vshll.u32 %v1629_v59, 16  ;;  %v1992_v16 = vld [vmem:[#allocation3 + $0x4] sm:$0xff]  }
 0x305   : > { %v1345_v19 = vshll.u32 %v1992_v16, 16  ;;  %v1343_v24 = vshrl.u32 %v1992_v16, 16 }
 0x306   : > { %1859 = vmatmul.mubr.bf16.vlgmr.msra.gmra.mrb[8].mxu1 %v1620_v52  ;;  %v1216_v61 = vshrl.u32 %v1630_v58, 16  ;;  %v1219_v62 = vshll.u32 %v1630_v58, 16  ;;  %v1210_v6 = vrot.slane %v1208_v1, 3  ;;  %v1213_v7 = vrot.slane %v1211_v2, 4 }
 0x307   : > { %1863 = vmatpush3.bf16.msra.mxu1 %v1976_v49  ;;  %1878 = vmatprep.mubr.msk.bf16.mxu1 %vm2003_vm0, %v2002_v0  ;;  %v1347_v21 = vrot.slane %v1345_v19, 1 }
 0x308   : > { %1864 = vmatprep.subr.bf16.mxu1 %v2002_v0  ;;  %v1218_v3 = vrot.slane %v1216_v61, 3  ;;  %v1221_v4 = vrot.slane %v1219_v62, 4  ;;  %v1214_v9 = vor.u32 %v1213_v7, %v1210_v6 }
 0x309   : > { %v1348_v25 = vor.u32 %v1347_v21, %v1343_v24 }
 0x30a   : > { %v1222_v8 = vor.u32 %v1221_v4, %v1218_v3 }
 0x30b   : > { %1865 = vmatpush3.bf16.msra.mxu1 %v1977_v53  ;;  %v1353_v27 = vsel %vm949_vm11, %v1348_v25, %v1352_v26 }
 0x30c   : > { %1866 = vmatprep.subr.bf16.mxu1 %v2002_v0  ;;  %v1223_v11 = vsel %vm843_vm10, %v1214_v9, %v1222_v8 }
 0x30f   : > { %1867 = vmatpush3.bf16.msra.mxu1 %v1978_v54 }
 0x310   : > { %1868 = vmatprep.subr.bf16.mxu1 %v2002_v0 }
 0x313   : > { %1869 = vmatpush3.bf16.msra.mxu1 %v1979_v55 }
 0x314   : > { %1870 = vmatprep.subr.bf16.mxu1 %v2002_v0 }
 0x317   : > { %1871 = vmatpush3.bf16.msra.mxu1 %v1980_v56 }
 0x318   : > { %1872 = vmatprep.subr.bf16.mxu1 %v2002_v0 }
 0x31b   : > { %1873 = vmatpush3.bf16.msra.mxu1 %v1981_v60 }
 0x31c   : > { %1874 = vmatprep.subr.bf16.mxu1 %v2002_v0 }
 0x31f   : > { %1875 = vmatpush3.bf16.msra.mxu1 %v1982_v63 }
 0x320   : > { %1876 = vmatprep.subr.bf16.mxu1 %v2002_v0 }
 0x323   : > { %1877 = vmatpush3.bf16.msra.mxu1 %v1983_v5 }
 0x324   : > { %1882 = vmatprep.subr.bf16.mxu1 %v2002_v0 }
 0x326   : > { %1879 = vmatmul.mubr.bf16.vlgmr.msra.gmra.mrb[8].mxu1 %v1223_v11 }
 0x327   : > { %1883 = vmatpush3.bf16.msra.mxu1 %v1984_v10  ;;  %1898 = vmatprep.mubr.msk.bf16.mxu1 %vm2003_vm0, %v2002_v0 }
 0x328   : > { %1884 = vmatprep.subr.bf16.mxu1 %v2002_v0 }
 0x32b   : > { %1885 = vmatpush3.bf16.msra.mxu1 %v1985_v12 }
 0x32c   : > { %1886 = vmatprep.subr.bf16.mxu1 %v2002_v0 }
 0x32f   : > { %1887 = vmatpush3.bf16.msra.mxu1 %v1986_v13 }
 0x330   : > { %1888 = vmatprep.subr.bf16.mxu1 %v2002_v0 }
 0x333   : > { %1889 = vmatpush3.bf16.msra.mxu1 %v1987_v14 }
 0x334   : > { %1890 = vmatprep.subr.bf16.mxu1 %v2002_v0 }
 0x337   : > { %1891 = vmatpush3.bf16.msra.mxu1 %v1988_v15 }
 0x338   : > { %1892 = vmatprep.subr.bf16.mxu1 %v2002_v0 }
 0x33b   : > { %1893 = vmatpush3.bf16.msra.mxu1 %v1989_v17 }
 0x33c   : > { %1894 = vmatprep.subr.bf16.mxu1 %v2002_v0 }
 0x33f   : > { %1895 = vmatpush3.bf16.msra.mxu1 %v1990_v20 }
 0x340   : > { %1896 = vmatprep.subr.bf16.mxu1 %v2002_v0 }
 0x343   : > { %1897 = vmatpush3.bf16.msra.mxu1 %v1991_v23 }
 0x346   : > { %1899 = vmatmul.mubr.bf16.vlgmr.msra.gmra.mrb[8].mxu1 %v1353_v27 }
 0x419   : > { %v1437_v29 = vpop.f32.mrb[8].mxu1 }
 0x41a   : > { %v1453_v31 = vmul.f32 %v1665_v28, %v1437_v29  ;;  %v1900_v32 = vpop.f32.mrb[9].mxu1 }
 0x41b   : > { %v1440_v33 = vpop.f32.mrb[10].mxu1 }
 0x41c   : > { %v1462_v34 = vadd.f32 %v1666_v30, %v1453_v31  ;;  %v1454_v0 = vmul.f32 %v1665_v28, %v1440_v33  ;;  %v1901_v35 = vpop.f32.mrb[11].mxu1 }
 0x41e   : > { %v1463_v36 = vadd.f32 %v1666_v30, %v1454_v0  ;;  %v1464_v37 = vmax.f32 %v1462_v34, 0.0 }
 0x420   : > { %v1465_v38 = vmax.f32 %v1463_v36, 0.0 }
 0x422   : > { %v1682_v39 = vpack.c.bf16 %v1465_v38, %v1464_v37 }
 0x424   : > { %1683 = vst [vmem:[%s386_s23] sm:$0xff] %v1682_v39  }
 0x425 PF: > { %s21_s17 = sadd.s32 1, %s2000_s17  }
 0x426   : > { %p18_p4 = scmp.ge.s32.totalorder %s21_s17, 4  }
 0x428   :  { %20 = sbr.rel (!%p18_p4) target bundleno = 1 (0x1), region = 98 }

// kernel: unet_forward.11
= control target key start
LH: loop header
LB: loop body
LE: loop exit
PB: predicated region body
PF: predicated region fallthrough
CT: control target
= control target key end

     0   :  { %s1904_s17 = smov 0   ;;  %s2182_s0 = inlined_call_operand.vmem [shape: bf16[2,16,128], index: 0, kind: input, shape index: {}]   ;;  %s2183_s1 = inlined_call_operand.vmem [shape: bf16[8,16], index: 1, kind: input, shape index: {}]   ;;  %s2184_s2 = inlined_call_operand.vmem [shape: bf16[8,16], index: 2, kind: input, shape index: {}]   ;;  %s2185_s3 = inlined_call_operand.vmem [shape: bf16[128,64], index: 3, kind: input, shape index: {}]   ;;  %s2186_s4 = inlined_call_operand.vmem [shape: bf16[128,64], index: 4, kind: input, shape index: {}]   ;;  %s2187_s5 = inlined_call_operand.vmem [shape: bf16[3,64,128], index: 5, kind: input, shape index: {}]   ;;  %s2188_s6 = inlined_call_operand.vmem [shape: f32[1,128], index: 6, kind: input, shape index: {}]   ;;  %s2189_s7 = inlined_call_operand.vmem [shape: f32[1,128], index: 7, kind: input, shape index: {}]   ;;  %s2190_s8 = inlined_call_operand.vmem [shape: bf16[3,128,128], index: 8, kind: input, shape index: {}]   ;;  %s2191_s9 = inlined_call_operand.vmem [shape: f32[1,128], index: 9, kind: input, shape index: {}]   ;;  %s2192_s10 = inlined_call_operand.vmem [shape: f32[1,128], index: 10, kind: input, shape index: {}]   ;;  %s2193_s11 = inlined_call_operand.vmem [shape: bf16[2,8,128], index: 11, kind: output, shape index: {}]  }
   0x1 LB: > { %s1414_s18 = sadd.s32 4294967295, %s1840_s17   ;;  %p1418_p0 = scmp.ge.s32.totalorder %s1840_s17, 1  ;;  %s1840_s17 = sphi %s1904_s17, %s21_s17  }
   0x2   : > { %p337_p1 = scmp.lt.s32.totalorder %s1840_s17, 3 }
   0x4   : > { %p338_p2 = pnand %p1418_p0, %p337_p1 }
   0x5   : > { %p376_p3 = scmp.lt.s32.totalorder (!%p338_p2), %s1414_s18, 1  ;;  %v1842_v0 = vmov (!%p338_p2), 0.0   ;;  %vm1843_vm0 = vmmov (!%p338_p2), 0   ;;  %v1778_v1 = vld [vmem:[%s2185_s3] sm:$0xff] (!%p338_p2)   ;;  %v1779_v2 = vld [vmem:[%s2185_s3 + $0x8] sm:$0xff] (!%p338_p2)   ;;  %vm395_vm1 = vcmask (!%p338_p2), 130048  }
   0x6   : > { %341 = sbr.rel (%p338_p2) target bundleno = 1045 (0x415), region = 64  ;;  %1603 = vmatprep.subr.bf16.mxu1 (!%p338_p2), %v1842_v0  ;;  %1605 = vmatprep.mubr.msk.bf16.mxu1 (!%p338_p2), %vm1843_vm0, %v1842_v0  ;;  %v388_v4 = vld [vmem:[%s2183_s1] sm:$0xf] (!%p338_p2)  ;;  %v1780_v5 = vld [vmem:[%s2185_s3 + $0x10] sm:$0xff] (!%p338_p2)   ;;  %v1781_v6 = vld [vmem:[%s2185_s3 + $0x18] sm:$0xff] (!%p338_p2)   ;;  %vm694_vm2 = vcmask (!%p338_p2), 519171  }
   0x7   : > { %1615 = vmatprep.subr.bf16.mxu0 (!%p338_p2), %v1842_v0  ;;  %1631 = vmatprep.mubr.msk.bf16.mxu0 (!%p338_p2), %vm1843_vm0, %v1842_v0  ;;  %v439_v7 = vld [vmem:[%s2184_s2] sm:$0xf] (!%p338_p2)  ;;  %v1783_v9 = vld [vmem:[%s2185_s3 + $0x28] sm:$0xff] (!%p338_p2)   ;;  %v1784_v10 = vld [vmem:[%s2185_s3 + $0x30] sm:$0xff] (!%p338_p2)   ;;  %vm695_vm3 = vsmask.f32 (!%p338_p2), 7950 }
   0x8   : > { %1616 = vmatpush3.bf16.msra.mxu0 (!%p338_p2), %v1778_v1  ;;  %v1782_v8 = vld [vmem:[%s2185_s3 + $0x20] sm:$0xff] (!%p338_p2)   ;;  %v1785_v11 = vld [vmem:[%s2185_s3 + $0x38] sm:$0xff] (!%p338_p2)   ;;  %v1787_v23 = vld [vmem:[%s2186_s4 + $0x8] sm:$0xff] (!%p338_p2)   ;;  %vm700_vm5 = vcmask (!%p338_p2), 516096   ;;  %vm701_vm6 = vsmask.f32 (!%p338_p2), 256 }
   0x9   : > { %1617 = vmatprep.subr.bf16.mxu0 (!%p338_p2), %v1842_v0  ;;  %v1786_v20 = vld [vmem:[%s2186_s4] sm:$0xff] (!%p338_p2)   ;;  %v1788_v24 = vld [vmem:[%s2186_s4 + $0x10] sm:$0xff] (!%p338_p2)   ;;  %v1789_v25 = vld [vmem:[%s2186_s4 + $0x18] sm:$0xff] (!%p338_p2)   ;;  %vm707_vm8 = vcmask (!%p338_p2), 519168   ;;  %vm752_vm9 = vcmask (!%p338_p2), 523264   ;;  %vm984_vm10 = vcmask (!%p338_p2), 1043459  }
   0xa   : > { %v1790_v26 = vld [vmem:[%s2186_s4 + $0x20] sm:$0xff] (!%p338_p2)   ;;  %v1791_v27 = vld [vmem:[%s2186_s4 + $0x28] sm:$0xff] (!%p338_p2)   ;;  %v1792_v28 = vld [vmem:[%s2186_s4 + $0x30] sm:$0xff] (!%p338_p2)   ;;  %vm989_vm12 = vcmask (!%p338_p2), 1040384  }
   0xb   : > { %v1793_v29 = vld [vmem:[%s2186_s4 + $0x38] sm:$0xff] (!%p338_p2)   ;;  %v1794_v30 = vld [vmem:[%s2187_s5 + $0x20] sm:$0xff] (!%p338_p2)   ;;  %v1795_v31 = vld [vmem:[%s2187_s5 + $0x28] sm:$0xff] (!%p338_p2)  }
   0xc   : > { %1618 = vmatpush3.bf16.msra.mxu0 (!%p338_p2), %v1779_v2  ;;  %v1796_v32 = vld [vmem:[%s2187_s5 + $0x30] sm:$0xff] (!%p338_p2)   ;;  %vm696_vm4 = vmand (!%p338_p2), %vm694_vm2, %vm695_vm3  ;;  %v697_v33 = vld [vmem:[#allocation2] sm:$0x8] (!%p338_p2) }
   0xd   : > { %s2195_s18 = smov (!%p376_p3, %s1414_s18), 1  ;;  %1619 = vmatprep.subr.bf16.mxu0 %v1842_v0  ;;  %v698_v34 = vsel %vm696_vm4, 0, %v697_v33  ;;  %v703_v35 = vld [vmem:[#allocation2 + $0x8] sm:$0x1]  ;;  %v1797_v36 = vld [vmem:[%s2187_s5 + $0x38] sm:$0xff]   ;;  %vm702_vm7 = vmand %vm700_vm5, %vm701_vm6 }
   0xe   : > { %s1538_s21 = sshll.u32 %s2195_s18, 3  ;;  %699 = vst [vmem:[#allocation2] sm:$0x8] %v698_v34  ;;  %v704_v37 = vsel %vm702_vm7, 0, %v703_v35  ;;  %v1808_v38 = vld [vmem:[%s2190_s8 + $0x40] sm:$0xff]   ;;  %v1809_v39 = vld [vmem:[%s2190_s8 + $0x48] sm:$0xff]   ;;  %vm985_vm11 = vmand %vm984_vm10, %vm695_vm3 }
   0xf   : > { %s380_s26 = scalar_lea.vmem %s2182_s0, %s1538_s21  ;;  %705 = vst [vmem:[#allocation2 + $0x8] sm:$0x1] %v704_v37  ;;  %v1810_v40 = vld [vmem:[%s2190_s8 + $0x50] sm:$0xff]   ;;  %v1811_v41 = vld [vmem:[%s2190_s8 + $0x58] sm:$0xff]   ;;  %v1799_v52 = vld [vmem:[%s2187_s5] sm:$0xff]   ;;  %s1421_s20 = sshll.u32 %s2195_s18, 2 }
  0x10   : > { %v1777_v3 = vld [vmem:[%s380_s26] sm:$0xff]   ;;  %1620 = vmatpush3.bf16.msra.mxu0 %v1780_v5  ;;  %v1800_v55 = vld [vmem:[%s2187_s5 + $0x8] sm:$0xff]   ;;  %v1801_v57 = vld [vmem:[%s2187_s5 + $0x10] sm:$0xff]   ;;  %s384_s23 = scalar_lea.vmem %s2193_s11, %s1421_s20 }
  0x11   : > { %1604 = vmatpush3.bf16.msra.mxu1 %v1777_v3  ;;  %1621 = vmatprep.subr.bf16.mxu0 %v1842_v0  ;;  %v1802_v60 = vld [vmem:[%s2187_s5 + $0x18] sm:$0xff]   ;;  %v1803_v63 = vld [vmem:[%s2187_s5 + $0x40] sm:$0xff]   ;;  %v1804_v2 = vld [vmem:[%s2187_s5 + $0x48] sm:$0xff]  }
  0x12   : > { %1609 = vmatprep.subr.bf16.mxu1 %v1842_v0  ;;  %vm990_vm13 = vmand %vm989_vm12, %vm701_vm6  ;;  %v1821_v33 = vld [vmem:[%s2190_s8 + $0x20] sm:$0xff]   ;;  %v1822_v35 = vld [vmem:[%s2190_s8 + $0x28] sm:$0xff]  }
  0x13   : > { %v1823_v37 = vld [vmem:[%s2190_s8 + $0x30] sm:$0xff]  }
  0x14   : > { %1606 = vmatmul.mubr.msk.bf16.vlgmr.msra.gmra.mrb[0].mxu1 %vm395_vm1, %v388_v4  ;;  %1622 = vmatpush3.bf16.msra.mxu0 %v1781_v6  ;;  %v1805_v4 = vld [vmem:[%s2187_s5 + $0x50] sm:$0xff]   ;;  %v1806_v6 = vld [vmem:[%s2187_s5 + $0x58] sm:$0xff]  }
  0x15   : > { %1610 = vmatpush3.bf16.msra.mxu1 %v1777_v3  ;;  %1611 = vmatprep.mubr.msk.bf16.mxu1 %vm1843_vm0, %v1842_v0  ;;  %v709_v53 = vld [vmem:[#allocation2] sm:$0x8] }
  0x16   : > { %1691 = vmatprep.subr.bf16.mxu1 %v1842_v0  ;;  %1623 = vmatprep.subr.bf16.mxu0 %v1842_v0 }
  0x18   : > { %1624 = vmatpush3.bf16.msra.mxu0 %v1782_v8 }
  0x19   : > { %1625 = vmatprep.subr.bf16.mxu0 %v1842_v0 }
  0x1c   : > { %1612 = vmatmul.mubr.msk.bf16.vlgmr.msra.gmra.mrb[4].mxu1 %vm395_vm1, %v439_v7  ;;  %1626 = vmatpush3.bf16.msra.mxu0 %v1783_v9 }
  0x1d   : > { %1707 = vmatprep.mubr.msk.bf16.mxu1 %vm1843_vm0, %v1842_v0  ;;  %1627 = vmatprep.subr.bf16.mxu0 %v1842_v0 }
  0x1e   : > { %1692 = vmatpush3.bf16.msra.mxu1 %v1808_v38 }
  0x1f   : > { %1693 = vmatprep.subr.bf16.mxu1 %v1842_v0 }
  0x20   : > { %1628 = vmatpush3.bf16.msra.mxu0 %v1784_v10  ;;  %v1812_v10 = vld [vmem:[%s2190_s8 + $0x60] sm:$0xff]  }
  0x21   : > { %1629 = vmatprep.subr.bf16.mxu0 %v1842_v0 }
  0x22   : > { %1694 = vmatpush3.bf16.msra.mxu1 %v1809_v39 }
  0x23   : > { %1695 = vmatprep.subr.bf16.mxu1 %v1842_v0 }
  0x24   : > { %1630 = vmatpush3.bf16.msra.mxu0 %v1785_v11  ;;  %v1813_v11 = vld [vmem:[%s2190_s8 + $0x68] sm:$0xff]  }
  0x25   : > { %1635 = vmatprep.subr.bf16.mxu0 %v1842_v0 }
  0x26   : > { %1696 = vmatpush3.bf16.msra.mxu1 %v1810_v40  ;;  %v1824_v40 = vld [vmem:[%s2190_s8 + $0x38] sm:$0xff]  }
  0x27   : > { %1697 = vmatprep.subr.bf16.mxu1 %v1842_v0 }
  0x2a   : > { %1698 = vmatpush3.bf16.msra.mxu1 %v1811_v41 }
  0x2b   : > { %1699 = vmatprep.subr.bf16.mxu1 %v1842_v0 }
  0x2e   : > { %1700 = vmatpush3.bf16.msra.mxu1 %v1812_v10 }
  0x2f   : > { %1701 = vmatprep.subr.bf16.mxu1 %v1842_v0 }
  0x32   : > { %1702 = vmatpush3.bf16.msra.mxu1 %v1813_v11 }
  0x33   : > { %1703 = vmatprep.subr.bf16.mxu1 %v1842_v0 }
  0xe7   : > { %v433_v12 = vpop.f32.mrb[0].mxu1 }
  0xe8   : > { %v1607_v13 = vpop.f32.mrb[1].mxu1 }
  0xe9   : > { %v436_v14 = vpop.f32.mrb[2].mxu1  ;;  %v986_v13 = vld [vmem:[#allocation3] sm:$0x8] }
  0xea   : > { %v1608_v15 = vpop.f32.mrb[3].mxu1  ;;  %v987_v14 = vsel %vm985_vm11, 0, %v986_v13 }
  0xeb   : > { %v991_v15 = vld [vmem:[#allocation3 + $0x8] sm:$0x1]  ;;  %988 = vst [vmem:[#allocation3] sm:$0x8] %v987_v14 }
  0xef   : > { %v477_v16 = vpop.f32.mrb[4].mxu1 }
  0xf0   : > { %v483_v17 = vmax.f32 %v433_v12, %v477_v16  ;;  %v1613_v18 = vpop.f32.mrb[5].mxu1  ;;  %v1814_v12 = vld [vmem:[%s2190_s8 + $0x70] sm:$0xff]   ;;  %v1815_v16 = vld [vmem:[%s2190_s8 + $0x78] sm:$0xff]  }
  0xf1   : > { %v480_v19 = vpop.f32.mrb[6].mxu1  ;;  %1704 = vmatpush3.bf16.msra.mxu1 %v1814_v12  ;;  %v1474_v18 = vld [vmem:[%s2188_s6] ss:$0 sm:$0xff] }
  0xf2   : > { %v484_v21 = vpack.c.bf16 %v483_v17, %v483_v17  ;;  %v1614_v22 = vpop.f32.mrb[7].mxu1  ;;  %v992_v17 = vsel %vm990_vm13, 0, %v991_v15  ;;  %1705 = vmatprep.subr.bf16.mxu1 %v1842_v0  ;;  %v996_v34 = vld [vmem:[#allocation3] sm:$0x8] }
  0xf3   : > { %993 = vst [vmem:[#allocation3 + $0x8] sm:$0x1] %v992_v17 }
  0xf4   : > { %1632 = vmatmul.mubr.bf16.vlgmr.msra.gmra.mrb[0].mxu0 %v484_v21 }
  0xf5   : > { %1636 = vmatpush3.bf16.msra.mxu0 %v1786_v20  ;;  %1651 = vmatprep.mubr.msk.bf16.mxu0 %vm1843_vm0, %v1842_v0  ;;  %v1475_v20 = vld [vmem:[%s2189_s7] ss:$0 sm:$0xff] }
  0xf6   : > { %1637 = vmatprep.subr.bf16.mxu0 %v1842_v0  ;;  %1706 = vmatpush3.bf16.msra.mxu1 %v1815_v16 }
  0xf7   : > { %1711 = vmatprep.subr.bf16.mxu1 %v1842_v0 }
  0xf9   : > { %1638 = vmatpush3.bf16.msra.mxu0 %v1787_v23 }
  0xfa   : > { %1639 = vmatprep.subr.bf16.mxu0 %v1842_v0 }
  0xfd   : > { %1640 = vmatpush3.bf16.msra.mxu0 %v1788_v24 }
  0xfe   : > { %1641 = vmatprep.subr.bf16.mxu0 %v1842_v0 }
 0x101   : > { %1642 = vmatpush3.bf16.msra.mxu0 %v1789_v25 }
 0x102   : > { %1643 = vmatprep.subr.bf16.mxu0 %v1842_v0 }
 0x105   : > { %1644 = vmatpush3.bf16.msra.mxu0 %v1790_v26 }
 0x106   : > { %1645 = vmatprep.subr.bf16.mxu0 %v1842_v0 }
 0x109   : > { %1646 = vmatpush3.bf16.msra.mxu0 %v1791_v27 }
 0x10a   : > { %1647 = vmatprep.subr.bf16.mxu0 %v1842_v0 }
 0x10d   : > { %1648 = vmatpush3.bf16.msra.mxu0 %v1792_v28  ;;  %v1817_v28 = vld [vmem:[%s2190_s8] sm:$0xff]  }
 0x10e   : > { %1649 = vmatprep.subr.bf16.mxu0 %v1842_v0 }
 0x111   : > { %1650 = vmatpush3.bf16.msra.mxu0 %v1793_v29 }
 0x112   : > { %1655 = vmatprep.subr.bf16.mxu0 %v1842_v0 }
 0x114   : > { %1652 = vmatmul.mubr.bf16.vlgmr.msra.gmra.mrb[4].mxu0 %v484_v21 }
 0x115   : > { %1663 = vmatprep.mubr.msk.bf16.mxu0 %vm1843_vm0, %v1842_v0  ;;  %1656 = vmatpush3.bf16.msra.mxu0 %v1794_v30  ;;  %v1818_v30 = vld [vmem:[%s2190_s8 + $0x8] sm:$0xff]  }
 0x116   : > { %1657 = vmatprep.subr.bf16.mxu0 %v1842_v0 }
 0x119   : > { %1658 = vmatpush3.bf16.msra.mxu0 %v1795_v31  ;;  %v1819_v31 = vld [vmem:[%s2190_s8 + $0x10] sm:$0xff]  }
 0x11a   : > { %1659 = vmatprep.subr.bf16.mxu0 %v1842_v0 }
 0x11d   : > { %1660 = vmatpush3.bf16.msra.mxu0 %v1796_v32  ;;  %v1820_v32 = vld [vmem:[%s2190_s8 + $0x18] sm:$0xff]  }
 0x11e   : > { %1661 = vmatprep.subr.bf16.mxu0 %v1842_v0 }
 0x121   : > { %1662 = vmatpush3.bf16.msra.mxu0 %v1797_v36 }
 0x122   : > { %1667 = vmatprep.subr.bf16.mxu0 %v1842_v0 }
 0x1c7   : > { %v583_v42 = vpop.f32.mrb[0].mxu0 }
 0x1c8   : > { %v1633_v43 = vpop.f32.mrb[1].mxu0 }
 0x1c9   : > { %v586_v44 = vpop.f32.mrb[2].mxu0  ;;  %v1825_v43 = vld [vmem:[%s2190_s8 + $0x80] sm:$0xff]  }
 0x1ca   : > { %v1634_v45 = vpop.f32.mrb[3].mxu0 }
 0x1cb   : > { %v1826_v45 = vld [vmem:[%s2190_s8 + $0x88] sm:$0xff]  }
 0x1e7   : > { %v687_v46 = vpop.f32.mrb[4].mxu0 }
 0x1e8   : > { %v693_v47 = vmax.f32 %v583_v42, %v687_v46  ;;  %v1653_v48 = vpop.f32.mrb[5].mxu0  ;;  %v1827_v46 = vld [vmem:[%s2190_s8 + $0x90] sm:$0xff]  }
 0x1e9   : > { %v690_v49 = vpop.f32.mrb[6].mxu0  ;;  %v1829_v48 = vld [vmem:[%s2190_s8 + $0xa0] sm:$0xff]  }
 0x1ea   : > { %v706_v50 = vpack.c.bf16 %v693_v47, %v693_v47  ;;  %v1654_v51 = vpop.f32.mrb[7].mxu0  ;;  %v1828_v47 = vld [vmem:[%s2190_s8 + $0x98] sm:$0xff]   ;;  %v1830_v49 = vld [vmem:[%s2190_s8 + $0xa8] sm:$0xff]  }
 0x1eb   : > { %v1831_v51 = vld [vmem:[%s2190_s8 + $0xb0] sm:$0xff]  }
 0x1ec   : > { %708 = vst.msk [vmem:[#allocation2 + $0x4] sm:$0xf] %vm707_vm8, %v706_v50 }
 0x1f3   : > { %v710_v54 = vld [vmem:[#allocation2 + $0x4] sm:$0xf] }
 0x1f4   : > { %1664 = vmatmul.mubr.msk.bf16.vlgmr.msra.gmra.mrb[8].mxu0 %vm752_vm9, %v710_v54  ;;  %v1454_v56 = vcombine.low %v709_v53, %v710_v54  ;;  %v1807_v3 = vld [vmem:[#allocation2 + $0x4] sm:$0x1f]   ;;  %v1832_v53 = vld [vmem:[%s2190_s8 + $0xb8] sm:$0xff]  }
 0x1f5   : > { %1668 = vmatpush3.bf16.msra.mxu0 %v1799_v52  ;;  %1675 = vmatprep.mubr.msk.bf16.mxu0 %vm1843_vm0, %v1842_v0  ;;  %v895_v5 = vshll.u32 %v1807_v3, 16  ;;  %v893_v8 = vshrl.u32 %v1807_v3, 16 }
 0x1f6   : > { %1669 = vmatprep.subr.bf16.mxu0 %v1842_v0  ;;  %v802_v58 = vshrl.u32 %v1454_v56, 16  ;;  %v805_v59 = vshll.u32 %v1454_v56, 16 }
 0x1f7   : > { %v897_v7 = vrot.slane %v895_v5, 1 }
 0x1f8   : > { %v804_v61 = vrot.slane %v802_v58, 3  ;;  %v807_v62 = vrot.slane %v805_v59, 4  ;;  %v1535_v59 = vld [vmem:[%s2192_s10] ss:$0 sm:$0xff] }
 0x1f9   : > { %1670 = vmatpush3.bf16.msra.mxu0 %v1800_v55  ;;  %v898_v9 = vor.u32 %v897_v7, %v893_v8 }
 0x1fa   : > { %1671 = vmatprep.subr.bf16.mxu0 %v1842_v0  ;;  %v808_v1 = vor.u32 %v807_v62, %v804_v61 }
 0x1fd   : > { %1672 = vmatpush3.bf16.msra.mxu0 %v1801_v57  ;;  %v1534_v57 = vld [vmem:[%s2191_s9] ss:$0 sm:$0xff] }
 0x1fe   : > { %1673 = vmatprep.subr.bf16.mxu0 %v1842_v0 }
 0x201   : > { %1674 = vmatpush3.bf16.msra.mxu0 %v1802_v60 }
 0x202   : > { %1679 = vmatprep.subr.bf16.mxu0 %v1842_v0 }
 0x204   : > { %1676 = vmatmul.mubr.msk.bf16.vlgmr.msra.gmra.mrb[8].mxu0 %vm752_vm9, %v808_v1 }
 0x205   : > { %1680 = vmatpush3.bf16.msra.mxu0 %v1803_v63  ;;  %1687 = vmatprep.mubr.msk.bf16.mxu0 %vm1843_vm0, %v1842_v0 }
 0x206   : > { %1681 = vmatprep.subr.bf16.mxu0 %v1842_v0 }
 0x209   : > { %1682 = vmatpush3.bf16.msra.mxu0 %v1804_v2 }
 0x20a   : > { %1683 = vmatprep.subr.bf16.mxu0 %v1842_v0 }
 0x20d   : > { %1684 = vmatpush3.bf16.msra.mxu0 %v1805_v4 }
 0x20e   : > { %1685 = vmatprep.subr.bf16.mxu0 %v1842_v0 }
 0x211   : > { %1686 = vmatpush3.bf16.msra.mxu0 %v1806_v6 }
 0x214   : > { %1688 = vmatmul.mubr.msk.bf16.vlgmr.msra.gmra.mrb[8].mxu0 %vm752_vm9, %v898_v9 }
 0x2e7   : > { %v960_v19 = vpop.f32.mrb[8].mxu0 }
 0x2e8   : > { %v974_v21 = vmul.f32 %v1474_v18, %v960_v19  ;;  %v1689_v22 = vpop.f32.mrb[9].mxu0 }
 0x2e9   : > { %v963_v23 = vpop.f32.mrb[10].mxu0 }
 0x2ea   : > { %v982_v24 = vadd.f32 %v1475_v20, %v974_v21  ;;  %v1690_v25 = vpop.f32.mrb[11].mxu0 }
 0x2ec   : > { %v983_v26 = vmax.f32 %v982_v24, 0.0 }
 0x2ee   : > { %v994_v27 = vpack.c.bf16 %v983_v26, %v983_v26 }
 0x2f0   : > { %995 = vst [vmem:[#allocation3 + $0x4] sm:$0xf] %v994_v27 }
 0x2f7   : > { %v997_v29 = vld [vmem:[#allocation3 + $0x4] sm:$0xf] }
 0x2f8   : > { %1708 = vmatmul.mubr.bf16.vlgmr.msra.gmra.mrb[8].mxu1 %v997_v29  ;;  %v1500_v36 = vcombine.low %v996_v34, %v997_v29  ;;  %v1833_v50 = vld [vmem:[#allocation3 + $0x4] sm:$0x1f]  }
 0x2f9   : > { %1712 = vmatpush3.bf16.msra.mxu1 %v1817_v28  ;;  %1727 = vmatprep.mubr.msk.bf16.mxu1 %vm1843_vm0, %v1842_v0  ;;  %v1248_v52 = vshll.u32 %v1833_v50, 16  ;;  %v1246_v55 = vshrl.u32 %v1833_v50, 16 }
 0x2fa   : > { %1713 = vmatprep.subr.bf16.mxu1 %v1842_v0  ;;  %v1125_v38 = vshrl.u32 %v1500_v36, 16  ;;  %v1128_v39 = vshll.u32 %v1500_v36, 16 }
 0x2fb   : > { %v1250_v54 = vrot.slane %v1248_v52, 1 }
 0x2fc   : > { %v1127_v41 = vrot.slane %v1125_v38, 3  ;;  %v1130_v42 = vrot.slane %v1128_v39, 4 }
 0x2fd   : > { %1714 = vmatpush3.bf16.msra.mxu1 %v1818_v30  ;;  %v1251_v56 = vor.u32 %v1250_v54, %v1246_v55 }
 0x2fe   : > { %1715 = vmatprep.subr.bf16.mxu1 %v1842_v0  ;;  %v1131_v44 = vor.u32 %v1130_v42, %v1127_v41 }
 0x301   : > { %1716 = vmatpush3.bf16.msra.mxu1 %v1819_v31 }
 0x302   : > { %1717 = vmatprep.subr.bf16.mxu1 %v1842_v0 }
 0x305   : > { %1718 = vmatpush3.bf16.msra.mxu1 %v1820_v32 }
 0x306   : > { %1719 = vmatprep.subr.bf16.mxu1 %v1842_v0 }
 0x309   : > { %1720 = vmatpush3.bf16.msra.mxu1 %v1821_v33 }
 0x30a   : > { %1721 = vmatprep.subr.bf16.mxu1 %v1842_v0 }
 0x30d   : > { %1722 = vmatpush3.bf16.msra.mxu1 %v1822_v35 }
 0x30e   : > { %1723 = vmatprep.subr.bf16.mxu1 %v1842_v0 }
 0x311   : > { %1724 = vmatpush3.bf16.msra.mxu1 %v1823_v37 }
 0x312   : > { %1725 = vmatprep.subr.bf16.mxu1 %v1842_v0 }
 0x315   : > { %1726 = vmatpush3.bf16.msra.mxu1 %v1824_v40 }
 0x316   : > { %1731 = vmatprep.subr.bf16.mxu1 %v1842_v0 }
 0x318   : > { %1728 = vmatmul.mubr.bf16.vlgmr.msra.gmra.mrb[8].mxu1 %v1131_v44 }
 0x319   : > { %1732 = vmatpush3.bf16.msra.mxu1 %v1825_v43  ;;  %1747 = vmatprep.mubr.msk.bf16.mxu1 %vm1843_vm0, %v1842_v0 }
 0x31a   : > { %1733 = vmatprep.subr.bf16.mxu1 %v1842_v0 }
 0x31d   : > { %1734 = vmatpush3.bf16.msra.mxu1 %v1826_v45 }
 0x31e   : > { %1735 = vmatprep.subr.bf16.mxu1 %v1842_v0 }
 0x321   : > { %1736 = vmatpush3.bf16.msra.mxu1 %v1827_v46 }
 0x322   : > { %1737 = vmatprep.subr.bf16.mxu1 %v1842_v0 }
 0x325   : > { %1738 = vmatpush3.bf16.msra.mxu1 %v1828_v47 }
 0x326   : > { %1739 = vmatprep.subr.bf16.mxu1 %v1842_v0 }
 0x329   : > { %1740 = vmatpush3.bf16.msra.mxu1 %v1829_v48 }
 0x32a   : > { %1741 = vmatprep.subr.bf16.mxu1 %v1842_v0 }
 0x32d   : > { %1742 = vmatpush3.bf16.msra.mxu1 %v1830_v49 }
 0x32e   : > { %1743 = vmatprep.subr.bf16.mxu1 %v1842_v0 }
 0x331   : > { %1744 = vmatpush3.bf16.msra.mxu1 %v1831_v51 }
 0x332   : > { %1745 = vmatprep.subr.bf16.mxu1 %v1842_v0 }
 0x335   : > { %1746 = vmatpush3.bf16.msra.mxu1 %v1832_v53 }
 0x338   : > { %1748 = vmatmul.mubr.bf16.vlgmr.msra.gmra.mrb[8].mxu1 %v1251_v56 }
 0x40b   : > { %v1335_v58 = vpop.f32.mrb[8].mxu1 }
 0x40c   : > { %v1349_v60 = vmul.f32 %v1534_v57, %v1335_v58  ;;  %v1749_v61 = vpop.f32.mrb[9].mxu1 }
 0x40d   : > { %v1338_v62 = vpop.f32.mrb[10].mxu1 }
 0x40e   : > { %v1357_v63 = vadd.f32 %v1535_v59, %v1349_v60  ;;  %v1750_v0 = vpop.f32.mrb[11].mxu1 }
 0x410   : > { %v1358_v1 = vmax.f32 %v1357_v63, 0.0 }
 0x412   : > { %v1359_v2 = vpack.c.bf16 %v1358_v1, %v1358_v1 }
 0x414   : > { %1360 = vst [vmem:[%s384_s23] sm:$0xf] %v1359_v2 }
 0x415 PF: > { %s21_s17 = sadd.s32 1, %s1840_s17  }
 0x416   : > { %p18_p4 = scmp.ge.s32.totalorder %s21_s17, 4  }
 0x418   :  { %20 = sbr.rel (!%p18_p4) target bundleno = 1 (0x1), region = 98 }

// kernel: unet_forward.12
= control target key start
LH: loop header
LB: loop body
LE: loop exit
PB: predicated region body
PF: predicated region fallthrough
CT: control target
= control target key end

     0   :  { %s1888_s17 = smov 0   ;;  %s2166_s0 = inlined_call_operand.vmem [shape: bf16[2,8,128], index: 0, kind: input, shape index: {}]   ;;  %s2167_s1 = inlined_call_operand.vmem [shape: bf16[4,8], index: 1, kind: input, shape index: {}]   ;;  %s2168_s2 = inlined_call_operand.vmem [shape: bf16[4,8], index: 2, kind: input, shape index: {}]   ;;  %s2169_s3 = inlined_call_operand.vmem [shape: bf16[128,64], index: 3, kind: input, shape index: {}]   ;;  %s2170_s4 = inlined_call_operand.vmem [shape: bf16[128,64], index: 4, kind: input, shape index: {}]   ;;  %s2171_s5 = inlined_call_operand.vmem [shape: bf16[3,64,128], index: 5, kind: input, shape index: {}]   ;;  %s2172_s6 = inlined_call_operand.vmem [shape: f32[1,128], index: 6, kind: input, shape index: {}]   ;;  %s2173_s7 = inlined_call_operand.vmem [shape: f32[1,128], index: 7, kind: input, shape index: {}]   ;;  %s2174_s8 = inlined_call_operand.vmem [shape: bf16[3,128,128], index: 8, kind: input, shape index: {}]   ;;  %s2175_s9 = inlined_call_operand.vmem [shape: f32[1,128], index: 9, kind: input, shape index: {}]   ;;  %s2176_s10 = inlined_call_operand.vmem [shape: f32[1,128], index: 10, kind: input, shape index: {}]   ;;  %s2177_s11 = inlined_call_operand.vmem [shape: bf16[2,4,128], index: 11, kind: output, shape index: {}]  }
   0x1 LB: > { %s1402_s18 = sadd.s32 4294967295, %s1824_s17   ;;  %p1406_p0 = scmp.ge.s32.totalorder %s1824_s17, 1  ;;  %s1824_s17 = sphi %s1888_s17, %s21_s17  }
   0x2   : > { %p336_p1 = scmp.lt.s32.totalorder %s1824_s17, 3 }
   0x4   : > { %p337_p2 = pnand %p1406_p0, %p336_p1 }
   0x5   : > { %p374_p3 = scmp.lt.s32.totalorder (!%p337_p2), %s1402_s18, 1  ;;  %v1826_v0 = vmov (!%p337_p2), 0.0   ;;  %vm1827_vm0 = vmmov (!%p337_p2), 0   ;;  %v1762_v1 = vld [vmem:[%s2169_s3] sm:$0xff] (!%p337_p2)   ;;  %v1763_v2 = vld [vmem:[%s2169_s3 + $0x8] sm:$0xff] (!%p337_p2)   ;;  %vm389_vm1 = vcmask (!%p337_p2), 1043456  }
   0x6   : > { %340 = sbr.rel (%p337_p2) target bundleno = 1046 (0x416), region = 64  ;;  %1588 = vmatprep.subr.bf16.mxu1 (!%p337_p2), %v1826_v0  ;;  %1590 = vmatprep.mubr.msk.bf16.mxu1 (!%p337_p2), %vm1827_vm0, %v1826_v0  ;;  %v384_v4 = vld [vmem:[%s2167_s1] sm:$0x3] (!%p337_p2)  ;;  %vm385_vm2 = vcmask (!%p337_p2), 64512   ;;  %v1764_v6 = vld [vmem:[%s2169_s3 + $0x10] sm:$0xff] (!%p337_p2)   ;;  %v1765_v7 = vld [vmem:[%s2169_s3 + $0x18] sm:$0xff] (!%p337_p2)  }
   0x7   : > { %1600 = vmatprep.subr.bf16.mxu0 (!%p337_p2), %v1826_v0  ;;  %1616 = vmatprep.mubr.msk.bf16.mxu0 (!%p337_p2), %vm1827_vm0, %v1826_v0  ;;  %v1766_v8 = vld [vmem:[%s2169_s3 + $0x20] sm:$0xff] (!%p337_p2)   ;;  %v1767_v10 = vld [vmem:[%s2169_s3 + $0x28] sm:$0xff] (!%p337_p2)   ;;  %v1768_v11 = vld [vmem:[%s2169_s3 + $0x30] sm:$0xff] (!%p337_p2)   ;;  %vm688_vm3 = vcmask (!%p337_p2), 519171   ;;  %vm689_vm4 = vsmask.f32 (!%p337_p2), 7950 }
   0x8   : > { %1601 = vmatpush3.bf16.msra.mxu0 (!%p337_p2), %v1762_v1  ;;  %v433_v9 = vld [vmem:[%s2168_s2] sm:$0x3] (!%p337_p2)  ;;  %v1769_v12 = vld [vmem:[%s2169_s3 + $0x38] sm:$0xff] (!%p337_p2)   ;;  %v1771_v24 = vld [vmem:[%s2170_s4 + $0x8] sm:$0xff] (!%p337_p2)   ;;  %vm694_vm6 = vcmask (!%p337_p2), 518146   ;;  %vm701_vm9 = vcmask (!%p337_p2), 517120  }
   0x9   : > { %1602 = vmatprep.subr.bf16.mxu0 (!%p337_p2), %v1826_v0  ;;  %v1770_v21 = vld [vmem:[%s2170_s4] sm:$0xff] (!%p337_p2)   ;;  %v1772_v25 = vld [vmem:[%s2170_s4 + $0x10] sm:$0xff] (!%p337_p2)   ;;  %v1773_v26 = vld [vmem:[%s2170_s4 + $0x18] sm:$0xff] (!%p337_p2)   ;;  %vm695_vm7 = vsmask.f32 (!%p337_p2), 2304  ;;  %vm746_vm10 = vcmask (!%p337_p2), 523264  }
   0xa   : > { %v1774_v27 = vld [vmem:[%s2170_s4 + $0x20] sm:$0xff] (!%p337_p2)   ;;  %v1775_v28 = vld [vmem:[%s2170_s4 + $0x28] sm:$0xff] (!%p337_p2)   ;;  %v1776_v29 = vld [vmem:[%s2170_s4 + $0x30] sm:$0xff] (!%p337_p2)   ;;  %vm975_vm11 = vcmask (!%p337_p2), 1043459   ;;  %vm980_vm13 = vcmask (!%p337_p2), 1042434  }
   0xb   : > { %v1777_v30 = vld [vmem:[%s2170_s4 + $0x38] sm:$0xff] (!%p337_p2)   ;;  %v1778_v31 = vld [vmem:[%s2171_s5 + $0x20] sm:$0xff] (!%p337_p2)   ;;  %v1779_v32 = vld [vmem:[%s2171_s5 + $0x28] sm:$0xff] (!%p337_p2)  }
   0xc   : > { %1603 = vmatpush3.bf16.msra.mxu0 (!%p337_p2), %v1763_v2  ;;  %v1780_v33 = vld [vmem:[%s2171_s5 + $0x30] sm:$0xff] (!%p337_p2)   ;;  %vm690_vm5 = vmand (!%p337_p2), %vm688_vm3, %vm689_vm4  ;;  %v691_v34 = vld [vmem:[#allocation2] sm:$0x8] (!%p337_p2) }
   0xd   : > { %s2179_s18 = smov (!%p374_p3, %s1402_s18), 1  ;;  %1604 = vmatprep.subr.bf16.mxu0 %v1826_v0  ;;  %v692_v35 = vsel %vm690_vm5, 0, %v691_v34  ;;  %v697_v36 = vld [vmem:[#allocation2 + $0x4] sm:$0x4]  ;;  %v1781_v37 = vld [vmem:[%s2171_s5 + $0x38] sm:$0xff]   ;;  %vm696_vm8 = vmand %vm694_vm6, %vm695_vm7 }
   0xe   : > { %s1407_s23 = sshll.u32 %s2179_s18, 2  ;;  %693 = vst [vmem:[#allocation2] sm:$0x8] %v692_v35  ;;  %v698_v38 = vsel %vm696_vm8, 0, %v697_v36  ;;  %v1792_v39 = vld [vmem:[%s2174_s8 + $0x40] sm:$0xff]   ;;  %v1793_v40 = vld [vmem:[%s2174_s8 + $0x48] sm:$0xff]   ;;  %vm976_vm12 = vmand %vm975_vm11, %vm689_vm4 }
   0xf   : > { %s377_s26 = scalar_lea.vmem %s2166_s0, %s1407_s23  ;;  %699 = vst [vmem:[#allocation2 + $0x4] sm:$0x4] %v698_v38  ;;  %v1794_v41 = vld [vmem:[%s2174_s8 + $0x50] sm:$0xff]   ;;  %v1795_v42 = vld [vmem:[%s2174_s8 + $0x58] sm:$0xff]   ;;  %v1783_v53 = vld [vmem:[%s2171_s5] sm:$0xff]   ;;  %s1408_s20 = sshll.u32 %s2179_s18, 1 }
  0x10   : > { %v383_v3 = vld [vmem:[%s377_s26] sm:$0xf]  ;;  %1605 = vmatpush3.bf16.msra.mxu0 %v1764_v6  ;;  %v1784_v56 = vld [vmem:[%s2171_s5 + $0x8] sm:$0xff]   ;;  %v1785_v58 = vld [vmem:[%s2171_s5 + $0x10] sm:$0xff]   ;;  %s381_s23 = scalar_lea.vmem %s2177_s11, %s1408_s20 }
  0x11   : > { %v391_v5 = vsel %vm389_vm1, %v383_v3, 0  ;;  %1606 = vmatprep.subr.bf16.mxu0 %v1826_v0  ;;  %v1786_v61 = vld [vmem:[%s2171_s5 + $0x18] sm:$0xff]   ;;  %v1787_v1 = vld [vmem:[%s2171_s5 + $0x40] sm:$0xff]   ;;  %v1788_v3 = vld [vmem:[%s2171_s5 + $0x48] sm:$0xff]  }
  0x12   : > { %1589 = vmatpush3.bf16.msra.mxu1 %v391_v5  ;;  %vm981_vm14 = vmand %vm980_vm13, %vm695_vm7  ;;  %v1805_v34 = vld [vmem:[%s2174_s8 + $0x20] sm:$0xff]   ;;  %v1806_v36 = vld [vmem:[%s2174_s8 + $0x28] sm:$0xff]  }
  0x13   : > { %1594 = vmatprep.subr.bf16.mxu1 %v1826_v0  ;;  %v1807_v38 = vld [vmem:[%s2174_s8 + $0x30] sm:$0xff]  }
  0x14   : > { %1607 = vmatpush3.bf16.msra.mxu0 %v1765_v7  ;;  %v1790_v7 = vld [vmem:[%s2171_s5 + $0x58] sm:$0xff]  }
  0x15   : > { %1591 = vmatmul.mubr.msk.bf16.vlgmr.msra.gmra.mrb[0].mxu1 %vm385_vm2, %v384_v4  ;;  %1608 = vmatprep.subr.bf16.mxu0 %v1826_v0  ;;  %v703_v54 = vld [vmem:[#allocation2] sm:$0x8] }
  0x16   : > { %1595 = vmatpush3.bf16.msra.mxu1 %v391_v5  ;;  %1596 = vmatprep.mubr.msk.bf16.mxu1 %vm1827_vm0, %v1826_v0  ;;  %v1789_v5 = vld [vmem:[%s2171_s5 + $0x50] sm:$0xff]  }
  0x17   : > { %1676 = vmatprep.subr.bf16.mxu1 %v1826_v0 }
  0x18   : > { %1609 = vmatpush3.bf16.msra.mxu0 %v1766_v8 }
  0x19   : > { %1610 = vmatprep.subr.bf16.mxu0 %v1826_v0 }
  0x1c   : > { %1611 = vmatpush3.bf16.msra.mxu0 %v1767_v10 }
  0x1d   : > { %1597 = vmatmul.mubr.msk.bf16.vlgmr.msra.gmra.mrb[4].mxu1 %vm385_vm2, %v433_v9  ;;  %1612 = vmatprep.subr.bf16.mxu0 %v1826_v0 }
  0x1e   : > { %1692 = vmatprep.mubr.msk.bf16.mxu1 %vm1827_vm0, %v1826_v0  ;;  %1677 = vmatpush3.bf16.msra.mxu1 %v1792_v39 }
  0x1f   : > { %1678 = vmatprep.subr.bf16.mxu1 %v1826_v0 }
  0x20   : > { %1613 = vmatpush3.bf16.msra.mxu0 %v1768_v11  ;;  %v1796_v11 = vld [vmem:[%s2174_s8 + $0x60] sm:$0xff]  }
  0x21   : > { %1614 = vmatprep.subr.bf16.mxu0 %v1826_v0 }
  0x22   : > { %1679 = vmatpush3.bf16.msra.mxu1 %v1793_v40 }
  0x23   : > { %1680 = vmatprep.subr.bf16.mxu1 %v1826_v0 }
  0x24   : > { %1615 = vmatpush3.bf16.msra.mxu0 %v1769_v12  ;;  %v1797_v12 = vld [vmem:[%s2174_s8 + $0x68] sm:$0xff]  }
  0x25   : > { %1620 = vmatprep.subr.bf16.mxu0 %v1826_v0 }
  0x26   : > { %1681 = vmatpush3.bf16.msra.mxu1 %v1794_v41  ;;  %v1808_v41 = vld [vmem:[%s2174_s8 + $0x38] sm:$0xff]  }
  0x27   : > { %1682 = vmatprep.subr.bf16.mxu1 %v1826_v0 }
  0x2a   : > { %1683 = vmatpush3.bf16.msra.mxu1 %v1795_v42 }
  0x2b   : > { %1684 = vmatprep.subr.bf16.mxu1 %v1826_v0 }
  0x2e   : > { %1685 = vmatpush3.bf16.msra.mxu1 %v1796_v11 }
  0x2f   : > { %1686 = vmatprep.subr.bf16.mxu1 %v1826_v0 }
  0x32   : > { %1687 = vmatpush3.bf16.msra.mxu1 %v1797_v12 }
  0x33   : > { %1688 = vmatprep.subr.bf16.mxu1 %v1826_v0 }
  0xe8   : > { %v427_v13 = vpop.f32.mrb[0].mxu1 }
  0xe9   : > { %v1592_v14 = vpop.f32.mrb[1].mxu1 }
  0xea   : > { %v430_v15 = vpop.f32.mrb[2].mxu1  ;;  %v977_v14 = vld [vmem:[#allocation3] sm:$0x8] }
  0xeb   : > { %v1593_v16 = vpop.f32.mrb[3].mxu1  ;;  %v978_v15 = vsel %vm976_vm12, 0, %v977_v14 }
  0xec   : > { %v982_v16 = vld [vmem:[#allocation3 + $0x4] sm:$0x4]  ;;  %979 = vst [vmem:[#allocation3] sm:$0x8] %v978_v15 }
  0xf0   : > { %v471_v17 = vpop.f32.mrb[4].mxu1 }
  0xf1   : > { %v477_v18 = vmax.f32 %v427_v13, %v471_v17  ;;  %v1598_v19 = vpop.f32.mrb[5].mxu1  ;;  %v1798_v13 = vld [vmem:[%s2174_s8 + $0x70] sm:$0xff]   ;;  %v1799_v17 = vld [vmem:[%s2174_s8 + $0x78] sm:$0xff]  }
  0xf2   : > { %v474_v20 = vpop.f32.mrb[6].mxu1  ;;  %1689 = vmatpush3.bf16.msra.mxu1 %v1798_v13  ;;  %v1460_v19 = vld [vmem:[%s2172_s6] ss:$0 sm:$0xff] }
  0xf3   : > { %v478_v22 = vpack.c.bf16 %v477_v18, %v477_v18  ;;  %v1599_v23 = vpop.f32.mrb[7].mxu1  ;;  %v983_v18 = vsel %vm981_vm14, 0, %v982_v16  ;;  %1690 = vmatprep.subr.bf16.mxu1 %v1826_v0  ;;  %v987_v35 = vld [vmem:[#allocation3] sm:$0x8] }
  0xf4   : > { %984 = vst [vmem:[#allocation3 + $0x4] sm:$0x4] %v983_v18 }
  0xf5   : > { %1617 = vmatmul.mubr.bf16.vlgmr.msra.gmra.mrb[0].mxu0 %v478_v22 }
  0xf6   : > { %1621 = vmatpush3.bf16.msra.mxu0 %v1770_v21  ;;  %1636 = vmatprep.mubr.msk.bf16.mxu0 %vm1827_vm0, %v1826_v0  ;;  %v1461_v21 = vld [vmem:[%s2173_s7] ss:$0 sm:$0xff] }
  0xf7   : > { %1622 = vmatprep.subr.bf16.mxu0 %v1826_v0  ;;  %1691 = vmatpush3.bf16.msra.mxu1 %v1799_v17 }
  0xf8   : > { %1696 = vmatprep.subr.bf16.mxu1 %v1826_v0 }
  0xfa   : > { %1623 = vmatpush3.bf16.msra.mxu0 %v1771_v24 }
  0xfb   : > { %1624 = vmatprep.subr.bf16.mxu0 %v1826_v0 }
  0xfe   : > { %1625 = vmatpush3.bf16.msra.mxu0 %v1772_v25 }
  0xff   : > { %1626 = vmatprep.subr.bf16.mxu0 %v1826_v0 }
 0x102   : > { %1627 = vmatpush3.bf16.msra.mxu0 %v1773_v26 }
 0x103   : > { %1628 = vmatprep.subr.bf16.mxu0 %v1826_v0 }
 0x106   : > { %1629 = vmatpush3.bf16.msra.mxu0 %v1774_v27 }
 0x107   : > { %1630 = vmatprep.subr.bf16.mxu0 %v1826_v0 }
 0x10a   : > { %1631 = vmatpush3.bf16.msra.mxu0 %v1775_v28 }
 0x10b   : > { %1632 = vmatprep.subr.bf16.mxu0 %v1826_v0 }
 0x10e   : > { %1633 = vmatpush3.bf16.msra.mxu0 %v1776_v29  ;;  %v1801_v29 = vld [vmem:[%s2174_s8] sm:$0xff]  }
 0x10f   : > { %1634 = vmatprep.subr.bf16.mxu0 %v1826_v0 }
 0x112   : > { %1635 = vmatpush3.bf16.msra.mxu0 %v1777_v30 }
 0x113   : > { %1640 = vmatprep.subr.bf16.mxu0 %v1826_v0 }
 0x115   : > { %1637 = vmatmul.mubr.bf16.vlgmr.msra.gmra.mrb[4].mxu0 %v478_v22 }
 0x116   : > { %1648 = vmatprep.mubr.msk.bf16.mxu0 %vm1827_vm0, %v1826_v0  ;;  %1641 = vmatpush3.bf16.msra.mxu0 %v1778_v31  ;;  %v1802_v31 = vld [vmem:[%s2174_s8 + $0x8] sm:$0xff]  }
 0x117   : > { %1642 = vmatprep.subr.bf16.mxu0 %v1826_v0 }
 0x11a   : > { %1643 = vmatpush3.bf16.msra.mxu0 %v1779_v32  ;;  %v1803_v32 = vld [vmem:[%s2174_s8 + $0x10] sm:$0xff]  }
 0x11b   : > { %1644 = vmatprep.subr.bf16.mxu0 %v1826_v0 }
 0x11e   : > { %1645 = vmatpush3.bf16.msra.mxu0 %v1780_v33  ;;  %v1804_v33 = vld [vmem:[%s2174_s8 + $0x18] sm:$0xff]  }
 0x11f   : > { %1646 = vmatprep.subr.bf16.mxu0 %v1826_v0 }
 0x122   : > { %1647 = vmatpush3.bf16.msra.mxu0 %v1781_v37 }
 0x123   : > { %1652 = vmatprep.subr.bf16.mxu0 %v1826_v0 }
 0x1c8   : > { %v577_v43 = vpop.f32.mrb[0].mxu0 }
 0x1c9   : > { %v1618_v44 = vpop.f32.mrb[1].mxu0 }
 0x1ca   : > { %v580_v45 = vpop.f32.mrb[2].mxu0  ;;  %v1809_v44 = vld [vmem:[%s2174_s8 + $0x80] sm:$0xff]  }
 0x1cb   : > { %v1619_v46 = vpop.f32.mrb[3].mxu0 }
 0x1cc   : > { %v1810_v46 = vld [vmem:[%s2174_s8 + $0x88] sm:$0xff]  }
 0x1e8   : > { %v681_v47 = vpop.f32.mrb[4].mxu0 }
 0x1e9   : > { %v687_v48 = vmax.f32 %v577_v43, %v681_v47  ;;  %v1638_v49 = vpop.f32.mrb[5].mxu0  ;;  %v1811_v47 = vld [vmem:[%s2174_s8 + $0x90] sm:$0xff]  }
 0x1ea   : > { %v684_v50 = vpop.f32.mrb[6].mxu0  ;;  %v1813_v49 = vld [vmem:[%s2174_s8 + $0xa0] sm:$0xff]  }
 0x1eb   : > { %v700_v51 = vpack.c.bf16 %v687_v48, %v687_v48  ;;  %v1639_v52 = vpop.f32.mrb[7].mxu0  ;;  %v1812_v48 = vld [vmem:[%s2174_s8 + $0x98] sm:$0xff]   ;;  %v1814_v50 = vld [vmem:[%s2174_s8 + $0xa8] sm:$0xff]  }
 0x1ec   : > { %v1815_v52 = vld [vmem:[%s2174_s8 + $0xb0] sm:$0xff]  }
 0x1ed   : > { %702 = vst.msk [vmem:[#allocation2 + $0x4] sm:$0x3] %vm701_vm9, %v700_v51 }
 0x1f4   : > { %v704_v55 = vld [vmem:[#allocation2 + $0x4] sm:$0x3] }
 0x1f5   : > { %1649 = vmatmul.mubr.msk.bf16.vlgmr.msra.gmra.mrb[8].mxu0 %vm746_vm10, %v704_v55  ;;  %v1440_v57 = vcombine.low %v703_v54, %v704_v55  ;;  %v1791_v4 = vld [vmem:[#allocation2 + $0x4] ss:$0 sps:$4 sm:$0x77]   ;;  %v1816_v54 = vld [vmem:[%s2174_s8 + $0xb8] sm:$0xff]  }
 0x1f6   : > { %1653 = vmatpush3.bf16.msra.mxu0 %v1783_v53  ;;  %1660 = vmatprep.mubr.msk.bf16.mxu0 %vm1827_vm0, %v1826_v0  ;;  %v886_v6 = vshll.u32 %v1791_v4, 16  ;;  %v884_v9 = vshrl.u32 %v1791_v4, 16 }
 0x1f7   : > { %1654 = vmatprep.subr.bf16.mxu0 %v1826_v0  ;;  %v796_v59 = vshrl.u32 %v1440_v57, 16  ;;  %v799_v60 = vshll.u32 %v1440_v57, 16 }
 0x1f8   : > { %v888_v8 = vrot.slane %v886_v6, 1 }
 0x1f9   : > { %v798_v62 = vrot.slane %v796_v59, 3  ;;  %v801_v63 = vrot.slane %v799_v60, 4  ;;  %v1521_v60 = vld [vmem:[%s2176_s10] ss:$0 sm:$0xff] }
 0x1fa   : > { %1655 = vmatpush3.bf16.msra.mxu0 %v1784_v56  ;;  %v889_v10 = vor.u32 %v888_v8, %v884_v9 }
 0x1fb   : > { %1656 = vmatprep.subr.bf16.mxu0 %v1826_v0  ;;  %v802_v2 = vor.u32 %v801_v63, %v798_v62 }
 0x1fe   : > { %1657 = vmatpush3.bf16.msra.mxu0 %v1785_v58  ;;  %v1520_v58 = vld [vmem:[%s2175_s9] ss:$0 sm:$0xff] }
 0x1ff   : > { %1658 = vmatprep.subr.bf16.mxu0 %v1826_v0 }
 0x202   : > { %1659 = vmatpush3.bf16.msra.mxu0 %v1786_v61 }
 0x203   : > { %1664 = vmatprep.subr.bf16.mxu0 %v1826_v0 }
 0x205   : > { %1661 = vmatmul.mubr.msk.bf16.vlgmr.msra.gmra.mrb[8].mxu0 %vm746_vm10, %v802_v2 }
 0x206   : > { %1665 = vmatpush3.bf16.msra.mxu0 %v1787_v1  ;;  %1672 = vmatprep.mubr.msk.bf16.mxu0 %vm1827_vm0, %v1826_v0 }
 0x207   : > { %1666 = vmatprep.subr.bf16.mxu0 %v1826_v0 }
 0x20a   : > { %1667 = vmatpush3.bf16.msra.mxu0 %v1788_v3 }
 0x20b   : > { %1668 = vmatprep.subr.bf16.mxu0 %v1826_v0 }
 0x20e   : > { %1669 = vmatpush3.bf16.msra.mxu0 %v1789_v5 }
 0x20f   : > { %1670 = vmatprep.subr.bf16.mxu0 %v1826_v0 }
 0x212   : > { %1671 = vmatpush3.bf16.msra.mxu0 %v1790_v7 }
 0x215   : > { %1673 = vmatmul.mubr.msk.bf16.vlgmr.msra.gmra.mrb[8].mxu0 %vm746_vm10, %v889_v10 }
 0x2e8   : > { %v951_v20 = vpop.f32.mrb[8].mxu0 }
 0x2e9   : > { %v965_v22 = vmul.f32 %v1460_v19, %v951_v20  ;;  %v1674_v23 = vpop.f32.mrb[9].mxu0 }
 0x2ea   : > { %v954_v24 = vpop.f32.mrb[10].mxu0 }
 0x2eb   : > { %v973_v25 = vadd.f32 %v1461_v21, %v965_v22  ;;  %v1675_v26 = vpop.f32.mrb[11].mxu0 }
 0x2ed   : > { %v974_v27 = vmax.f32 %v973_v25, 0.0 }
 0x2ef   : > { %v985_v28 = vpack.c.bf16 %v974_v27, %v974_v27 }
 0x2f1   : > { %986 = vst [vmem:[#allocation3 + $0x4] sm:$0x3] %v985_v28 }
 0x2f8   : > { %v988_v30 = vld [vmem:[#allocation3 + $0x4] sm:$0x3] }
 0x2f9   : > { %1693 = vmatmul.mubr.bf16.vlgmr.msra.gmra.mrb[8].mxu1 %v988_v30  ;;  %v1486_v37 = vcombine.low %v987_v35, %v988_v30  ;;  %v1817_v51 = vld [vmem:[#allocation3 + $0x4] ss:$0 sps:$4 sm:$0x77]  }
 0x2fa   : > { %1697 = vmatpush3.bf16.msra.mxu1 %v1801_v29  ;;  %1712 = vmatprep.mubr.msk.bf16.mxu1 %vm1827_vm0, %v1826_v0  ;;  %v1236_v53 = vshll.u32 %v1817_v51, 16  ;;  %v1234_v56 = vshrl.u32 %v1817_v51, 16 }
 0x2fb   : > { %1698 = vmatprep.subr.bf16.mxu1 %v1826_v0  ;;  %v1116_v39 = vshrl.u32 %v1486_v37, 16  ;;  %v1119_v40 = vshll.u32 %v1486_v37, 16 }
 0x2fc   : > { %v1238_v55 = vrot.slane %v1236_v53, 1 }
 0x2fd   : > { %v1118_v42 = vrot.slane %v1116_v39, 3  ;;  %v1121_v43 = vrot.slane %v1119_v40, 4 }
 0x2fe   : > { %1699 = vmatpush3.bf16.msra.mxu1 %v1802_v31  ;;  %v1239_v57 = vor.u32 %v1238_v55, %v1234_v56 }
 0x2ff   : > { %1700 = vmatprep.subr.bf16.mxu1 %v1826_v0  ;;  %v1122_v45 = vor.u32 %v1121_v43, %v1118_v42 }
 0x302   : > { %1701 = vmatpush3.bf16.msra.mxu1 %v1803_v32 }
 0x303   : > { %1702 = vmatprep.subr.bf16.mxu1 %v1826_v0 }
 0x306   : > { %1703 = vmatpush3.bf16.msra.mxu1 %v1804_v33 }
 0x307   : > { %1704 = vmatprep.subr.bf16.mxu1 %v1826_v0 }
 0x30a   : > { %1705 = vmatpush3.bf16.msra.mxu1 %v1805_v34 }
 0x30b   : > { %1706 = vmatprep.subr.bf16.mxu1 %v1826_v0 }
 0x30e   : > { %1707 = vmatpush3.bf16.msra.mxu1 %v1806_v36 }
 0x30f   : > { %1708 = vmatprep.subr.bf16.mxu1 %v1826_v0 }
 0x312   : > { %1709 = vmatpush3.bf16.msra.mxu1 %v1807_v38 }
 0x313   : > { %1710 = vmatprep.subr.bf16.mxu1 %v1826_v0 }
 0x316   : > { %1711 = vmatpush3.bf16.msra.mxu1 %v1808_v41 }
 0x317   : > { %1716 = vmatprep.subr.bf16.mxu1 %v1826_v0 }
 0x319   : > { %1713 = vmatmul.mubr.bf16.vlgmr.msra.gmra.mrb[8].mxu1 %v1122_v45 }
 0x31a   : > { %1717 = vmatpush3.bf16.msra.mxu1 %v1809_v44  ;;  %1732 = vmatprep.mubr.msk.bf16.mxu1 %vm1827_vm0, %v1826_v0 }
 0x31b   : > { %1718 = vmatprep.subr.bf16.mxu1 %v1826_v0 }
 0x31e   : > { %1719 = vmatpush3.bf16.msra.mxu1 %v1810_v46 }
 0x31f   : > { %1720 = vmatprep.subr.bf16.mxu1 %v1826_v0 }
 0x322   : > { %1721 = vmatpush3.bf16.msra.mxu1 %v1811_v47 }
 0x323   : > { %1722 = vmatprep.subr.bf16.mxu1 %v1826_v0 }
 0x326   : > { %1723 = vmatpush3.bf16.msra.mxu1 %v1812_v48 }
 0x327   : > { %1724 = vmatprep.subr.bf16.mxu1 %v1826_v0 }
 0x32a   : > { %1725 = vmatpush3.bf16.msra.mxu1 %v1813_v49 }
 0x32b   : > { %1726 = vmatprep.subr.bf16.mxu1 %v1826_v0 }
 0x32e   : > { %1727 = vmatpush3.bf16.msra.mxu1 %v1814_v50 }
 0x32f   : > { %1728 = vmatprep.subr.bf16.mxu1 %v1826_v0 }
 0x332   : > { %1729 = vmatpush3.bf16.msra.mxu1 %v1815_v52 }
 0x333   : > { %1730 = vmatprep.subr.bf16.mxu1 %v1826_v0 }
 0x336   : > { %1731 = vmatpush3.bf16.msra.mxu1 %v1816_v54 }
 0x339   : > { %1733 = vmatmul.mubr.bf16.vlgmr.msra.gmra.mrb[8].mxu1 %v1239_v57 }
 0x40c   : > { %v1323_v59 = vpop.f32.mrb[8].mxu1 }
 0x40d   : > { %v1337_v61 = vmul.f32 %v1520_v58, %v1323_v59  ;;  %v1734_v62 = vpop.f32.mrb[9].mxu1 }
 0x40e   : > { %v1326_v63 = vpop.f32.mrb[10].mxu1 }
 0x40f   : > { %v1345_v1 = vadd.f32 %v1521_v60, %v1337_v61  ;;  %v1735_v0 = vpop.f32.mrb[11].mxu1 }
 0x411   : > { %v1346_v2 = vmax.f32 %v1345_v1, 0.0 }
 0x413   : > { %v1347_v3 = vpack.c.bf16 %v1346_v2, %v1346_v2 }
 0x415   : > { %1348 = vst [vmem:[%s381_s23] sm:$0x3] %v1347_v3 }
 0x416 PF: > { %s21_s17 = sadd.s32 1, %s1824_s17  }
 0x417   : > { %p18_p4 = scmp.ge.s32.totalorder %s21_s17, 4  }
 0x419   :  { %20 = sbr.rel (!%p18_p4) target bundleno = 1 (0x1), region = 98 }

// kernel: unet_forward.9
= control target key start
LH: loop header
LB: loop body
LE: loop exit
PB: predicated region body
PF: predicated region fallthrough
CT: control target
= control target key end

     0   :  { %s1770_s21 = smov 0   ;;  %s1975_s0 = inlined_call_operand.vmem [shape: bf16[2,32,128], index: 0, kind: input, shape index: {}]   ;;  %s1976_s1 = inlined_call_operand.vmem [shape: bf16[3,128,128], index: 1, kind: input, shape index: {}]   ;;  %s1977_s2 = inlined_call_operand.vmem [shape: f32[1,128], index: 2, kind: input, shape index: {}]   ;;  %s1978_s3 = inlined_call_operand.vmem [shape: bf16[3,128,128], index: 3, kind: input, shape index: {}]   ;;  %s1979_s4 = inlined_call_operand.vmem [shape: f32[1,128], index: 4, kind: input, shape index: {}]   ;;  %s1980_s5 = inlined_call_operand.vmem [shape: f32[1,128], index: 5, kind: input, shape index: {}]   ;;  %s1981_s6 = inlined_call_operand.vmem [shape: bf16[2,32,128], index: 6, kind: output, shape index: {}]  }
   0x1 LB: > { %s1283_s22 = sadd.s32 4294967295, %s1733_s21   ;;  %p1287_p0 = scmp.ge.s32.totalorder %s1733_s21, 1  ;;  %s1733_s21 = sphi %s1770_s21, %s16_s21  }
   0x2   : > { %p212_p1 = scmp.lt.s32.totalorder %s1733_s21, 3 }
   0x4   : > { %p213_p2 = pnand %p1287_p0, %p212_p1 }
   0x5   : > { %v1664_v0 = vld [vmem:[%s1976_s1 + $0x40] sm:$0xff] (!%p213_p2)   ;;  %p242_p3 = scmp.lt.s32.totalorder (!%p213_p2), %s1283_s22, 1  ;;  %v1665_v1 = vld [vmem:[%s1976_s1 + $0x48] sm:$0xff] (!%p213_p2)   ;;  %v1666_v2 = vld [vmem:[%s1976_s1 + $0x50] sm:$0xff] (!%p213_p2)   ;;  %vm257_vm0 = vcmask (!%p213_p2), 1043459   ;;  %vm263_vm3 = vcmask (!%p213_p2), 1040384  }
   0x6   : > { %216 = sbr.rel (%p213_p2) target bundleno = 620 (0x26c), region = 44  ;;  %1520 = vmatprep.subr.bf16.mxu0 (!%p213_p2), %v1664_v0  ;;  %v1667_v3 = vld [vmem:[%s1976_s1 + $0x58] sm:$0xff] (!%p213_p2)   ;;  %vm258_vm1 = vsmask.f32 (!%p213_p2), 7950  ;;  %v260_v6 = vld [vmem:[#allocation2] sm:$0x8] (!%p213_p2) }
   0x7   : > { %1521 = vmatpush3.bf16.msra.mxu0 (!%p213_p2), %v1664_v0  ;;  %vm1798_vm2 = vmand (!%p213_p2), %vm257_vm0, %vm258_vm1  ;;  %v1668_v9 = vld [vmem:[%s1976_s1 + $0x60] sm:$0xff] (!%p213_p2)   ;;  %v1669_v10 = vld [vmem:[%s1976_s1 + $0x68] sm:$0xff] (!%p213_p2)   ;;  %vm425_vm4 = vsmask.f32 (!%p213_p2), 4352  ;;  %vm264_vm5 = vsmask.f32 (!%p213_p2), 256 }
   0x8   : > { %1522 = vmatprep.subr.bf16.mxu0 (!%p213_p2), %v1665_v1  ;;  %v261_v8 = vsel (!%p213_p2), %vm1798_vm2, 0, %v260_v6  ;;  %v1670_v20 = vld [vmem:[%s1976_s1 + $0x70] sm:$0xff] (!%p213_p2)   ;;  %v1671_v23 = vld [vmem:[%s1976_s1 + $0x78] sm:$0xff] (!%p213_p2)   ;;  %v1675_v29 = vld [vmem:[%s1976_s1] sm:$0xff] (!%p213_p2)   ;;  %vm586_vm7 = vsmask.f32 (!%p213_p2), 7424 }
   0x9   : > { %262 = vst [vmem:[#allocation2] sm:$0x8] (!%p213_p2), %v261_v8  ;;  %v1695_v33 = vld [vmem:[%s1978_s3 + $0x40] sm:$0xff] (!%p213_p2)   ;;  %vm1824_vm6 = vmand (!%p213_p2), %vm263_vm3, %vm264_vm5  ;;  %v266_v35 = vld [vmem:[#allocation2 + $0x14] sm:$0x1] (!%p213_p2) }
   0xa   : > { %v1677_v36 = vld [vmem:[%s1976_s1 + $0x8] sm:$0xff] (!%p213_p2)   ;;  %v267_v38 = vsel (!%p213_p2), %vm1824_vm6, 0, %v266_v35  ;;  %1580 = vmatprep.subr.bf16.mxu1 (!%p213_p2), %v1695_v33  ;;  %v1678_v40 = vld [vmem:[%s1976_s1 + $0x10] sm:$0xff] (!%p213_p2)   ;;  %v1698_v42 = vld [vmem:[%s1978_s3 + $0x58] sm:$0xff] (!%p213_p2)  }
   0xb   : > { %1523 = vmatpush3.bf16.msra.mxu0 (!%p213_p2), %v1665_v1  ;;  %v1696_v39 = vld [vmem:[%s1978_s3 + $0x48] sm:$0xff] (!%p213_p2)   ;;  %268 = vst [vmem:[#allocation2 + $0x14] sm:$0x1] (!%p213_p2), %v267_v38  ;;  %1581 = vmatpush3.bf16.msra.mxu1 (!%p213_p2), %v1695_v33  ;;  %v1697_v41 = vld [vmem:[%s1978_s3 + $0x50] sm:$0xff] (!%p213_p2)   ;;  %v1679_v43 = vld [vmem:[%s1976_s1 + $0x18] sm:$0xff] (!%p213_p2)  }
   0xc   : > { %1524 = vmatprep.subr.bf16.mxu0 (!%p213_p2), %v1666_v2  ;;  %1582 = vmatprep.subr.bf16.mxu1 (!%p213_p2), %v1696_v39  ;;  %v1680_v44 = vld [vmem:[%s1976_s1 + $0x20] sm:$0xff] (!%p213_p2)   ;;  %v1681_v45 = vld [vmem:[%s1976_s1 + $0x28] sm:$0xff] (!%p213_p2)   ;;  %v1682_v50 = vld [vmem:[%s1976_s1 + $0x30] sm:$0xff] (!%p213_p2)  }
   0xd   : > { %s1987_s22 = smov (!%p242_p3, %s1283_s22), 1  ;;  %v1683_v55 = vld [vmem:[%s1976_s1 + $0x38] sm:$0xff]   ;;  %v1684_v60 = vld [vmem:[%s1976_s1 + $0x80] sm:$0xff]   ;;  %v1685_v0 = vld [vmem:[%s1976_s1 + $0x88] sm:$0xff]  }
   0xe   : > { %s1433_s29 = sshll.u32 %s1987_s22, 4  ;;  %v1690_v8 = vld [vmem:[%s1976_s1 + $0xb0] sm:$0xff]   ;;  %v1706_v7 = vld [vmem:[%s1978_s3] sm:$0xff]  }
   0xf   : > { %s246_s8 = scalar_lea.vmem %s1975_s0, %s1433_s29  ;;  %1525 = vmatpush3.bf16.msra.mxu0 %v1666_v2  ;;  %1583 = vmatpush3.bf16.msra.mxu1 %v1696_v39  ;;  %v1686_v2 = vld [vmem:[%s1976_s1 + $0x90] sm:$0xff]   ;;  %s251_s25 = scalar_lea.vmem %s1981_s6, %s1433_s29 }
  0x10   : > { %v253_v4 = vld [vmem:[%s246_s8] sm:$0xff]   ;;  %v255_v5 = vld [vmem:[%s246_s8 + $0x8] sm:$0xff]   ;;  %1526 = vmatprep.subr.bf16.mxu0 %v1667_v3  ;;  %1584 = vmatprep.subr.bf16.mxu1 %v1697_v41 }
  0x11   : > { %269 = vst [vmem:[#allocation2 + $0x4] sm:$0xff] %v253_v4   ;;  %271 = vst [vmem:[#allocation2 + $0xc] sm:$0xff] %v255_v5   ;;  %v273_v16 = vld [vmem:[#allocation2] sm:$0x8]  ;;  %v1689_v5 = vld [vmem:[%s1976_s1 + $0xa8] sm:$0xff]  }
  0x12   : > { %v1688_v4 = vld [vmem:[%s1976_s1 + $0xa0] sm:$0xff]   ;;  %v1694_v6 = vld [vmem:[#allocation2 + $0x14] ss:$0 sps:$4 sm:$0x11]  }
  0x13   : > { %1527 = vmatpush3.bf16.msra.mxu0 %v1667_v3  ;;  %1585 = vmatpush3.bf16.msra.mxu1 %v1697_v41  ;;  %v1687_v3 = vld [vmem:[%s1976_s1 + $0x98] sm:$0xff]  }
  0x14   : > { %1528 = vmatprep.subr.bf16.mxu0 %v1668_v9  ;;  %1586 = vmatprep.subr.bf16.mxu1 %v1698_v42 }
  0x17   : > { %1529 = vmatpush3.bf16.msra.mxu0 %v1668_v9  ;;  %1587 = vmatpush3.bf16.msra.mxu1 %v1698_v42 }
  0x18   : > { %v274_v11 = vld [vmem:[#allocation2 + $0x4] sm:$0xf]  ;;  %v275_v12 = vld [vmem:[#allocation2 + $0x8] sm:$0xf]  ;;  %v276_v13 = vld [vmem:[#allocation2 + $0xc] sm:$0xf]  ;;  %1530 = vmatprep.subr.bf16.mxu0 %v1669_v10 }
  0x19   : > { %v1308_v14 = vcombine.low %v274_v11, %v275_v12  ;;  %v1319_v15 = vcombine.low %v275_v12, %v276_v13  ;;  %v1318_v17 = vcombine.low %v273_v16, %v274_v11  ;;  %v277_v28 = vld [vmem:[#allocation2 + $0x10] sm:$0xf]  ;;  %v1692_v46 = vld [vmem:[#allocation2 + $0x4] sm:$0xff]   ;;  %v1691_v11 = vld [vmem:[%s1976_s1 + $0xb8] sm:$0xff]  }
  0x1a   : > { %v1309_v32 = vcombine.low %v276_v13, %v277_v28  ;;  %v1320_v47 = vcombine.low %v277_v28, %v277_v28  ;;  %v1693_v51 = vld [vmem:[#allocation2 + $0xc] sm:$0xff]   ;;  %v590_v52 = vshll.u32 %v1692_v46, 16  ;;  %v588_v56 = vshrl.u32 %v1692_v46, 16 }
  0x1b   : > { %1536 = vmatprep.mubr.bf16.mxu0 %v1308_v14  ;;  %v435_v18 = vshrl.u32 %v1319_v15, 16  ;;  %v438_v19 = vshll.u32 %v1319_v15, 16  ;;  %v427_v21 = vshrl.u32 %v1318_v17, 16  ;;  %v430_v22 = vshll.u32 %v1318_v17, 16  ;;  %1531 = vmatpush3.bf16.msra.mxu0 %v1669_v10  ;;  %v1699_v15 = vld [vmem:[%s1978_s3 + $0x60] sm:$0xff]   ;;  %v1700_v16 = vld [vmem:[%s1978_s3 + $0x68] sm:$0xff]  }
  0x1c   : > { %1532 = vmatprep.subr.bf16.mxu0 %v1670_v20  ;;  %v444_v48 = vshrl.u32 %v1320_v47, 16  ;;  %v447_v49 = vshll.u32 %v1320_v47, 16  ;;  %v592_v57 = vrot.slane %v590_v52, 1  ;;  %v595_v58 = vshll.u32 %v1693_v51, 16  ;;  %1588 = vmatprep.subr.bf16.mxu1 %v1699_v15  ;;  %v721_v17 = vld [vmem:[#allocation3] sm:$0x8] }
  0x1d   : > { %v429_v24 = vrot.slane %v427_v21, 3  ;;  %v432_v25 = vrot.slane %v430_v22, 4  ;;  %v437_v26 = vrot.slane %v435_v18, 3  ;;  %v440_v27 = vrot.slane %v438_v19, 4  ;;  %1589 = vmatpush3.bf16.msra.mxu1 %v1699_v15  ;;  %v1701_v19 = vld [vmem:[%s1978_s3 + $0x70] sm:$0xff]   ;;  %v1709_v46 = vld [vmem:[%s1978_s3 + $0x8] sm:$0xff]  }
  0x1e   : > { %v446_v53 = vrot.slane %v444_v48, 3  ;;  %v449_v54 = vrot.slane %v447_v49, 4  ;;  %v593_v61 = vor.u32 %v592_v57, %v588_v56  ;;  %v597_v62 = vrot.slane %v595_v58, 1  ;;  %1590 = vmatprep.subr.bf16.mxu1 %v1700_v16  ;;  %v724_v21 = vld [vmem:[#allocation3 + $0x14] sm:$0x1]  ;;  %v1711_v57 = vld [vmem:[%s1978_s3 + $0x18] sm:$0xff]  }
  0x1f   : > { %1533 = vmatpush3.bf16.msra.mxu0 %v1670_v20  ;;  %v433_v30 = vor.u32 %v432_v25, %v429_v24  ;;  %v1819_v31 = vor.u32 %v440_v27, %v437_v26  ;;  %v599_v9 = vshrl.u32 %v1693_v51, 16  ;;  %v603_v10 = vshll.u32 %v1694_v6, 16  ;;  %v1702_v20 = vld [vmem:[%s1978_s3 + $0x78] sm:$0xff]   ;;  %v1712_v58 = vld [vmem:[%s1978_s3 + $0x20] sm:$0xff]  }
  0x20   : > { %1534 = vmatprep.subr.bf16.mxu0 %v1671_v23  ;;  %v450_v59 = vor.u32 %v449_v54, %v446_v53  ;;  %v598_v1 = vsel %vm586_vm7, %v593_v61, %v597_v62  ;;  %v722_v18 = vsel %vm1798_vm2, 0, %v721_v17  ;;  %v725_v22 = vsel %vm1824_vm6, 0, %v724_v21  ;;  %v1710_v53 = vld [vmem:[%s1978_s3 + $0x10] sm:$0xff]  }
  0x21   : > { %v442_v37 = vsel %vm425_vm4, %v433_v30, %v1819_v31  ;;  %v601_v12 = vor.u32 %v599_v9, %v597_v62  ;;  %v605_v13 = vrot.slane %v603_v10, 1  ;;  %723 = vst [vmem:[#allocation3] sm:$0x8] %v722_v18  ;;  %1591 = vmatpush3.bf16.msra.mxu1 %v1700_v16  ;;  %726 = vst [vmem:[#allocation3 + $0x14] sm:$0x1] %v725_v22  ;;  %v1714_v62 = vld [vmem:[%s1978_s3 + $0x30] sm:$0xff]  }
  0x22   : > { %v451_v63 = vsel %vm425_vm4, %v1819_v31, %v450_v59  ;;  %1592 = vmatprep.subr.bf16.mxu1 %v1701_v19  ;;  %v1713_v59 = vld [vmem:[%s1978_s3 + $0x28] sm:$0xff]   ;;  %v1720_v17 = vld [vmem:[%s1978_s3 + $0x90] sm:$0xff]   ;;  %v1721_v18 = vld [vmem:[%s1978_s3 + $0x98] sm:$0xff]  }
  0x23   : > { %1535 = vmatpush3.bf16.msra.mxu0 %v1671_v23  ;;  %v606_v14 = vsel %vm586_vm7, %v601_v12, %v605_v13  ;;  %v1356_v23 = vld [vmem:[%s1977_s2] ss:$0 sm:$0xff]  ;;  %v1724_v21 = vld [vmem:[%s1978_s3 + $0xb0] sm:$0xff]  }
  0x24   : > { %1540 = vmatprep.subr.bf16.mxu0 %v1675_v29 }
  0x25   : > { %1593 = vmatpush3.bf16.msra.mxu1 %v1701_v19  ;;  %v1722_v19 = vld [vmem:[%s1978_s3 + $0xa0] sm:$0xff]  }
  0x26   : > { %1537 = vmatmul.mubr.bf16.vlgmr.msra.gmra.mrb[0].mxu0 %v1309_v32  ;;  %1594 = vmatprep.subr.bf16.mxu1 %v1702_v20 }
  0x27   : > { %1541 = vmatpush3.bf16.msra.mxu0 %v1675_v29  ;;  %1556 = vmatprep.mubr.bf16.mxu0 %v442_v37 }
  0x28   : > { %1542 = vmatprep.subr.bf16.mxu0 %v1677_v36  ;;  %v747_v35 = vld [vmem:[#allocation3] sm:$0x8]  ;;  %v1726_v22 = vld [vmem:[#allocation3 + $0x14] ss:$0 sps:$4 sm:$0x11]  }
  0x29   : > { %1595 = vmatpush3.bf16.msra.mxu1 %v1702_v20  ;;  %v1723_v20 = vld [vmem:[%s1978_s3 + $0xa8] sm:$0xff]  }
  0x2a   : > { %1600 = vmatprep.subr.bf16.mxu1 %v1706_v7 }
  0x2b   : > { %1543 = vmatpush3.bf16.msra.mxu0 %v1677_v36 }
  0x2c   : > { %1544 = vmatprep.subr.bf16.mxu0 %v1678_v40 }
  0x2f   : > { %1545 = vmatpush3.bf16.msra.mxu0 %v1678_v40 }
  0x30   : > { %1546 = vmatprep.subr.bf16.mxu0 %v1679_v43 }
  0x33   : > { %1547 = vmatpush3.bf16.msra.mxu0 %v1679_v43 }
  0x34   : > { %1548 = vmatprep.subr.bf16.mxu0 %v1680_v44 }
  0x37   : > { %1549 = vmatpush3.bf16.msra.mxu0 %v1680_v44 }
  0x38   : > { %1550 = vmatprep.subr.bf16.mxu0 %v1681_v45 }
  0x3b   : > { %1551 = vmatpush3.bf16.msra.mxu0 %v1681_v45 }
  0x3c   : > { %1552 = vmatprep.subr.bf16.mxu0 %v1682_v50 }
  0x3f   : > { %1553 = vmatpush3.bf16.msra.mxu0 %v1682_v50 }
  0x40   : > { %1554 = vmatprep.subr.bf16.mxu0 %v1683_v55 }
  0x43   : > { %1555 = vmatpush3.bf16.msra.mxu0 %v1683_v55 }
  0x44   : > { %1560 = vmatprep.subr.bf16.mxu0 %v1684_v60 }
  0x46   : > { %1557 = vmatmul.mubr.bf16.vlgmr.msra.gmra.mrb[0].mxu0 %v451_v63 }
  0x47   : > { %1561 = vmatpush3.bf16.msra.mxu0 %v1684_v60  ;;  %1576 = vmatprep.mubr.bf16.mxu0 %v598_v1 }
  0x48   : > { %1562 = vmatprep.subr.bf16.mxu0 %v1685_v0 }
  0x4b   : > { %1563 = vmatpush3.bf16.msra.mxu0 %v1685_v0 }
  0x4c   : > { %1564 = vmatprep.subr.bf16.mxu0 %v1686_v2 }
  0x4f   : > { %1565 = vmatpush3.bf16.msra.mxu0 %v1686_v2  ;;  %v1715_v2 = vld [vmem:[%s1978_s3 + $0x38] sm:$0xff]  }
  0x50   : > { %1566 = vmatprep.subr.bf16.mxu0 %v1687_v3 }
  0x53   : > { %1567 = vmatpush3.bf16.msra.mxu0 %v1687_v3 }
  0x54   : > { %1568 = vmatprep.subr.bf16.mxu0 %v1688_v4 }
  0x57   : > { %1569 = vmatpush3.bf16.msra.mxu0 %v1688_v4 }
  0x58   : > { %1570 = vmatprep.subr.bf16.mxu0 %v1689_v5 }
  0x5b   : > { %1571 = vmatpush3.bf16.msra.mxu0 %v1689_v5 }
  0x5c   : > { %1572 = vmatprep.subr.bf16.mxu0 %v1690_v8 }
  0x5f   : > { %1573 = vmatpush3.bf16.msra.mxu0 %v1690_v8  ;;  %v1716_v8 = vld [vmem:[%s1978_s3 + $0x80] sm:$0xff]  }
  0x60   : > { %1574 = vmatprep.subr.bf16.mxu0 %v1691_v11 }
  0x63   : > { %1575 = vmatpush3.bf16.msra.mxu0 %v1691_v11 }
  0x66   : > { %1577 = vmatmul.mubr.bf16.vlgmr.msra.gmra.mrb[0].mxu0 %v606_v14  ;;  %v1719_v14 = vld [vmem:[%s1978_s3 + $0x88] sm:$0xff]  }
 0x139   : > { %v1578_v24 = vpop.f32.mrb[0].mxu0 }
 0x13a   : > { %v691_v25 = vpop.f32.mrb[1].mxu0  ;;  %v719_v30 = vadd.f32 %v1578_v24, %v1356_v23 }
 0x13b   : > { %v717_v26 = vadd.f32 %v1356_v23, %v691_v25  ;;  %v1579_v27 = vpop.f32.mrb[2].mxu0 }
 0x13c   : > { %v720_v28 = vadd.f32 %v1579_v27, %v1356_v23  ;;  %v694_v29 = vpop.f32.mrb[3].mxu0 }
 0x13d   : > { %v1435_v31 = vpack.c.bf16 %v717_v26, %v717_v26  ;;  %v718_v32 = vadd.f32 %v1356_v23, %v694_v29  ;;  %v1075_v23 = vshll.u32 %v1726_v22, 16 }
 0x13e   : > { %v1438_v33 = vpack.c.bf16 %v720_v28, %v720_v28  ;;  %v1425_v28 = vld [vmem:[%s1979_s4] ss:$0 sm:$0xff] }
 0x13f   : > { %743 = vst [vmem:[#allocation3 + $0x4] sm:$0xf] %v1435_v31  ;;  %v1446_v34 = vpack.c.bf16 %v719_v30, %v718_v32  ;;  %v1077_v26 = vrot.slane %v1075_v23, 1  ;;  %v1426_v30 = vld [vmem:[%s1980_s5] ss:$0 sm:$0xff] }
 0x140   : > { %746 = vst [vmem:[#allocation3 + $0x10] sm:$0xf] %v1438_v33 }
 0x141   : > { %1458 = vst [vmem:[#allocation3 + $0x8] sm:$0xff] %v1446_v34  }
 0x146   : > { %v748_v36 = vld [vmem:[#allocation3 + $0x4] sm:$0xf] }
 0x147   : > { %v1387_v37 = vcombine.low %v747_v35, %v748_v36  ;;  %v751_v38 = vld [vmem:[#allocation3 + $0x10] sm:$0xf] }
 0x148   : > { %v749_v39 = vld [vmem:[#allocation3 + $0x8] sm:$0xf]  ;;  %v750_v40 = vld [vmem:[#allocation3 + $0xc] sm:$0xf]  ;;  %v1389_v60 = vcombine.low %v751_v38, %v751_v38 }
 0x149   : > { %v1377_v41 = vcombine.low %v748_v36, %v749_v39  ;;  %v1388_v42 = vcombine.low %v749_v39, %v750_v40  ;;  %v900_v43 = vshrl.u32 %v1387_v37, 16  ;;  %v903_v44 = vshll.u32 %v1387_v37, 16  ;;  %v1717_v61 = vld [vmem:[#allocation3 + $0x4] sm:$0xff]   ;;  %v1718_v3 = vld [vmem:[#allocation3 + $0xc] sm:$0xff]  }
 0x14a   : > { %v1378_v45 = vcombine.low %v750_v40, %v751_v38  ;;  %v917_v63 = vshrl.u32 %v1389_v60, 16  ;;  %v920_v0 = vshll.u32 %v1389_v60, 16  ;;  %v1062_v1 = vshll.u32 %v1717_v61, 16 }
 0x14b   : > { %1596 = vmatprep.mubr.bf16.mxu1 %v1377_v41  ;;  %v902_v47 = vrot.slane %v900_v43, 3  ;;  %v905_v48 = vrot.slane %v903_v44, 4  ;;  %v908_v49 = vshrl.u32 %v1388_v42, 16  ;;  %v911_v50 = vshll.u32 %v1388_v42, 16 }
 0x14c   : > { %1597 = vmatmul.mubr.bf16.vlgmr.msra.gmra.mrb[0].mxu1 %v1378_v45  ;;  %v919_v4 = vrot.slane %v917_v63, 3  ;;  %v922_v5 = vrot.slane %v920_v0, 4  ;;  %v1064_v6 = vrot.slane %v1062_v1, 1  ;;  %v1060_v9 = vshrl.u32 %v1717_v61, 16 }
 0x14d   : > { %v910_v51 = vrot.slane %v908_v49, 3  ;;  %v913_v52 = vrot.slane %v911_v50, 4  ;;  %1601 = vmatpush3.bf16.msra.mxu1 %v1706_v7  ;;  %v906_v54 = vor.u32 %v905_v48, %v902_v47  ;;  %v1067_v10 = vshll.u32 %v1718_v3, 16  ;;  %v1725_v7 = vld [vmem:[%s1978_s3 + $0xb8] sm:$0xff]  }
 0x14e   : > { %1602 = vmatprep.subr.bf16.mxu1 %v1709_v46  ;;  %v923_v11 = vor.u32 %v922_v5, %v919_v4  ;;  %v1065_v12 = vor.u32 %v1064_v6, %v1060_v9  ;;  %v1071_v24 = vshrl.u32 %v1718_v3, 16 }
 0x14f   : > { %v914_v55 = vor.u32 %v913_v52, %v910_v51  ;;  %v1069_v13 = vrot.slane %v1067_v10, 1 }
 0x151   : > { %1603 = vmatpush3.bf16.msra.mxu1 %v1709_v46  ;;  %v915_v56 = vsel %vm425_vm4, %v906_v54, %v914_v55  ;;  %v924_v15 = vsel %vm425_vm4, %v914_v55, %v923_v11  ;;  %v1070_v16 = vsel %vm586_vm7, %v1065_v12, %v1069_v13  ;;  %v1073_v25 = vor.u32 %v1071_v24, %v1069_v13 }
 0x152   : > { %1616 = vmatprep.mubr.bf16.mxu1 %v915_v56  ;;  %1604 = vmatprep.subr.bf16.mxu1 %v1710_v53 }
 0x153   : > { %v1078_v27 = vsel %vm586_vm7, %v1073_v25, %v1077_v26 }
 0x155   : > { %1605 = vmatpush3.bf16.msra.mxu1 %v1710_v53 }
 0x156   : > { %1606 = vmatprep.subr.bf16.mxu1 %v1711_v57 }
 0x159   : > { %1607 = vmatpush3.bf16.msra.mxu1 %v1711_v57 }
 0x15a   : > { %1608 = vmatprep.subr.bf16.mxu1 %v1712_v58 }
 0x15d   : > { %1609 = vmatpush3.bf16.msra.mxu1 %v1712_v58 }
 0x15e   : > { %1610 = vmatprep.subr.bf16.mxu1 %v1713_v59 }
 0x161   : > { %1611 = vmatpush3.bf16.msra.mxu1 %v1713_v59 }
 0x162   : > { %1612 = vmatprep.subr.bf16.mxu1 %v1714_v62 }
 0x165   : > { %1613 = vmatpush3.bf16.msra.mxu1 %v1714_v62 }
 0x166   : > { %1614 = vmatprep.subr.bf16.mxu1 %v1715_v2 }
 0x169   : > { %1615 = vmatpush3.bf16.msra.mxu1 %v1715_v2 }
 0x16a   : > { %1620 = vmatprep.subr.bf16.mxu1 %v1716_v8 }
 0x16c   : > { %1617 = vmatmul.mubr.bf16.vlgmr.msra.gmra.mrb[0].mxu1 %v924_v15 }
 0x16d   : > { %1621 = vmatpush3.bf16.msra.mxu1 %v1716_v8  ;;  %1636 = vmatprep.mubr.bf16.mxu1 %v1070_v16 }
 0x16e   : > { %1622 = vmatprep.subr.bf16.mxu1 %v1719_v14 }
 0x171   : > { %1623 = vmatpush3.bf16.msra.mxu1 %v1719_v14 }
 0x172   : > { %1624 = vmatprep.subr.bf16.mxu1 %v1720_v17 }
 0x175   : > { %1625 = vmatpush3.bf16.msra.mxu1 %v1720_v17 }
 0x176   : > { %1626 = vmatprep.subr.bf16.mxu1 %v1721_v18 }
 0x179   : > { %1627 = vmatpush3.bf16.msra.mxu1 %v1721_v18 }
 0x17a   : > { %1628 = vmatprep.subr.bf16.mxu1 %v1722_v19 }
 0x17d   : > { %1629 = vmatpush3.bf16.msra.mxu1 %v1722_v19 }
 0x17e   : > { %1630 = vmatprep.subr.bf16.mxu1 %v1723_v20 }
 0x181   : > { %1631 = vmatpush3.bf16.msra.mxu1 %v1723_v20 }
 0x182   : > { %1632 = vmatprep.subr.bf16.mxu1 %v1724_v21 }
 0x185   : > { %1633 = vmatpush3.bf16.msra.mxu1 %v1724_v21 }
 0x186   : > { %1634 = vmatprep.subr.bf16.mxu1 %v1725_v7 }
 0x189   : > { %1635 = vmatpush3.bf16.msra.mxu1 %v1725_v7 }
 0x18c   : > { %1637 = vmatmul.mubr.bf16.vlgmr.msra.gmra.mrb[0].mxu1 %v1078_v27 }
 0x25f   : > { %v1638_v29 = vpop.f32.mrb[0].mxu1 }
 0x260   : > { %v1191_v31 = vmul.f32 %v1638_v29, %v1425_v28  ;;  %v1163_v32 = vpop.f32.mrb[1].mxu1 }
 0x261   : > { %v1189_v33 = vmul.f32 %v1425_v28, %v1163_v32  ;;  %v1639_v34 = vpop.f32.mrb[2].mxu1 }
 0x262   : > { %v1202_v35 = vadd.f32 %v1426_v30, %v1191_v31  ;;  %v1192_v36 = vmul.f32 %v1639_v34, %v1425_v28  ;;  %v1166_v37 = vpop.f32.mrb[3].mxu1 }
 0x263   : > { %v1200_v38 = vadd.f32 %v1426_v30, %v1189_v33  ;;  %v1190_v39 = vmul.f32 %v1425_v28, %v1166_v37 }
 0x264   : > { %v1203_v40 = vadd.f32 %v1426_v30, %v1192_v36  ;;  %v1206_v42 = vmax.f32 %v1202_v35, 0.0 }
 0x265   : > { %v1201_v41 = vadd.f32 %v1426_v30, %v1190_v39  ;;  %v1204_v44 = vmax.f32 %v1200_v38, 0.0 }
 0x266   : > { %v1207_v43 = vmax.f32 %v1203_v40, 0.0 }
 0x267   : > { %v1205_v45 = vmax.f32 %v1201_v41, 0.0 }
 0x268   : > { %v1456_v46 = vpack.c.bf16 %v1207_v43, %v1206_v42 }
 0x269   : > { %v1451_v47 = vpack.c.bf16 %v1205_v45, %v1204_v44 }
 0x26a   : > { %1459 = vst [vmem:[%s251_s25 + $0x8] sm:$0xff] %v1456_v46  }
 0x26b   : > { %1452 = vst [vmem:[%s251_s25] sm:$0xff] %v1451_v47  }
 0x26c PF: > { %s16_s21 = sadd.s32 1, %s1733_s21  }
 0x26d   : > { %p13_p4 = scmp.ge.s32.totalorder %s16_s21, 4  }
 0x26f   :  { %15 = sbr.rel (!%p13_p4) target bundleno = 1 (0x1), region = 78 }

// kernel: unet_forward.13
= control target key start
LH: loop header
LB: loop body
LE: loop exit
PB: predicated region body
PF: predicated region fallthrough
CT: control target
= control target key end

     0   :  { %s1879_s17 = smov 0   ;;  %s2157_s0 = inlined_call_operand.vmem [shape: bf16[2,4,128], index: 0, kind: input, shape index: {}]   ;;  %s2158_s1 = inlined_call_operand.vmem [shape: bf16[2,4], index: 1, kind: input, shape index: {}]   ;;  %s2159_s2 = inlined_call_operand.vmem [shape: bf16[2,4], index: 2, kind: input, shape index: {}]   ;;  %s2160_s3 = inlined_call_operand.vmem [shape: bf16[128,64], index: 3, kind: input, shape index: {}]   ;;  %s2161_s4 = inlined_call_operand.vmem [shape: bf16[128,64], index: 4, kind: input, shape index: {}]   ;;  %s2162_s5 = inlined_call_operand.vmem [shape: bf16[3,64,128], index: 5, kind: input, shape index: {}]   ;;  %s2163_s6 = inlined_call_operand.vmem [shape: f32[1,128], index: 6, kind: input, shape index: {}]   ;;  %s2164_s7 = inlined_call_operand.vmem [shape: f32[1,128], index: 7, kind: input, shape index: {}]   ;;  %s2165_s8 = inlined_call_operand.vmem [shape: bf16[3,128,128], index: 8, kind: input, shape index: {}]   ;;  %s2166_s9 = inlined_call_operand.vmem [shape: f32[1,128], index: 9, kind: input, shape index: {}]   ;;  %s2167_s10 = inlined_call_operand.vmem [shape: f32[1,128], index: 10, kind: input, shape index: {}]   ;;  %s2168_s11 = inlined_call_operand.vmem [shape: bf16[2,2,128], index: 11, kind: output, shape index: {}]  }
   0x1 LB: > { %s1394_s18 = sadd.s32 4294967295, %s1815_s17   ;;  %p1398_p0 = scmp.ge.s32.totalorder %s1815_s17, 1  ;;  %s1815_s17 = sphi %s1879_s17, %s21_s17  }
   0x2   : > { %p336_p1 = scmp.lt.s32.totalorder %s1815_s17, 3 }
   0x4   : > { %p337_p2 = pnand %p1398_p0, %p336_p1 }
   0x5   : > { %p373_p3 = scmp.lt.s32.totalorder (!%p337_p2), %s1394_s18, 1  ;;  %v1817_v0 = vmov (!%p337_p2), 0.0   ;;  %vm1818_vm0 = vmmov (!%p337_p2), 0   ;;  %v1753_v1 = vld [vmem:[%s2160_s3] sm:$0xff] (!%p337_p2)   ;;  %v1754_v2 = vld [vmem:[%s2160_s3 + $0x8] sm:$0xff] (!%p337_p2)   ;;  %vm387_vm1 = vcmask (!%p337_p2), 1041408  }
   0x6   : > { %340 = sbr.rel (%p337_p2) target bundleno = 1046 (0x416), region = 64  ;;  %1579 = vmatprep.subr.bf16.mxu1 (!%p337_p2), %v1817_v0  ;;  %1581 = vmatprep.mubr.msk.bf16.mxu1 (!%p337_p2), %vm1818_vm0, %v1817_v0  ;;  %v382_v4 = vld [vmem:[%s2158_s1] sm:$0x1] (!%p337_p2)  ;;  %vm383_vm2 = vcmask (!%p337_p2), 31744   ;;  %v1755_v6 = vld [vmem:[%s2160_s3 + $0x10] sm:$0xff] (!%p337_p2)   ;;  %v1756_v7 = vld [vmem:[%s2160_s3 + $0x18] sm:$0xff] (!%p337_p2)  }
   0x7   : > { %1591 = vmatprep.subr.bf16.mxu0 (!%p337_p2), %v1817_v0  ;;  %1607 = vmatprep.mubr.msk.bf16.mxu0 (!%p337_p2), %vm1818_vm0, %v1817_v0  ;;  %v1757_v8 = vld [vmem:[%s2160_s3 + $0x20] sm:$0xff] (!%p337_p2)   ;;  %v1758_v10 = vld [vmem:[%s2160_s3 + $0x28] sm:$0xff] (!%p337_p2)   ;;  %v1759_v11 = vld [vmem:[%s2160_s3 + $0x30] sm:$0xff] (!%p337_p2)   ;;  %vm686_vm3 = vcmask (!%p337_p2), 519171   ;;  %vm687_vm4 = vsmask.f32 (!%p337_p2), 7950 }
   0x8   : > { %1592 = vmatpush3.bf16.msra.mxu0 (!%p337_p2), %v1753_v1  ;;  %v431_v9 = vld [vmem:[%s2159_s2] sm:$0x1] (!%p337_p2)  ;;  %v1760_v12 = vld [vmem:[%s2160_s3 + $0x38] sm:$0xff] (!%p337_p2)   ;;  %v1762_v24 = vld [vmem:[%s2161_s4 + $0x8] sm:$0xff] (!%p337_p2)   ;;  %vm692_vm6 = vcmask (!%p337_p2), 517121   ;;  %vm699_vm9 = vcmask (!%p337_p2), 516096  }
   0x9   : > { %1593 = vmatprep.subr.bf16.mxu0 (!%p337_p2), %v1817_v0  ;;  %v1761_v21 = vld [vmem:[%s2161_s4] sm:$0xff] (!%p337_p2)   ;;  %v1763_v25 = vld [vmem:[%s2161_s4 + $0x10] sm:$0xff] (!%p337_p2)   ;;  %v1764_v26 = vld [vmem:[%s2161_s4 + $0x18] sm:$0xff] (!%p337_p2)   ;;  %vm693_vm7 = vsmask.f32 (!%p337_p2), 1280  ;;  %vm744_vm10 = vcmask (!%p337_p2), 523264  }
   0xa   : > { %v1765_v27 = vld [vmem:[%s2161_s4 + $0x20] sm:$0xff] (!%p337_p2)   ;;  %v1766_v28 = vld [vmem:[%s2161_s4 + $0x28] sm:$0xff] (!%p337_p2)   ;;  %v1767_v29 = vld [vmem:[%s2161_s4 + $0x30] sm:$0xff] (!%p337_p2)   ;;  %vm973_vm11 = vcmask (!%p337_p2), 1043459   ;;  %vm978_vm13 = vcmask (!%p337_p2), 1041409  }
   0xb   : > { %v1768_v30 = vld [vmem:[%s2161_s4 + $0x38] sm:$0xff] (!%p337_p2)   ;;  %v1769_v31 = vld [vmem:[%s2162_s5 + $0x20] sm:$0xff] (!%p337_p2)   ;;  %v1770_v32 = vld [vmem:[%s2162_s5 + $0x28] sm:$0xff] (!%p337_p2)  }
   0xc   : > { %1594 = vmatpush3.bf16.msra.mxu0 (!%p337_p2), %v1754_v2  ;;  %v1771_v33 = vld [vmem:[%s2162_s5 + $0x30] sm:$0xff] (!%p337_p2)   ;;  %vm688_vm5 = vmand (!%p337_p2), %vm686_vm3, %vm687_vm4  ;;  %v689_v34 = vld [vmem:[#allocation2] sm:$0x8] (!%p337_p2) }
   0xd   : > { %s2170_s18 = smov (!%p373_p3, %s1394_s18), 1  ;;  %1595 = vmatprep.subr.bf16.mxu0 %v1817_v0  ;;  %v690_v35 = vsel %vm688_vm5, 0, %v689_v34  ;;  %v695_v36 = vld [vmem:[#allocation2 + $0x4] sm:$0x2]  ;;  %v1772_v37 = vld [vmem:[%s2162_s5 + $0x38] sm:$0xff]   ;;  %vm694_vm8 = vmand %vm692_vm6, %vm693_vm7 }
   0xe   : > { %s1399_s23 = sshll.u32 %s2170_s18, 1  ;;  %691 = vst [vmem:[#allocation2] sm:$0x8] %v690_v35  ;;  %v696_v38 = vsel %vm694_vm8, 0, %v695_v36  ;;  %v1783_v39 = vld [vmem:[%s2165_s8 + $0x40] sm:$0xff]   ;;  %v1784_v40 = vld [vmem:[%s2165_s8 + $0x48] sm:$0xff]   ;;  %vm974_vm12 = vmand %vm973_vm11, %vm687_vm4  ;;  %s379_s22 = scalar_lea.vmem %s2168_s11, %s2170_s18 }
   0xf   : > { %s376_s26 = scalar_lea.vmem %s2157_s0, %s1399_s23  ;;  %697 = vst [vmem:[#allocation2 + $0x4] sm:$0x2] %v696_v38  ;;  %v1785_v41 = vld [vmem:[%s2165_s8 + $0x50] sm:$0xff]   ;;  %v1786_v42 = vld [vmem:[%s2165_s8 + $0x58] sm:$0xff]   ;;  %v1774_v53 = vld [vmem:[%s2162_s5] sm:$0xff]  }
  0x10   : > { %v381_v3 = vld [vmem:[%s376_s26] sm:$0x3]  ;;  %1596 = vmatpush3.bf16.msra.mxu0 %v1755_v6  ;;  %v1775_v56 = vld [vmem:[%s2162_s5 + $0x8] sm:$0xff]   ;;  %v1776_v58 = vld [vmem:[%s2162_s5 + $0x10] sm:$0xff]  }
  0x11   : > { %v389_v5 = vsel %vm387_vm1, %v381_v3, 0  ;;  %1597 = vmatprep.subr.bf16.mxu0 %v1817_v0  ;;  %v1777_v61 = vld [vmem:[%s2162_s5 + $0x18] sm:$0xff]   ;;  %v1778_v1 = vld [vmem:[%s2162_s5 + $0x40] sm:$0xff]   ;;  %v1779_v3 = vld [vmem:[%s2162_s5 + $0x48] sm:$0xff]  }
  0x12   : > { %1580 = vmatpush3.bf16.msra.mxu1 %v389_v5  ;;  %vm979_vm14 = vmand %vm978_vm13, %vm693_vm7  ;;  %v1796_v34 = vld [vmem:[%s2165_s8 + $0x20] sm:$0xff]   ;;  %v1797_v36 = vld [vmem:[%s2165_s8 + $0x28] sm:$0xff]  }
  0x13   : > { %1585 = vmatprep.subr.bf16.mxu1 %v1817_v0  ;;  %v1798_v38 = vld [vmem:[%s2165_s8 + $0x30] sm:$0xff]  }
  0x14   : > { %1598 = vmatpush3.bf16.msra.mxu0 %v1756_v7  ;;  %v1781_v7 = vld [vmem:[%s2162_s5 + $0x58] sm:$0xff]  }
  0x15   : > { %1582 = vmatmul.mubr.msk.bf16.vlgmr.msra.gmra.mrb[0].mxu1 %vm383_vm2, %v382_v4  ;;  %1599 = vmatprep.subr.bf16.mxu0 %v1817_v0  ;;  %v701_v54 = vld [vmem:[#allocation2] sm:$0x8] }
  0x16   : > { %1586 = vmatpush3.bf16.msra.mxu1 %v389_v5  ;;  %1587 = vmatprep.mubr.msk.bf16.mxu1 %vm1818_vm0, %v1817_v0  ;;  %v1780_v5 = vld [vmem:[%s2162_s5 + $0x50] sm:$0xff]  }
  0x17   : > { %1667 = vmatprep.subr.bf16.mxu1 %v1817_v0 }
  0x18   : > { %1600 = vmatpush3.bf16.msra.mxu0 %v1757_v8 }
  0x19   : > { %1601 = vmatprep.subr.bf16.mxu0 %v1817_v0 }
  0x1c   : > { %1602 = vmatpush3.bf16.msra.mxu0 %v1758_v10 }
  0x1d   : > { %1588 = vmatmul.mubr.msk.bf16.vlgmr.msra.gmra.mrb[4].mxu1 %vm383_vm2, %v431_v9  ;;  %1603 = vmatprep.subr.bf16.mxu0 %v1817_v0 }
  0x1e   : > { %1683 = vmatprep.mubr.msk.bf16.mxu1 %vm1818_vm0, %v1817_v0  ;;  %1668 = vmatpush3.bf16.msra.mxu1 %v1783_v39 }
  0x1f   : > { %1669 = vmatprep.subr.bf16.mxu1 %v1817_v0 }
  0x20   : > { %1604 = vmatpush3.bf16.msra.mxu0 %v1759_v11  ;;  %v1787_v11 = vld [vmem:[%s2165_s8 + $0x60] sm:$0xff]  }
  0x21   : > { %1605 = vmatprep.subr.bf16.mxu0 %v1817_v0 }
  0x22   : > { %1670 = vmatpush3.bf16.msra.mxu1 %v1784_v40 }
  0x23   : > { %1671 = vmatprep.subr.bf16.mxu1 %v1817_v0 }
  0x24   : > { %1606 = vmatpush3.bf16.msra.mxu0 %v1760_v12  ;;  %v1788_v12 = vld [vmem:[%s2165_s8 + $0x68] sm:$0xff]  }
  0x25   : > { %1611 = vmatprep.subr.bf16.mxu0 %v1817_v0 }
  0x26   : > { %1672 = vmatpush3.bf16.msra.mxu1 %v1785_v41  ;;  %v1799_v41 = vld [vmem:[%s2165_s8 + $0x38] sm:$0xff]  }
  0x27   : > { %1673 = vmatprep.subr.bf16.mxu1 %v1817_v0 }
  0x2a   : > { %1674 = vmatpush3.bf16.msra.mxu1 %v1786_v42 }
  0x2b   : > { %1675 = vmatprep.subr.bf16.mxu1 %v1817_v0 }
  0x2e   : > { %1676 = vmatpush3.bf16.msra.mxu1 %v1787_v11 }
  0x2f   : > { %1677 = vmatprep.subr.bf16.mxu1 %v1817_v0 }
  0x32   : > { %1678 = vmatpush3.bf16.msra.mxu1 %v1788_v12 }
  0x33   : > { %1679 = vmatprep.subr.bf16.mxu1 %v1817_v0 }
  0xe8   : > { %v425_v13 = vpop.f32.mrb[0].mxu1 }
  0xe9   : > { %v1583_v14 = vpop.f32.mrb[1].mxu1 }
  0xea   : > { %v428_v15 = vpop.f32.mrb[2].mxu1  ;;  %v975_v14 = vld [vmem:[#allocation3] sm:$0x8] }
  0xeb   : > { %v1584_v16 = vpop.f32.mrb[3].mxu1  ;;  %v976_v15 = vsel %vm974_vm12, 0, %v975_v14 }
  0xec   : > { %v980_v16 = vld [vmem:[#allocation3 + $0x4] sm:$0x2]  ;;  %977 = vst [vmem:[#allocation3] sm:$0x8] %v976_v15 }
  0xf0   : > { %v469_v17 = vpop.f32.mrb[4].mxu1 }
  0xf1   : > { %v475_v18 = vmax.f32 %v425_v13, %v469_v17  ;;  %v1589_v19 = vpop.f32.mrb[5].mxu1  ;;  %v1789_v13 = vld [vmem:[%s2165_s8 + $0x70] sm:$0xff]   ;;  %v1790_v17 = vld [vmem:[%s2165_s8 + $0x78] sm:$0xff]  }
  0xf2   : > { %v472_v20 = vpop.f32.mrb[6].mxu1  ;;  %1680 = vmatpush3.bf16.msra.mxu1 %v1789_v13  ;;  %v1451_v19 = vld [vmem:[%s2163_s6] ss:$0 sm:$0xff] }
  0xf3   : > { %v476_v22 = vpack.c.bf16 %v475_v18, %v475_v18  ;;  %v1590_v23 = vpop.f32.mrb[7].mxu1  ;;  %v981_v18 = vsel %vm979_vm14, 0, %v980_v16  ;;  %1681 = vmatprep.subr.bf16.mxu1 %v1817_v0  ;;  %v985_v35 = vld [vmem:[#allocation3] sm:$0x8] }
  0xf4   : > { %982 = vst [vmem:[#allocation3 + $0x4] sm:$0x2] %v981_v18 }
  0xf5   : > { %1608 = vmatmul.mubr.bf16.vlgmr.msra.gmra.mrb[0].mxu0 %v476_v22 }
  0xf6   : > { %1612 = vmatpush3.bf16.msra.mxu0 %v1761_v21  ;;  %1627 = vmatprep.mubr.msk.bf16.mxu0 %vm1818_vm0, %v1817_v0  ;;  %v1452_v21 = vld [vmem:[%s2164_s7] ss:$0 sm:$0xff] }
  0xf7   : > { %1613 = vmatprep.subr.bf16.mxu0 %v1817_v0  ;;  %1682 = vmatpush3.bf16.msra.mxu1 %v1790_v17 }
  0xf8   : > { %1687 = vmatprep.subr.bf16.mxu1 %v1817_v0 }
  0xfa   : > { %1614 = vmatpush3.bf16.msra.mxu0 %v1762_v24 }
  0xfb   : > { %1615 = vmatprep.subr.bf16.mxu0 %v1817_v0 }
  0xfe   : > { %1616 = vmatpush3.bf16.msra.mxu0 %v1763_v25 }
  0xff   : > { %1617 = vmatprep.subr.bf16.mxu0 %v1817_v0 }
 0x102   : > { %1618 = vmatpush3.bf16.msra.mxu0 %v1764_v26 }
 0x103   : > { %1619 = vmatprep.subr.bf16.mxu0 %v1817_v0 }
 0x106   : > { %1620 = vmatpush3.bf16.msra.mxu0 %v1765_v27 }
 0x107   : > { %1621 = vmatprep.subr.bf16.mxu0 %v1817_v0 }
 0x10a   : > { %1622 = vmatpush3.bf16.msra.mxu0 %v1766_v28 }
 0x10b   : > { %1623 = vmatprep.subr.bf16.mxu0 %v1817_v0 }
 0x10e   : > { %1624 = vmatpush3.bf16.msra.mxu0 %v1767_v29  ;;  %v1792_v29 = vld [vmem:[%s2165_s8] sm:$0xff]  }
 0x10f   : > { %1625 = vmatprep.subr.bf16.mxu0 %v1817_v0 }
 0x112   : > { %1626 = vmatpush3.bf16.msra.mxu0 %v1768_v30 }
 0x113   : > { %1631 = vmatprep.subr.bf16.mxu0 %v1817_v0 }
 0x115   : > { %1628 = vmatmul.mubr.bf16.vlgmr.msra.gmra.mrb[4].mxu0 %v476_v22 }
 0x116   : > { %1639 = vmatprep.mubr.msk.bf16.mxu0 %vm1818_vm0, %v1817_v0  ;;  %1632 = vmatpush3.bf16.msra.mxu0 %v1769_v31  ;;  %v1793_v31 = vld [vmem:[%s2165_s8 + $0x8] sm:$0xff]  }
 0x117   : > { %1633 = vmatprep.subr.bf16.mxu0 %v1817_v0 }
 0x11a   : > { %1634 = vmatpush3.bf16.msra.mxu0 %v1770_v32  ;;  %v1794_v32 = vld [vmem:[%s2165_s8 + $0x10] sm:$0xff]  }
 0x11b   : > { %1635 = vmatprep.subr.bf16.mxu0 %v1817_v0 }
 0x11e   : > { %1636 = vmatpush3.bf16.msra.mxu0 %v1771_v33  ;;  %v1795_v33 = vld [vmem:[%s2165_s8 + $0x18] sm:$0xff]  }
 0x11f   : > { %1637 = vmatprep.subr.bf16.mxu0 %v1817_v0 }
 0x122   : > { %1638 = vmatpush3.bf16.msra.mxu0 %v1772_v37 }
 0x123   : > { %1643 = vmatprep.subr.bf16.mxu0 %v1817_v0 }
 0x1c8   : > { %v575_v43 = vpop.f32.mrb[0].mxu0 }
 0x1c9   : > { %v1609_v44 = vpop.f32.mrb[1].mxu0 }
 0x1ca   : > { %v578_v45 = vpop.f32.mrb[2].mxu0  ;;  %v1800_v44 = vld [vmem:[%s2165_s8 + $0x80] sm:$0xff]  }
 0x1cb   : > { %v1610_v46 = vpop.f32.mrb[3].mxu0 }
 0x1cc   : > { %v1801_v46 = vld [vmem:[%s2165_s8 + $0x88] sm:$0xff]  }
 0x1e8   : > { %v679_v47 = vpop.f32.mrb[4].mxu0 }
 0x1e9   : > { %v685_v48 = vmax.f32 %v575_v43, %v679_v47  ;;  %v1629_v49 = vpop.f32.mrb[5].mxu0  ;;  %v1802_v47 = vld [vmem:[%s2165_s8 + $0x90] sm:$0xff]  }
 0x1ea   : > { %v682_v50 = vpop.f32.mrb[6].mxu0  ;;  %v1804_v49 = vld [vmem:[%s2165_s8 + $0xa0] sm:$0xff]  }
 0x1eb   : > { %v698_v51 = vpack.c.bf16 %v685_v48, %v685_v48  ;;  %v1630_v52 = vpop.f32.mrb[7].mxu0  ;;  %v1803_v48 = vld [vmem:[%s2165_s8 + $0x98] sm:$0xff]   ;;  %v1805_v50 = vld [vmem:[%s2165_s8 + $0xa8] sm:$0xff]  }
 0x1ec   : > { %v1806_v52 = vld [vmem:[%s2165_s8 + $0xb0] sm:$0xff]  }
 0x1ed   : > { %700 = vst.msk [vmem:[#allocation2 + $0x4] sm:$0x1] %vm699_vm9, %v698_v51 }
 0x1f4   : > { %v702_v55 = vld [vmem:[#allocation2 + $0x4] sm:$0x1] }
 0x1f5   : > { %1640 = vmatmul.mubr.msk.bf16.vlgmr.msra.gmra.mrb[8].mxu0 %vm744_vm10, %v702_v55  ;;  %v1431_v57 = vcombine.low %v701_v54, %v702_v55  ;;  %v1782_v4 = vld [vmem:[#allocation2 + $0x4] ss:$0 sps:$4 sm:$0x33]   ;;  %v1807_v54 = vld [vmem:[%s2165_s8 + $0xb8] sm:$0xff]  }
 0x1f6   : > { %1644 = vmatpush3.bf16.msra.mxu0 %v1774_v53  ;;  %1651 = vmatprep.mubr.msk.bf16.mxu0 %vm1818_vm0, %v1817_v0  ;;  %v884_v6 = vshll.u32 %v1782_v4, 16  ;;  %v882_v9 = vshrl.u32 %v1782_v4, 16 }
 0x1f7   : > { %1645 = vmatprep.subr.bf16.mxu0 %v1817_v0  ;;  %v794_v59 = vshrl.u32 %v1431_v57, 16  ;;  %v797_v60 = vshll.u32 %v1431_v57, 16 }
 0x1f8   : > { %v886_v8 = vrot.slane %v884_v6, 1 }
 0x1f9   : > { %v796_v62 = vrot.slane %v794_v59, 3  ;;  %v799_v63 = vrot.slane %v797_v60, 4  ;;  %v1512_v60 = vld [vmem:[%s2167_s10] ss:$0 sm:$0xff] }
 0x1fa   : > { %1646 = vmatpush3.bf16.msra.mxu0 %v1775_v56  ;;  %v887_v10 = vor.u32 %v886_v8, %v882_v9 }
 0x1fb   : > { %1647 = vmatprep.subr.bf16.mxu0 %v1817_v0  ;;  %v800_v2 = vor.u32 %v799_v63, %v796_v62 }
 0x1fe   : > { %1648 = vmatpush3.bf16.msra.mxu0 %v1776_v58  ;;  %v1511_v58 = vld [vmem:[%s2166_s9] ss:$0 sm:$0xff] }
 0x1ff   : > { %1649 = vmatprep.subr.bf16.mxu0 %v1817_v0 }
 0x202   : > { %1650 = vmatpush3.bf16.msra.mxu0 %v1777_v61 }
 0x203   : > { %1655 = vmatprep.subr.bf16.mxu0 %v1817_v0 }
 0x205   : > { %1652 = vmatmul.mubr.msk.bf16.vlgmr.msra.gmra.mrb[8].mxu0 %vm744_vm10, %v800_v2 }
 0x206   : > { %1656 = vmatpush3.bf16.msra.mxu0 %v1778_v1  ;;  %1663 = vmatprep.mubr.msk.bf16.mxu0 %vm1818_vm0, %v1817_v0 }
 0x207   : > { %1657 = vmatprep.subr.bf16.mxu0 %v1817_v0 }
 0x20a   : > { %1658 = vmatpush3.bf16.msra.mxu0 %v1779_v3 }
 0x20b   : > { %1659 = vmatprep.subr.bf16.mxu0 %v1817_v0 }
 0x20e   : > { %1660 = vmatpush3.bf16.msra.mxu0 %v1780_v5 }
 0x20f   : > { %1661 = vmatprep.subr.bf16.mxu0 %v1817_v0 }
 0x212   : > { %1662 = vmatpush3.bf16.msra.mxu0 %v1781_v7 }
 0x215   : > { %1664 = vmatmul.mubr.msk.bf16.vlgmr.msra.gmra.mrb[8].mxu0 %vm744_vm10, %v887_v10 }
 0x2e8   : > { %v949_v20 = vpop.f32.mrb[8].mxu0 }
 0x2e9   : > { %v963_v22 = vmul.f32 %v1451_v19, %v949_v20  ;;  %v1665_v23 = vpop.f32.mrb[9].mxu0 }
 0x2ea   : > { %v952_v24 = vpop.f32.mrb[10].mxu0 }
 0x2eb   : > { %v971_v25 = vadd.f32 %v1452_v21, %v963_v22  ;;  %v1666_v26 = vpop.f32.mrb[11].mxu0 }
 0x2ed   : > { %v972_v27 = vmax.f32 %v971_v25, 0.0 }
 0x2ef   : > { %v983_v28 = vpack.c.bf16 %v972_v27, %v972_v27 }
 0x2f1   : > { %984 = vst [vmem:[#allocation3 + $0x4] sm:$0x1] %v983_v28 }
 0x2f8   : > { %v986_v30 = vld [vmem:[#allocation3 + $0x4] sm:$0x1] }
 0x2f9   : > { %1684 = vmatmul.mubr.bf16.vlgmr.msra.gmra.mrb[8].mxu1 %v986_v30  ;;  %v1477_v37 = vcombine.low %v985_v35, %v986_v30  ;;  %v1808_v51 = vld [vmem:[#allocation3 + $0x4] ss:$0 sps:$4 sm:$0x33]  }
 0x2fa   : > { %1688 = vmatpush3.bf16.msra.mxu1 %v1792_v29  ;;  %1703 = vmatprep.mubr.msk.bf16.mxu1 %vm1818_vm0, %v1817_v0  ;;  %v1234_v53 = vshll.u32 %v1808_v51, 16  ;;  %v1232_v56 = vshrl.u32 %v1808_v51, 16 }
 0x2fb   : > { %1689 = vmatprep.subr.bf16.mxu1 %v1817_v0  ;;  %v1114_v39 = vshrl.u32 %v1477_v37, 16  ;;  %v1117_v40 = vshll.u32 %v1477_v37, 16 }
 0x2fc   : > { %v1236_v55 = vrot.slane %v1234_v53, 1 }
 0x2fd   : > { %v1116_v42 = vrot.slane %v1114_v39, 3  ;;  %v1119_v43 = vrot.slane %v1117_v40, 4 }
 0x2fe   : > { %1690 = vmatpush3.bf16.msra.mxu1 %v1793_v31  ;;  %v1237_v57 = vor.u32 %v1236_v55, %v1232_v56 }
 0x2ff   : > { %1691 = vmatprep.subr.bf16.mxu1 %v1817_v0  ;;  %v1120_v45 = vor.u32 %v1119_v43, %v1116_v42 }
 0x302   : > { %1692 = vmatpush3.bf16.msra.mxu1 %v1794_v32 }
 0x303   : > { %1693 = vmatprep.subr.bf16.mxu1 %v1817_v0 }
 0x306   : > { %1694 = vmatpush3.bf16.msra.mxu1 %v1795_v33 }
 0x307   : > { %1695 = vmatprep.subr.bf16.mxu1 %v1817_v0 }
 0x30a   : > { %1696 = vmatpush3.bf16.msra.mxu1 %v1796_v34 }
 0x30b   : > { %1697 = vmatprep.subr.bf16.mxu1 %v1817_v0 }
 0x30e   : > { %1698 = vmatpush3.bf16.msra.mxu1 %v1797_v36 }
 0x30f   : > { %1699 = vmatprep.subr.bf16.mxu1 %v1817_v0 }
 0x312   : > { %1700 = vmatpush3.bf16.msra.mxu1 %v1798_v38 }
 0x313   : > { %1701 = vmatprep.subr.bf16.mxu1 %v1817_v0 }
 0x316   : > { %1702 = vmatpush3.bf16.msra.mxu1 %v1799_v41 }
 0x317   : > { %1707 = vmatprep.subr.bf16.mxu1 %v1817_v0 }
 0x319   : > { %1704 = vmatmul.mubr.bf16.vlgmr.msra.gmra.mrb[8].mxu1 %v1120_v45 }
 0x31a   : > { %1708 = vmatpush3.bf16.msra.mxu1 %v1800_v44  ;;  %1723 = vmatprep.mubr.msk.bf16.mxu1 %vm1818_vm0, %v1817_v0 }
 0x31b   : > { %1709 = vmatprep.subr.bf16.mxu1 %v1817_v0 }
 0x31e   : > { %1710 = vmatpush3.bf16.msra.mxu1 %v1801_v46 }
 0x31f   : > { %1711 = vmatprep.subr.bf16.mxu1 %v1817_v0 }
 0x322   : > { %1712 = vmatpush3.bf16.msra.mxu1 %v1802_v47 }
 0x323   : > { %1713 = vmatprep.subr.bf16.mxu1 %v1817_v0 }
 0x326   : > { %1714 = vmatpush3.bf16.msra.mxu1 %v1803_v48 }
 0x327   : > { %1715 = vmatprep.subr.bf16.mxu1 %v1817_v0 }
 0x32a   : > { %1716 = vmatpush3.bf16.msra.mxu1 %v1804_v49 }
 0x32b   : > { %1717 = vmatprep.subr.bf16.mxu1 %v1817_v0 }
 0x32e   : > { %1718 = vmatpush3.bf16.msra.mxu1 %v1805_v50 }
 0x32f   : > { %1719 = vmatprep.subr.bf16.mxu1 %v1817_v0 }
 0x332   : > { %1720 = vmatpush3.bf16.msra.mxu1 %v1806_v52 }
 0x333   : > { %1721 = vmatprep.subr.bf16.mxu1 %v1817_v0 }
 0x336   : > { %1722 = vmatpush3.bf16.msra.mxu1 %v1807_v54 }
 0x339   : > { %1724 = vmatmul.mubr.bf16.vlgmr.msra.gmra.mrb[8].mxu1 %v1237_v57 }
 0x40c   : > { %v1321_v59 = vpop.f32.mrb[8].mxu1 }
 0x40d   : > { %v1335_v61 = vmul.f32 %v1511_v58, %v1321_v59  ;;  %v1725_v62 = vpop.f32.mrb[9].mxu1 }
 0x40e   : > { %v1324_v63 = vpop.f32.mrb[10].mxu1 }
 0x40f   : > { %v1343_v1 = vadd.f32 %v1512_v60, %v1335_v61  ;;  %v1726_v2 = vpop.f32.mrb[11].mxu1 }
 0x411   : > { %v1344_v0 = vmax.f32 %v1343_v1, 0.0 }
 0x413   : > { %v1345_v3 = vpack.c.bf16 %v1344_v0, %v1344_v0 }
 0x415   : > { %1346 = vst [vmem:[%s379_s22] sm:$0x1] %v1345_v3 }
 0x416 PF: > { %s21_s17 = sadd.s32 1, %s1815_s17  }
 0x417   : > { %p18_p4 = scmp.ge.s32.totalorder %s21_s17, 4  }
 0x419   :  { %20 = sbr.rel (!%p18_p4) target bundleno = 1 (0x1), region = 98 }

// kernel: unet_forward.15
= control target key start
LH: loop header
LB: loop body
LE: loop exit
PB: predicated region body
PF: predicated region fallthrough
CT: control target
= control target key end

     0   :  { %s2451_s21 = smov 0   ;;  %s2864_s0 = inlined_call_operand.vmem [shape: bf16[2,4,128], index: 0, kind: input, shape index: {}]   ;;  %s2865_s1 = inlined_call_operand.vmem [shape: bf16[2,8,128], index: 1, kind: input, shape index: {}]   ;;  %s2866_s2 = inlined_call_operand.vmem [shape: bf16[8,4], index: 2, kind: input, shape index: {}]   ;;  %s2867_s3 = inlined_call_operand.vmem [shape: bf16[128,128], index: 3, kind: input, shape index: {}]   ;;  %s2868_s4 = inlined_call_operand.vmem [shape: f32[1,128], index: 4, kind: input, shape index: {}]   ;;  %s2869_s5 = inlined_call_operand.vmem [shape: bf16[3,128,128], index: 5, kind: input, shape index: {}]   ;;  %s2870_s6 = inlined_call_operand.vmem [shape: bf16[3,128,128], index: 6, kind: input, shape index: {}]   ;;  %s2871_s7 = inlined_call_operand.vmem [shape: f32[1,128], index: 7, kind: input, shape index: {}]   ;;  %s2872_s8 = inlined_call_operand.vmem [shape: f32[1,128], index: 8, kind: input, shape index: {}]   ;;  %s2873_s9 = inlined_call_operand.vmem [shape: bf16[3,128,128], index: 9, kind: input, shape index: {}]   ;;  %s2874_s10 = inlined_call_operand.vmem [shape: f32[1,128], index: 10, kind: input, shape index: {}]   ;;  %s2875_s11 = inlined_call_operand.vmem [shape: f32[1,128], index: 11, kind: input, shape index: {}]   ;;  %s2876_s12 = inlined_call_operand.vmem [shape: bf16[2,8,128], index: 12, kind: output, shape index: {}]  }
   0x1 LB: > { %s1759_s22 = sadd.s32 4294967295, %s2382_s21   ;;  %p1763_p0 = scmp.ge.s32.totalorder %s2382_s21, 1  ;;  %s2382_s21 = sphi %s2451_s21, %s22_s21  }
   0x2   : > { %p370_p1 = scmp.lt.s32.totalorder %s2382_s21, 3 }
   0x4   : > { %p371_p2 = pnand %p1763_p0, %p370_p1 }
   0x5   : > { %p414_p3 = scmp.lt.s32.totalorder (!%p371_p2), %s1759_s22, 1  ;;  %v2384_v0 = vmov (!%p371_p2), 0.0   ;;  %vm2385_vm0 = vmmov (!%p371_p2), 0   ;;  %v2290_v1 = vld [vmem:[%s2867_s3] sm:$0xff] (!%p371_p2)   ;;  %vm433_vm1 = vcmask (!%p371_p2), 1041408   ;;  %v2291_v2 = vld [vmem:[%s2867_s3 + $0x8] sm:$0xff] (!%p371_p2)  }
   0x6   : > { %374 = sbr.rel (%p371_p2) target bundleno = 1038 (0x40e), region = 68  ;;  %2049 = vmatprep.subr.bf16.mxu0 (!%p371_p2), %v2384_v0  ;;  %2051 = vmatprep.mubr.msk.bf16.mxu0 (!%p371_p2), %vm2385_vm0, %v2384_v0  ;;  %v427_v5 = vld [vmem:[%s2866_s2] sm:$0xf] (!%p371_p2)  ;;  %v2292_v7 = vld [vmem:[%s2867_s3 + $0x10] sm:$0xff] (!%p371_p2)   ;;  %vm429_vm2 = vcmask (!%p371_p2), 31744   ;;  %v2293_v8 = vld [vmem:[%s2867_s3 + $0x18] sm:$0xff] (!%p371_p2)  }
   0x7   : > { %2055 = vmatprep.subr.bf16.mxu1 (!%p371_p2), %v2384_v0  ;;  %2071 = vmatprep.mubr.msk.bf16.mxu1 (!%p371_p2), %vm2385_vm0, %v2384_v0  ;;  %v2294_v9 = vld [vmem:[%s2867_s3 + $0x20] sm:$0xff] (!%p371_p2)   ;;  %v2295_v10 = vld [vmem:[%s2867_s3 + $0x28] sm:$0xff] (!%p371_p2)   ;;  %v2296_v11 = vld [vmem:[%s2867_s3 + $0x30] sm:$0xff] (!%p371_p2)   ;;  %vm590_vm3 = vcmask (!%p371_p2), 1043459   ;;  %vm591_vm4 = vsmask.f32 (!%p371_p2), 7950 }
   0x8   : > { %2056 = vmatpush3.bf16.msra.mxu1 (!%p371_p2), %v2290_v1  ;;  %v2297_v12 = vld [vmem:[%s2867_s3 + $0x38] sm:$0xff] (!%p371_p2)   ;;  %v2298_v13 = vld [vmem:[%s2869_s5] sm:$0xff] (!%p371_p2)   ;;  %v2299_v14 = vld [vmem:[%s2869_s5 + $0x8] sm:$0xff] (!%p371_p2)   ;;  %vm596_vm6 = vcmask (!%p371_p2), 1040384   ;;  %vm597_vm7 = vsmask.f32 (!%p371_p2), 256 }
   0x9   : > { %2057 = vmatprep.subr.bf16.mxu1 (!%p371_p2), %v2384_v0  ;;  %vm2521_vm5 = vmand (!%p371_p2), %vm590_vm3, %vm591_vm4  ;;  %v593_v16 = vld [vmem:[#allocation2] sm:$0x8] (!%p371_p2)  ;;  %v2300_v18 = vld [vmem:[%s2869_s5 + $0x10] sm:$0xff] (!%p371_p2)  }
   0xa   : > { %v594_v17 = vsel (!%p371_p2), %vm2521_vm5, 0, %v593_v16  ;;  %vm2531_vm8 = vmand (!%p371_p2), %vm596_vm6, %vm597_vm7  ;;  %v599_v20 = vld [vmem:[#allocation2 + $0x8] sm:$0x1] (!%p371_p2)  ;;  %v2301_v22 = vld [vmem:[%s2869_s5 + $0x18] sm:$0xff] (!%p371_p2)  }
   0xb   : > { %595 = vst [vmem:[#allocation2] sm:$0x8] (!%p371_p2), %v594_v17  ;;  %v600_v21 = vsel (!%p371_p2), %vm2531_vm8, 0, %v599_v20  ;;  %v2302_v23 = vld [vmem:[%s2869_s5 + $0x20] sm:$0xff] (!%p371_p2)   ;;  %v2303_v27 = vld [vmem:[%s2869_s5 + $0x28] sm:$0xff] (!%p371_p2)   ;;  %v2304_v30 = vld [vmem:[%s2869_s5 + $0x30] sm:$0xff] (!%p371_p2)  }
   0xc   : > { %2058 = vmatpush3.bf16.msra.mxu1 (!%p371_p2), %v2291_v2  ;;  %601 = vst [vmem:[#allocation2 + $0x8] sm:$0x1] (!%p371_p2), %v600_v21  ;;  %v2305_v33 = vld [vmem:[%s2869_s5 + $0x38] sm:$0xff] (!%p371_p2)   ;;  %v2307_v35 = vld [vmem:[%s2869_s5 + $0x80] sm:$0xff] (!%p371_p2)   ;;  %v2308_v36 = vld [vmem:[%s2869_s5 + $0x88] sm:$0xff] (!%p371_p2)  }
   0xd   : > { %s2882_s22 = smov (!%p414_p3, %s1759_s22), 1  ;;  %2059 = vmatprep.subr.bf16.mxu1 %v2384_v0  ;;  %v2309_v37 = vld [vmem:[%s2869_s5 + $0x90] sm:$0xff]   ;;  %v2310_v38 = vld [vmem:[%s2869_s5 + $0x98] sm:$0xff]   ;;  %v2311_v39 = vld [vmem:[%s2869_s5 + $0xa0] sm:$0xff]  }
   0xe   : > { %s1764_s27 = sshll.u32 %s2882_s22, 1  ;;  %s1765_s28 = sshll.u32 %s2882_s22, 2  ;;  %v2312_v41 = vld [vmem:[%s2869_s5 + $0xa8] sm:$0xff]   ;;  %v2313_v43 = vld [vmem:[%s2869_s5 + $0xb0] sm:$0xff]   ;;  %v2314_v46 = vld [vmem:[%s2869_s5 + $0xb8] sm:$0xff]  }
   0xf   : > { %s417_s13 = scalar_lea.vmem %s2864_s0, %s1764_s27  ;;  %s421_s16 = scalar_lea.vmem %s2865_s1, %s1765_s28  ;;  %v2316_v48 = vld [vmem:[%s2870_s6 + $0x40] sm:$0xff]   ;;  %v2317_v49 = vld [vmem:[%s2870_s6 + $0x48] sm:$0xff]   ;;  %v2318_v50 = vld [vmem:[%s2870_s6 + $0x50] sm:$0xff]  }
  0x10   : > { %v428_v3 = vld [vmem:[%s417_s13] sm:$0x3]  ;;  %2060 = vmatpush3.bf16.msra.mxu1 %v2292_v7  ;;  %v2319_v51 = vld [vmem:[%s2870_s6 + $0x58] sm:$0xff]   ;;  %v2321_v58 = vld [vmem:[%s2870_s6 + $0x68] sm:$0xff]   ;;  %s425_s24 = scalar_lea.vmem %s2876_s12, %s1765_s28 }
  0x11   : > { %v589_v4 = vld [vmem:[%s421_s16] sm:$0xf]  ;;  %v435_v6 = vsel %vm433_vm1, %v428_v3, 0  ;;  %2061 = vmatprep.subr.bf16.mxu1 %v2384_v0  ;;  %v2322_v59 = vld [vmem:[%s2870_s6 + $0x70] sm:$0xff]   ;;  %v603_v60 = vld [vmem:[#allocation3] sm:$0x8] }
  0x12   : > { %602 = vst [vmem:[#allocation2 + $0x4] sm:$0xf] %v589_v4  ;;  %2050 = vmatpush3.bf16.msra.mxu0 %v435_v6  ;;  %v611_v24 = vld [vmem:[#allocation2] sm:$0x8]  ;;  %v604_v61 = vsel %vm2521_vm5, 0, %v603_v60  ;;  %v2323_v63 = vld [vmem:[%s2870_s6 + $0x78] sm:$0xff]  }
  0x13   : > { %2095 = vmatprep.subr.bf16.mxu0 %v2384_v0  ;;  %v2320_v52 = vld [vmem:[%s2870_s6 + $0x60] sm:$0xff]   ;;  %v606_v62 = vld [vmem:[#allocation3 + $0x8] sm:$0x1]  ;;  %605 = vst [vmem:[#allocation3] sm:$0x8] %v604_v61  ;;  %v2335_v3 = vld [vmem:[%s2869_s5 + $0x48] sm:$0xff]  }
  0x14   : > { %2062 = vmatpush3.bf16.msra.mxu1 %v2293_v8  ;;  %v607_v1 = vsel %vm2531_vm8, 0, %v606_v62  ;;  %v2333_v2 = vld [vmem:[%s2869_s5 + $0x40] sm:$0xff]   ;;  %v2337_v4 = vld [vmem:[%s2869_s5 + $0x50] sm:$0xff]   ;;  %v2343_v7 = vld [vmem:[%s2869_s5 + $0x68] sm:$0xff]  }
  0x15   : > { %2052 = vmatmul.mubr.msk.bf16.vlgmr.msra.gmra.mrb[0].mxu0 %vm429_vm2, %v427_v5  ;;  %2063 = vmatprep.subr.bf16.mxu1 %v2384_v0  ;;  %608 = vst [vmem:[#allocation3 + $0x8] sm:$0x1] %v607_v1  ;;  %v2339_v5 = vld [vmem:[%s2869_s5 + $0x58] sm:$0xff]   ;;  %v2341_v6 = vld [vmem:[%s2869_s5 + $0x60] sm:$0xff]   ;;  %v2345_v8 = vld [vmem:[%s2869_s5 + $0x70] sm:$0xff]  }
  0x16   : > { %2111 = vmatprep.mubr.msk.bf16.mxu0 %vm2385_vm0, %v2384_v0  ;;  %2096 = vmatpush3.bf16.msra.mxu0 %v2298_v13  ;;  %v1768_v13 = vld [vmem:[%s2868_s4] ss:$0 sm:$0xff]  ;;  %v2357_v62 = vld [vmem:[%s2873_s9 + $0x78] sm:$0xff]  }
  0x17   : > { %2097 = vmatprep.subr.bf16.mxu0 %v2384_v0  ;;  %v1324_v61 = vld [vmem:[#allocation4 + $0x8] sm:$0x1] }
  0x18   : > { %2064 = vmatpush3.bf16.msra.mxu1 %v2294_v9  ;;  %v2347_v9 = vld [vmem:[%s2869_s5 + $0x78] sm:$0xff]   ;;  %v1893_v15 = vld [vmem:[%s2871_s7] ss:$0 sm:$0xff] }
  0x19   : > { %2065 = vmatprep.subr.bf16.mxu1 %v2384_v0  ;;  %v2545_v25 = vld [vmem:[#allocation2 + $0x4] sm:$0xf] }
  0x1a   : > { %2098 = vmatpush3.bf16.msra.mxu0 %v2299_v14  ;;  %v1801_v26 = vcombine.low %v611_v24, %v2545_v25  ;;  %v2315_v40 = vld [vmem:[#allocation2 + $0x4] sm:$0x1f]  }
  0x1b   : > { %2099 = vmatprep.subr.bf16.mxu0 %v2384_v0  ;;  %v863_v42 = vshll.u32 %v2315_v40, 16  ;;  %v861_v44 = vshrl.u32 %v2315_v40, 16  ;;  %v2326_v24 = vld [vmem:[%s2870_s6 + $0x8] sm:$0xff]  }
  0x1c   : > { %2066 = vmatpush3.bf16.msra.mxu1 %v2295_v10  ;;  %v740_v28 = vshrl.u32 %v1801_v26, 16  ;;  %v743_v29 = vshll.u32 %v1801_v26, 16  ;;  %v2350_v10 = vld [vmem:[%s2873_s9 + $0x40] sm:$0xff]   ;;  %v2328_v26 = vld [vmem:[%s2870_s6 + $0x18] sm:$0xff]   ;;  %v2336_v40 = vld [vmem:[%s2870_s6 + $0x88] sm:$0xff]  }
  0x1d   : > { %2067 = vmatprep.subr.bf16.mxu1 %v2384_v0  ;;  %v865_v45 = vrot.slane %v863_v42, 1  ;;  %v2340_v42 = vld [vmem:[%s2870_s6 + $0x98] sm:$0xff]  }
  0x1e   : > { %2100 = vmatpush3.bf16.msra.mxu0 %v2300_v18  ;;  %v742_v31 = vrot.slane %v740_v28, 3  ;;  %v745_v32 = vrot.slane %v743_v29, 4  ;;  %v957_v28 = vld [vmem:[#allocation3] sm:$0x8] }
  0x1f   : > { %2101 = vmatprep.subr.bf16.mxu0 %v2384_v0  ;;  %v866_v47 = vor.u32 %v865_v45, %v861_v44  ;;  %v2330_v29 = vld [vmem:[%s2870_s6 + $0x28] sm:$0xff]  }
  0x20   : > { %2068 = vmatpush3.bf16.msra.mxu1 %v2296_v11  ;;  %v746_v34 = vor.u32 %v745_v32, %v742_v31  ;;  %v2351_v11 = vld [vmem:[%s2873_s9 + $0x48] sm:$0xff]   ;;  %v2353_v31 = vld [vmem:[%s2873_s9 + $0x58] sm:$0xff]   ;;  %v2331_v32 = vld [vmem:[%s2870_s6 + $0x30] sm:$0xff]  }
  0x21   : > { %2069 = vmatprep.subr.bf16.mxu1 %v2384_v0  ;;  %v2344_v44 = vld [vmem:[%s2870_s6 + $0xa8] sm:$0xff]  }
  0x22   : > { %2102 = vmatpush3.bf16.msra.mxu0 %v2301_v22  ;;  %v2325_v22 = vld [vmem:[%s2870_s6] sm:$0xff]  }
  0x23   : > { %2103 = vmatprep.subr.bf16.mxu0 %v2384_v0 }
  0x24   : > { %2070 = vmatpush3.bf16.msra.mxu1 %v2297_v12  ;;  %v2352_v12 = vld [vmem:[%s2873_s9 + $0x50] sm:$0xff]  }
  0x25   : > { %2075 = vmatprep.subr.bf16.mxu1 %v2384_v0 }
  0x26   : > { %2104 = vmatpush3.bf16.msra.mxu0 %v2302_v23 }
  0x27   : > { %2105 = vmatprep.subr.bf16.mxu0 %v2384_v0 }
  0x2a   : > { %2106 = vmatpush3.bf16.msra.mxu0 %v2303_v27  ;;  %v2329_v27 = vld [vmem:[%s2870_s6 + $0x20] sm:$0xff]  }
  0x2b   : > { %2107 = vmatprep.subr.bf16.mxu0 %v2384_v0 }
  0x2e   : > { %2108 = vmatpush3.bf16.msra.mxu0 %v2304_v30 }
  0x2f   : > { %2109 = vmatprep.subr.bf16.mxu0 %v2384_v0 }
  0x32   : > { %2110 = vmatpush3.bf16.msra.mxu0 %v2305_v33 }
  0x33   : > { %2115 = vmatprep.subr.bf16.mxu0 %v2384_v0 }
  0x35   : > { %2112 = vmatmul.mubr.bf16.vlgmr.msra.gmra.mrb[4].mxu0 %v746_v34 }
  0x36   : > { %2116 = vmatpush3.bf16.msra.mxu0 %v2307_v35  ;;  %2131 = vmatprep.mubr.msk.bf16.mxu0 %vm2385_vm0, %v2384_v0  ;;  %v2332_v35 = vld [vmem:[%s2870_s6 + $0x38] sm:$0xff]  }
  0x37   : > { %2117 = vmatprep.subr.bf16.mxu0 %v2384_v0 }
  0x3a   : > { %2118 = vmatpush3.bf16.msra.mxu0 %v2308_v36 }
  0x3b   : > { %2119 = vmatprep.subr.bf16.mxu0 %v2384_v0 }
  0x3e   : > { %2120 = vmatpush3.bf16.msra.mxu0 %v2309_v37 }
  0x3f   : > { %2121 = vmatprep.subr.bf16.mxu0 %v2384_v0 }
  0x42   : > { %2122 = vmatpush3.bf16.msra.mxu0 %v2310_v38  ;;  %v2334_v38 = vld [vmem:[%s2870_s6 + $0x80] sm:$0xff]  }
  0x43   : > { %2123 = vmatprep.subr.bf16.mxu0 %v2384_v0 }
  0x46   : > { %2124 = vmatpush3.bf16.msra.mxu0 %v2311_v39 }
  0x47   : > { %2125 = vmatprep.subr.bf16.mxu0 %v2384_v0 }
  0x4a   : > { %2126 = vmatpush3.bf16.msra.mxu0 %v2312_v41  ;;  %v2338_v41 = vld [vmem:[%s2870_s6 + $0x90] sm:$0xff]  }
  0x4b   : > { %2127 = vmatprep.subr.bf16.mxu0 %v2384_v0 }
  0x4e   : > { %2128 = vmatpush3.bf16.msra.mxu0 %v2313_v43  ;;  %v2342_v43 = vld [vmem:[%s2870_s6 + $0xa0] sm:$0xff]  }
  0x4f   : > { %2129 = vmatprep.subr.bf16.mxu0 %v2384_v0 }
  0x52   : > { %2130 = vmatpush3.bf16.msra.mxu0 %v2314_v46  ;;  %v2346_v46 = vld [vmem:[%s2870_s6 + $0xb0] sm:$0xff]  }
  0x53   : > { %2135 = vmatprep.subr.bf16.mxu0 %v2384_v0 }
  0x55   : > { %2132 = vmatmul.mubr.bf16.vlgmr.msra.gmra.mrb[4].mxu0 %v866_v47 }
  0x56   : > { %2136 = vmatpush3.bf16.msra.mxu0 %v2316_v48  ;;  %2151 = vmatprep.mubr.msk.bf16.mxu0 %vm2385_vm0, %v2384_v0  ;;  %v2348_v48 = vld [vmem:[%s2870_s6 + $0xb8] sm:$0xff]  }
  0x57   : > { %2137 = vmatprep.subr.bf16.mxu0 %v2384_v0 }
  0x5a   : > { %2138 = vmatpush3.bf16.msra.mxu0 %v2317_v49 }
  0x5b   : > { %2139 = vmatprep.subr.bf16.mxu0 %v2384_v0 }
  0x5e   : > { %2140 = vmatpush3.bf16.msra.mxu0 %v2318_v50 }
  0x5f   : > { %2141 = vmatprep.subr.bf16.mxu0 %v2384_v0 }
  0x62   : > { %2142 = vmatpush3.bf16.msra.mxu0 %v2319_v51 }
  0x63   : > { %2143 = vmatprep.subr.bf16.mxu0 %v2384_v0 }
  0x66   : > { %2144 = vmatpush3.bf16.msra.mxu0 %v2320_v52 }
  0x67   : > { %2145 = vmatprep.subr.bf16.mxu0 %v2384_v0 }
  0x6a   : > { %2146 = vmatpush3.bf16.msra.mxu0 %v2321_v58  ;;  %v2356_v58 = vld [vmem:[%s2873_s9 + $0x70] sm:$0xff]  }
  0x6b   : > { %2147 = vmatprep.subr.bf16.mxu0 %v2384_v0 }
  0x6e   : > { %2148 = vmatpush3.bf16.msra.mxu0 %v2322_v59  ;;  %v1321_v59 = vld [vmem:[#allocation4] sm:$0x8] }
  0x6f   : > { %2149 = vmatprep.subr.bf16.mxu0 %v2384_v0  ;;  %v1322_v60 = vsel %vm2521_vm5, 0, %v1321_v59 }
  0x70   : > { %1323 = vst [vmem:[#allocation4] sm:$0x8] %v1322_v60 }
  0x72   : > { %2150 = vmatpush3.bf16.msra.mxu0 %v2323_v63  ;;  %v1325_v63 = vsel %vm2531_vm8, 0, %v1324_v61 }
  0x73   : > { %2155 = vmatprep.subr.bf16.mxu0 %v2384_v0  ;;  %1326 = vst [vmem:[#allocation4 + $0x8] sm:$0x1] %v1325_v63 }
  0xe8   : > { %v471_v53 = vpop.f32.mrb[0].mxu0 }
  0xe9   : > { %v477_v54 = vpack.c.bf16 %v471_v53, %v471_v53  ;;  %v2053_v55 = vpop.f32.mrb[1].mxu0 }
  0xea   : > { %v474_v56 = vpop.f32.mrb[2].mxu0 }
  0xeb   : > { %v2054_v57 = vpop.f32.mrb[3].mxu0  ;;  %2072 = vmatmul.mubr.bf16.vlgmr.msra.gmra.mrb[0].mxu1 %v477_v54  ;;  %v2354_v56 = vld [vmem:[%s2873_s9 + $0x60] sm:$0xff]  }
  0xec   : > { %2091 = vmatprep.mubr.msk.bf16.mxu1 %vm2385_vm0, %v2384_v0  ;;  %2076 = vmatpush3.bf16.msra.mxu1 %v2333_v2  ;;  %v2355_v57 = vld [vmem:[%s2873_s9 + $0x68] sm:$0xff]  }
  0xed   : > { %2077 = vmatprep.subr.bf16.mxu1 %v2384_v0 }
  0xf0   : > { %2078 = vmatpush3.bf16.msra.mxu1 %v2335_v3 }
  0xf1   : > { %2079 = vmatprep.subr.bf16.mxu1 %v2384_v0 }
  0xf4   : > { %2080 = vmatpush3.bf16.msra.mxu1 %v2337_v4  ;;  %v1894_v4 = vld [vmem:[%s2872_s8] ss:$0 sm:$0xff] }
  0xf5   : > { %2081 = vmatprep.subr.bf16.mxu1 %v2384_v0 }
  0xf8   : > { %2082 = vmatpush3.bf16.msra.mxu1 %v2339_v5 }
  0xf9   : > { %2083 = vmatprep.subr.bf16.mxu1 %v2384_v0 }
  0xfc   : > { %2084 = vmatpush3.bf16.msra.mxu1 %v2341_v6 }
  0xfd   : > { %2085 = vmatprep.subr.bf16.mxu1 %v2384_v0 }
 0x100   : > { %2086 = vmatpush3.bf16.msra.mxu1 %v2343_v7 }
 0x101   : > { %2087 = vmatprep.subr.bf16.mxu1 %v2384_v0 }
 0x104   : > { %2088 = vmatpush3.bf16.msra.mxu1 %v2345_v8 }
 0x105   : > { %2089 = vmatprep.subr.bf16.mxu1 %v2384_v0 }
 0x108   : > { %2090 = vmatpush3.bf16.msra.mxu1 %v2347_v9 }
 0x109   : > { %2195 = vmatprep.subr.bf16.mxu1 %v2384_v0 }
 0x10b   : > { %2092 = vmatmul.mubr.bf16.vlgmr.msra.gmra.mrb[4].mxu1 %v2545_v25  ;;  %v2327_v25 = vld [vmem:[%s2870_s6 + $0x10] sm:$0xff]  }
 0x10c   : > { %2211 = vmatprep.mubr.msk.bf16.mxu1 %vm2385_vm0, %v2384_v0  ;;  %2196 = vmatpush3.bf16.msra.mxu1 %v2350_v10  ;;  %v2359_v10 = vld [vmem:[%s2873_s9] sm:$0xff]  }
 0x10d   : > { %2197 = vmatprep.subr.bf16.mxu1 %v2384_v0 }
 0x110   : > { %2198 = vmatpush3.bf16.msra.mxu1 %v2351_v11 }
 0x111   : > { %2199 = vmatprep.subr.bf16.mxu1 %v2384_v0 }
 0x114   : > { %2200 = vmatpush3.bf16.msra.mxu1 %v2352_v12  ;;  %v2360_v12 = vld [vmem:[%s2873_s9 + $0x8] sm:$0xff]  }
 0x115   : > { %2201 = vmatprep.subr.bf16.mxu1 %v2384_v0 }
 0x118   : > { %2202 = vmatpush3.bf16.msra.mxu1 %v2353_v31  ;;  %v2370_v31 = vld [vmem:[%s2873_s9 + $0x98] sm:$0xff]  }
 0x119   : > { %2203 = vmatprep.subr.bf16.mxu1 %v2384_v0 }
 0x11c   : > { %2204 = vmatpush3.bf16.msra.mxu1 %v2354_v56 }
 0x11d   : > { %2205 = vmatprep.subr.bf16.mxu1 %v2384_v0 }
 0x120   : > { %2206 = vmatpush3.bf16.msra.mxu1 %v2355_v57 }
 0x121   : > { %2207 = vmatprep.subr.bf16.mxu1 %v2384_v0 }
 0x124   : > { %2208 = vmatpush3.bf16.msra.mxu1 %v2356_v58 }
 0x125   : > { %2209 = vmatprep.subr.bf16.mxu1 %v2384_v0 }
 0x128   : > { %2210 = vmatpush3.bf16.msra.mxu1 %v2357_v62 }
 0x129   : > { %2215 = vmatprep.subr.bf16.mxu1 %v2384_v0 }
 0x1be   : > { %v583_v14 = vpop.f32.mrb[0].mxu1 }
 0x1bf   : > { %v584_v16 = vadd.f32 %v1768_v13, %v583_v14  ;;  %v2073_v17 = vpop.f32.mrb[1].mxu1  ;;  %v2361_v13 = vld [vmem:[%s2873_s9 + $0x10] sm:$0xff]   ;;  %v2362_v14 = vld [vmem:[%s2873_s9 + $0x18] sm:$0xff]  }
 0x1c0   : > { %v586_v18 = vpop.f32.mrb[2].mxu1  ;;  %v1329_v17 = vld [vmem:[#allocation4] sm:$0x8] }
 0x1c1   : > { %v609_v20 = vpack.c.bf16 %v584_v16, %v584_v16  ;;  %v2074_v21 = vpop.f32.mrb[3].mxu1  ;;  %v2363_v16 = vld [vmem:[%s2873_s9 + $0x20] sm:$0xff]   ;;  %v2364_v18 = vld [vmem:[%s2873_s9 + $0x28] sm:$0xff]  }
 0x1c2   : > { %v2365_v21 = vld [vmem:[%s2873_s9 + $0x30] sm:$0xff]  }
 0x1c3   : > { %610 = vst [vmem:[#allocation3 + $0x4] sm:$0xf] %v609_v20 }
 0x1ca   : > { %v958_v23 = vld [vmem:[#allocation3 + $0x4] sm:$0xf] }
 0x1cb   : > { %2152 = vmatmul.mubr.bf16.vlgmr.msra.gmra.mrb[4].mxu0 %v958_v23  ;;  %v1859_v30 = vcombine.low %v957_v28, %v958_v23  ;;  %v2349_v45 = vld [vmem:[#allocation3 + $0x4] sm:$0x1f]  }
 0x1cc   : > { %2156 = vmatpush3.bf16.msra.mxu0 %v2325_v22  ;;  %2171 = vmatprep.mubr.msk.bf16.mxu0 %vm2385_vm0, %v2384_v0  ;;  %v1209_v47 = vshll.u32 %v2349_v45, 16  ;;  %v1207_v50 = vshrl.u32 %v2349_v45, 16 }
 0x1cd   : > { %2157 = vmatprep.subr.bf16.mxu0 %v2384_v0  ;;  %v1086_v33 = vshrl.u32 %v1859_v30, 16  ;;  %v1089_v34 = vshll.u32 %v1859_v30, 16  ;;  %v2369_v30 = vld [vmem:[%s2873_s9 + $0x90] sm:$0xff]  }
 0x1ce   : > { %v1211_v49 = vrot.slane %v1209_v47, 1 }
 0x1cf   : > { %v1088_v36 = vrot.slane %v1086_v33, 3  ;;  %v1091_v37 = vrot.slane %v1089_v34, 4  ;;  %v2372_v33 = vld [vmem:[%s2873_s9 + $0xa8] sm:$0xff]  }
 0x1d0   : > { %2158 = vmatpush3.bf16.msra.mxu0 %v2326_v24  ;;  %v1212_v51 = vor.u32 %v1211_v49, %v1207_v50  ;;  %v2366_v24 = vld [vmem:[%s2873_s9 + $0x38] sm:$0xff]  }
 0x1d1   : > { %2159 = vmatprep.subr.bf16.mxu0 %v2384_v0  ;;  %v1092_v39 = vor.u32 %v1091_v37, %v1088_v36  ;;  %v2374_v37 = vld [vmem:[%s2873_s9 + $0xb8] sm:$0xff]  }
 0x1d4   : > { %2160 = vmatpush3.bf16.msra.mxu0 %v2327_v25 }
 0x1d5   : > { %2161 = vmatprep.subr.bf16.mxu0 %v2384_v0 }
 0x1d8   : > { %2162 = vmatpush3.bf16.msra.mxu0 %v2328_v26 }
 0x1d9   : > { %2163 = vmatprep.subr.bf16.mxu0 %v2384_v0 }
 0x1dc   : > { %2164 = vmatpush3.bf16.msra.mxu0 %v2329_v27  ;;  %v2367_v27 = vld [vmem:[%s2873_s9 + $0x80] sm:$0xff]  }
 0x1dd   : > { %2165 = vmatprep.subr.bf16.mxu0 %v2384_v0 }
 0x1de   : > { %v728_v52 = vpop.f32.mrb[4].mxu1 }
 0x1df   : > { %v2093_v53 = vpop.f32.mrb[5].mxu1 }
 0x1e0   : > { %2166 = vmatpush3.bf16.msra.mxu0 %v2330_v29  ;;  %v731_v54 = vpop.f32.mrb[6].mxu1  ;;  %v2368_v29 = vld [vmem:[%s2873_s9 + $0x88] sm:$0xff]  }
 0x1e1   : > { %2167 = vmatprep.subr.bf16.mxu0 %v2384_v0  ;;  %v2094_v55 = vpop.f32.mrb[7].mxu1 }
 0x1e4   : > { %2168 = vmatpush3.bf16.msra.mxu0 %v2331_v32  ;;  %v2371_v32 = vld [vmem:[%s2873_s9 + $0xa0] sm:$0xff]  }
 0x1e5   : > { %2169 = vmatprep.subr.bf16.mxu0 %v2384_v0 }
 0x1e8   : > { %2170 = vmatpush3.bf16.msra.mxu0 %v2332_v35  ;;  %v2373_v35 = vld [vmem:[%s2873_s9 + $0xb0] sm:$0xff]  }
 0x1e9   : > { %2175 = vmatprep.subr.bf16.mxu0 %v2384_v0 }
 0x1eb   : > { %2172 = vmatmul.mubr.bf16.vlgmr.msra.gmra.mrb[4].mxu0 %v1092_v39 }
 0x1ec   : > { %2176 = vmatpush3.bf16.msra.mxu0 %v2334_v38  ;;  %2191 = vmatprep.mubr.msk.bf16.mxu0 %vm2385_vm0, %v2384_v0 }
 0x1ed   : > { %2177 = vmatprep.subr.bf16.mxu0 %v2384_v0 }
 0x1f0   : > { %2178 = vmatpush3.bf16.msra.mxu0 %v2336_v40 }
 0x1f1   : > { %2179 = vmatprep.subr.bf16.mxu0 %v2384_v0 }
 0x1f4   : > { %2180 = vmatpush3.bf16.msra.mxu0 %v2338_v41  ;;  %v1953_v41 = vld [vmem:[%s2874_s10] ss:$0 sm:$0xff] }
 0x1f5   : > { %2181 = vmatprep.subr.bf16.mxu0 %v2384_v0 }
 0x1f8   : > { %2182 = vmatpush3.bf16.msra.mxu0 %v2340_v42 }
 0x1f9   : > { %2183 = vmatprep.subr.bf16.mxu0 %v2384_v0 }
 0x1fc   : > { %2184 = vmatpush3.bf16.msra.mxu0 %v2342_v43  ;;  %v1954_v43 = vld [vmem:[%s2875_s11] ss:$0 sm:$0xff] }
 0x1fd   : > { %2185 = vmatprep.subr.bf16.mxu0 %v2384_v0 }
 0x200   : > { %2186 = vmatpush3.bf16.msra.mxu0 %v2344_v44 }
 0x201   : > { %2187 = vmatprep.subr.bf16.mxu0 %v2384_v0 }
 0x204   : > { %2188 = vmatpush3.bf16.msra.mxu0 %v2346_v46 }
 0x205   : > { %2189 = vmatprep.subr.bf16.mxu0 %v2384_v0 }
 0x208   : > { %2190 = vmatpush3.bf16.msra.mxu0 %v2348_v48 }
 0x20b   : > { %2192 = vmatmul.mubr.bf16.vlgmr.msra.gmra.mrb[4].mxu0 %v1212_v51 }
 0x2de   : > { %v1296_v1 = vpop.f32.mrb[4].mxu0 }
 0x2df   : > { %v2255_v2 = vadd.f32 %v1296_v1, %v728_v52  ;;  %v2193_v3 = vpop.f32.mrb[5].mxu0 }
 0x2e0   : > { %v1299_v5 = vpop.f32.mrb[6].mxu0 }
 0x2e1   : > { %v1311_v19 = vmul.f32 %v2255_v2, %v1893_v15  ;;  %v2194_v6 = vpop.f32.mrb[7].mxu0 }
 0x2e3   : > { %v1319_v7 = vadd.f32 %v1894_v4, %v1311_v19 }
 0x2e5   : > { %v1320_v8 = vmax.f32 %v1319_v7, 0.0 }
 0x2e7   : > { %v1327_v9 = vpack.c.bf16 %v1320_v8, %v1320_v8 }
 0x2e9   : > { %1328 = vst [vmem:[#allocation4 + $0x4] sm:$0xf] %v1327_v9 }
 0x2f0   : > { %v1330_v11 = vld [vmem:[#allocation4 + $0x4] sm:$0xf] }
 0x2f1   : > { %2212 = vmatmul.mubr.bf16.vlgmr.msra.gmra.mrb[8].mxu1 %v1330_v11  ;;  %v1919_v20 = vcombine.low %v1329_v17, %v1330_v11  ;;  %v2375_v34 = vld [vmem:[#allocation4 + $0x4] sm:$0x1f]  }
 0x2f2   : > { %2216 = vmatpush3.bf16.msra.mxu1 %v2359_v10  ;;  %2231 = vmatprep.mubr.msk.bf16.mxu1 %vm2385_vm0, %v2384_v0  ;;  %v1581_v36 = vshll.u32 %v2375_v34, 16  ;;  %v1579_v39 = vshrl.u32 %v2375_v34, 16 }
 0x2f3   : > { %2217 = vmatprep.subr.bf16.mxu1 %v2384_v0  ;;  %v1458_v22 = vshrl.u32 %v1919_v20, 16  ;;  %v1461_v23 = vshll.u32 %v1919_v20, 16 }
 0x2f4   : > { %v1583_v38 = vrot.slane %v1581_v36, 1 }
 0x2f5   : > { %v1460_v25 = vrot.slane %v1458_v22, 3  ;;  %v1463_v26 = vrot.slane %v1461_v23, 4 }
 0x2f6   : > { %2218 = vmatpush3.bf16.msra.mxu1 %v2360_v12  ;;  %v1584_v40 = vor.u32 %v1583_v38, %v1579_v39 }
 0x2f7   : > { %2219 = vmatprep.subr.bf16.mxu1 %v2384_v0  ;;  %v1464_v28 = vor.u32 %v1463_v26, %v1460_v25 }
 0x2fa   : > { %2220 = vmatpush3.bf16.msra.mxu1 %v2361_v13 }
 0x2fb   : > { %2221 = vmatprep.subr.bf16.mxu1 %v2384_v0 }
 0x2fe   : > { %2222 = vmatpush3.bf16.msra.mxu1 %v2362_v14 }
 0x2ff   : > { %2223 = vmatprep.subr.bf16.mxu1 %v2384_v0 }
 0x302   : > { %2224 = vmatpush3.bf16.msra.mxu1 %v2363_v16 }
 0x303   : > { %2225 = vmatprep.subr.bf16.mxu1 %v2384_v0 }
 0x306   : > { %2226 = vmatpush3.bf16.msra.mxu1 %v2364_v18 }
 0x307   : > { %2227 = vmatprep.subr.bf16.mxu1 %v2384_v0 }
 0x30a   : > { %2228 = vmatpush3.bf16.msra.mxu1 %v2365_v21 }
 0x30b   : > { %2229 = vmatprep.subr.bf16.mxu1 %v2384_v0 }
 0x30e   : > { %2230 = vmatpush3.bf16.msra.mxu1 %v2366_v24 }
 0x30f   : > { %2235 = vmatprep.subr.bf16.mxu1 %v2384_v0 }
 0x311   : > { %2232 = vmatmul.mubr.bf16.vlgmr.msra.gmra.mrb[8].mxu1 %v1464_v28 }
 0x312   : > { %2236 = vmatpush3.bf16.msra.mxu1 %v2367_v27  ;;  %2251 = vmatprep.mubr.msk.bf16.mxu1 %vm2385_vm0, %v2384_v0 }
 0x313   : > { %2237 = vmatprep.subr.bf16.mxu1 %v2384_v0 }
 0x316   : > { %2238 = vmatpush3.bf16.msra.mxu1 %v2368_v29 }
 0x317   : > { %2239 = vmatprep.subr.bf16.mxu1 %v2384_v0 }
 0x31a   : > { %2240 = vmatpush3.bf16.msra.mxu1 %v2369_v30 }
 0x31b   : > { %2241 = vmatprep.subr.bf16.mxu1 %v2384_v0 }
 0x31e   : > { %2242 = vmatpush3.bf16.msra.mxu1 %v2370_v31 }
 0x31f   : > { %2243 = vmatprep.subr.bf16.mxu1 %v2384_v0 }
 0x322   : > { %2244 = vmatpush3.bf16.msra.mxu1 %v2371_v32 }
 0x323   : > { %2245 = vmatprep.subr.bf16.mxu1 %v2384_v0 }
 0x326   : > { %2246 = vmatpush3.bf16.msra.mxu1 %v2372_v33 }
 0x327   : > { %2247 = vmatprep.subr.bf16.mxu1 %v2384_v0 }
 0x32a   : > { %2248 = vmatpush3.bf16.msra.mxu1 %v2373_v35 }
 0x32b   : > { %2249 = vmatprep.subr.bf16.mxu1 %v2384_v0 }
 0x32e   : > { %2250 = vmatpush3.bf16.msra.mxu1 %v2374_v37 }
 0x331   : > { %2252 = vmatmul.mubr.bf16.vlgmr.msra.gmra.mrb[8].mxu1 %v1584_v40 }
 0x404   : > { %v1668_v42 = vpop.f32.mrb[8].mxu1 }
 0x405   : > { %v1682_v44 = vmul.f32 %v1953_v41, %v1668_v42  ;;  %v2253_v45 = vpop.f32.mrb[9].mxu1 }
 0x406   : > { %v1671_v46 = vpop.f32.mrb[10].mxu1 }
 0x407   : > { %v1690_v47 = vadd.f32 %v1954_v43, %v1682_v44  ;;  %v2254_v48 = vpop.f32.mrb[11].mxu1 }
 0x409   : > { %v1691_v0 = vmax.f32 %v1690_v47, 0.0 }
 0x40b   : > { %v1692_v49 = vpack.c.bf16 %v1691_v0, %v1691_v0 }
 0x40d   : > { %1693 = vst [vmem:[%s425_s24] sm:$0xf] %v1692_v49 }
 0x40e PF: > { %s22_s21 = sadd.s32 1, %s2382_s21  }
 0x40f   : > { %p19_p4 = scmp.ge.s32.totalorder %s22_s21, 4  }
 0x411   :  { %21 = sbr.rel (!%p19_p4) target bundleno = 1 (0x1), region = 107 }

// kernel: unet_forward.14
= control target key start
LH: loop header
LB: loop body
LE: loop exit
PB: predicated region body
PF: predicated region fallthrough
CT: control target
= control target key end

     0   :  { %s2435_s21 = smov 0   ;;  %s2848_s0 = inlined_call_operand.vmem [shape: bf16[2,2,128], index: 0, kind: input, shape index: {}]   ;;  %s2849_s1 = inlined_call_operand.vmem [shape: bf16[2,4,128], index: 1, kind: input, shape index: {}]   ;;  %s2850_s2 = inlined_call_operand.vmem [shape: bf16[4,2], index: 2, kind: input, shape index: {}]   ;;  %s2851_s3 = inlined_call_operand.vmem [shape: bf16[128,128], index: 3, kind: input, shape index: {}]   ;;  %s2852_s4 = inlined_call_operand.vmem [shape: f32[1,128], index: 4, kind: input, shape index: {}]   ;;  %s2853_s5 = inlined_call_operand.vmem [shape: bf16[3,128,128], index: 5, kind: input, shape index: {}]   ;;  %s2854_s6 = inlined_call_operand.vmem [shape: bf16[3,128,128], index: 6, kind: input, shape index: {}]   ;;  %s2855_s7 = inlined_call_operand.vmem [shape: f32[1,128], index: 7, kind: input, shape index: {}]   ;;  %s2856_s8 = inlined_call_operand.vmem [shape: f32[1,128], index: 8, kind: input, shape index: {}]   ;;  %s2857_s9 = inlined_call_operand.vmem [shape: bf16[3,128,128], index: 9, kind: input, shape index: {}]   ;;  %s2858_s10 = inlined_call_operand.vmem [shape: f32[1,128], index: 10, kind: input, shape index: {}]   ;;  %s2859_s11 = inlined_call_operand.vmem [shape: f32[1,128], index: 11, kind: input, shape index: {}]   ;;  %s2860_s12 = inlined_call_operand.vmem [shape: bf16[2,4,128], index: 12, kind: output, shape index: {}]  }
   0x1 LB: > { %s1744_s22 = sadd.s32 4294967295, %s2366_s21   ;;  %p1748_p0 = scmp.ge.s32.totalorder %s2366_s21, 1  ;;  %s2366_s21 = sphi %s2435_s21, %s22_s21  }
   0x2   : > { %p369_p1 = scmp.lt.s32.totalorder %s2366_s21, 3 }
   0x4   : > { %p370_p2 = pnand %p1748_p0, %p369_p1 }
   0x5   : > { %p412_p3 = scmp.lt.s32.totalorder (!%p370_p2), %s1744_s22, 1  ;;  %v2368_v0 = vmov (!%p370_p2), 0.0   ;;  %vm2369_vm0 = vmmov (!%p370_p2), 0   ;;  %v2274_v1 = vld [vmem:[%s2851_s3] sm:$0xff] (!%p370_p2)   ;;  %vm430_vm1 = vcmask (!%p370_p2), 1040384   ;;  %v2275_v2 = vld [vmem:[%s2851_s3 + $0x8] sm:$0xff] (!%p370_p2)  }
   0x6   : > { %373 = sbr.rel (%p370_p2) target bundleno = 1037 (0x40d), region = 68  ;;  %2033 = vmatprep.subr.bf16.mxu0 (!%p370_p2), %v2368_v0  ;;  %2035 = vmatprep.mubr.msk.bf16.mxu0 (!%p370_p2), %vm2369_vm0, %v2368_v0  ;;  %v424_v4 = vld [vmem:[%s2850_s2] sm:$0x3] (!%p370_p2)  ;;  %vm426_vm2 = vcmask (!%p370_p2), 15360   ;;  %v2276_v7 = vld [vmem:[%s2851_s3 + $0x10] sm:$0xff] (!%p370_p2)   ;;  %v2277_v8 = vld [vmem:[%s2851_s3 + $0x18] sm:$0xff] (!%p370_p2)  }
   0x7   : > { %2039 = vmatprep.subr.bf16.mxu1 (!%p370_p2), %v2368_v0  ;;  %2055 = vmatprep.mubr.msk.bf16.mxu1 (!%p370_p2), %vm2369_vm0, %v2368_v0  ;;  %v2278_v9 = vld [vmem:[%s2851_s3 + $0x20] sm:$0xff] (!%p370_p2)   ;;  %v2279_v10 = vld [vmem:[%s2851_s3 + $0x28] sm:$0xff] (!%p370_p2)   ;;  %v2280_v11 = vld [vmem:[%s2851_s3 + $0x30] sm:$0xff] (!%p370_p2)   ;;  %vm587_vm3 = vcmask (!%p370_p2), 1043459   ;;  %vm588_vm4 = vsmask.f32 (!%p370_p2), 7950 }
   0x8   : > { %2040 = vmatpush3.bf16.msra.mxu1 (!%p370_p2), %v2274_v1  ;;  %v2281_v12 = vld [vmem:[%s2851_s3 + $0x38] sm:$0xff] (!%p370_p2)   ;;  %v2282_v13 = vld [vmem:[%s2853_s5] sm:$0xff] (!%p370_p2)   ;;  %v2283_v14 = vld [vmem:[%s2853_s5 + $0x8] sm:$0xff] (!%p370_p2)   ;;  %vm593_vm6 = vcmask (!%p370_p2), 1042434   ;;  %vm594_vm7 = vsmask.f32 (!%p370_p2), 2304 }
   0x9   : > { %2041 = vmatprep.subr.bf16.mxu1 (!%p370_p2), %v2368_v0  ;;  %vm2505_vm5 = vmand (!%p370_p2), %vm587_vm3, %vm588_vm4  ;;  %v590_v16 = vld [vmem:[#allocation2] sm:$0x8] (!%p370_p2)  ;;  %v2284_v18 = vld [vmem:[%s2853_s5 + $0x10] sm:$0xff] (!%p370_p2)  }
   0xa   : > { %v591_v17 = vsel (!%p370_p2), %vm2505_vm5, 0, %v590_v16  ;;  %vm2515_vm8 = vmand (!%p370_p2), %vm593_vm6, %vm594_vm7  ;;  %v596_v20 = vld [vmem:[#allocation2 + $0x4] sm:$0x4] (!%p370_p2)  ;;  %v2285_v22 = vld [vmem:[%s2853_s5 + $0x18] sm:$0xff] (!%p370_p2)  }
   0xb   : > { %592 = vst [vmem:[#allocation2] sm:$0x8] (!%p370_p2), %v591_v17  ;;  %v597_v21 = vsel (!%p370_p2), %vm2515_vm8, 0, %v596_v20  ;;  %v2286_v23 = vld [vmem:[%s2853_s5 + $0x20] sm:$0xff] (!%p370_p2)   ;;  %v2287_v27 = vld [vmem:[%s2853_s5 + $0x28] sm:$0xff] (!%p370_p2)   ;;  %v2288_v30 = vld [vmem:[%s2853_s5 + $0x30] sm:$0xff] (!%p370_p2)  }
   0xc   : > { %2042 = vmatpush3.bf16.msra.mxu1 (!%p370_p2), %v2275_v2  ;;  %598 = vst [vmem:[#allocation2 + $0x4] sm:$0x4] (!%p370_p2), %v597_v21  ;;  %v2289_v33 = vld [vmem:[%s2853_s5 + $0x38] sm:$0xff] (!%p370_p2)   ;;  %v2291_v35 = vld [vmem:[%s2853_s5 + $0x80] sm:$0xff] (!%p370_p2)   ;;  %v2292_v36 = vld [vmem:[%s2853_s5 + $0x88] sm:$0xff] (!%p370_p2)  }
   0xd   : > { %s2866_s22 = smov (!%p412_p3, %s1744_s22), 1  ;;  %2043 = vmatprep.subr.bf16.mxu1 %v2368_v0  ;;  %v2293_v37 = vld [vmem:[%s2853_s5 + $0x90] sm:$0xff]   ;;  %v2294_v38 = vld [vmem:[%s2853_s5 + $0x98] sm:$0xff]   ;;  %v2295_v39 = vld [vmem:[%s2853_s5 + $0xa0] sm:$0xff]  }
   0xe   : > { %s414_s29 = scalar_lea.vmem %s2848_s0, %s2866_s22  ;;  %s1749_s30 = sshll.u32 %s2866_s22, 1  ;;  %v2296_v41 = vld [vmem:[%s2853_s5 + $0xa8] sm:$0xff]   ;;  %v2297_v43 = vld [vmem:[%s2853_s5 + $0xb0] sm:$0xff]   ;;  %v2298_v46 = vld [vmem:[%s2853_s5 + $0xb8] sm:$0xff]  }
   0xf   : > { %s418_s15 = scalar_lea.vmem %s2849_s1, %s1749_s30  ;;  %v425_v3 = vld [vmem:[%s414_s29] sm:$0x1]  ;;  %v2301_v49 = vld [vmem:[%s2854_s6 + $0x48] sm:$0xff]   ;;  %v2302_v50 = vld [vmem:[%s2854_s6 + $0x50] sm:$0xff]   ;;  %s422_s23 = scalar_lea.vmem %s2860_s12, %s1749_s30 }
  0x10   : > { %v432_v5 = vsel %vm430_vm1, %v425_v3, 0  ;;  %v586_v6 = vld [vmem:[%s418_s15] sm:$0x3]  ;;  %2044 = vmatpush3.bf16.msra.mxu1 %v2276_v7  ;;  %v2303_v51 = vld [vmem:[%s2854_s6 + $0x58] sm:$0xff]   ;;  %v2305_v58 = vld [vmem:[%s2854_s6 + $0x68] sm:$0xff]  }
  0x11   : > { %2034 = vmatpush3.bf16.msra.mxu0 %v432_v5  ;;  %599 = vst [vmem:[#allocation2 + $0x4] sm:$0x3] %v586_v6  ;;  %2045 = vmatprep.subr.bf16.mxu1 %v2368_v0  ;;  %v2300_v48 = vld [vmem:[%s2854_s6 + $0x40] sm:$0xff]   ;;  %v2306_v59 = vld [vmem:[%s2854_s6 + $0x70] sm:$0xff]   ;;  %v600_v60 = vld [vmem:[#allocation3] sm:$0x8] }
  0x12   : > { %2079 = vmatprep.subr.bf16.mxu0 %v2368_v0  ;;  %v608_v24 = vld [vmem:[#allocation2] sm:$0x8]  ;;  %v601_v61 = vsel %vm2505_vm5, 0, %v600_v60  ;;  %v603_v62 = vld [vmem:[#allocation3 + $0x4] sm:$0x4]  ;;  %v2307_v63 = vld [vmem:[%s2854_s6 + $0x78] sm:$0xff]  }
  0x13   : > { %v2304_v52 = vld [vmem:[%s2854_s6 + $0x60] sm:$0xff]   ;;  %602 = vst [vmem:[#allocation3] sm:$0x8] %v601_v61  ;;  %v604_v1 = vsel %vm2515_vm8, 0, %v603_v62  ;;  %v2319_v3 = vld [vmem:[%s2853_s5 + $0x48] sm:$0xff]   ;;  %v2323_v5 = vld [vmem:[%s2853_s5 + $0x58] sm:$0xff]  }
  0x14   : > { %2036 = vmatmul.mubr.msk.bf16.vlgmr.msra.gmra.mrb[0].mxu0 %vm426_vm2, %v424_v4  ;;  %2046 = vmatpush3.bf16.msra.mxu1 %v2277_v8  ;;  %605 = vst [vmem:[#allocation3 + $0x4] sm:$0x4] %v604_v1  ;;  %v2317_v2 = vld [vmem:[%s2853_s5 + $0x40] sm:$0xff]   ;;  %v2321_v4 = vld [vmem:[%s2853_s5 + $0x50] sm:$0xff]   ;;  %v2327_v7 = vld [vmem:[%s2853_s5 + $0x68] sm:$0xff]  }
  0x15   : > { %2095 = vmatprep.mubr.msk.bf16.mxu0 %vm2369_vm0, %v2368_v0  ;;  %2047 = vmatprep.subr.bf16.mxu1 %v2368_v0  ;;  %v2325_v6 = vld [vmem:[%s2853_s5 + $0x60] sm:$0xff]   ;;  %v2329_v8 = vld [vmem:[%s2853_s5 + $0x70] sm:$0xff]   ;;  %v2341_v62 = vld [vmem:[%s2857_s9 + $0x78] sm:$0xff]  }
  0x16   : > { %2080 = vmatpush3.bf16.msra.mxu0 %v2282_v13  ;;  %v1752_v13 = vld [vmem:[%s2852_s4] ss:$0 sm:$0xff]  ;;  %v1315_v61 = vld [vmem:[#allocation4 + $0x4] sm:$0x4] }
  0x17   : > { %2081 = vmatprep.subr.bf16.mxu0 %v2368_v0  ;;  %v1877_v15 = vld [vmem:[%s2855_s7] ss:$0 sm:$0xff] }
  0x18   : > { %2048 = vmatpush3.bf16.msra.mxu1 %v2278_v9  ;;  %v2529_v25 = vld [vmem:[#allocation2 + $0x4] sm:$0x3]  ;;  %v2331_v9 = vld [vmem:[%s2853_s5 + $0x78] sm:$0xff]  }
  0x19   : > { %2049 = vmatprep.subr.bf16.mxu1 %v2368_v0  ;;  %v1785_v26 = vcombine.low %v608_v24, %v2529_v25  ;;  %v2299_v40 = vld [vmem:[#allocation2 + $0x4] ss:$0 sps:$4 sm:$0x77]   ;;  %v2310_v24 = vld [vmem:[%s2854_s6 + $0x8] sm:$0xff]  }
  0x1a   : > { %2082 = vmatpush3.bf16.msra.mxu0 %v2283_v14  ;;  %v857_v42 = vshll.u32 %v2299_v40, 16  ;;  %v855_v44 = vshrl.u32 %v2299_v40, 16  ;;  %v2320_v40 = vld [vmem:[%s2854_s6 + $0x88] sm:$0xff]  }
  0x1b   : > { %2083 = vmatprep.subr.bf16.mxu0 %v2368_v0  ;;  %v737_v28 = vshrl.u32 %v1785_v26, 16  ;;  %v740_v29 = vshll.u32 %v1785_v26, 16  ;;  %v2312_v26 = vld [vmem:[%s2854_s6 + $0x18] sm:$0xff]  }
  0x1c   : > { %2050 = vmatpush3.bf16.msra.mxu1 %v2279_v10  ;;  %v859_v45 = vrot.slane %v857_v42, 1  ;;  %v2334_v10 = vld [vmem:[%s2857_s9 + $0x40] sm:$0xff]   ;;  %v2324_v42 = vld [vmem:[%s2854_s6 + $0x98] sm:$0xff]  }
  0x1d   : > { %2051 = vmatprep.subr.bf16.mxu1 %v2368_v0  ;;  %v739_v31 = vrot.slane %v737_v28, 3  ;;  %v742_v32 = vrot.slane %v740_v29, 4  ;;  %v951_v28 = vld [vmem:[#allocation3] sm:$0x8] }
  0x1e   : > { %2084 = vmatpush3.bf16.msra.mxu0 %v2284_v18  ;;  %v860_v47 = vor.u32 %v859_v45, %v855_v44  ;;  %v2314_v29 = vld [vmem:[%s2854_s6 + $0x28] sm:$0xff]  }
  0x1f   : > { %2085 = vmatprep.subr.bf16.mxu0 %v2368_v0  ;;  %v743_v34 = vor.u32 %v742_v32, %v739_v31  ;;  %v2337_v31 = vld [vmem:[%s2857_s9 + $0x58] sm:$0xff]   ;;  %v2315_v32 = vld [vmem:[%s2854_s6 + $0x30] sm:$0xff]   ;;  %v2328_v44 = vld [vmem:[%s2854_s6 + $0xa8] sm:$0xff]  }
  0x20   : > { %2052 = vmatpush3.bf16.msra.mxu1 %v2280_v11  ;;  %v2335_v11 = vld [vmem:[%s2857_s9 + $0x48] sm:$0xff]  }
  0x21   : > { %2053 = vmatprep.subr.bf16.mxu1 %v2368_v0 }
  0x22   : > { %2086 = vmatpush3.bf16.msra.mxu0 %v2285_v22  ;;  %v2309_v22 = vld [vmem:[%s2854_s6] sm:$0xff]  }
  0x23   : > { %2087 = vmatprep.subr.bf16.mxu0 %v2368_v0 }
  0x24   : > { %2054 = vmatpush3.bf16.msra.mxu1 %v2281_v12  ;;  %v2336_v12 = vld [vmem:[%s2857_s9 + $0x50] sm:$0xff]  }
  0x25   : > { %2059 = vmatprep.subr.bf16.mxu1 %v2368_v0 }
  0x26   : > { %2088 = vmatpush3.bf16.msra.mxu0 %v2286_v23 }
  0x27   : > { %2089 = vmatprep.subr.bf16.mxu0 %v2368_v0 }
  0x2a   : > { %2090 = vmatpush3.bf16.msra.mxu0 %v2287_v27  ;;  %v2313_v27 = vld [vmem:[%s2854_s6 + $0x20] sm:$0xff]  }
  0x2b   : > { %2091 = vmatprep.subr.bf16.mxu0 %v2368_v0 }
  0x2e   : > { %2092 = vmatpush3.bf16.msra.mxu0 %v2288_v30 }
  0x2f   : > { %2093 = vmatprep.subr.bf16.mxu0 %v2368_v0 }
  0x32   : > { %2094 = vmatpush3.bf16.msra.mxu0 %v2289_v33 }
  0x33   : > { %2099 = vmatprep.subr.bf16.mxu0 %v2368_v0 }
  0x35   : > { %2096 = vmatmul.mubr.bf16.vlgmr.msra.gmra.mrb[4].mxu0 %v743_v34 }
  0x36   : > { %2100 = vmatpush3.bf16.msra.mxu0 %v2291_v35  ;;  %2115 = vmatprep.mubr.msk.bf16.mxu0 %vm2369_vm0, %v2368_v0  ;;  %v2316_v35 = vld [vmem:[%s2854_s6 + $0x38] sm:$0xff]  }
  0x37   : > { %2101 = vmatprep.subr.bf16.mxu0 %v2368_v0 }
  0x3a   : > { %2102 = vmatpush3.bf16.msra.mxu0 %v2292_v36 }
  0x3b   : > { %2103 = vmatprep.subr.bf16.mxu0 %v2368_v0 }
  0x3e   : > { %2104 = vmatpush3.bf16.msra.mxu0 %v2293_v37 }
  0x3f   : > { %2105 = vmatprep.subr.bf16.mxu0 %v2368_v0 }
  0x42   : > { %2106 = vmatpush3.bf16.msra.mxu0 %v2294_v38  ;;  %v2318_v38 = vld [vmem:[%s2854_s6 + $0x80] sm:$0xff]  }
  0x43   : > { %2107 = vmatprep.subr.bf16.mxu0 %v2368_v0 }
  0x46   : > { %2108 = vmatpush3.bf16.msra.mxu0 %v2295_v39 }
  0x47   : > { %2109 = vmatprep.subr.bf16.mxu0 %v2368_v0 }
  0x4a   : > { %2110 = vmatpush3.bf16.msra.mxu0 %v2296_v41  ;;  %v2322_v41 = vld [vmem:[%s2854_s6 + $0x90] sm:$0xff]  }
  0x4b   : > { %2111 = vmatprep.subr.bf16.mxu0 %v2368_v0 }
  0x4e   : > { %2112 = vmatpush3.bf16.msra.mxu0 %v2297_v43  ;;  %v2326_v43 = vld [vmem:[%s2854_s6 + $0xa0] sm:$0xff]  }
  0x4f   : > { %2113 = vmatprep.subr.bf16.mxu0 %v2368_v0 }
  0x52   : > { %2114 = vmatpush3.bf16.msra.mxu0 %v2298_v46  ;;  %v2330_v46 = vld [vmem:[%s2854_s6 + $0xb0] sm:$0xff]  }
  0x53   : > { %2119 = vmatprep.subr.bf16.mxu0 %v2368_v0 }
  0x55   : > { %2116 = vmatmul.mubr.bf16.vlgmr.msra.gmra.mrb[4].mxu0 %v860_v47 }
  0x56   : > { %2120 = vmatpush3.bf16.msra.mxu0 %v2300_v48  ;;  %2135 = vmatprep.mubr.msk.bf16.mxu0 %vm2369_vm0, %v2368_v0  ;;  %v2332_v48 = vld [vmem:[%s2854_s6 + $0xb8] sm:$0xff]  }
  0x57   : > { %2121 = vmatprep.subr.bf16.mxu0 %v2368_v0 }
  0x5a   : > { %2122 = vmatpush3.bf16.msra.mxu0 %v2301_v49 }
  0x5b   : > { %2123 = vmatprep.subr.bf16.mxu0 %v2368_v0 }
  0x5e   : > { %2124 = vmatpush3.bf16.msra.mxu0 %v2302_v50 }
  0x5f   : > { %2125 = vmatprep.subr.bf16.mxu0 %v2368_v0 }
  0x62   : > { %2126 = vmatpush3.bf16.msra.mxu0 %v2303_v51 }
  0x63   : > { %2127 = vmatprep.subr.bf16.mxu0 %v2368_v0 }
  0x66   : > { %2128 = vmatpush3.bf16.msra.mxu0 %v2304_v52 }
  0x67   : > { %2129 = vmatprep.subr.bf16.mxu0 %v2368_v0 }
  0x6a   : > { %2130 = vmatpush3.bf16.msra.mxu0 %v2305_v58  ;;  %v2340_v58 = vld [vmem:[%s2857_s9 + $0x70] sm:$0xff]  }
  0x6b   : > { %2131 = vmatprep.subr.bf16.mxu0 %v2368_v0 }
  0x6e   : > { %2132 = vmatpush3.bf16.msra.mxu0 %v2306_v59  ;;  %v1312_v59 = vld [vmem:[#allocation4] sm:$0x8] }
  0x6f   : > { %2133 = vmatprep.subr.bf16.mxu0 %v2368_v0  ;;  %v1313_v60 = vsel %vm2505_vm5, 0, %v1312_v59 }
  0x70   : > { %1314 = vst [vmem:[#allocation4] sm:$0x8] %v1313_v60 }
  0x72   : > { %2134 = vmatpush3.bf16.msra.mxu0 %v2307_v63  ;;  %v1316_v63 = vsel %vm2515_vm8, 0, %v1315_v61 }
  0x73   : > { %2139 = vmatprep.subr.bf16.mxu0 %v2368_v0  ;;  %1317 = vst [vmem:[#allocation4 + $0x4] sm:$0x4] %v1316_v63 }
  0xe7   : > { %v468_v53 = vpop.f32.mrb[0].mxu0 }
  0xe8   : > { %v474_v54 = vpack.c.bf16 %v468_v53, %v468_v53  ;;  %v2037_v55 = vpop.f32.mrb[1].mxu0 }
  0xe9   : > { %v471_v56 = vpop.f32.mrb[2].mxu0 }
  0xea   : > { %v2038_v57 = vpop.f32.mrb[3].mxu0  ;;  %2056 = vmatmul.mubr.bf16.vlgmr.msra.gmra.mrb[0].mxu1 %v474_v54  ;;  %v2338_v56 = vld [vmem:[%s2857_s9 + $0x60] sm:$0xff]  }
  0xeb   : > { %2075 = vmatprep.mubr.msk.bf16.mxu1 %vm2369_vm0, %v2368_v0  ;;  %2060 = vmatpush3.bf16.msra.mxu1 %v2317_v2  ;;  %v2339_v57 = vld [vmem:[%s2857_s9 + $0x68] sm:$0xff]  }
  0xec   : > { %2061 = vmatprep.subr.bf16.mxu1 %v2368_v0 }
  0xef   : > { %2062 = vmatpush3.bf16.msra.mxu1 %v2319_v3 }
  0xf0   : > { %2063 = vmatprep.subr.bf16.mxu1 %v2368_v0 }
  0xf3   : > { %2064 = vmatpush3.bf16.msra.mxu1 %v2321_v4  ;;  %v1878_v4 = vld [vmem:[%s2856_s8] ss:$0 sm:$0xff] }
  0xf4   : > { %2065 = vmatprep.subr.bf16.mxu1 %v2368_v0 }
  0xf7   : > { %2066 = vmatpush3.bf16.msra.mxu1 %v2323_v5 }
  0xf8   : > { %2067 = vmatprep.subr.bf16.mxu1 %v2368_v0 }
  0xfb   : > { %2068 = vmatpush3.bf16.msra.mxu1 %v2325_v6 }
  0xfc   : > { %2069 = vmatprep.subr.bf16.mxu1 %v2368_v0 }
  0xff   : > { %2070 = vmatpush3.bf16.msra.mxu1 %v2327_v7 }
 0x100   : > { %2071 = vmatprep.subr.bf16.mxu1 %v2368_v0 }
 0x103   : > { %2072 = vmatpush3.bf16.msra.mxu1 %v2329_v8 }
 0x104   : > { %2073 = vmatprep.subr.bf16.mxu1 %v2368_v0 }
 0x107   : > { %2074 = vmatpush3.bf16.msra.mxu1 %v2331_v9 }
 0x108   : > { %2179 = vmatprep.subr.bf16.mxu1 %v2368_v0 }
 0x10a   : > { %2076 = vmatmul.mubr.bf16.vlgmr.msra.gmra.mrb[4].mxu1 %v2529_v25  ;;  %v2311_v25 = vld [vmem:[%s2854_s6 + $0x10] sm:$0xff]  }
 0x10b   : > { %2195 = vmatprep.mubr.msk.bf16.mxu1 %vm2369_vm0, %v2368_v0  ;;  %2180 = vmatpush3.bf16.msra.mxu1 %v2334_v10  ;;  %v2343_v10 = vld [vmem:[%s2857_s9] sm:$0xff]  }
 0x10c   : > { %2181 = vmatprep.subr.bf16.mxu1 %v2368_v0 }
 0x10f   : > { %2182 = vmatpush3.bf16.msra.mxu1 %v2335_v11 }
 0x110   : > { %2183 = vmatprep.subr.bf16.mxu1 %v2368_v0 }
 0x113   : > { %2184 = vmatpush3.bf16.msra.mxu1 %v2336_v12  ;;  %v2344_v12 = vld [vmem:[%s2857_s9 + $0x8] sm:$0xff]  }
 0x114   : > { %2185 = vmatprep.subr.bf16.mxu1 %v2368_v0 }
 0x117   : > { %2186 = vmatpush3.bf16.msra.mxu1 %v2337_v31  ;;  %v2354_v31 = vld [vmem:[%s2857_s9 + $0x98] sm:$0xff]  }
 0x118   : > { %2187 = vmatprep.subr.bf16.mxu1 %v2368_v0 }
 0x11b   : > { %2188 = vmatpush3.bf16.msra.mxu1 %v2338_v56 }
 0x11c   : > { %2189 = vmatprep.subr.bf16.mxu1 %v2368_v0 }
 0x11f   : > { %2190 = vmatpush3.bf16.msra.mxu1 %v2339_v57 }
 0x120   : > { %2191 = vmatprep.subr.bf16.mxu1 %v2368_v0 }
 0x123   : > { %2192 = vmatpush3.bf16.msra.mxu1 %v2340_v58 }
 0x124   : > { %2193 = vmatprep.subr.bf16.mxu1 %v2368_v0 }
 0x127   : > { %2194 = vmatpush3.bf16.msra.mxu1 %v2341_v62 }
 0x128   : > { %2199 = vmatprep.subr.bf16.mxu1 %v2368_v0 }
 0x1bd   : > { %v580_v14 = vpop.f32.mrb[0].mxu1 }
 0x1be   : > { %v581_v16 = vadd.f32 %v1752_v13, %v580_v14  ;;  %v2057_v17 = vpop.f32.mrb[1].mxu1  ;;  %v2345_v13 = vld [vmem:[%s2857_s9 + $0x10] sm:$0xff]   ;;  %v2346_v14 = vld [vmem:[%s2857_s9 + $0x18] sm:$0xff]  }
 0x1bf   : > { %v583_v18 = vpop.f32.mrb[2].mxu1  ;;  %v1320_v17 = vld [vmem:[#allocation4] sm:$0x8] }
 0x1c0   : > { %v606_v20 = vpack.c.bf16 %v581_v16, %v581_v16  ;;  %v2058_v21 = vpop.f32.mrb[3].mxu1  ;;  %v2347_v16 = vld [vmem:[%s2857_s9 + $0x20] sm:$0xff]   ;;  %v2348_v18 = vld [vmem:[%s2857_s9 + $0x28] sm:$0xff]  }
 0x1c1   : > { %v2349_v21 = vld [vmem:[%s2857_s9 + $0x30] sm:$0xff]  }
 0x1c2   : > { %607 = vst [vmem:[#allocation3 + $0x4] sm:$0x3] %v606_v20 }
 0x1c9   : > { %v952_v23 = vld [vmem:[#allocation3 + $0x4] sm:$0x3] }
 0x1ca   : > { %2136 = vmatmul.mubr.bf16.vlgmr.msra.gmra.mrb[4].mxu0 %v952_v23  ;;  %v1843_v30 = vcombine.low %v951_v28, %v952_v23  ;;  %v2333_v45 = vld [vmem:[#allocation3 + $0x4] ss:$0 sps:$4 sm:$0x77]  }
 0x1cb   : > { %2140 = vmatpush3.bf16.msra.mxu0 %v2309_v22  ;;  %2155 = vmatprep.mubr.msk.bf16.mxu0 %vm2369_vm0, %v2368_v0  ;;  %v1200_v47 = vshll.u32 %v2333_v45, 16  ;;  %v1198_v50 = vshrl.u32 %v2333_v45, 16 }
 0x1cc   : > { %2141 = vmatprep.subr.bf16.mxu0 %v2368_v0  ;;  %v1080_v33 = vshrl.u32 %v1843_v30, 16  ;;  %v1083_v34 = vshll.u32 %v1843_v30, 16  ;;  %v2353_v30 = vld [vmem:[%s2857_s9 + $0x90] sm:$0xff]  }
 0x1cd   : > { %v1202_v49 = vrot.slane %v1200_v47, 1 }
 0x1ce   : > { %v1082_v36 = vrot.slane %v1080_v33, 3  ;;  %v1085_v37 = vrot.slane %v1083_v34, 4  ;;  %v2356_v33 = vld [vmem:[%s2857_s9 + $0xa8] sm:$0xff]  }
 0x1cf   : > { %2142 = vmatpush3.bf16.msra.mxu0 %v2310_v24  ;;  %v1203_v51 = vor.u32 %v1202_v49, %v1198_v50  ;;  %v2350_v24 = vld [vmem:[%s2857_s9 + $0x38] sm:$0xff]  }
 0x1d0   : > { %2143 = vmatprep.subr.bf16.mxu0 %v2368_v0  ;;  %v1086_v39 = vor.u32 %v1085_v37, %v1082_v36  ;;  %v2358_v37 = vld [vmem:[%s2857_s9 + $0xb8] sm:$0xff]  }
 0x1d3   : > { %2144 = vmatpush3.bf16.msra.mxu0 %v2311_v25 }
 0x1d4   : > { %2145 = vmatprep.subr.bf16.mxu0 %v2368_v0 }
 0x1d7   : > { %2146 = vmatpush3.bf16.msra.mxu0 %v2312_v26 }
 0x1d8   : > { %2147 = vmatprep.subr.bf16.mxu0 %v2368_v0 }
 0x1db   : > { %2148 = vmatpush3.bf16.msra.mxu0 %v2313_v27  ;;  %v2351_v27 = vld [vmem:[%s2857_s9 + $0x80] sm:$0xff]  }
 0x1dc   : > { %2149 = vmatprep.subr.bf16.mxu0 %v2368_v0 }
 0x1dd   : > { %v725_v52 = vpop.f32.mrb[4].mxu1 }
 0x1de   : > { %v2077_v53 = vpop.f32.mrb[5].mxu1 }
 0x1df   : > { %2150 = vmatpush3.bf16.msra.mxu0 %v2314_v29  ;;  %v728_v54 = vpop.f32.mrb[6].mxu1  ;;  %v2352_v29 = vld [vmem:[%s2857_s9 + $0x88] sm:$0xff]  }
 0x1e0   : > { %2151 = vmatprep.subr.bf16.mxu0 %v2368_v0  ;;  %v2078_v55 = vpop.f32.mrb[7].mxu1 }
 0x1e3   : > { %2152 = vmatpush3.bf16.msra.mxu0 %v2315_v32  ;;  %v2355_v32 = vld [vmem:[%s2857_s9 + $0xa0] sm:$0xff]  }
 0x1e4   : > { %2153 = vmatprep.subr.bf16.mxu0 %v2368_v0 }
 0x1e7   : > { %2154 = vmatpush3.bf16.msra.mxu0 %v2316_v35  ;;  %v2357_v35 = vld [vmem:[%s2857_s9 + $0xb0] sm:$0xff]  }
 0x1e8   : > { %2159 = vmatprep.subr.bf16.mxu0 %v2368_v0 }
 0x1ea   : > { %2156 = vmatmul.mubr.bf16.vlgmr.msra.gmra.mrb[4].mxu0 %v1086_v39 }
 0x1eb   : > { %2160 = vmatpush3.bf16.msra.mxu0 %v2318_v38  ;;  %2175 = vmatprep.mubr.msk.bf16.mxu0 %vm2369_vm0, %v2368_v0 }
 0x1ec   : > { %2161 = vmatprep.subr.bf16.mxu0 %v2368_v0 }
 0x1ef   : > { %2162 = vmatpush3.bf16.msra.mxu0 %v2320_v40 }
 0x1f0   : > { %2163 = vmatprep.subr.bf16.mxu0 %v2368_v0 }
 0x1f3   : > { %2164 = vmatpush3.bf16.msra.mxu0 %v2322_v41  ;;  %v1937_v41 = vld [vmem:[%s2858_s10] ss:$0 sm:$0xff] }
 0x1f4   : > { %2165 = vmatprep.subr.bf16.mxu0 %v2368_v0 }
 0x1f7   : > { %2166 = vmatpush3.bf16.msra.mxu0 %v2324_v42 }
 0x1f8   : > { %2167 = vmatprep.subr.bf16.mxu0 %v2368_v0 }
 0x1fb   : > { %2168 = vmatpush3.bf16.msra.mxu0 %v2326_v43  ;;  %v1938_v43 = vld [vmem:[%s2859_s11] ss:$0 sm:$0xff] }
 0x1fc   : > { %2169 = vmatprep.subr.bf16.mxu0 %v2368_v0 }
 0x1ff   : > { %2170 = vmatpush3.bf16.msra.mxu0 %v2328_v44 }
 0x200   : > { %2171 = vmatprep.subr.bf16.mxu0 %v2368_v0 }
 0x203   : > { %2172 = vmatpush3.bf16.msra.mxu0 %v2330_v46 }
 0x204   : > { %2173 = vmatprep.subr.bf16.mxu0 %v2368_v0 }
 0x207   : > { %2174 = vmatpush3.bf16.msra.mxu0 %v2332_v48 }
 0x20a   : > { %2176 = vmatmul.mubr.bf16.vlgmr.msra.gmra.mrb[4].mxu0 %v1203_v51 }
 0x2dd   : > { %v1287_v1 = vpop.f32.mrb[4].mxu0 }
 0x2de   : > { %v2239_v2 = vadd.f32 %v1287_v1, %v725_v52  ;;  %v2177_v3 = vpop.f32.mrb[5].mxu0 }
 0x2df   : > { %v1290_v5 = vpop.f32.mrb[6].mxu0 }
 0x2e0   : > { %v1302_v19 = vmul.f32 %v2239_v2, %v1877_v15  ;;  %v2178_v6 = vpop.f32.mrb[7].mxu0 }
 0x2e2   : > { %v1310_v7 = vadd.f32 %v1878_v4, %v1302_v19 }
 0x2e4   : > { %v1311_v8 = vmax.f32 %v1310_v7, 0.0 }
 0x2e6   : > { %v1318_v9 = vpack.c.bf16 %v1311_v8, %v1311_v8 }
 0x2e8   : > { %1319 = vst [vmem:[#allocation4 + $0x4] sm:$0x3] %v1318_v9 }
 0x2ef   : > { %v1321_v11 = vld [vmem:[#allocation4 + $0x4] sm:$0x3] }
 0x2f0   : > { %2196 = vmatmul.mubr.bf16.vlgmr.msra.gmra.mrb[8].mxu1 %v1321_v11  ;;  %v1903_v20 = vcombine.low %v1320_v17, %v1321_v11  ;;  %v2359_v34 = vld [vmem:[#allocation4 + $0x4] ss:$0 sps:$4 sm:$0x77]  }
 0x2f1   : > { %2200 = vmatpush3.bf16.msra.mxu1 %v2343_v10  ;;  %2215 = vmatprep.mubr.msk.bf16.mxu1 %vm2369_vm0, %v2368_v0  ;;  %v1569_v36 = vshll.u32 %v2359_v34, 16  ;;  %v1567_v39 = vshrl.u32 %v2359_v34, 16 }
 0x2f2   : > { %2201 = vmatprep.subr.bf16.mxu1 %v2368_v0  ;;  %v1449_v22 = vshrl.u32 %v1903_v20, 16  ;;  %v1452_v23 = vshll.u32 %v1903_v20, 16 }
 0x2f3   : > { %v1571_v38 = vrot.slane %v1569_v36, 1 }
 0x2f4   : > { %v1451_v25 = vrot.slane %v1449_v22, 3  ;;  %v1454_v26 = vrot.slane %v1452_v23, 4 }
 0x2f5   : > { %2202 = vmatpush3.bf16.msra.mxu1 %v2344_v12  ;;  %v1572_v40 = vor.u32 %v1571_v38, %v1567_v39 }
 0x2f6   : > { %2203 = vmatprep.subr.bf16.mxu1 %v2368_v0  ;;  %v1455_v28 = vor.u32 %v1454_v26, %v1451_v25 }
 0x2f9   : > { %2204 = vmatpush3.bf16.msra.mxu1 %v2345_v13 }
 0x2fa   : > { %2205 = vmatprep.subr.bf16.mxu1 %v2368_v0 }
 0x2fd   : > { %2206 = vmatpush3.bf16.msra.mxu1 %v2346_v14 }
 0x2fe   : > { %2207 = vmatprep.subr.bf16.mxu1 %v2368_v0 }
 0x301   : > { %2208 = vmatpush3.bf16.msra.mxu1 %v2347_v16 }
 0x302   : > { %2209 = vmatprep.subr.bf16.mxu1 %v2368_v0 }
 0x305   : > { %2210 = vmatpush3.bf16.msra.mxu1 %v2348_v18 }
 0x306   : > { %2211 = vmatprep.subr.bf16.mxu1 %v2368_v0 }
 0x309   : > { %2212 = vmatpush3.bf16.msra.mxu1 %v2349_v21 }
 0x30a   : > { %2213 = vmatprep.subr.bf16.mxu1 %v2368_v0 }
 0x30d   : > { %2214 = vmatpush3.bf16.msra.mxu1 %v2350_v24 }
 0x30e   : > { %2219 = vmatprep.subr.bf16.mxu1 %v2368_v0 }
 0x310   : > { %2216 = vmatmul.mubr.bf16.vlgmr.msra.gmra.mrb[8].mxu1 %v1455_v28 }
 0x311   : > { %2220 = vmatpush3.bf16.msra.mxu1 %v2351_v27  ;;  %2235 = vmatprep.mubr.msk.bf16.mxu1 %vm2369_vm0, %v2368_v0 }
 0x312   : > { %2221 = vmatprep.subr.bf16.mxu1 %v2368_v0 }
 0x315   : > { %2222 = vmatpush3.bf16.msra.mxu1 %v2352_v29 }
 0x316   : > { %2223 = vmatprep.subr.bf16.mxu1 %v2368_v0 }
 0x319   : > { %2224 = vmatpush3.bf16.msra.mxu1 %v2353_v30 }
 0x31a   : > { %2225 = vmatprep.subr.bf16.mxu1 %v2368_v0 }
 0x31d   : > { %2226 = vmatpush3.bf16.msra.mxu1 %v2354_v31 }
 0x31e   : > { %2227 = vmatprep.subr.bf16.mxu1 %v2368_v0 }
 0x321   : > { %2228 = vmatpush3.bf16.msra.mxu1 %v2355_v32 }
 0x322   : > { %2229 = vmatprep.subr.bf16.mxu1 %v2368_v0 }
 0x325   : > { %2230 = vmatpush3.bf16.msra.mxu1 %v2356_v33 }
 0x326   : > { %2231 = vmatprep.subr.bf16.mxu1 %v2368_v0 }
 0x329   : > { %2232 = vmatpush3.bf16.msra.mxu1 %v2357_v35 }
 0x32a   : > { %2233 = vmatprep.subr.bf16.mxu1 %v2368_v0 }
 0x32d   : > { %2234 = vmatpush3.bf16.msra.mxu1 %v2358_v37 }
 0x330   : > { %2236 = vmatmul.mubr.bf16.vlgmr.msra.gmra.mrb[8].mxu1 %v1572_v40 }
 0x403   : > { %v1656_v42 = vpop.f32.mrb[8].mxu1 }
 0x404   : > { %v1670_v44 = vmul.f32 %v1937_v41, %v1656_v42  ;;  %v2237_v45 = vpop.f32.mrb[9].mxu1 }
 0x405   : > { %v1659_v46 = vpop.f32.mrb[10].mxu1 }
 0x406   : > { %v1678_v47 = vadd.f32 %v1938_v43, %v1670_v44  ;;  %v2238_v48 = vpop.f32.mrb[11].mxu1 }
 0x408   : > { %v1679_v0 = vmax.f32 %v1678_v47, 0.0 }
 0x40a   : > { %v1680_v49 = vpack.c.bf16 %v1679_v0, %v1679_v0 }
 0x40c   : > { %1681 = vst [vmem:[%s422_s23] sm:$0x3] %v1680_v49 }
 0x40d PF: > { %s22_s21 = sadd.s32 1, %s2366_s21  }
 0x40e   : > { %p19_p4 = scmp.ge.s32.totalorder %s22_s21, 4  }
 0x410   :  { %21 = sbr.rel (!%p19_p4) target bundleno = 1 (0x1), region = 107 }

// kernel: unet_forward.16
= control target key start
LH: loop header
LB: loop body
LE: loop exit
PB: predicated region body
PF: predicated region fallthrough
CT: control target
= control target key end

     0   :  { %s2626_s21 = smov 0   ;;  %s3050_s0 = inlined_call_operand.vmem [shape: bf16[2,8,128], index: 0, kind: input, shape index: {}]   ;;  %s3051_s1 = inlined_call_operand.vmem [shape: bf16[2,16,128], index: 1, kind: input, shape index: {}]   ;;  %s3052_s2 = inlined_call_operand.vmem [shape: bf16[16,8], index: 2, kind: input, shape index: {}]   ;;  %s3053_s3 = inlined_call_operand.vmem [shape: bf16[128,128], index: 3, kind: input, shape index: {}]   ;;  %s3054_s4 = inlined_call_operand.vmem [shape: f32[1,128], index: 4, kind: input, shape index: {}]   ;;  %s3055_s5 = inlined_call_operand.vmem [shape: bf16[3,128,128], index: 5, kind: input, shape index: {}]   ;;  %s3056_s6 = inlined_call_operand.vmem [shape: bf16[3,128,128], index: 6, kind: input, shape index: {}]   ;;  %s3057_s7 = inlined_call_operand.vmem [shape: f32[1,128], index: 7, kind: input, shape index: {}]   ;;  %s3058_s8 = inlined_call_operand.vmem [shape: f32[1,128], index: 8, kind: input, shape index: {}]   ;;  %s3059_s9 = inlined_call_operand.vmem [shape: bf16[3,128,128], index: 9, kind: input, shape index: {}]   ;;  %s3060_s10 = inlined_call_operand.vmem [shape: f32[1,128], index: 10, kind: input, shape index: {}]   ;;  %s3061_s11 = inlined_call_operand.vmem [shape: f32[1,128], index: 11, kind: input, shape index: {}]   ;;  %s3062_s12 = inlined_call_operand.vmem [shape: bf16[2,16,128], index: 12, kind: output, shape index: {}]  }
   0x1 LB: > { %s1893_s22 = sadd.s32 4294967295, %s2557_s21   ;;  %p1897_p0 = scmp.ge.s32.totalorder %s2557_s21, 1  ;;  %s2557_s21 = sphi %s2626_s21, %s22_s21  }
   0x2   : > { %p371_p1 = scmp.lt.s32.totalorder %s2557_s21, 3 }
   0x4   : > { %p372_p2 = pnand %p1897_p0, %p371_p1 }
   0x5   : > { %p417_p3 = scmp.lt.s32.totalorder (!%p372_p2), %s1893_s22, 1  ;;  %v2559_v0 = vmov (!%p372_p2), 0.0   ;;  %vm2560_vm0 = vmmov (!%p372_p2), 0   ;;  %v2457_v1 = vld [vmem:[%s3053_s3] sm:$0xff] (!%p372_p2)   ;;  %vm444_vm1 = vcmask (!%p372_p2), 1043456   ;;  %v2458_v2 = vld [vmem:[%s3053_s3 + $0x8] sm:$0xff] (!%p372_p2)  }
   0x6   : > { %375 = sbr.rel (%p372_p2) target bundleno = 1050 (0x41a), region = 68  ;;  %2214 = vmatprep.subr.bf16.mxu0 (!%p372_p2), %v2559_v0  ;;  %2216 = vmatprep.mubr.msk.bf16.mxu0 (!%p372_p2), %vm2560_vm0, %v2559_v0  ;;  %v2456_v6 = vld [vmem:[%s3052_s2] sm:$0xff] (!%p372_p2)   ;;  %vm440_vm2 = vcmask (!%p372_p2), 64512   ;;  %v2459_v7 = vld [vmem:[%s3053_s3 + $0x10] sm:$0xff] (!%p372_p2)   ;;  %v2460_v8 = vld [vmem:[%s3053_s3 + $0x18] sm:$0xff] (!%p372_p2)   ;;  %vm604_vm3 = vcmask (!%p372_p2), 1043459  }
   0x7   : > { %2220 = vmatprep.subr.bf16.mxu1 (!%p372_p2), %v2559_v0  ;;  %2236 = vmatprep.mubr.msk.bf16.mxu1 (!%p372_p2), %vm2560_vm0, %v2559_v0  ;;  %v2461_v9 = vld [vmem:[%s3053_s3 + $0x20] sm:$0xff] (!%p372_p2)   ;;  %v2462_v10 = vld [vmem:[%s3053_s3 + $0x28] sm:$0xff] (!%p372_p2)   ;;  %v2463_v11 = vld [vmem:[%s3053_s3 + $0x30] sm:$0xff] (!%p372_p2)   ;;  %vm605_vm4 = vsmask.f32 (!%p372_p2), 7950  ;;  %vm610_vm6 = vcmask (!%p372_p2), 1040384  }
   0x8   : > { %2221 = vmatpush3.bf16.msra.mxu1 (!%p372_p2), %v2457_v1  ;;  %v2464_v12 = vld [vmem:[%s3053_s3 + $0x38] sm:$0xff] (!%p372_p2)   ;;  %v2465_v13 = vld [vmem:[%s3055_s5] sm:$0xff] (!%p372_p2)   ;;  %v2466_v14 = vld [vmem:[%s3055_s5 + $0x8] sm:$0xff] (!%p372_p2)   ;;  %vm611_vm7 = vsmask.f32 (!%p372_p2), 256 }
   0x9   : > { %2222 = vmatprep.subr.bf16.mxu1 (!%p372_p2), %v2559_v0  ;;  %vm2696_vm5 = vmand (!%p372_p2), %vm604_vm3, %vm605_vm4  ;;  %v607_v16 = vld [vmem:[#allocation2] sm:$0x8] (!%p372_p2)  ;;  %v2467_v18 = vld [vmem:[%s3055_s5 + $0x10] sm:$0xff] (!%p372_p2)   ;;  %vm769_vm9 = vsmask.f32 (!%p372_p2), 4352 }
   0xa   : > { %v608_v17 = vsel (!%p372_p2), %vm2696_vm5, 0, %v607_v16  ;;  %vm2706_vm8 = vmand (!%p372_p2), %vm610_vm6, %vm611_vm7  ;;  %v613_v20 = vld [vmem:[#allocation2 + $0xc] sm:$0x1] (!%p372_p2)  ;;  %v2468_v22 = vld [vmem:[%s3055_s5 + $0x18] sm:$0xff] (!%p372_p2)   ;;  %vm905_vm10 = vsmask.f32 (!%p372_p2), 7424 }
   0xb   : > { %609 = vst [vmem:[#allocation2] sm:$0x8] (!%p372_p2), %v608_v17  ;;  %v614_v21 = vsel (!%p372_p2), %vm2706_vm8, 0, %v613_v20  ;;  %v2469_v26 = vld [vmem:[%s3055_s5 + $0x20] sm:$0xff] (!%p372_p2)   ;;  %v2470_v29 = vld [vmem:[%s3055_s5 + $0x28] sm:$0xff] (!%p372_p2)   ;;  %v2471_v34 = vld [vmem:[%s3055_s5 + $0x30] sm:$0xff] (!%p372_p2)  }
   0xc   : > { %2223 = vmatpush3.bf16.msra.mxu1 (!%p372_p2), %v2458_v2  ;;  %615 = vst [vmem:[#allocation2 + $0xc] sm:$0x1] (!%p372_p2), %v614_v21  ;;  %v2472_v39 = vld [vmem:[%s3055_s5 + $0x38] sm:$0xff] (!%p372_p2)   ;;  %v2475_v43 = vld [vmem:[%s3055_s5 + $0x80] sm:$0xff] (!%p372_p2)   ;;  %v2476_v44 = vld [vmem:[%s3055_s5 + $0x88] sm:$0xff] (!%p372_p2)  }
   0xd   : > { %s3068_s22 = smov (!%p417_p3, %s1893_s22), 1  ;;  %2224 = vmatprep.subr.bf16.mxu1 %v2559_v0  ;;  %v2477_v45 = vld [vmem:[%s3055_s5 + $0x90] sm:$0xff]   ;;  %v2478_v46 = vld [vmem:[%s3055_s5 + $0x98] sm:$0xff]   ;;  %v2479_v47 = vld [vmem:[%s3055_s5 + $0xa0] sm:$0xff]  }
   0xe   : > { %s1898_s25 = sshll.u32 %s3068_s22, 2  ;;  %s2109_s26 = sshll.u32 %s3068_s22, 3  ;;  %v2480_v49 = vld [vmem:[%s3055_s5 + $0xa8] sm:$0xff]   ;;  %v2481_v52 = vld [vmem:[%s3055_s5 + $0xb0] sm:$0xff]   ;;  %v2482_v56 = vld [vmem:[%s3055_s5 + $0xb8] sm:$0xff]  }
   0xf   : > { %s420_s13 = scalar_lea.vmem %s3050_s0, %s1898_s25  ;;  %s425_s16 = scalar_lea.vmem %s3051_s1, %s2109_s26  ;;  %v2485_v60 = vld [vmem:[%s3056_s6 + $0x40] sm:$0xff]   ;;  %v2486_v61 = vld [vmem:[%s3056_s6 + $0x48] sm:$0xff]   ;;  %v2487_v62 = vld [vmem:[%s3056_s6 + $0x50] sm:$0xff]  }
  0x10   : > { %v434_v3 = vld [vmem:[%s420_s13] sm:$0xf]  ;;  %2225 = vmatpush3.bf16.msra.mxu1 %v2459_v7  ;;  %v2488_v63 = vld [vmem:[%s3056_s6 + $0x58] sm:$0xff]   ;;  %v2490_v7 = vld [vmem:[%s3056_s6 + $0x68] sm:$0xff]   ;;  %s430_s24 = scalar_lea.vmem %s3062_s12, %s2109_s26 }
  0x11   : > { %v602_v4 = vld [vmem:[%s425_s16] sm:$0xff]   ;;  %v446_v5 = vsel %vm444_vm1, %v434_v3, 0  ;;  %2226 = vmatprep.subr.bf16.mxu1 %v2559_v0  ;;  %v2506_v16 = vld [vmem:[%s3055_s5 + $0x48] sm:$0xff]   ;;  %v2508_v17 = vld [vmem:[%s3055_s5 + $0x50] sm:$0xff]  }
  0x12   : > { %616 = vst [vmem:[#allocation2 + $0x4] sm:$0xff] %v602_v4   ;;  %2215 = vmatpush3.bf16.msra.mxu0 %v446_v5  ;;  %v634_v25 = vld [vmem:[#allocation2] sm:$0x8]  ;;  %v2514_v21 = vld [vmem:[%s3055_s5 + $0x68] sm:$0xff]  }
  0x13   : > { %2260 = vmatprep.subr.bf16.mxu0 %v2559_v0  ;;  %v2484_v50 = vld [vmem:[#allocation2 + $0xc] ss:$0 sps:$4 sm:$0x11]   ;;  %v2512_v20 = vld [vmem:[%s3055_s5 + $0x60] sm:$0xff]  }
  0x14   : > { %2227 = vmatpush3.bf16.msra.mxu1 %v2460_v8  ;;  %v914_v55 = vshll.u32 %v2484_v50, 16  ;;  %v618_v8 = vld [vmem:[#allocation3] sm:$0x8] }
  0x15   : > { %2217 = vmatmul.mubr.msk.bf16.vlgmr.msra.gmra.mrb[0].mxu0 %vm440_vm2, %v2456_v6  ;;  %2228 = vmatprep.subr.bf16.mxu1 %v2559_v0  ;;  %v2489_v6 = vld [vmem:[%s3056_s6 + $0x60] sm:$0xff]  }
  0x16   : > { %2276 = vmatprep.mubr.msk.bf16.mxu0 %vm2560_vm0, %v2559_v0  ;;  %2261 = vmatpush3.bf16.msra.mxu0 %v2465_v13  ;;  %v916_v58 = vrot.slane %v914_v55, 1 }
  0x17   : > { %2262 = vmatprep.subr.bf16.mxu0 %v2559_v0 }
  0x18   : > { %2229 = vmatpush3.bf16.msra.mxu1 %v2461_v9  ;;  %v619_v9 = vsel %vm2696_vm5, 0, %v618_v8  ;;  %v2517_v8 = vld [vmem:[%s3056_s6 + $0xb0] sm:$0xff]  }
  0x19   : > { %2230 = vmatprep.subr.bf16.mxu1 %v2559_v0  ;;  %v2717_v23 = vld [vmem:[#allocation2 + $0x4] sm:$0xf]  ;;  %v2719_v24 = vld [vmem:[#allocation2 + $0x8] sm:$0xf]  ;;  %620 = vst [vmem:[#allocation3] sm:$0x8] %v619_v9 }
  0x1a   : > { %2263 = vmatpush3.bf16.msra.mxu0 %v2466_v14  ;;  %v1941_v27 = vcombine.low %v634_v25, %v2717_v23  ;;  %v1942_v28 = vcombine.low %v2719_v24, %v2719_v24  ;;  %v2483_v48 = vld [vmem:[#allocation2 + $0x4] sm:$0xff]   ;;  %v2518_v25 = vld [vmem:[%s3055_s5 + $0x78] sm:$0xff]  }
  0x1b   : > { %2264 = vmatprep.subr.bf16.mxu0 %v2559_v0  ;;  %v909_v51 = vshll.u32 %v2483_v48, 16  ;;  %v907_v53 = vshrl.u32 %v2483_v48, 16  ;;  %v2504_v14 = vld [vmem:[%s3055_s5 + $0x40] sm:$0xff]   ;;  %v2524_v48 = vld [vmem:[%s3059_s9 + $0x50] sm:$0xff]  }
  0x1c   : > { %2231 = vmatpush3.bf16.msra.mxu1 %v2462_v10  ;;  %v771_v30 = vshrl.u32 %v1941_v27, 16  ;;  %v774_v31 = vshll.u32 %v1941_v27, 16  ;;  %v779_v32 = vshrl.u32 %v1942_v28, 16  ;;  %v782_v33 = vshll.u32 %v1942_v28, 16  ;;  %v2491_v10 = vld [vmem:[%s3056_s6 + $0x70] sm:$0xff]   ;;  %v2522_v27 = vld [vmem:[%s3059_s9 + $0x40] sm:$0xff]  }
  0x1d   : > { %2232 = vmatprep.subr.bf16.mxu1 %v2559_v0  ;;  %v911_v54 = vrot.slane %v909_v51, 1  ;;  %v2523_v28 = vld [vmem:[%s3059_s9 + $0x48] sm:$0xff]   ;;  %v2502_v51 = vld [vmem:[%s3056_s6 + $0x30] sm:$0xff]  }
  0x1e   : > { %2265 = vmatpush3.bf16.msra.mxu0 %v2467_v18  ;;  %v773_v35 = vrot.slane %v771_v30, 3  ;;  %v776_v36 = vrot.slane %v774_v31, 4  ;;  %v781_v37 = vrot.slane %v779_v32, 3  ;;  %v784_v38 = vrot.slane %v782_v33, 4  ;;  %v2510_v18 = vld [vmem:[%s3055_s5 + $0x58] sm:$0xff]  }
  0x1f   : > { %2266 = vmatprep.subr.bf16.mxu0 %v2559_v0  ;;  %v912_v57 = vor.u32 %v911_v54, %v907_v53 }
  0x20   : > { %2233 = vmatpush3.bf16.msra.mxu1 %v2463_v11  ;;  %v777_v40 = vor.u32 %v776_v36, %v773_v35  ;;  %v785_v41 = vor.u32 %v784_v38, %v781_v37  ;;  %v621_v11 = vld [vmem:[#allocation3 + $0xc] sm:$0x1]  ;;  %v2496_v36 = vld [vmem:[%s3056_s6] sm:$0xff]  }
  0x21   : > { %2234 = vmatprep.subr.bf16.mxu1 %v2559_v0  ;;  %v917_v59 = vsel %vm905_vm10, %v912_v57, %v916_v58  ;;  %v622_v13 = vsel %vm2706_vm8, 0, %v621_v11  ;;  %v2519_v11 = vld [vmem:[%s3056_s6 + $0xb8] sm:$0xff]  }
  0x22   : > { %2267 = vmatpush3.bf16.msra.mxu0 %v2468_v22  ;;  %v786_v42 = vsel %vm769_vm9, %v777_v40, %v785_v41  ;;  %623 = vst [vmem:[#allocation3 + $0xc] sm:$0x1] %v622_v13  ;;  %v2516_v22 = vld [vmem:[%s3055_s5 + $0x70] sm:$0xff]   ;;  %v2497_v40 = vld [vmem:[%s3056_s6 + $0x8] sm:$0xff]  }
  0x23   : > { %2268 = vmatprep.subr.bf16.mxu0 %v2559_v0  ;;  %v2498_v41 = vld [vmem:[%s3056_s6 + $0x10] sm:$0xff]  }
  0x24   : > { %2235 = vmatpush3.bf16.msra.mxu1 %v2464_v12  ;;  %v2492_v12 = vld [vmem:[%s3056_s6 + $0x78] sm:$0xff]  }
  0x25   : > { %2240 = vmatprep.subr.bf16.mxu1 %v2559_v0 }
  0x26   : > { %2269 = vmatpush3.bf16.msra.mxu0 %v2469_v26  ;;  %v1932_v26 = vcombine.low %v2717_v23, %v2719_v24  ;;  %v1905_v23 = vld [vmem:[%s3054_s4] ss:$0 sm:$0xff] }
  0x27   : > { %2270 = vmatprep.subr.bf16.mxu0 %v2559_v0 }
  0x2a   : > { %2271 = vmatpush3.bf16.msra.mxu0 %v2470_v29 }
  0x2b   : > { %2272 = vmatprep.subr.bf16.mxu0 %v2559_v0 }
  0x2e   : > { %2273 = vmatpush3.bf16.msra.mxu0 %v2471_v34 }
  0x2f   : > { %2274 = vmatprep.subr.bf16.mxu0 %v2559_v0 }
  0x32   : > { %2275 = vmatpush3.bf16.msra.mxu0 %v2472_v39 }
  0x33   : > { %2280 = vmatprep.subr.bf16.mxu0 %v2559_v0 }
  0x35   : > { %2277 = vmatmul.mubr.bf16.vlgmr.msra.gmra.mrb[4].mxu0 %v786_v42  ;;  %v2499_v42 = vld [vmem:[%s3056_s6 + $0x18] sm:$0xff]  }
  0x36   : > { %2281 = vmatpush3.bf16.msra.mxu0 %v2475_v43  ;;  %2296 = vmatprep.mubr.msk.bf16.mxu0 %vm2560_vm0, %v2559_v0  ;;  %v2500_v43 = vld [vmem:[%s3056_s6 + $0x20] sm:$0xff]  }
  0x37   : > { %2282 = vmatprep.subr.bf16.mxu0 %v2559_v0 }
  0x3a   : > { %2283 = vmatpush3.bf16.msra.mxu0 %v2476_v44  ;;  %v1010_v44 = vld [vmem:[#allocation3] sm:$0x8] }
  0x3b   : > { %2284 = vmatprep.subr.bf16.mxu0 %v2559_v0 }
  0x3e   : > { %2285 = vmatpush3.bf16.msra.mxu0 %v2477_v45 }
  0x3f   : > { %2286 = vmatprep.subr.bf16.mxu0 %v2559_v0 }
  0x42   : > { %2287 = vmatpush3.bf16.msra.mxu0 %v2478_v46 }
  0x43   : > { %2288 = vmatprep.subr.bf16.mxu0 %v2559_v0 }
  0x46   : > { %2289 = vmatpush3.bf16.msra.mxu0 %v2479_v47  ;;  %v2501_v47 = vld [vmem:[%s3056_s6 + $0x28] sm:$0xff]  }
  0x47   : > { %2290 = vmatprep.subr.bf16.mxu0 %v2559_v0 }
  0x4a   : > { %2291 = vmatpush3.bf16.msra.mxu0 %v2480_v49 }
  0x4b   : > { %2292 = vmatprep.subr.bf16.mxu0 %v2559_v0 }
  0x4e   : > { %2293 = vmatpush3.bf16.msra.mxu0 %v2481_v52 }
  0x4f   : > { %2294 = vmatprep.subr.bf16.mxu0 %v2559_v0 }
  0x52   : > { %2295 = vmatpush3.bf16.msra.mxu0 %v2482_v56  ;;  %v2503_v56 = vld [vmem:[%s3056_s6 + $0x38] sm:$0xff]  }
  0x53   : > { %2300 = vmatprep.subr.bf16.mxu0 %v2559_v0 }
  0x55   : > { %2297 = vmatmul.mubr.bf16.vlgmr.msra.gmra.mrb[4].mxu0 %v917_v59 }
  0x56   : > { %2301 = vmatpush3.bf16.msra.mxu0 %v2485_v60  ;;  %2316 = vmatprep.mubr.msk.bf16.mxu0 %vm2560_vm0, %v2559_v0 }
  0x57   : > { %2302 = vmatprep.subr.bf16.mxu0 %v2559_v0 }
  0x5a   : > { %2303 = vmatpush3.bf16.msra.mxu0 %v2486_v61  ;;  %v2505_v61 = vld [vmem:[%s3056_s6 + $0x80] sm:$0xff]  }
  0x5b   : > { %2304 = vmatprep.subr.bf16.mxu0 %v2559_v0 }
  0x5e   : > { %2305 = vmatpush3.bf16.msra.mxu0 %v2487_v62 }
  0x5f   : > { %2306 = vmatprep.subr.bf16.mxu0 %v2559_v0 }
  0x62   : > { %2307 = vmatpush3.bf16.msra.mxu0 %v2488_v63  ;;  %v2507_v63 = vld [vmem:[%s3056_s6 + $0x88] sm:$0xff]  }
  0x63   : > { %2308 = vmatprep.subr.bf16.mxu0 %v2559_v0 }
  0x66   : > { %2309 = vmatpush3.bf16.msra.mxu0 %v2489_v6  ;;  %v2521_v6 = vld [vmem:[#allocation3 + $0xc] ss:$0 sps:$4 sm:$0x11]  }
  0x67   : > { %2310 = vmatprep.subr.bf16.mxu0 %v2559_v0 }
  0x6a   : > { %2311 = vmatpush3.bf16.msra.mxu0 %v2490_v7 }
  0x6b   : > { %2312 = vmatprep.subr.bf16.mxu0 %v2559_v0 }
  0x6e   : > { %2313 = vmatpush3.bf16.msra.mxu0 %v2491_v10  ;;  %v1288_v10 = vshll.u32 %v2521_v6, 16  ;;  %v2541_v6 = vld [vmem:[%s3059_s9 + $0x80] sm:$0xff]  }
  0x6f   : > { %2314 = vmatprep.subr.bf16.mxu0 %v2559_v0 }
  0x72   : > { %2315 = vmatpush3.bf16.msra.mxu0 %v2492_v12 }
  0x73   : > { %2320 = vmatprep.subr.bf16.mxu0 %v2559_v0 }
  0xe8   : > { %v482_v1 = vpop.f32.mrb[0].mxu0 }
  0xe9   : > { %v2218_v2 = vpop.f32.mrb[1].mxu0 }
  0xea   : > { %v485_v3 = vpop.f32.mrb[2].mxu0  ;;  %v2511_v2 = vld [vmem:[%s3056_s6 + $0x98] sm:$0xff]  }
  0xeb   : > { %v489_v4 = vpack.c.bf16 %v485_v3, %v482_v1  ;;  %v2219_v5 = vpop.f32.mrb[3].mxu0  ;;  %v2509_v1 = vld [vmem:[%s3056_s6 + $0x90] sm:$0xff]   ;;  %v2513_v3 = vld [vmem:[%s3056_s6 + $0xa0] sm:$0xff]  }
  0xec   : > { %v2515_v5 = vld [vmem:[%s3056_s6 + $0xa8] sm:$0xff]  }
  0xed   : > { %2237 = vmatmul.mubr.bf16.vlgmr.msra.gmra.mrb[0].mxu1 %v489_v4 }
  0xee   : > { %2256 = vmatprep.mubr.msk.bf16.mxu1 %vm2560_vm0, %v2559_v0  ;;  %2241 = vmatpush3.bf16.msra.mxu1 %v2504_v14  ;;  %v1290_v14 = vrot.slane %v1288_v10, 1  ;;  %v2544_v10 = vld [vmem:[%s3059_s9 + $0x98] sm:$0xff]  }
  0xef   : > { %2242 = vmatprep.subr.bf16.mxu1 %v2559_v0 }
  0xf2   : > { %2243 = vmatpush3.bf16.msra.mxu1 %v2506_v16 }
  0xf3   : > { %2244 = vmatprep.subr.bf16.mxu1 %v2559_v0 }
  0xf6   : > { %2245 = vmatpush3.bf16.msra.mxu1 %v2508_v17 }
  0xf7   : > { %2246 = vmatprep.subr.bf16.mxu1 %v2559_v0 }
  0xfa   : > { %2247 = vmatpush3.bf16.msra.mxu1 %v2510_v18 }
  0xfb   : > { %2248 = vmatprep.subr.bf16.mxu1 %v2559_v0 }
  0xfe   : > { %2249 = vmatpush3.bf16.msra.mxu1 %v2512_v20 }
  0xff   : > { %2250 = vmatprep.subr.bf16.mxu1 %v2559_v0 }
 0x102   : > { %2251 = vmatpush3.bf16.msra.mxu1 %v2514_v21 }
 0x103   : > { %2252 = vmatprep.subr.bf16.mxu1 %v2559_v0 }
 0x106   : > { %2253 = vmatpush3.bf16.msra.mxu1 %v2516_v22  ;;  %v2525_v22 = vld [vmem:[%s3059_s9 + $0x58] sm:$0xff]  }
 0x107   : > { %2254 = vmatprep.subr.bf16.mxu1 %v2559_v0 }
 0x10a   : > { %2255 = vmatpush3.bf16.msra.mxu1 %v2518_v25  ;;  %v2526_v25 = vld [vmem:[%s3059_s9 + $0x60] sm:$0xff]  }
 0x10b   : > { %2360 = vmatprep.subr.bf16.mxu1 %v2559_v0 }
 0x10d   : > { %2257 = vmatmul.mubr.bf16.vlgmr.msra.gmra.mrb[4].mxu1 %v1932_v26  ;;  %v2527_v26 = vld [vmem:[%s3059_s9 + $0x68] sm:$0xff]  }
 0x10e   : > { %2376 = vmatprep.mubr.msk.bf16.mxu1 %vm2560_vm0, %v2559_v0  ;;  %2361 = vmatpush3.bf16.msra.mxu1 %v2522_v27  ;;  %v1406_v27 = vld [vmem:[#allocation4] sm:$0x8] }
 0x10f   : > { %2362 = vmatprep.subr.bf16.mxu1 %v2559_v0 }
 0x112   : > { %2363 = vmatpush3.bf16.msra.mxu1 %v2523_v28  ;;  %v1407_v28 = vsel %vm2696_vm5, 0, %v1406_v27 }
 0x113   : > { %2364 = vmatprep.subr.bf16.mxu1 %v2559_v0  ;;  %1408 = vst [vmem:[#allocation4] sm:$0x8] %v1407_v28  ;;  %v2103_v28 = vld [vmem:[%s3060_s10] ss:$0 sm:$0xff] }
 0x116   : > { %2365 = vmatpush3.bf16.msra.mxu1 %v2524_v48 }
 0x117   : > { %2366 = vmatprep.subr.bf16.mxu1 %v2559_v0 }
 0x11a   : > { %2367 = vmatpush3.bf16.msra.mxu1 %v2525_v22 }
 0x11b   : > { %2368 = vmatprep.subr.bf16.mxu1 %v2559_v0 }
 0x11e   : > { %2369 = vmatpush3.bf16.msra.mxu1 %v2526_v25 }
 0x11f   : > { %2370 = vmatprep.subr.bf16.mxu1 %v2559_v0 }
 0x122   : > { %2371 = vmatpush3.bf16.msra.mxu1 %v2527_v26 }
 0x123   : > { %2372 = vmatprep.subr.bf16.mxu1 %v2559_v0 }
 0x1c0   : > { %v595_v24 = vpop.f32.mrb[0].mxu1 }
 0x1c1   : > { %v596_v29 = vadd.f32 %v1905_v23, %v595_v24  ;;  %v2238_v30 = vpop.f32.mrb[1].mxu1  ;;  %v1409_v24 = vld [vmem:[#allocation4 + $0xc] sm:$0x1] }
 0x1c2   : > { %v598_v31 = vpop.f32.mrb[2].mxu1  ;;  %v1410_v30 = vsel %vm2706_vm8, 0, %v1409_v24  ;;  %v2104_v24 = vld [vmem:[%s3061_s11] ss:$0 sm:$0xff] }
 0x1c3   : > { %v2111_v32 = vpack.c.bf16 %v596_v29, %v596_v29  ;;  %v599_v33 = vadd.f32 %v1905_v23, %v598_v31  ;;  %v2239_v34 = vpop.f32.mrb[3].mxu1  ;;  %v2528_v23 = vld [vmem:[%s3059_s9 + $0x70] sm:$0xff]   ;;  %v2529_v29 = vld [vmem:[%s3059_s9 + $0x78] sm:$0xff]   ;;  %1411 = vst [vmem:[#allocation4 + $0xc] sm:$0x1] %v1410_v30 }
 0x1c4   : > { %2373 = vmatpush3.bf16.msra.mxu1 %v2528_v23  ;;  %v2038_v31 = vld [vmem:[%s3057_s7] ss:$0 sm:$0xff] }
 0x1c5   : > { %632 = vst [vmem:[#allocation3 + $0x4] sm:$0xf] %v2111_v32  ;;  %v2112_v35 = vpack.c.bf16 %v599_v33, %v599_v33  ;;  %2374 = vmatprep.subr.bf16.mxu1 %v2559_v0  ;;  %v2039_v34 = vld [vmem:[%s3058_s8] ss:$0 sm:$0xff] }
 0x1c7   : > { %633 = vst [vmem:[#allocation3 + $0x8] sm:$0xf] %v2112_v35 }
 0x1c8   : > { %2375 = vmatpush3.bf16.msra.mxu1 %v2529_v29 }
 0x1c9   : > { %2380 = vmatprep.subr.bf16.mxu1 %v2559_v0 }
 0x1cc   : > { %v1011_v37 = vld [vmem:[#allocation3 + $0x4] sm:$0xf] }
 0x1cd   : > { %v2002_v46 = vcombine.low %v1010_v44, %v1011_v37 }
 0x1ce   : > { %v1012_v38 = vld [vmem:[#allocation3 + $0x8] sm:$0xf] }
 0x1cf   : > { %v1993_v39 = vcombine.low %v1011_v37, %v1012_v38  ;;  %v2003_v45 = vcombine.low %v1012_v38, %v1012_v38  ;;  %v1146_v52 = vshrl.u32 %v2002_v46, 16  ;;  %v1149_v53 = vshll.u32 %v2002_v46, 16  ;;  %v2520_v4 = vld [vmem:[#allocation3 + $0x4] sm:$0xff]  }
 0x1d0   : > { %v1283_v7 = vshll.u32 %v2520_v4, 16  ;;  %v1281_v12 = vshrl.u32 %v2520_v4, 16 }
 0x1d1   : > { %2317 = vmatmul.mubr.bf16.vlgmr.msra.gmra.mrb[4].mxu0 %v1993_v39  ;;  %v1154_v49 = vshrl.u32 %v2003_v45, 16  ;;  %v1157_v50 = vshll.u32 %v2003_v45, 16  ;;  %v1148_v57 = vrot.slane %v1146_v52, 3  ;;  %v1151_v58 = vrot.slane %v1149_v53, 4  ;;  %v2533_v45 = vld [vmem:[%s3059_s9] sm:$0xff]  }
 0x1d2   : > { %2321 = vmatpush3.bf16.msra.mxu0 %v2496_v36  ;;  %2336 = vmatprep.mubr.msk.bf16.mxu0 %vm2560_vm0, %v2559_v0  ;;  %v1285_v9 = vrot.slane %v1283_v7, 1  ;;  %v2537_v52 = vld [vmem:[%s3059_s9 + $0x20] sm:$0xff]  }
 0x1d3   : > { %2322 = vmatprep.subr.bf16.mxu0 %v2559_v0  ;;  %v1156_v54 = vrot.slane %v1154_v49, 3  ;;  %v1159_v55 = vrot.slane %v1157_v50, 4  ;;  %v1152_v60 = vor.u32 %v1151_v58, %v1148_v57  ;;  %v2534_v49 = vld [vmem:[%s3059_s9 + $0x8] sm:$0xff]   ;;  %v2535_v50 = vld [vmem:[%s3059_s9 + $0x10] sm:$0xff]   ;;  %v1422_v53 = vld [vmem:[#allocation4] sm:$0x8] }
 0x1d4   : > { %v1286_v13 = vor.u32 %v1285_v9, %v1281_v12  ;;  %v2543_v9 = vld [vmem:[%s3059_s9 + $0x90] sm:$0xff]  }
 0x1d5   : > { %v1160_v59 = vor.u32 %v1159_v55, %v1156_v54 }
 0x1d6   : > { %2323 = vmatpush3.bf16.msra.mxu0 %v2497_v40  ;;  %v1291_v16 = vsel %vm905_vm10, %v1286_v13, %v1290_v14  ;;  %v2546_v13 = vld [vmem:[%s3059_s9 + $0xa8] sm:$0xff]  }
 0x1d7   : > { %2324 = vmatprep.subr.bf16.mxu0 %v2559_v0  ;;  %v1161_v62 = vsel %vm769_vm9, %v1152_v60, %v1160_v59  ;;  %v2539_v59 = vld [vmem:[%s3059_s9 + $0x30] sm:$0xff]   ;;  %v2550_v14 = vld [vmem:[#allocation4 + $0xc] ss:$0 sps:$4 sm:$0x11]  }
 0x1da   : > { %2325 = vmatpush3.bf16.msra.mxu0 %v2498_v41 }
 0x1db   : > { %2326 = vmatprep.subr.bf16.mxu0 %v2559_v0 }
 0x1de   : > { %2327 = vmatpush3.bf16.msra.mxu0 %v2499_v42 }
 0x1df   : > { %2328 = vmatprep.subr.bf16.mxu0 %v2559_v0 }
 0x1e0   : > { %v758_v17 = vpop.f32.mrb[4].mxu1 }
 0x1e1   : > { %v2258_v18 = vpop.f32.mrb[5].mxu1 }
 0x1e2   : > { %2329 = vmatpush3.bf16.msra.mxu0 %v2500_v43  ;;  %v761_v20 = vpop.f32.mrb[6].mxu1 }
 0x1e3   : > { %2330 = vmatprep.subr.bf16.mxu0 %v2559_v0  ;;  %v2259_v21 = vpop.f32.mrb[7].mxu1 }
 0x1e4   : > { %v2548_v21 = vld [vmem:[%s3059_s9 + $0xb8] sm:$0xff]  }
 0x1e6   : > { %2331 = vmatpush3.bf16.msra.mxu0 %v2501_v47 }
 0x1e7   : > { %2332 = vmatprep.subr.bf16.mxu0 %v2559_v0 }
 0x1ea   : > { %2333 = vmatpush3.bf16.msra.mxu0 %v2502_v51  ;;  %v2536_v51 = vld [vmem:[%s3059_s9 + $0x18] sm:$0xff]  }
 0x1eb   : > { %2334 = vmatprep.subr.bf16.mxu0 %v2559_v0 }
 0x1ee   : > { %2335 = vmatpush3.bf16.msra.mxu0 %v2503_v56  ;;  %v2538_v56 = vld [vmem:[%s3059_s9 + $0x28] sm:$0xff]  }
 0x1ef   : > { %2340 = vmatprep.subr.bf16.mxu0 %v2559_v0 }
 0x1f1   : > { %2337 = vmatmul.mubr.bf16.vlgmr.msra.gmra.mrb[4].mxu0 %v1161_v62 }
 0x1f2   : > { %2341 = vmatpush3.bf16.msra.mxu0 %v2505_v61  ;;  %2356 = vmatprep.mubr.msk.bf16.mxu0 %vm2560_vm0, %v2559_v0 }
 0x1f3   : > { %2342 = vmatprep.subr.bf16.mxu0 %v2559_v0 }
 0x1f6   : > { %2343 = vmatpush3.bf16.msra.mxu0 %v2507_v63 }
 0x1f7   : > { %2344 = vmatprep.subr.bf16.mxu0 %v2559_v0 }
 0x1fa   : > { %2345 = vmatpush3.bf16.msra.mxu0 %v2509_v1  ;;  %v2540_v1 = vld [vmem:[%s3059_s9 + $0x38] sm:$0xff]  }
 0x1fb   : > { %2346 = vmatprep.subr.bf16.mxu0 %v2559_v0 }
 0x1fe   : > { %2347 = vmatpush3.bf16.msra.mxu0 %v2511_v2 }
 0x1ff   : > { %2348 = vmatprep.subr.bf16.mxu0 %v2559_v0 }
 0x202   : > { %2349 = vmatpush3.bf16.msra.mxu0 %v2513_v3 }
 0x203   : > { %2350 = vmatprep.subr.bf16.mxu0 %v2559_v0 }
 0x206   : > { %2351 = vmatpush3.bf16.msra.mxu0 %v2515_v5 }
 0x207   : > { %2352 = vmatprep.subr.bf16.mxu0 %v2559_v0 }
 0x20a   : > { %2353 = vmatpush3.bf16.msra.mxu0 %v2517_v8  ;;  %v2542_v8 = vld [vmem:[%s3059_s9 + $0x88] sm:$0xff]  }
 0x20b   : > { %2354 = vmatprep.subr.bf16.mxu0 %v2559_v0 }
 0x20e   : > { %2355 = vmatpush3.bf16.msra.mxu0 %v2519_v11  ;;  %v2545_v11 = vld [vmem:[%s3059_s9 + $0xa0] sm:$0xff]  }
 0x211   : > { %2357 = vmatmul.mubr.bf16.vlgmr.msra.gmra.mrb[4].mxu0 %v1291_v16 }
 0x2e4   : > { %v1375_v15 = vpop.f32.mrb[4].mxu0 }
 0x2e5   : > { %v2420_v32 = vadd.f32 %v1375_v15, %v758_v17  ;;  %v2358_v33 = vpop.f32.mrb[5].mxu0  ;;  %v2547_v17 = vld [vmem:[%s3059_s9 + $0xb0] sm:$0xff]  }
 0x2e6   : > { %v1378_v35 = vpop.f32.mrb[6].mxu0 }
 0x2e7   : > { %v1393_v19 = vmul.f32 %v2420_v32, %v2038_v31  ;;  %v2421_v36 = vadd.f32 %v1378_v35, %v761_v20  ;;  %v2359_v37 = vpop.f32.mrb[7].mxu0  ;;  %v1700_v20 = vshll.u32 %v2550_v14, 16 }
 0x2e9   : > { %v1402_v38 = vadd.f32 %v2039_v34, %v1393_v19  ;;  %v1394_v39 = vmul.f32 %v2421_v36, %v2038_v31  ;;  %v1702_v26 = vrot.slane %v1700_v20, 1 }
 0x2eb   : > { %v1404_v40 = vmax.f32 %v1402_v38, 0.0  ;;  %v1403_v41 = vadd.f32 %v2039_v34, %v1394_v39 }
 0x2ed   : > { %v2113_v42 = vpack.c.bf16 %v1404_v40, %v1404_v40  ;;  %v1405_v43 = vmax.f32 %v1403_v41, 0.0 }
 0x2ef   : > { %1420 = vst [vmem:[#allocation4 + $0x4] sm:$0xf] %v2113_v42  ;;  %v2114_v44 = vpack.c.bf16 %v1405_v43, %v1405_v43 }
 0x2f1   : > { %1421 = vst [vmem:[#allocation4 + $0x8] sm:$0xf] %v2114_v44 }
 0x2f6   : > { %v1423_v46 = vld [vmem:[#allocation4 + $0x4] sm:$0xf] }
 0x2f7   : > { %v2067_v55 = vcombine.low %v1422_v53, %v1423_v46 }
 0x2f8   : > { %v1424_v47 = vld [vmem:[#allocation4 + $0x8] sm:$0xf] }
 0x2f9   : > { %v2058_v48 = vcombine.low %v1423_v46, %v1424_v47  ;;  %v2068_v54 = vcombine.low %v1424_v47, %v1424_v47  ;;  %v1558_v60 = vshrl.u32 %v2067_v55, 16  ;;  %v1561_v61 = vshll.u32 %v2067_v55, 16  ;;  %v2549_v12 = vld [vmem:[#allocation4 + $0x4] sm:$0xff]  }
 0x2fa   : > { %v1695_v16 = vshll.u32 %v2549_v12, 16  ;;  %v1693_v22 = vshrl.u32 %v2549_v12, 16 }
 0x2fb   : > { %2377 = vmatmul.mubr.bf16.vlgmr.msra.gmra.mrb[8].mxu1 %v2058_v48  ;;  %v1566_v57 = vshrl.u32 %v2068_v54, 16  ;;  %v1569_v58 = vshll.u32 %v2068_v54, 16  ;;  %v1560_v2 = vrot.slane %v1558_v60, 3  ;;  %v1563_v3 = vrot.slane %v1561_v61, 4 }
 0x2fc   : > { %2381 = vmatpush3.bf16.msra.mxu1 %v2533_v45  ;;  %2396 = vmatprep.mubr.msk.bf16.mxu1 %vm2560_vm0, %v2559_v0  ;;  %v1697_v18 = vrot.slane %v1695_v16, 1 }
 0x2fd   : > { %2382 = vmatprep.subr.bf16.mxu1 %v2559_v0  ;;  %v1568_v62 = vrot.slane %v1566_v57, 3  ;;  %v1571_v63 = vrot.slane %v1569_v58, 4  ;;  %v1564_v5 = vor.u32 %v1563_v3, %v1560_v2 }
 0x2fe   : > { %v1698_v25 = vor.u32 %v1697_v18, %v1693_v22 }
 0x2ff   : > { %v1572_v4 = vor.u32 %v1571_v63, %v1568_v62 }
 0x300   : > { %2383 = vmatpush3.bf16.msra.mxu1 %v2534_v49  ;;  %v1703_v27 = vsel %vm905_vm10, %v1698_v25, %v1702_v26 }
 0x301   : > { %2384 = vmatprep.subr.bf16.mxu1 %v2559_v0  ;;  %v1573_v7 = vsel %vm769_vm9, %v1564_v5, %v1572_v4 }
 0x304   : > { %2385 = vmatpush3.bf16.msra.mxu1 %v2535_v50 }
 0x305   : > { %2386 = vmatprep.subr.bf16.mxu1 %v2559_v0 }
 0x308   : > { %2387 = vmatpush3.bf16.msra.mxu1 %v2536_v51 }
 0x309   : > { %2388 = vmatprep.subr.bf16.mxu1 %v2559_v0 }
 0x30c   : > { %2389 = vmatpush3.bf16.msra.mxu1 %v2537_v52 }
 0x30d   : > { %2390 = vmatprep.subr.bf16.mxu1 %v2559_v0 }
 0x310   : > { %2391 = vmatpush3.bf16.msra.mxu1 %v2538_v56 }
 0x311   : > { %2392 = vmatprep.subr.bf16.mxu1 %v2559_v0 }
 0x314   : > { %2393 = vmatpush3.bf16.msra.mxu1 %v2539_v59 }
 0x315   : > { %2394 = vmatprep.subr.bf16.mxu1 %v2559_v0 }
 0x318   : > { %2395 = vmatpush3.bf16.msra.mxu1 %v2540_v1 }
 0x319   : > { %2400 = vmatprep.subr.bf16.mxu1 %v2559_v0 }
 0x31b   : > { %2397 = vmatmul.mubr.bf16.vlgmr.msra.gmra.mrb[8].mxu1 %v1573_v7 }
 0x31c   : > { %2401 = vmatpush3.bf16.msra.mxu1 %v2541_v6  ;;  %2416 = vmatprep.mubr.msk.bf16.mxu1 %vm2560_vm0, %v2559_v0 }
 0x31d   : > { %2402 = vmatprep.subr.bf16.mxu1 %v2559_v0 }
 0x320   : > { %2403 = vmatpush3.bf16.msra.mxu1 %v2542_v8 }
 0x321   : > { %2404 = vmatprep.subr.bf16.mxu1 %v2559_v0 }
 0x324   : > { %2405 = vmatpush3.bf16.msra.mxu1 %v2543_v9 }
 0x325   : > { %2406 = vmatprep.subr.bf16.mxu1 %v2559_v0 }
 0x328   : > { %2407 = vmatpush3.bf16.msra.mxu1 %v2544_v10 }
 0x329   : > { %2408 = vmatprep.subr.bf16.mxu1 %v2559_v0 }
 0x32c   : > { %2409 = vmatpush3.bf16.msra.mxu1 %v2545_v11 }
 0x32d   : > { %2410 = vmatprep.subr.bf16.mxu1 %v2559_v0 }
 0x330   : > { %2411 = vmatpush3.bf16.msra.mxu1 %v2546_v13 }
 0x331   : > { %2412 = vmatprep.subr.bf16.mxu1 %v2559_v0 }
 0x334   : > { %2413 = vmatpush3.bf16.msra.mxu1 %v2547_v17 }
 0x335   : > { %2414 = vmatprep.subr.bf16.mxu1 %v2559_v0 }
 0x338   : > { %2415 = vmatpush3.bf16.msra.mxu1 %v2548_v21 }
 0x33b   : > { %2417 = vmatmul.mubr.bf16.vlgmr.msra.gmra.mrb[8].mxu1 %v1703_v27 }
 0x40e   : > { %v1787_v23 = vpop.f32.mrb[8].mxu1 }
 0x40f   : > { %v1803_v29 = vmul.f32 %v2103_v28, %v1787_v23  ;;  %v2418_v30 = vpop.f32.mrb[9].mxu1 }
 0x410   : > { %v1790_v15 = vpop.f32.mrb[10].mxu1 }
 0x411   : > { %v1812_v0 = vadd.f32 %v2104_v24, %v1803_v29  ;;  %v1804_v31 = vmul.f32 %v2103_v28, %v1790_v15  ;;  %v2419_v32 = vpop.f32.mrb[11].mxu1 }
 0x413   : > { %v1813_v33 = vadd.f32 %v2104_v24, %v1804_v31  ;;  %v1814_v34 = vmax.f32 %v1812_v0, 0.0 }
 0x415   : > { %v1815_v35 = vmax.f32 %v1813_v33, 0.0 }
 0x417   : > { %v2120_v19 = vpack.c.bf16 %v1815_v35, %v1814_v34 }
 0x419   : > { %2121 = vst [vmem:[%s430_s24] sm:$0xff] %v2120_v19  }
 0x41a PF: > { %s22_s21 = sadd.s32 1, %s2557_s21  }
 0x41b   : > { %p19_p4 = scmp.ge.s32.totalorder %s22_s21, 4  }
 0x41d   :  { %21 = sbr.rel (!%p19_p4) target bundleno = 1 (0x1), region = 107 }

// kernel: unet_forward.17
= control target key start
LH: loop header
LB: loop body
LE: loop exit
PB: predicated region body
PF: predicated region fallthrough
CT: control target
= control target key end

     0   :  { %s3154_s29 = smov 0   ;;  %s3501_s0 = inlined_call_operand.vmem [shape: bf16[2,16,128], index: 0, kind: input, shape index: {}]   ;;  %s3502_s1 = inlined_call_operand.vmem [shape: bf16[2,32,128], index: 1, kind: input, shape index: {}]   ;;  %s3503_s2 = inlined_call_operand.vmem [shape: bf16[32,16], index: 2, kind: input, shape index: {}]   ;;  %s3504_s3 = inlined_call_operand.vmem [shape: bf16[128,128], index: 3, kind: input, shape index: {}]   ;;  %s3505_s4 = inlined_call_operand.vmem [shape: f32[1,128], index: 4, kind: input, shape index: {}]   ;;  %s3506_s5 = inlined_call_operand.vmem [shape: bf16[3,128,128], index: 5, kind: input, shape index: {}]   ;;  %s3507_s6 = inlined_call_operand.vmem [shape: bf16[3,128,128], index: 6, kind: input, shape index: {}]   ;;  %s3508_s7 = inlined_call_operand.vmem [shape: f32[1,128], index: 7, kind: input, shape index: {}]   ;;  %s3509_s8 = inlined_call_operand.vmem [shape: f32[1,128], index: 8, kind: input, shape index: {}]   ;;  %s3510_s9 = inlined_call_operand.vmem [shape: bf16[3,128,128], index: 9, kind: input, shape index: {}]   ;;  %s3511_s10 = inlined_call_operand.vmem [shape: f32[1,128], index: 10, kind: input, shape index: {}]   ;;  %s3512_s11 = inlined_call_operand.vmem [shape: f32[1,128], index: 11, kind: input, shape index: {}]   ;;  %s3513_s12 = inlined_call_operand.vmem [shape: bf16[128,64], index: 12, kind: input, shape index: {}]   ;;  %s3514_s13 = inlined_call_operand.vmem [shape: f32[1,64], index: 13, kind: input, shape index: {}]   ;;  %s3515_s14 = inlined_call_operand.vmem [shape: f32[2,32,64], index: 14, kind: output, shape index: {}]  }
   0x1 LB: > { %s2318_s30 = sadd.s32 4294967295, %s3077_s29   ;;  %p2322_p0 = scmp.ge.s32.totalorder %s3077_s29, 1  ;;  %s3077_s29 = sphi %s3154_s29, %s24_s29  }
   0x2   : > { %p422_p1 = scmp.lt.s32.totalorder %s3077_s29, 3 }
   0x4   : > { %p423_p2 = pnand %p2322_p0, %p422_p1 }
   0x5   : > { %p473_p3 = scmp.lt.s32.totalorder (!%p423_p2), %s2318_s30, 1  ;;  %v2957_v0 = vld [vmem:[%s3503_s2] sm:$0xff] (!%p423_p2)   ;;  %vm511_vm0 = vcmask (!%p423_p2), 130048   ;;  %v2958_v5 = vld [vmem:[%s3503_s2 + $0x8] sm:$0xff] (!%p423_p2)   ;;  %v2961_v7 = vld [vmem:[%s3504_s3 + $0x10] sm:$0xff] (!%p423_p2)   ;;  %vm693_vm1 = vcmask (!%p423_p2), 1043459  }
   0x6   : > { %426 = sbr.rel (%p423_p2) target bundleno = 1273 (0x4f9), region = 76  ;;  %2696 = vmatprep.mubr.msk.bf16.mxu1 (!%p423_p2), %vm511_vm0, %v2957_v0  ;;  %v2959_v1 = vld [vmem:[%s3504_s3] sm:$0xff] (!%p423_p2)   ;;  %v2960_v6 = vld [vmem:[%s3504_s3 + $0x8] sm:$0xff] (!%p423_p2)   ;;  %v2962_v8 = vld [vmem:[%s3504_s3 + $0x18] sm:$0xff] (!%p423_p2)   ;;  %vm694_vm2 = vsmask.f32 (!%p423_p2), 7950 }
   0x7   : > { %v2963_v9 = vld [vmem:[%s3504_s3 + $0x20] sm:$0xff] (!%p423_p2)   ;;  %v2964_v10 = vld [vmem:[%s3504_s3 + $0x28] sm:$0xff] (!%p423_p2)   ;;  %v2965_v11 = vld [vmem:[%s3504_s3 + $0x30] sm:$0xff] (!%p423_p2)   ;;  %vm699_vm4 = vcmask (!%p423_p2), 1040384   ;;  %vm700_vm5 = vsmask.f32 (!%p423_p2), 256 }
   0x8   : > { %v2966_v12 = vld [vmem:[%s3504_s3 + $0x38] sm:$0xff] (!%p423_p2)   ;;  %v2967_v13 = vld [vmem:[%s3506_s5 + $0x40] sm:$0xff] (!%p423_p2)   ;;  %v2968_v14 = vld [vmem:[%s3506_s5 + $0x48] sm:$0xff] (!%p423_p2)   ;;  %vm887_vm7 = vsmask.f32 (!%p423_p2), 4352  ;;  %vm2246_vm9 = vcmask (!%p423_p2), 523264  }
   0x9   : > { %2720 = vmatprep.subr.bf16.mxu0 (!%p423_p2), %v2967_v13  ;;  %vm3210_vm3 = vmand (!%p423_p2), %vm693_vm1, %vm694_vm2  ;;  %v696_v16 = vld [vmem:[#allocation2] sm:$0x8] (!%p423_p2)  ;;  %v2969_v19 = vld [vmem:[%s3506_s5 + $0x50] sm:$0xff] (!%p423_p2)   ;;  %vm1048_vm8 = vsmask.f32 (!%p423_p2), 7424 }
   0xa   : > { %2721 = vmatpush3.bf16.msra.mxu0 (!%p423_p2), %v2967_v13  ;;  %v697_v20 = vsel (!%p423_p2), %vm3210_vm3, 0, %v696_v16  ;;  %v2970_v22 = vld [vmem:[%s3506_s5 + $0x58] sm:$0xff] (!%p423_p2)   ;;  %vm3222_vm6 = vmand (!%p423_p2), %vm699_vm4, %vm700_vm5  ;;  %v702_v24 = vld [vmem:[#allocation2 + $0x14] sm:$0x1] (!%p423_p2) }
   0xb   : > { %2722 = vmatprep.subr.bf16.mxu0 (!%p423_p2), %v2968_v14  ;;  %698 = vst [vmem:[#allocation2] sm:$0x8] (!%p423_p2), %v697_v20  ;;  %v2971_v25 = vld [vmem:[%s3506_s5 + $0x60] sm:$0xff] (!%p423_p2)   ;;  %v703_v26 = vsel (!%p423_p2), %vm3222_vm6, 0, %v702_v24  ;;  %v2972_v29 = vld [vmem:[%s3506_s5 + $0x68] sm:$0xff] (!%p423_p2)   ;;  %v2973_v32 = vld [vmem:[%s3506_s5 + $0x70] sm:$0xff] (!%p423_p2)  }
   0xc   : > { %704 = vst [vmem:[#allocation2 + $0x14] sm:$0x1] (!%p423_p2), %v703_v26  ;;  %v2974_v37 = vld [vmem:[%s3506_s5 + $0x78] sm:$0xff] (!%p423_p2)   ;;  %v2978_v43 = vld [vmem:[%s3506_s5] sm:$0xff] (!%p423_p2)   ;;  %v2981_v47 = vld [vmem:[%s3506_s5 + $0x8] sm:$0xff] (!%p423_p2)  }
   0xd   : > { %s3521_s30 = smov (!%p473_p3, %s2318_s30), 1  ;;  %v2982_v49 = vld [vmem:[%s3506_s5 + $0x10] sm:$0xff]   ;;  %v2983_v50 = vld [vmem:[%s3506_s5 + $0x18] sm:$0xff]   ;;  %v2984_v51 = vld [vmem:[%s3506_s5 + $0x20] sm:$0xff]  }
   0xe   : > { %s2558_s17 = sshll.u32 %s3521_s30, 3  ;;  %s2559_s18 = sshll.u32 %s3521_s30, 4  ;;  %2723 = vmatpush3.bf16.msra.mxu0 %v2968_v14  ;;  %v2985_v53 = vld [vmem:[%s3506_s5 + $0x28] sm:$0xff]   ;;  %v2986_v57 = vld [vmem:[%s3506_s5 + $0x30] sm:$0xff]   ;;  %v2987_v62 = vld [vmem:[%s3506_s5 + $0x38] sm:$0xff]  }
   0xf   : > { %s477_s21 = scalar_lea.vmem %s3501_s0, %s2558_s17  ;;  %s482_s24 = scalar_lea.vmem %s3502_s1, %s2559_s18  ;;  %2724 = vmatprep.subr.bf16.mxu0 %v2969_v19  ;;  %v2994_v14 = vld [vmem:[%s3506_s5 + $0xb0] sm:$0xff]   ;;  %v3000_v24 = vld [vmem:[%s3507_s6 + $0x48] sm:$0xff]   ;;  %v3002_v26 = vld [vmem:[%s3507_s6 + $0x58] sm:$0xff]  }
  0x10   : > { %v2956_v2 = vld [vmem:[%s477_s21] sm:$0xff]   ;;  %v691_v4 = vld [vmem:[%s482_s24 + $0x8] sm:$0xff]   ;;  %s2560_s17 = sshll.u32 %s3521_s30, 5 }
  0x11   : > { %v689_v3 = vld [vmem:[%s482_s24] sm:$0xff]   ;;  %2694 = vmatprep.subr.bf16.mxu1 %v2956_v2  ;;  %707 = vst [vmem:[#allocation2 + $0xc] sm:$0xff] %v691_v4   ;;  %s487_s22 = scalar_lea.vmem %s3515_s14, %s2560_s17 }
  0x12   : > { %705 = vst [vmem:[#allocation2 + $0x4] sm:$0xff] %v689_v3   ;;  %2695 = vmatpush3.bf16.msra.mxu1 %v2956_v2  ;;  %2725 = vmatpush3.bf16.msra.mxu0 %v2969_v19  ;;  %v735_v27 = vld [vmem:[#allocation2] sm:$0x8]  ;;  %v2476_v23 = vld [vmem:[%s3509_s8] ss:$0 sm:$0xff] }
  0x13   : > { %2700 = vmatprep.subr.bf16.mxu1 %v2959_v1  ;;  %2726 = vmatprep.subr.bf16.mxu0 %v2970_v22  ;;  %v2988_v3 = vld [vmem:[%s3506_s5 + $0x80] sm:$0xff]   ;;  %v2999_v13 = vld [vmem:[#allocation2 + $0x14] ss:$0 sps:$4 sm:$0x11]  }
  0x14   : > { %v3042_v15 = vld [vmem:[%s3510_s9] sm:$0xff]  }
  0x15   : > { %2697 = vmatmul.mubr.msk.bf16.vlgmr.msra.gmra.mrb[0].mxu1 %vm511_vm0, %v2958_v5 }
  0x16   : > { %2701 = vmatpush3.bf16.msra.mxu1 %v2959_v1  ;;  %2727 = vmatpush3.bf16.msra.mxu0 %v2970_v22 }
  0x17   : > { %2702 = vmatprep.subr.bf16.mxu1 %v2960_v6  ;;  %2728 = vmatprep.subr.bf16.mxu0 %v2971_v25 }
  0x18   : > { %v738_v28 = vld [vmem:[#allocation2 + $0xc] sm:$0xf]  ;;  %v739_v42 = vld [vmem:[#allocation2 + $0x10] sm:$0xf] }
  0x19   : > { %v736_v17 = vld [vmem:[#allocation2 + $0x4] sm:$0xf]  ;;  %v737_v18 = vld [vmem:[#allocation2 + $0x8] sm:$0xf]  ;;  %v2364_v46 = vcombine.low %v738_v28, %v739_v42  ;;  %v2375_v52 = vcombine.low %v739_v42, %v739_v42  ;;  %v2997_v58 = vld [vmem:[#allocation2 + $0xc] sm:$0xff]  }
  0x1a   : > { %2703 = vmatpush3.bf16.msra.mxu1 %v2960_v6  ;;  %v2363_v21 = vcombine.low %v736_v17, %v737_v18  ;;  %v2373_v30 = vcombine.low %v735_v27, %v736_v17  ;;  %v2374_v31 = vcombine.low %v737_v18, %v738_v28  ;;  %2729 = vmatpush3.bf16.msra.mxu0 %v2971_v25  ;;  %v2996_v54 = vld [vmem:[#allocation2 + $0x4] sm:$0xff]   ;;  %v1057_v1 = vshll.u32 %v2997_v58, 16  ;;  %v2995_v18 = vld [vmem:[%s3506_s5 + $0xb8] sm:$0xff]   ;;  %v3001_v25 = vld [vmem:[%s3507_s6 + $0x50] sm:$0xff]  }
  0x1b   : > { %2704 = vmatprep.subr.bf16.mxu1 %v2961_v7  ;;  %2730 = vmatprep.subr.bf16.mxu0 %v2972_v29  ;;  %v906_v55 = vshrl.u32 %v2375_v52, 16  ;;  %v909_v56 = vshll.u32 %v2375_v52, 16  ;;  %v1052_v59 = vshll.u32 %v2996_v54, 16  ;;  %v1050_v63 = vshrl.u32 %v2996_v54, 16  ;;  %v3031_v42 = vld [vmem:[%s3510_s9 + $0x40] sm:$0xff]  }
  0x1c   : > { %2736 = vmatprep.mubr.bf16.mxu0 %v2363_v21  ;;  %v889_v33 = vshrl.u32 %v2373_v30, 16  ;;  %v892_v34 = vshll.u32 %v2373_v30, 16  ;;  %v897_v35 = vshrl.u32 %v2374_v31, 16  ;;  %v900_v36 = vshll.u32 %v2374_v31, 16  ;;  %v2998_v21 = vld [vmem:[%s3507_s6 + $0x40] sm:$0xff]  }
  0x1d   : > { %v908_v60 = vrot.slane %v906_v55, 3  ;;  %v911_v61 = vrot.slane %v909_v56, 4  ;;  %v1054_v0 = vrot.slane %v1052_v59, 1  ;;  %v1059_v5 = vrot.slane %v1057_v1, 1 }
  0x1e   : > { %2705 = vmatpush3.bf16.msra.mxu1 %v2961_v7  ;;  %2731 = vmatpush3.bf16.msra.mxu0 %v2972_v29  ;;  %v891_v38 = vrot.slane %v889_v33, 3  ;;  %v894_v39 = vrot.slane %v892_v34, 4  ;;  %v899_v40 = vrot.slane %v897_v35, 3  ;;  %v902_v41 = vrot.slane %v900_v36, 4  ;;  %v2989_v7 = vld [vmem:[%s3506_s5 + $0x88] sm:$0xff]   ;;  %v3003_v33 = vld [vmem:[%s3507_s6 + $0x60] sm:$0xff]  }
  0x1f   : > { %2706 = vmatprep.subr.bf16.mxu1 %v2962_v8  ;;  %2732 = vmatprep.subr.bf16.mxu0 %v2973_v32  ;;  %v912_v2 = vor.u32 %v911_v61, %v908_v60  ;;  %v1055_v4 = vor.u32 %v1054_v0, %v1050_v63  ;;  %v1061_v16 = vshrl.u32 %v2997_v58, 16  ;;  %v1065_v17 = vshll.u32 %v2999_v13, 16  ;;  %v3004_v34 = vld [vmem:[%s3507_s6 + $0x68] sm:$0xff]   ;;  %v709_v35 = vld [vmem:[#allocation3] sm:$0x8] }
  0x20   : > { %v895_v44 = vor.u32 %v894_v39, %v891_v38  ;;  %v903_v45 = vor.u32 %v902_v41, %v899_v40  ;;  %v710_v36 = vsel %vm3210_vm3, 0, %v709_v35  ;;  %v3006_v38 = vld [vmem:[%s3507_s6 + $0x78] sm:$0xff]   ;;  %v712_v39 = vld [vmem:[#allocation3 + $0x14] sm:$0x1]  ;;  %v3010_v41 = vld [vmem:[%s3507_s6] sm:$0xff]  }
  0x21   : > { %v1063_v19 = vor.u32 %v1061_v16, %v1059_v5  ;;  %v1067_v20 = vrot.slane %v1065_v17, 1  ;;  %711 = vst [vmem:[#allocation3] sm:$0x8] %v710_v36  ;;  %v713_v40 = vsel %vm3222_vm6, 0, %v712_v39  ;;  %v3015_v16 = vld [vmem:[%s3507_s6 + $0x18] sm:$0xff]   ;;  %v3016_v17 = vld [vmem:[%s3507_s6 + $0x20] sm:$0xff]  }
  0x22   : > { %2707 = vmatpush3.bf16.msra.mxu1 %v2962_v8  ;;  %2733 = vmatpush3.bf16.msra.mxu0 %v2973_v32  ;;  %v904_v48 = vsel %vm887_vm7, %v895_v44, %v903_v45  ;;  %v913_v6 = vsel %vm887_vm7, %v903_v45, %v912_v2  ;;  %v1060_v8 = vsel %vm1048_vm8, %v1055_v4, %v1059_v5  ;;  %v3033_v44 = vld [vmem:[%s3510_s9 + $0x50] sm:$0xff]   ;;  %v2334_v45 = vld [vmem:[%s3505_s4] ss:$0 sm:$0xff]  ;;  %v3013_v4 = vld [vmem:[%s3507_s6 + $0x8] sm:$0xff]  }
  0x23   : > { %2708 = vmatprep.subr.bf16.mxu1 %v2963_v9  ;;  %2734 = vmatprep.subr.bf16.mxu0 %v2974_v37  ;;  %v1068_v22 = vsel %vm1048_vm8, %v1063_v19, %v1067_v20  ;;  %714 = vst [vmem:[#allocation3 + $0x14] sm:$0x1] %v713_v40  ;;  %v3024_v40 = vld [vmem:[%s3507_s6 + $0x90] sm:$0xff]  }
  0x26   : > { %2709 = vmatpush3.bf16.msra.mxu1 %v2963_v9  ;;  %2735 = vmatpush3.bf16.msra.mxu0 %v2974_v37  ;;  %v2990_v9 = vld [vmem:[%s3506_s5 + $0x90] sm:$0xff]  }
  0x27   : > { %2710 = vmatprep.subr.bf16.mxu1 %v2964_v10  ;;  %2740 = vmatprep.subr.bf16.mxu0 %v2978_v43  ;;  %v3005_v37 = vld [vmem:[%s3507_s6 + $0x70] sm:$0xff]  }
  0x29   : > { %2737 = vmatmul.mubr.bf16.vlgmr.msra.gmra.mrb[0].mxu0 %v2364_v46 }
  0x2a   : > { %2711 = vmatpush3.bf16.msra.mxu1 %v2964_v10  ;;  %2741 = vmatpush3.bf16.msra.mxu0 %v2978_v43  ;;  %v2991_v10 = vld [vmem:[%s3506_s5 + $0x98] sm:$0xff]   ;;  %v3032_v43 = vld [vmem:[%s3510_s9 + $0x48] sm:$0xff]  }
  0x2b   : > { %2712 = vmatprep.subr.bf16.mxu1 %v2965_v11  ;;  %2756 = vmatprep.mubr.bf16.mxu0 %v904_v48 }
  0x2c   : > { %2742 = vmatprep.subr.bf16.mxu0 %v2981_v47 }
  0x2e   : > { %2713 = vmatpush3.bf16.msra.mxu1 %v2965_v11  ;;  %2743 = vmatpush3.bf16.msra.mxu0 %v2981_v47  ;;  %v2992_v11 = vld [vmem:[%s3506_s5 + $0xa0] sm:$0xff]  }
  0x2f   : > { %2714 = vmatprep.subr.bf16.mxu1 %v2966_v12  ;;  %2744 = vmatprep.subr.bf16.mxu0 %v2982_v49 }
  0x32   : > { %2715 = vmatpush3.bf16.msra.mxu1 %v2966_v12  ;;  %2745 = vmatpush3.bf16.msra.mxu0 %v2982_v49  ;;  %v2993_v12 = vld [vmem:[%s3506_s5 + $0xa8] sm:$0xff]  }
  0x33   : > { %2746 = vmatprep.subr.bf16.mxu0 %v2983_v50  ;;  %2840 = vmatprep.subr.bf16.mxu1 %v3031_v42 }
  0x36   : > { %2747 = vmatpush3.bf16.msra.mxu0 %v2983_v50 }
  0x37   : > { %2748 = vmatprep.subr.bf16.mxu0 %v2984_v51 }
  0x3a   : > { %2749 = vmatpush3.bf16.msra.mxu0 %v2984_v51 }
  0x3b   : > { %2750 = vmatprep.subr.bf16.mxu0 %v2985_v53 }
  0x3e   : > { %2751 = vmatpush3.bf16.msra.mxu0 %v2985_v53 }
  0x3f   : > { %2752 = vmatprep.subr.bf16.mxu0 %v2986_v57 }
  0x42   : > { %2753 = vmatpush3.bf16.msra.mxu0 %v2986_v57  ;;  %v1172_v57 = vld [vmem:[#allocation3] sm:$0x8] }
  0x43   : > { %2754 = vmatprep.subr.bf16.mxu0 %v2987_v62 }
  0x46   : > { %2755 = vmatpush3.bf16.msra.mxu0 %v2987_v62 }
  0x47   : > { %2760 = vmatprep.subr.bf16.mxu0 %v2988_v3 }
  0x49   : > { %2757 = vmatmul.mubr.bf16.vlgmr.msra.gmra.mrb[0].mxu0 %v913_v6 }
  0x4a   : > { %2761 = vmatpush3.bf16.msra.mxu0 %v2988_v3  ;;  %2776 = vmatprep.mubr.bf16.mxu0 %v1060_v8 }
  0x4b   : > { %2762 = vmatprep.subr.bf16.mxu0 %v2989_v7 }
  0x4e   : > { %2763 = vmatpush3.bf16.msra.mxu0 %v2989_v7 }
  0x4f   : > { %2764 = vmatprep.subr.bf16.mxu0 %v2990_v9 }
  0x52   : > { %2765 = vmatpush3.bf16.msra.mxu0 %v2990_v9 }
  0x53   : > { %2766 = vmatprep.subr.bf16.mxu0 %v2991_v10 }
  0x56   : > { %2767 = vmatpush3.bf16.msra.mxu0 %v2991_v10 }
  0x57   : > { %2768 = vmatprep.subr.bf16.mxu0 %v2992_v11 }
  0x5a   : > { %2769 = vmatpush3.bf16.msra.mxu0 %v2992_v11  ;;  %v3014_v11 = vld [vmem:[%s3507_s6 + $0x10] sm:$0xff]  }
  0x5b   : > { %2770 = vmatprep.subr.bf16.mxu0 %v2993_v12 }
  0x5e   : > { %2771 = vmatpush3.bf16.msra.mxu0 %v2993_v12 }
  0x5f   : > { %2772 = vmatprep.subr.bf16.mxu0 %v2994_v14 }
  0x62   : > { %2773 = vmatpush3.bf16.msra.mxu0 %v2994_v14 }
  0x63   : > { %2774 = vmatprep.subr.bf16.mxu0 %v2995_v18 }
  0x66   : > { %2775 = vmatpush3.bf16.msra.mxu0 %v2995_v18  ;;  %v3017_v18 = vld [vmem:[%s3507_s6 + $0x28] sm:$0xff]  }
  0x67   : > { %2780 = vmatprep.subr.bf16.mxu0 %v2998_v21 }
  0x69   : > { %2777 = vmatmul.mubr.bf16.vlgmr.msra.gmra.mrb[0].mxu0 %v1068_v22 }
  0x6a   : > { %2781 = vmatpush3.bf16.msra.mxu0 %v2998_v21  ;;  %v3018_v21 = vld [vmem:[%s3507_s6 + $0x30] sm:$0xff]  }
  0x6b   : > { %2782 = vmatprep.subr.bf16.mxu0 %v3000_v24 }
  0x6e   : > { %2783 = vmatpush3.bf16.msra.mxu0 %v3000_v24 }
  0x6f   : > { %2784 = vmatprep.subr.bf16.mxu0 %v3001_v25 }
  0x72   : > { %2785 = vmatpush3.bf16.msra.mxu0 %v3001_v25 }
  0x73   : > { %2786 = vmatprep.subr.bf16.mxu0 %v3002_v26 }
  0x76   : > { %2787 = vmatpush3.bf16.msra.mxu0 %v3002_v26  ;;  %v3019_v26 = vld [vmem:[%s3507_s6 + $0x38] sm:$0xff]  }
  0x77   : > { %2788 = vmatprep.subr.bf16.mxu0 %v3003_v33 }
  0x7a   : > { %2789 = vmatpush3.bf16.msra.mxu0 %v3003_v33 }
  0x7b   : > { %2790 = vmatprep.subr.bf16.mxu0 %v3004_v34 }
  0x7e   : > { %2791 = vmatpush3.bf16.msra.mxu0 %v3004_v34 }
  0x7f   : > { %2792 = vmatprep.subr.bf16.mxu0 %v3005_v37 }
  0x82   : > { %2793 = vmatpush3.bf16.msra.mxu0 %v3005_v37  ;;  %v3023_v37 = vld [vmem:[%s3507_s6 + $0x88] sm:$0xff]  }
  0x83   : > { %2794 = vmatprep.subr.bf16.mxu0 %v3006_v38 }
  0x86   : > { %2795 = vmatpush3.bf16.msra.mxu0 %v3006_v38 }
  0x87   : > { %2800 = vmatprep.subr.bf16.mxu0 %v3010_v41 }
  0xe8   : > { %v2698_v27 = vpop.f32.mrb[0].mxu1 }
  0xe9   : > { %v552_v28 = vpop.f32.mrb[1].mxu1 }
  0xea   : > { %v2699_v29 = vpop.f32.mrb[2].mxu1 }
  0xeb   : > { %v568_v30 = vpack.c.bf16 %v2699_v29, %v2698_v27  ;;  %v555_v31 = vpop.f32.mrb[3].mxu1 }
  0xec   : > { %v567_v32 = vpack.c.bf16 %v555_v31, %v552_v28  ;;  %v3020_v31 = vld [vmem:[%s3507_s6 + $0x80] sm:$0xff]  }
  0xee   : > { %2716 = vmatprep.mubr.bf16.mxu1 %v567_v32 }
  0xef   : > { %2717 = vmatmul.mubr.bf16.vlgmr.msra.gmra.mrb[4].mxu1 %v568_v30 }
  0xf0   : > { %2841 = vmatpush3.bf16.msra.mxu1 %v3031_v42  ;;  %v3026_v42 = vld [vmem:[%s3507_s6 + $0xa0] sm:$0xff]  }
  0xf1   : > { %2842 = vmatprep.subr.bf16.mxu1 %v3032_v43 }
  0xf4   : > { %2843 = vmatpush3.bf16.msra.mxu1 %v3032_v43  ;;  %v3027_v43 = vld [vmem:[%s3507_s6 + $0xa8] sm:$0xff]  }
  0xf5   : > { %2844 = vmatprep.subr.bf16.mxu1 %v3033_v44 }
  0xf8   : > { %2845 = vmatpush3.bf16.msra.mxu1 %v3033_v44  ;;  %v3028_v44 = vld [vmem:[%s3507_s6 + $0xb0] sm:$0xff]  }
 0x1c2   : > { %v2718_v46 = vpop.f32.mrb[4].mxu1 }
 0x1c3   : > { %v674_v47 = vpop.f32.mrb[5].mxu1  ;;  %v683_v52 = vadd.f32 %v2718_v46, %v2334_v45  ;;  %v3029_v46 = vld [vmem:[%s3507_s6 + $0xb8] sm:$0xff]  }
 0x1c4   : > { %v675_v48 = vadd.f32 %v2334_v45, %v674_v47  ;;  %v2719_v49 = vpop.f32.mrb[6].mxu1 }
 0x1c5   : > { %v686_v50 = vadd.f32 %v2719_v49, %v2334_v45  ;;  %v677_v51 = vpop.f32.mrb[7].mxu1 }
 0x1c6   : > { %v2561_v53 = vpack.c.bf16 %v675_v48, %v675_v48  ;;  %v678_v54 = vadd.f32 %v2334_v45, %v677_v51  ;;  %v3030_v45 = vld [vmem:[#allocation3 + $0x14] ss:$0 sps:$4 sm:$0x11]  }
 0x1c7   : > { %v2564_v55 = vpack.c.bf16 %v686_v50, %v686_v50  ;;  %v1500_v47 = vshll.u32 %v3030_v45, 16 }
 0x1c8   : > { %731 = vst [vmem:[#allocation3 + $0x4] sm:$0xf] %v2561_v53  ;;  %v2572_v56 = vpack.c.bf16 %v683_v52, %v678_v54  ;;  %v3034_v52 = vld [vmem:[%s3510_s9 + $0x58] sm:$0xff]   ;;  %v3035_v53 = vld [vmem:[%s3510_s9 + $0x60] sm:$0xff]   ;;  %v3036_v54 = vld [vmem:[%s3510_s9 + $0x68] sm:$0xff]  }
 0x1c9   : > { %734 = vst [vmem:[#allocation3 + $0x10] sm:$0xf] %v2564_v55  ;;  %v1502_v50 = vrot.slane %v1500_v47, 1  ;;  %2846 = vmatprep.subr.bf16.mxu1 %v3034_v52  ;;  %v1637_v55 = vld [vmem:[#allocation4] sm:$0x8] }
 0x1ca   : > { %2579 = vst [vmem:[#allocation3 + $0x8] sm:$0xff] %v2572_v56   ;;  %2847 = vmatpush3.bf16.msra.mxu1 %v3034_v52  ;;  %v3037_v56 = vld [vmem:[%s3510_s9 + $0x70] sm:$0xff]  }
 0x1cb   : > { %2848 = vmatprep.subr.bf16.mxu1 %v3035_v53 }
 0x1ce   : > { %2849 = vmatpush3.bf16.msra.mxu1 %v3035_v53 }
 0x1cf   : > { %v1173_v58 = vld [vmem:[#allocation3 + $0x4] sm:$0xf]  ;;  %2850 = vmatprep.subr.bf16.mxu1 %v3036_v54 }
 0x1d0   : > { %v2437_v59 = vcombine.low %v1172_v57, %v1173_v58  ;;  %v1176_v60 = vld [vmem:[#allocation3 + $0x10] sm:$0xf]  ;;  %v1638_v57 = vsel %vm3210_vm3, 0, %v1637_v55  ;;  %v3052_v55 = vld [vmem:[%s3510_s9 + $0x80] sm:$0xff]  }
 0x1d1   : > { %v1174_v61 = vld [vmem:[#allocation3 + $0x8] sm:$0xf]  ;;  %v1175_v62 = vld [vmem:[#allocation3 + $0xc] sm:$0xf]  ;;  %v2439_v19 = vcombine.low %v1176_v60, %v1176_v60  ;;  %1639 = vst [vmem:[#allocation4] sm:$0x8] %v1638_v57 }
 0x1d2   : > { %v2427_v63 = vcombine.low %v1173_v58, %v1174_v61  ;;  %v2438_v0 = vcombine.low %v1174_v61, %v1175_v62  ;;  %v1325_v1 = vshrl.u32 %v2437_v59, 16  ;;  %v1328_v2 = vshll.u32 %v2437_v59, 16  ;;  %v3021_v20 = vld [vmem:[#allocation3 + $0x4] sm:$0xff]   ;;  %v3022_v27 = vld [vmem:[#allocation3 + $0xc] sm:$0xff]   ;;  %2851 = vmatpush3.bf16.msra.mxu1 %v3036_v54 }
 0x1d3   : > { %v2428_v3 = vcombine.low %v1175_v62, %v1176_v60  ;;  %v1342_v22 = vshrl.u32 %v2439_v19, 16  ;;  %v1345_v24 = vshll.u32 %v2439_v19, 16  ;;  %v1487_v25 = vshll.u32 %v3021_v20, 16  ;;  %2852 = vmatprep.subr.bf16.mxu1 %v3037_v56  ;;  %v3038_v58 = vld [vmem:[%s3510_s9 + $0x78] sm:$0xff]   ;;  %v1640_v59 = vld [vmem:[#allocation4 + $0x14] sm:$0x1] }
 0x1d4   : > { %2796 = vmatprep.mubr.bf16.mxu0 %v2427_v63  ;;  %v1333_v5 = vshrl.u32 %v2438_v0, 16  ;;  %v1336_v6 = vshll.u32 %v2438_v0, 16  ;;  %v1327_v7 = vrot.slane %v1325_v1, 3  ;;  %v1330_v8 = vrot.slane %v1328_v2, 4  ;;  %v2475_v61 = vld [vmem:[%s3508_s7] ss:$0 sm:$0xff] }
 0x1d5   : > { %2797 = vmatmul.mubr.bf16.vlgmr.msra.gmra.mrb[0].mxu0 %v2428_v3  ;;  %v1344_v28 = vrot.slane %v1342_v22, 3  ;;  %v1347_v29 = vrot.slane %v1345_v24, 4  ;;  %v1489_v30 = vrot.slane %v1487_v25, 1  ;;  %v1485_v32 = vshrl.u32 %v3021_v20, 16 }
 0x1d6   : > { %2801 = vmatpush3.bf16.msra.mxu0 %v3010_v41  ;;  %v1335_v9 = vrot.slane %v1333_v5, 3  ;;  %v1338_v10 = vrot.slane %v1336_v6, 4  ;;  %v1331_v12 = vor.u32 %v1330_v8, %v1327_v7  ;;  %v1492_v33 = vshll.u32 %v3022_v27, 16  ;;  %v3025_v41 = vld [vmem:[%s3507_s6 + $0x98] sm:$0xff]   ;;  %2853 = vmatpush3.bf16.msra.mxu1 %v3037_v56 }
 0x1d7   : > { %2802 = vmatprep.subr.bf16.mxu0 %v3013_v4  ;;  %v1348_v34 = vor.u32 %v1347_v29, %v1344_v28  ;;  %v1490_v35 = vor.u32 %v1489_v30, %v1485_v32  ;;  %v1496_v48 = vshrl.u32 %v3022_v27, 16  ;;  %v1641_v60 = vsel %vm3222_vm6, 0, %v1640_v59  ;;  %2854 = vmatprep.subr.bf16.mxu1 %v3038_v58  ;;  %v3045_v30 = vld [vmem:[%s3510_s9 + $0x8] sm:$0xff]  }
 0x1d8   : > { %v1339_v13 = vor.u32 %v1338_v10, %v1335_v9  ;;  %v1494_v36 = vrot.slane %v1492_v33, 1  ;;  %1642 = vst [vmem:[#allocation4 + $0x14] sm:$0x1] %v1641_v60 }
 0x1da   : > { %2803 = vmatpush3.bf16.msra.mxu0 %v3013_v4  ;;  %v1340_v14 = vsel %vm887_vm7, %v1331_v12, %v1339_v13  ;;  %v1349_v38 = vsel %vm887_vm7, %v1339_v13, %v1348_v34  ;;  %v1495_v39 = vsel %vm1048_vm8, %v1490_v35, %v1494_v36  ;;  %v1498_v49 = vor.u32 %v1496_v48, %v1494_v36 }
 0x1db   : > { %2816 = vmatprep.mubr.bf16.mxu0 %v1340_v14  ;;  %2804 = vmatprep.subr.bf16.mxu0 %v3014_v11 }
 0x1dc   : > { %v1503_v51 = vsel %vm1048_vm8, %v1498_v49, %v1502_v50  ;;  %2855 = vmatpush3.bf16.msra.mxu1 %v3038_v58  ;;  %v3051_v50 = vld [vmem:[%s3510_s9 + $0x38] sm:$0xff]  }
 0x1dd   : > { %2860 = vmatprep.subr.bf16.mxu1 %v3042_v15 }
 0x1de   : > { %2805 = vmatpush3.bf16.msra.mxu0 %v3014_v11 }
 0x1df   : > { %2806 = vmatprep.subr.bf16.mxu0 %v3015_v16 }
 0x1e2   : > { %2807 = vmatpush3.bf16.msra.mxu0 %v3015_v16 }
 0x1e3   : > { %2808 = vmatprep.subr.bf16.mxu0 %v3016_v17 }
 0x1e6   : > { %2809 = vmatpush3.bf16.msra.mxu0 %v3016_v17 }
 0x1e7   : > { %2810 = vmatprep.subr.bf16.mxu0 %v3017_v18 }
 0x1ea   : > { %2811 = vmatpush3.bf16.msra.mxu0 %v3017_v18  ;;  %v1663_v18 = vld [vmem:[#allocation4] sm:$0x8] }
 0x1eb   : > { %2812 = vmatprep.subr.bf16.mxu0 %v3018_v21 }
 0x1ee   : > { %2813 = vmatpush3.bf16.msra.mxu0 %v3018_v21 }
 0x1ef   : > { %2814 = vmatprep.subr.bf16.mxu0 %v3019_v26 }
 0x1f2   : > { %2815 = vmatpush3.bf16.msra.mxu0 %v3019_v26 }
 0x1f3   : > { %2820 = vmatprep.subr.bf16.mxu0 %v3020_v31 }
 0x1f5   : > { %2817 = vmatmul.mubr.bf16.vlgmr.msra.gmra.mrb[0].mxu0 %v1349_v38 }
 0x1f6   : > { %2821 = vmatpush3.bf16.msra.mxu0 %v3020_v31  ;;  %2836 = vmatprep.mubr.bf16.mxu0 %v1495_v39 }
 0x1f7   : > { %2822 = vmatprep.subr.bf16.mxu0 %v3023_v37 }
 0x1fa   : > { %2823 = vmatpush3.bf16.msra.mxu0 %v3023_v37  ;;  %v3046_v37 = vld [vmem:[%s3510_s9 + $0x10] sm:$0xff]  }
 0x1fb   : > { %2824 = vmatprep.subr.bf16.mxu0 %v3024_v40 }
 0x1fe   : > { %2825 = vmatpush3.bf16.msra.mxu0 %v3024_v40 }
 0x1ff   : > { %2826 = vmatprep.subr.bf16.mxu0 %v3025_v41 }
 0x202   : > { %2827 = vmatpush3.bf16.msra.mxu0 %v3025_v41  ;;  %v3047_v41 = vld [vmem:[%s3510_s9 + $0x18] sm:$0xff]  }
 0x203   : > { %2828 = vmatprep.subr.bf16.mxu0 %v3026_v42 }
 0x206   : > { %2829 = vmatpush3.bf16.msra.mxu0 %v3026_v42  ;;  %v3048_v42 = vld [vmem:[%s3510_s9 + $0x20] sm:$0xff]  }
 0x207   : > { %2830 = vmatprep.subr.bf16.mxu0 %v3027_v43 }
 0x20a   : > { %2831 = vmatpush3.bf16.msra.mxu0 %v3027_v43  ;;  %v3049_v43 = vld [vmem:[%s3510_s9 + $0x28] sm:$0xff]  }
 0x20b   : > { %2832 = vmatprep.subr.bf16.mxu0 %v3028_v44 }
 0x20e   : > { %2833 = vmatpush3.bf16.msra.mxu0 %v3028_v44 }
 0x20f   : > { %2834 = vmatprep.subr.bf16.mxu0 %v3029_v46 }
 0x212   : > { %2835 = vmatpush3.bf16.msra.mxu0 %v3029_v46  ;;  %v3050_v46 = vld [vmem:[%s3510_s9 + $0x30] sm:$0xff]  }
 0x215   : > { %2837 = vmatmul.mubr.bf16.vlgmr.msra.gmra.mrb[0].mxu0 %v1503_v51 }
 0x2e8   : > { %v2838_v62 = vpop.f32.mrb[0].mxu0 }
 0x2e9   : > { %v1620_v63 = vmul.f32 %v2838_v62, %v2475_v61  ;;  %v1588_v0 = vpop.f32.mrb[1].mxu0 }
 0x2ea   : > { %v1618_v1 = vmul.f32 %v2475_v61, %v1588_v0  ;;  %v2839_v2 = vpop.f32.mrb[2].mxu0  ;;  %v3058_v0 = vld [vmem:[%s3510_s9 + $0xa0] sm:$0xff]  }
 0x2eb   : > { %v1621_v3 = vmul.f32 %v2839_v2, %v2475_v61  ;;  %v1591_v4 = vpop.f32.mrb[3].mxu0  ;;  %v1631_v5 = vadd.f32 %v2476_v23, %v1620_v63  ;;  %v3056_v63 = vld [vmem:[%s3510_s9 + $0x90] sm:$0xff]  }
 0x2ec   : > { %v1629_v6 = vadd.f32 %v2476_v23, %v1618_v1  ;;  %v1619_v7 = vmul.f32 %v2475_v61, %v1591_v4  ;;  %v3059_v1 = vld [vmem:[%s3510_s9 + $0xa8] sm:$0xff]   ;;  %v3060_v2 = vld [vmem:[%s3510_s9 + $0xb0] sm:$0xff]   ;;  %v3061_v4 = vld [vmem:[%s3510_s9 + $0xb8] sm:$0xff]  }
 0x2ed   : > { %v1632_v8 = vadd.f32 %v2476_v23, %v1621_v3  ;;  %v1635_v12 = vmax.f32 %v1631_v5, 0.0  ;;  %v3062_v3 = vld [vmem:[#allocation4 + $0x14] ss:$0 sps:$4 sm:$0x11]  }
 0x2ee   : > { %v1633_v9 = vmax.f32 %v1629_v6, 0.0  ;;  %v1630_v10 = vadd.f32 %v2476_v23, %v1619_v7  ;;  %v3057_v23 = vld [vmem:[%s3510_s9 + $0x98] sm:$0xff]   ;;  %v1991_v5 = vshll.u32 %v3062_v3, 16  ;;  %v3063_v7 = vld [vmem:[%s3513_s12] sm:$0xff]  }
 0x2ef   : > { %v1636_v11 = vmax.f32 %v1632_v8, 0.0 }
 0x2f0   : > { %v2565_v13 = vpack.c.bf16 %v1633_v9, %v1633_v9  ;;  %v1634_v14 = vmax.f32 %v1630_v10, 0.0  ;;  %v1993_v9 = vrot.slane %v1991_v5, 1  ;;  %v3064_v10 = vld [vmem:[%s3513_s12 + $0x8] sm:$0xff]  }
 0x2f1   : > { %v2568_v16 = vpack.c.bf16 %v1636_v11, %v1636_v11 }
 0x2f2   : > { %1659 = vst [vmem:[#allocation4 + $0x4] sm:$0xf] %v2565_v13  ;;  %v2577_v17 = vpack.c.bf16 %v1635_v12, %v1634_v14  ;;  %v3065_v12 = vld [vmem:[%s3513_s12 + $0x10] sm:$0xff]   ;;  %v3066_v13 = vld [vmem:[%s3513_s12 + $0x18] sm:$0xff]   ;;  %v3067_v14 = vld [vmem:[%s3513_s12 + $0x20] sm:$0xff]  }
 0x2f3   : > { %1662 = vst [vmem:[#allocation4 + $0x10] sm:$0xf] %v2568_v16  ;;  %v3068_v16 = vld [vmem:[%s3513_s12 + $0x28] sm:$0xff]  }
 0x2f4   : > { %2580 = vst [vmem:[#allocation4 + $0x8] sm:$0xff] %v2577_v17   ;;  %v3069_v17 = vld [vmem:[%s3513_s12 + $0x30] sm:$0xff]  }
 0x2f9   : > { %v1664_v19 = vld [vmem:[#allocation4 + $0x4] sm:$0xf] }
 0x2fa   : > { %v2507_v20 = vcombine.low %v1663_v18, %v1664_v19  ;;  %v1667_v21 = vld [vmem:[#allocation4 + $0x10] sm:$0xf]  ;;  %v3070_v18 = vld [vmem:[%s3513_s12 + $0x38] sm:$0xff]  }
 0x2fb   : > { %v1665_v22 = vld [vmem:[#allocation4 + $0x8] sm:$0xf]  ;;  %v1666_v24 = vld [vmem:[#allocation4 + $0xc] sm:$0xf]  ;;  %v2509_v44 = vcombine.low %v1667_v21, %v1667_v21 }
 0x2fc   : > { %v2497_v25 = vcombine.low %v1664_v19, %v1665_v22  ;;  %v2508_v26 = vcombine.low %v1665_v22, %v1666_v24  ;;  %v1816_v27 = vshrl.u32 %v2507_v20, 16  ;;  %v1819_v28 = vshll.u32 %v2507_v20, 16  ;;  %v3053_v45 = vld [vmem:[#allocation4 + $0x4] sm:$0xff]   ;;  %v3054_v51 = vld [vmem:[#allocation4 + $0xc] sm:$0xff]  }
 0x2fd   : > { %v2498_v29 = vcombine.low %v1666_v24, %v1667_v21  ;;  %v1833_v47 = vshrl.u32 %v2509_v44, 16  ;;  %v1836_v48 = vshll.u32 %v2509_v44, 16  ;;  %v1978_v49 = vshll.u32 %v3053_v45, 16  ;;  %v2545_v19 = vld [vmem:[%s3511_s10] ss:$0 sm:$0xff] }
 0x2fe   : > { %2856 = vmatprep.mubr.bf16.mxu1 %v2497_v25  ;;  %v1824_v31 = vshrl.u32 %v2508_v26, 16  ;;  %v1827_v32 = vshll.u32 %v2508_v26, 16  ;;  %v1818_v33 = vrot.slane %v1816_v27, 3  ;;  %v1821_v34 = vrot.slane %v1819_v28, 4  ;;  %v2546_v21 = vld [vmem:[%s3512_s11] ss:$0 sm:$0xff] }
 0x2ff   : > { %2857 = vmatmul.mubr.bf16.vlgmr.msra.gmra.mrb[8].mxu1 %v2498_v29  ;;  %v1835_v52 = vrot.slane %v1833_v47, 3  ;;  %v1838_v53 = vrot.slane %v1836_v48, 4  ;;  %v1980_v54 = vrot.slane %v1978_v49, 1  ;;  %v1976_v56 = vshrl.u32 %v3053_v45, 16 }
 0x300   : > { %2861 = vmatpush3.bf16.msra.mxu1 %v3042_v15  ;;  %v1826_v35 = vrot.slane %v1824_v31, 3  ;;  %v1829_v36 = vrot.slane %v1827_v32, 4  ;;  %v1822_v38 = vor.u32 %v1821_v34, %v1818_v33  ;;  %v1983_v57 = vshll.u32 %v3054_v51, 16  ;;  %v3055_v15 = vld [vmem:[%s3510_s9 + $0x88] sm:$0xff]  }
 0x301   : > { %2862 = vmatprep.subr.bf16.mxu1 %v3045_v30  ;;  %v1839_v58 = vor.u32 %v1838_v53, %v1835_v52  ;;  %v1981_v59 = vor.u32 %v1980_v54, %v1976_v56  ;;  %v1987_v6 = vshrl.u32 %v3054_v51, 16 }
 0x302   : > { %v1830_v39 = vor.u32 %v1829_v36, %v1826_v35  ;;  %v1985_v60 = vrot.slane %v1983_v57, 1 }
 0x304   : > { %2863 = vmatpush3.bf16.msra.mxu1 %v3045_v30  ;;  %v1831_v40 = vsel %vm887_vm7, %v1822_v38, %v1830_v39  ;;  %v1840_v61 = vsel %vm887_vm7, %v1830_v39, %v1839_v58  ;;  %v1986_v62 = vsel %vm1048_vm8, %v1981_v59, %v1985_v60  ;;  %v1989_v8 = vor.u32 %v1987_v6, %v1985_v60 }
 0x305   : > { %2876 = vmatprep.mubr.bf16.mxu1 %v1831_v40  ;;  %2864 = vmatprep.subr.bf16.mxu1 %v3046_v37  ;;  %v2547_v40 = vld [vmem:[%s3514_s13] ss:$0 sm:$0xff] }
 0x306   : > { %v1994_v11 = vsel %vm1048_vm8, %v1989_v8, %v1993_v9 }
 0x308   : > { %2865 = vmatpush3.bf16.msra.mxu1 %v3046_v37 }
 0x309   : > { %2866 = vmatprep.subr.bf16.mxu1 %v3047_v41 }
 0x30c   : > { %2867 = vmatpush3.bf16.msra.mxu1 %v3047_v41 }
 0x30d   : > { %2868 = vmatprep.subr.bf16.mxu1 %v3048_v42 }
 0x310   : > { %2869 = vmatpush3.bf16.msra.mxu1 %v3048_v42 }
 0x311   : > { %2870 = vmatprep.subr.bf16.mxu1 %v3049_v43 }
 0x314   : > { %2871 = vmatpush3.bf16.msra.mxu1 %v3049_v43 }
 0x315   : > { %2872 = vmatprep.subr.bf16.mxu1 %v3050_v46 }
 0x318   : > { %2873 = vmatpush3.bf16.msra.mxu1 %v3050_v46 }
 0x319   : > { %2874 = vmatprep.subr.bf16.mxu1 %v3051_v50 }
 0x31c   : > { %2875 = vmatpush3.bf16.msra.mxu1 %v3051_v50 }
 0x31d   : > { %2880 = vmatprep.subr.bf16.mxu1 %v3052_v55 }
 0x31f   : > { %2877 = vmatmul.mubr.bf16.vlgmr.msra.gmra.mrb[8].mxu1 %v1840_v61 }
 0x320   : > { %2881 = vmatpush3.bf16.msra.mxu1 %v3052_v55  ;;  %2896 = vmatprep.mubr.bf16.mxu1 %v1986_v62 }
 0x321   : > { %2882 = vmatprep.subr.bf16.mxu1 %v3055_v15 }
 0x324   : > { %2883 = vmatpush3.bf16.msra.mxu1 %v3055_v15 }
 0x325   : > { %2884 = vmatprep.subr.bf16.mxu1 %v3056_v63 }
 0x328   : > { %2885 = vmatpush3.bf16.msra.mxu1 %v3056_v63 }
 0x329   : > { %2886 = vmatprep.subr.bf16.mxu1 %v3057_v23 }
 0x32c   : > { %2887 = vmatpush3.bf16.msra.mxu1 %v3057_v23 }
 0x32d   : > { %2888 = vmatprep.subr.bf16.mxu1 %v3058_v0 }
 0x330   : > { %2889 = vmatpush3.bf16.msra.mxu1 %v3058_v0 }
 0x331   : > { %2890 = vmatprep.subr.bf16.mxu1 %v3059_v1 }
 0x334   : > { %2891 = vmatpush3.bf16.msra.mxu1 %v3059_v1 }
 0x335   : > { %2892 = vmatprep.subr.bf16.mxu1 %v3060_v2 }
 0x338   : > { %2893 = vmatpush3.bf16.msra.mxu1 %v3060_v2 }
 0x339   : > { %2894 = vmatprep.subr.bf16.mxu1 %v3061_v4 }
 0x33c   : > { %2895 = vmatpush3.bf16.msra.mxu1 %v3061_v4 }
 0x33d   : > { %2900 = vmatprep.subr.bf16.mxu1 %v3063_v7 }
 0x33f   : > { %2897 = vmatmul.mubr.bf16.vlgmr.msra.gmra.mrb[8].mxu1 %v1994_v11 }
 0x340   : > { %2901 = vmatpush3.bf16.msra.mxu1 %v3063_v7 }
 0x341   : > { %2902 = vmatprep.subr.bf16.mxu1 %v3064_v10 }
 0x344   : > { %2903 = vmatpush3.bf16.msra.mxu1 %v3064_v10 }
 0x345   : > { %2904 = vmatprep.subr.bf16.mxu1 %v3065_v12 }
 0x348   : > { %2905 = vmatpush3.bf16.msra.mxu1 %v3065_v12 }
 0x349   : > { %2906 = vmatprep.subr.bf16.mxu1 %v3066_v13 }
 0x34c   : > { %2907 = vmatpush3.bf16.msra.mxu1 %v3066_v13 }
 0x34d   : > { %2908 = vmatprep.subr.bf16.mxu1 %v3067_v14 }
 0x350   : > { %2909 = vmatpush3.bf16.msra.mxu1 %v3067_v14 }
 0x351   : > { %2910 = vmatprep.subr.bf16.mxu1 %v3068_v16 }
 0x354   : > { %2911 = vmatpush3.bf16.msra.mxu1 %v3068_v16 }
 0x355   : > { %2912 = vmatprep.subr.bf16.mxu1 %v3069_v17 }
 0x358   : > { %2913 = vmatpush3.bf16.msra.mxu1 %v3069_v17 }
 0x359   : > { %2914 = vmatprep.subr.bf16.mxu1 %v3070_v18 }
 0x35c   : > { %2915 = vmatpush3.bf16.msra.mxu1 %v3070_v18 }
 0x412   : > { %v2898_v20 = vpop.f32.mrb[8].mxu1 }
 0x413   : > { %v2107_v22 = vmul.f32 %v2898_v20, %v2545_v19  ;;  %v2079_v24 = vpop.f32.mrb[9].mxu1 }
 0x414   : > { %v2105_v25 = vmul.f32 %v2545_v19, %v2079_v24  ;;  %v2899_v26 = vpop.f32.mrb[10].mxu1 }
 0x415   : > { %v2118_v27 = vadd.f32 %v2546_v21, %v2107_v22  ;;  %v2108_v28 = vmul.f32 %v2899_v26, %v2545_v19  ;;  %v2082_v29 = vpop.f32.mrb[11].mxu1 }
 0x416   : > { %v2116_v30 = vadd.f32 %v2546_v21, %v2105_v25  ;;  %v2106_v31 = vmul.f32 %v2545_v19, %v2082_v29 }
 0x417   : > { %v2119_v32 = vadd.f32 %v2546_v21, %v2108_v28  ;;  %v2122_v34 = vmax.f32 %v2118_v27, 0.0 }
 0x418   : > { %v2117_v33 = vadd.f32 %v2546_v21, %v2106_v31  ;;  %v2120_v36 = vmax.f32 %v2116_v30, 0.0 }
 0x419   : > { %v2123_v35 = vmax.f32 %v2119_v32, 0.0 }
 0x41a   : > { %v2121_v37 = vmax.f32 %v2117_v33, 0.0 }
 0x41b   : > { %v2125_v38 = vpack.c.bf16 %v2123_v35, %v2122_v34 }
 0x41c   : > { %v2124_v39 = vpack.c.bf16 %v2121_v37, %v2120_v36 }
 0x41e   : > { %2916 = vmatprep.mubr.bf16.mxu1 %v2124_v39 }
 0x41f   : > { %2917 = vmatmul.mubr.bf16.vlgmr.msra.gmra.mrb[12].mxu1 %v2125_v38 }
 0x4f2   : > { %v2918_v41 = vpop.f32.mrb[12].mxu1 }
 0x4f3   : > { %v2240_v42 = vadd.f32 %v2918_v41, %v2547_v40  ;;  %v2231_v43 = vpop.f32.mrb[13].mxu1 }
 0x4f4   : > { %v2232_v44 = vadd.f32 %v2547_v40, %v2231_v43  ;;  %v2919_v45 = vpop.f32.mrb[14].mxu1 }
 0x4f5   : > { %2249 = vst.msk [vmem:[%s487_s22 + $0x10] sm:$0xff] %vm2246_vm9, %v2240_v42  ;;  %v2243_v46 = vadd.f32 %v2919_v45, %v2547_v40  ;;  %v2234_v47 = vpop.f32.mrb[15].mxu1 }
 0x4f6   : > { %2247 = vst.msk [vmem:[%s487_s22] sm:$0xff] %vm2246_vm9, %v2232_v44  ;;  %v2235_v48 = vadd.f32 %v2547_v40, %v2234_v47 }
 0x4f7   : > { %2250 = vst.msk [vmem:[%s487_s22 + $0x18] sm:$0xff] %vm2246_vm9, %v2243_v46 }
 0x4f8   : > { %2248 = vst.msk [vmem:[%s487_s22 + $0x8] sm:$0xff] %vm2246_vm9, %v2235_v48 }
 0x4f9 PF: > { %s24_s29 = sadd.s32 1, %s3077_s29  }
 0x4fa   : > { %p21_p4 = scmp.ge.s32.totalorder %s24_s29, 4  }
 0x4fc   :  { %23 = sbr.rel (!%p21_p4) target bundleno = 1 (0x1), region = 115 }

</bundles_post_ra>
